<compile_context>
chip_gen: v7x
topology: tpu7x:2x2x1
jax: 0.10.0
libtpu: 0.0.40
codegen_flags: <defaults>
</compile_context>

<pallas_src>
import math

import jax
import jax.numpy as jnp
from jax.experimental import pallas as pl
from jax.experimental.pallas import tpu as pltpu

# ----------------------------- model configuration (small) -----------------------------
IN_CH = 16           # conf.in_channels
OUT_CH = 16          # conf.out_channels
MODEL_CH = 32        # conf.model_channels
EMBED_CH = 32        # conf.embed_channels
TIME_EMB_CH = 32     # conf.time_embed_channels
HIDDEN = 32          # conf.hidden_dim   (encoder)
LATENT = 32          # conf.latent_dim   (encoder output == cond dim)
NUM_LAYERS = 2       # conf.num_layers   (encoder hidden layers)
CHANNEL_MULT = (1, 2)

CH0 = MODEL_CH * CHANNEL_MULT[0]     # 32
CH1 = MODEL_CH * CHANNEL_MULT[1]     # 64
SLAB_W = 128                         # lane width of every packed slab and of the packed output
WROW_ALIGN = 16                      # bf16 sublane tile: keep weight-block row offsets 16-aligned


# ----------------------------- initializers & packing ------------------------------------
def linear_init(key, fan_in, fan_out):
    kw, kb = jax.random.split(key)
    bound = 1.0 / math.sqrt(fan_in)
    return (jax.random.uniform(kw, (fan_in, fan_out), jnp.float32, -bound, bound),
            jax.random.uniform(kb, (fan_out,), jnp.float32, -bound, bound))


def gn_init(key, c):
    kg, kb = jax.random.split(key)
    return (1.0 + 0.1 * jax.random.normal(kg, (c,), jnp.float32),
            0.1 * jax.random.normal(kb, (c,), jnp.float32))


def group_matrix(c):
    """Within-group averaging matrix for GroupNorm(min(32,c), c) on [B, c] activations."""
    groups = min(32, c)
    gs = c // groups
    gid = jnp.arange(c) // gs
    return (gid[:, None] == gid[None, :]).astype(jnp.float32) / gs


class Packer:
    """bf16 weight slab [Rw,128], f32 vector slab [Rv,128], f32 GN-matrix slab [Rg,128]."""

    def __init__(self):
        self.w_blocks, self.widx, self.w_off = [], {}, 0
        self.v_rows, self.vidx = [], {}
        self.g_blocks, self.gidx, self.g_off = [], {}, 0

    def add_w(self, name, w):
        fi, fo = w.shape
        rows = -(-fi // WROW_ALIGN) * WROW_ALIGN
        blk = jnp.zeros((rows, SLAB_W), jnp.bfloat16).at[:fi, :fo].set(w.astype(jnp.bfloat16))
        self.w_blocks.append(blk)
        self.widx[name] = (self.w_off, fi, fo)
        self.w_off += rows

    def add_v(self, name, v):
        v = jnp.reshape(jnp.asarray(v, jnp.float32), (-1,))
        n = v.shape[0]
        self.vidx[name] = (len(self.v_rows), n)
        self.v_rows.append(jnp.zeros((1, SLAB_W), jnp.float32).at[0, :n].set(v))

    def add_g(self, c):
        gm = group_matrix(c)
        rows = -(-c // 8) * 8
        blk = jnp.zeros((rows, SLAB_W), jnp.float32).at[:c, :c].set(gm)
        self.g_blocks.append(blk)
        self.gidx[c] = self.g_off
        self.g_off += rows

    def finish(self):
        return (jnp.concatenate(self.w_blocks, 0), jnp.concatenate(self.v_rows, 0),
                jnp.concatenate(self.g_blocks, 0), self.widx, self.vidx, self.gidx)


def build_params(key):
    p = Packer()
    keys = iter(jax.random.split(key, 128))

    def fold_chain(beta, w, b):
        # Exact value of Linear(SiLU(GroupNorm_{group_size=1}(x))) on 2-D activations:
        # GN output == beta, so the whole chain is a pack-time constant (bf16-rounded like the MXU).
        a = (beta * jax.nn.sigmoid(beta)).astype(jnp.bfloat16).astype(jnp.float32)
        wq = w.astype(jnp.bfloat16).astype(jnp.float32)
        return jnp.dot(a, wq, preferred_element_type=jnp.float32) + b

    def add_linear(name, fi, fo):
        w, b = linear_init(next(keys), fi, fo)
        p.add_w(name + "/w", w)
        p.add_v(name + "/b", b)

    def add_gn(gname, bname, c):
        g, b = gn_init(next(keys), c)
        if c > 32:                       # group-size-1 GN never reads gamma (output == beta)
            p.add_v(gname, g)
        p.add_v(bname, b)
        return g, b

    def add_resblock(name, cin, cout):
        _, be_in = add_gn(name + "/g_in", name + "/be_in", cin)
        w_in, b_in = linear_init(next(keys), cin, cout)
        p.add_w(name + "/w_in", w_in); p.add_v(name + "/b_in", b_in)
        w_emb, b_emb = linear_init(next(keys), EMBED_CH, cout)
        w_cond, b_cond = linear_init(next(keys), LATENT, cout)
        p.add_w(name + "/w_ec", jnp.concatenate([w_emb, w_cond], 0))   # fused emb/cond projection
        p.add_v(name + "/b_emb", b_emb); p.add_v(name + "/b_cond", b_cond)
        _, be_out = add_gn(name + "/g_out", name + "/be_out", cout)
        w_out, b_out = linear_init(next(keys), cout, cout)
        p.add_w(name + "/w_out", w_out); p.add_v(name + "/b_out", b_out)
        if cin != cout:                                                # identity skip otherwise
            w_sk, b_sk = linear_init(next(keys), cin, cout)
            p.add_w(name + "/w_skip", w_sk); p.add_v(name + "/b_skip", b_sk)
        # constant-folded degenerate GN->SiLU->Linear chains (group size 1 <=> C <= 32)
        if cin <= 32:
            p.add_v(name + "/c_in", fold_chain(be_in, w_in, b_in))
        if cout <= 32:
            p.add_v(name + "/c_out", fold_chain(be_out, w_out, b_out))

    def add_attn(name, c):
        add_gn(name + "/g", name + "/be", c)
        wq, bq = linear_init(next(keys), c, 3 * c)     # qkv projection; only v is ever used (L=1)
        p.add_w(name + "/w_v", wq[:, 2 * c:]); p.add_v(name + "/b_v", bq[2 * c:])
        w, b = linear_init(next(keys), c, c)
        p.add_w(name + "/w_proj", w); p.add_v(name + "/b_proj", b)

    # TimeStyleSeperateEmbed.time_embed + EncoderModel
    add_linear("time1", TIME_EMB_CH, EMBED_CH)
    add_linear("time2", EMBED_CH, EMBED_CH)
    d = IN_CH
    for i in range(NUM_LAYERS):
        add_linear("enc%d" % i, d, HIDDEN)
        d = HIDDEN
    add_linear("enc_out", HIDDEN, LATENT)

    # UNet trunk
    add_linear("ib0", IN_CH, CH0)
    add_resblock("ib1", CH0, CH0)
    add_linear("ib2", CH0, CH0)
    add_resblock("ib3", CH0, CH1)

    add_resblock("mb_res1", CH1, CH1)
    add_linear("mb_lin1", CH1, CH1)
    add_attn("mb_attn", CH1)
    add_linear("mb_lin2", CH1, CH1)
    add_resblock("mb_res2", CH1, CH1)

    add_resblock("ob0", CH1 + CH1, CH1)      # 128 -> 64
    add_resblock("ob1", CH1 + CH0, CH1)      # 96  -> 64
    add_linear("ob1_lin", CH1, CH1)
    add_resblock("ob2", CH1 + CH0, CH0)      # 96  -> 32
    add_resblock("ob3", CH0 + CH0, CH0)      # 64  -> 32

    # out head: GroupNorm(32,32) on [B,32] -> SiLU -> Linear folds to one constant row
    _, be = add_gn("out/g", "out/be", CH0)
    w, b = linear_init(next(keys), CH0, OUT_CH)
    p.add_w("out/w", w); p.add_v("out/b", b)
    p.add_v("out/c", fold_chain(be, w, b))

    for c in (CH1, CH1 + CH0, CH1 + CH1):    # shared GN averaging matrices: 64, 96, 128
        p.add_g(c)

    return p.finish()


def timestep_embedding(t, dim, max_period=10000.0):
    half = dim // 2
    freqs = jnp.exp(-math.log(max_period) * jnp.arange(half, dtype=jnp.float32) / half)
    args = t.astype(jnp.float32)[:, None] * freqs[None, :]
    return jnp.concatenate([jnp.cos(args), jnp.sin(args)], axis=-1)


# ----------------------------- fused Pallas kernel ---------------------------------------
def build_pallas_forward(wslab, vslab, gslab, widx, vidx, gidx, batch):
    tb = min(batch, 128)   # batch tile: sized for vreg pressure (live lateral skips), not VMEM

    def kernel(x_ref, xs_ref, te_ref, w_ref, v_ref, g_ref, o_ref):
        W = lambda n: w_ref[widx[n][0]:widx[n][0] + widx[n][1], 0:widx[n][2]]   # bf16 [fi, fo]
        V = lambda n: v_ref[vidx[n][0]:vidx[n][0] + 1, 0:vidx[n][1]]            # f32  [1, n]
        G = lambda c: g_ref[gidx[c]:gidx[c] + c, 0:c]                           # f32  [c, c]

        bdot = lambda a, b: jnp.dot(a.astype(jnp.bfloat16), b, preferred_element_type=jnp.float32)
        fdot = lambda a, b: jnp.dot(a, b, preferred_element_type=jnp.float32)
        silu = lambda y: y * jax.nn.sigmoid(y)
        relu = lambda y: jnp.maximum(y, 0.0)

        def gn(h, c, gname, bname):
            # non-degenerate GroupNorm only (C in {64,96,128}); group-size-1 sites are folded away.
            gm = G(c)
            m1 = fdot(h, gm)                       # E[x]   } two independent MXU ops (no
            m2 = fdot(h * h, gm)                   # E[x^2] } mean->var serial dependence)
            var = jnp.maximum(m2 - m1 * m1, 0.0)
            return (h - m1) * jax.lax.rsqrt(var + 1e-5) * V(gname) + V(bname)

        def linear(name, h, act=None):
            y = bdot(h, W(name + "/w")) + V(name + "/b")
            return relu(y) if act == "relu" else y

        x = x_ref[...]
        xs = xs_ref[...]
        te = te_ref[...]

        # ---- encoder (cond) and time-embed MLP ----
        e = xs
        for i in range(NUM_LAYERS):
            e = linear("enc%d" % i, e, "relu")     # Dropout inert (eval)
        cond = linear("enc_out", e)
        emb = linear("time2", silu(linear("time1", te)))
        ec = jnp.concatenate([silu(emb), silu(cond)], axis=-1)   # fused emb/cond operand [tb, 64]

        def ec_proj(name):
            return bdot(ec, W(name + "/w_ec")) + V(name + "/b_emb") + V(name + "/b_cond")

        def res_full(name, h, cin, cout, lateral=None):
            if lateral is not None:
                h = jnp.concatenate([h, lateral], axis=-1)       # in-vreg lane concat (no scratch)
            z = silu(gn(h, cin, name + "/g_in", name + "/be_in"))
            z = bdot(z, W(name + "/w_in")) + V(name + "/b_in")
            z = z + ec_proj(name)
            z = silu(gn(z, cout, name + "/g_out", name + "/be_out"))
            z = bdot(z, W(name + "/w_out")) + V(name + "/b_out")
            skip = h if cin == cout else bdot(h, W(name + "/w_skip")) + V(name + "/b_skip")
            return skip + z

        # ---- input blocks ----
        h = linear("ib0", x); h0a = h
        # ib1 (32->32): both GN chains group-size-1 -> main branch is a constant, skip is identity.
        h = h + V("ib1/c_out"); h0b = h
        h = linear("ib2", h, "relu"); h1a = h
        # ib3 (32->64): in_layers fold to a constant; out_layers live.
        z = V("ib3/c_in") + ec_proj("ib3")
        z = silu(gn(z, CH1, "ib3/g_out", "ib3/be_out"))
        z = bdot(z, W("ib3/w_out")) + V("ib3/b_out")
        h = bdot(h, W("ib3/w_skip")) + V("ib3/b_skip") + z; h1b = h

        # ---- middle block ----
        h = res_full("mb_res1", h, CH1, CH1)
        h = linear("mb_lin1", h, "relu")
        zn = gn(h, CH1, "mb_attn/g", "mb_attn/be")
        v = bdot(zn, W("mb_attn/w_v")) + V("mb_attn/b_v")        # seq len 1 => attention out == v
        h = h + bdot(v, W("mb_attn/w_proj")) + V("mb_attn/b_proj")
        h = linear("mb_lin2", h, "relu")
        h = res_full("mb_res2", h, CH1, CH1)

        # ---- output blocks (lateral skips concatenated inside the resblock) ----
        h = res_full("ob0", h, CH1 + CH1, CH1, lateral=h1b)
        h = res_full("ob1", h, CH1 + CH0, CH1, lateral=h1a)
        h = linear("ob1_lin", h, "relu")
        # ob2 / ob3 (-> 32): out_layers fold to a constant -> learned skip + const.
        cat = jnp.concatenate([h, h0b], axis=-1)
        h = bdot(cat, W("ob2/w_skip")) + V("ob2/b_skip") + V("ob2/c_out")
        cat = jnp.concatenate([h, h0a], axis=-1)
        h = bdot(cat, W("ob3/w_skip")) + V("ob3/b_skip") + V("ob3/c_out")

        # ---- out head: GroupNorm(32,32) on [B,32] is input-independent -> folded constant ----
        pred = jnp.broadcast_to(V("out/c"), (h.shape[0], OUT_CH))

        # lane-dense packed output: [pred(16) | cond(32) | trunk h(32) | zeros(48)] = 128 lanes
        pad = jnp.zeros((h.shape[0], SLAB_W - OUT_CH - LATENT - CH0), jnp.float32)
        o_ref[...] = jnp.concatenate([pred, cond, h, pad], axis=-1)

    return pl.pallas_call(
        kernel,
        out_shape=jax.ShapeDtypeStruct((batch, SLAB_W), jnp.float32),
        grid=(pl.cdiv(batch, tb),),
        in_specs=[
            pl.BlockSpec((tb, IN_CH), lambda i: (i, 0)),
            pl.BlockSpec((tb, IN_CH), lambda i: (i, 0)),
            pl.BlockSpec((tb, TIME_EMB_CH), lambda i: (i, 0)),
            pl.BlockSpec(wslab.shape, lambda i: (0, 0)),   # constant index: slabs stay VMEM-resident
            pl.BlockSpec(vslab.shape, lambda i: (0, 0)),
            pl.BlockSpec(gslab.shape, lambda i: (0, 0)),
        ],
        out_specs=pl.BlockSpec((tb, SLAB_W), lambda i: (i, 0)),
        compiler_params=pltpu.CompilerParams(dimension_semantics=("parallel",)),
    )


def noise_pred_forward(packed, x, t, x_start):
    wslab, vslab, gslab, widx, vidx, gidx = packed
    x = jnp.asarray(x, jnp.float32)
    x_start = jnp.asarray(x_start, jnp.float32)
    t_emb = timestep_embedding(jnp.asarray(t, jnp.float32), TIME_EMB_CH)
    fwd = build_pallas_forward(wslab, vslab, gslab, widx, vidx, gidx, x.shape[0])
    y = fwd(x, x_start, t_emb, wslab, vslab, gslab)
    return {"pred": y[:, :OUT_CH],
            "cond": y[:, OUT_CH:OUT_CH + LATENT],
            # trunk activation exposed for validation: the degenerate out head makes the UNet
            # trunk unobservable through `pred`.
            "h_trunk": y[:, OUT_CH + LATENT:OUT_CH + LATENT + CH0]}


# ----------------------------- unfolded pure-JAX reference -------------------------------
def reference_forward(wslab, vslab, gslab, widx, vidx, gidx, x, x_start, t_emb):
    """Original (unfolded) math: per-site GN->SiLU->Linear, separate emb/cond projections, stable
    variance.  Same bf16-weight / bf16-MXU-input numerics contract as the kernel."""
    W = lambda n: wslab[widx[n][0]:widx[n][0] + widx[n][1], :widx[n][2]]
    V = lambda n: vslab[vidx[n][0]:vidx[n][0] + 1, :vidx[n][1]]
    G = lambda c: gslab[gidx[c]:gidx[c] + c, :c]
    bdot = lambda a, b: jnp.dot(a.astype(jnp.bfloat16), b, preferred_element_type=jnp.float32)
    fdot = lambda a, b: jnp.dot(a, b, preferred_element_type=jnp.float32)
    silu = lambda y: y * jax.nn.sigmoid(y)
    relu = lambda y: jnp.maximum(y, 0.0)

    def gn(h, gname, bname):
        c = h.shape[-1]
        beta = V(bname)
        if c <= 32:                      # group size 1 on [B, C]: normalized value is exactly 0
            return jnp.broadcast_to(beta, h.shape)
        gamma = V(gname)
        gm = G(c)
        mean = fdot(h, gm)
        d = h - mean
        var = fdot(d * d, gm)
        return d * jax.lax.rsqrt(var + 1e-5) * gamma + beta

    def linear(name, h, act=None):
        y = bdot(h, W(name + "/w")) + V(name + "/b")
        return relu(y) if act == "relu" else y

    def resblock(name, h, emb, cond, cin, cout, lateral=None):
        if lateral is not None:
            h = jnp.concatenate([h, lateral], axis=-1)
        z = silu(gn(h, name + "/g_in", name + "/be_in"))
        z = bdot(z, W(name + "/w_in")) + V(name + "/b_in")
        wec = W(name + "/w_ec")
        z = z + bdot(silu(emb), wec[:EMBED_CH, :]) + V(name + "/b_emb")
        z = z + bdot(silu(cond), wec[EMBED_CH:, :]) + V(name + "/b_cond")
        z = silu(gn(z, name + "/g_out", name + "/be_out"))
        z = bdot(z, W(name + "/w_out")) + V(name + "/b_out")
        skip = h if cin == cout else bdot(h, W(name + "/w_skip")) + V(name + "/b_skip")
        return skip + z

    def attention(name, h):
        z = gn(h, name + "/g", name + "/be")
        v = bdot(z, W(name + "/w_v")) + V(name + "/b_v")         # softmax over a single key == 1
        return h + bdot(v, W(name + "/w_proj")) + V(name + "/b_proj")

    h = x_start
    for i in range(NUM_LAYERS):
        h = linear("enc%d" % i, h, "relu")
    cond = linear("enc_out", h)
    emb = linear("time2", silu(linear("time1", t_emb)))

    h = linear("ib0", x); h0a = h
    h = resblock("ib1", h, emb, cond, CH0, CH0); h0b = h
    h = linear("ib2", h, "relu"); h1a = h
    h = resblock("ib3", h, emb, cond, CH0, CH1); h1b = h

    h = resblock("mb_res1", h, emb, cond, CH1, CH1)
    h = linear("mb_lin1", h, "relu")
    h = attention("mb_attn", h)
    h = linear("mb_lin2", h, "relu")
    h = resblock("mb_res2", h, emb, cond, CH1, CH1)

    h = resblock("ob0", h, emb, cond, CH1 + CH1, CH1, lateral=h1b)
    h = resblock("ob1", h, emb, cond, CH1 + CH0, CH1, lateral=h1a)
    h = linear("ob1_lin", h, "relu")
    h = resblock("ob2", h, emb, cond, CH1 + CH0, CH0, lateral=h0b)
    h = resblock("ob3", h, emb, cond, CH0 + CH0, CH0, lateral=h0a)

    pred = bdot(silu(gn(h, "out/g", "out/be")), W("out/w")) + V("out/b")
    return pred, cond, h


# ----------------------------- main -------------------------------------------------------
if __name__ == "__main__":
    key = jax.random.PRNGKey(0)
    pkey, xkey, skey, tkey = jax.random.split(key, 4)
    packed = build_params(pkey)
    wslab, vslab, gslab, widx, vidx, gidx = packed

    B = 256                              # small data; exercises the batch grid (2 tiles of 128)
    x = jax.random.normal(xkey, (B, IN_CH), jnp.float32)
    x_start = jax.random.normal(skey, (B, IN_CH), jnp.float32)
    t = jax.random.randint(tkey, (B,), 0, 1000).astype(jnp.float32)

    out = noise_pred_forward(packed, x, t, x_start)
    pred = jax.block_until_ready(out["pred"])
    cond = jax.block_until_ready(out["cond"])
    h_trunk = out["h_trunk"]

    # unfolded pure-JAX reference on the same packed params
    t_emb = timestep_embedding(t, TIME_EMB_CH)
    ref = jax.jit(lambda w, v, g, a, b, c: reference_forward(w, v, g, widx, vidx, gidx, a, b, c))
    pred_r, cond_r, h_r = ref(wslab, vslab, gslab, x, x_start, t_emb)

    assert pred.shape == (B, OUT_CH) and cond.shape == (B, LATENT)
    assert bool(jnp.allclose(pred, pred_r, rtol=2e-2, atol=2e-2)), "pred mismatch vs reference"
    assert bool(jnp.allclose(cond, cond_r, rtol=2e-2, atol=2e-2)), "cond mismatch vs reference"
    assert bool(jnp.allclose(h_trunk, h_r, rtol=2e-2, atol=2e-2)), "trunk mismatch vs reference"
    print("KERNEL_OK")
</pallas_src>

<mosaic_0001>
module attributes {stable_mosaic.version = 11 : i64} {
  func.func @kernel(%arg0: i32, %arg1: memref<128x16xf32, #tpu.memory_space<vmem>>, %arg2: memref<128x16xf32, #tpu.memory_space<vmem>>, %arg3: memref<128x32xf32, #tpu.memory_space<vmem>>, %arg4: memref<2464x128xbf16, #tpu.memory_space<vmem>>, %arg5: memref<86x128xf32, #tpu.memory_space<vmem>>, %arg6: memref<288x128xf32, #tpu.memory_space<vmem>>, %arg7: memref<128x128xf32, #tpu.memory_space<vmem>>) attributes {dimension_semantics = [#tpu.dimension_semantics<parallel>], iteration_bounds = array<i64: 2>, scalar_prefetch = 0 : i64, scratch_operands = 0 : i64, tpu.core_type = #tpu.core_type<tc>, window_params = [{transform_indices = @transform_0, window_bounds = array<i64: 128, 16>}, {transform_indices = @transform_1, window_bounds = array<i64: 128, 16>}, {transform_indices = @transform_2, window_bounds = array<i64: 128, 32>}, {pipeline_mode = #tpu.pipeline_mode<synchronous>, transform_indices = @transform_3, window_bounds = array<i64: 2464, 128>}, {pipeline_mode = #tpu.pipeline_mode<synchronous>, transform_indices = @transform_4, window_bounds = array<i64: 86, 128>}, {pipeline_mode = #tpu.pipeline_mode<synchronous>, transform_indices = @transform_5, window_bounds = array<i64: 288, 128>}, {transform_indices = @transform_6, window_bounds = array<i64: 128, 128>}]} {
    %c0 = arith.constant 0 : index
    %c0_0 = arith.constant 0 : index
    %0 = vector.load %arg1[%c0, %c0_0] : memref<128x16xf32, #tpu.memory_space<vmem>>, vector<128x16xf32>
    %c0_1 = arith.constant 0 : index
    %c0_2 = arith.constant 0 : index
    %1 = vector.load %arg2[%c0_1, %c0_2] : memref<128x16xf32, #tpu.memory_space<vmem>>, vector<128x16xf32>
    %c0_3 = arith.constant 0 : index
    %c0_4 = arith.constant 0 : index
    %2 = vector.load %arg3[%c0_3, %c0_4] : memref<128x32xf32, #tpu.memory_space<vmem>>, vector<128x32xf32>
    %c64 = arith.constant 64 : index
    %c0_5 = arith.constant 0 : index
    %3 = vector.load %arg4[%c64, %c0_5] : memref<2464x128xbf16, #tpu.memory_space<vmem>>, vector<16x32xbf16>
    %4 = arith.truncf %1 : vector<128x16xf32> to vector<128x16xbf16>
    %cst = arith.constant dense<0.000000e+00> : vector<128x32xf32>
    %5 = tpu.matmul %4, %3, %cst {dimension_numbers = #tpu.dot_dimension_numbers<[1], [0], [0], [1], [0, 0, 1, 1], [], []>} : vector<128x16xbf16>, vector<16x32xbf16>, vector<128x32xf32> -> vector<128x32xf32>
    %c2 = arith.constant 2 : index
    %c0_6 = arith.constant 0 : index
    %6 = vector.load %arg5[%c2, %c0_6] : memref<86x128xf32, #tpu.memory_space<vmem>>, vector<1x32xf32>
    %7 = vector.broadcast %6 : vector<1x32xf32> to vector<128x32xf32>
    %8 = arith.addf %5, %7 : vector<128x32xf32>
    %cst_7 = arith.constant 0.000000e+00 : f32
    %9 = vector.broadcast %cst_7 : f32 to vector<128x32xf32>
    %10 = arith.maximumf %8, %9 : vector<128x32xf32>
    %c80 = arith.constant 80 : index
    %c0_8 = arith.constant 0 : index
    %11 = vector.load %arg4[%c80, %c0_8] : memref<2464x128xbf16, #tpu.memory_space<vmem>>, vector<32x32xbf16>
    %12 = arith.truncf %10 : vector<128x32xf32> to vector<128x32xbf16>
    %cst_9 = arith.constant dense<0.000000e+00> : vector<128x32xf32>
    %13 = tpu.matmul %12, %11, %cst_9 {dimension_numbers = #tpu.dot_dimension_numbers<[1], [0], [0], [1], [0, 0, 1, 1], [], []>} : vector<128x32xbf16>, vector<32x32xbf16>, vector<128x32xf32> -> vector<128x32xf32>
    %c3 = arith.constant 3 : index
    %c0_10 = arith.constant 0 : index
    %14 = vector.load %arg5[%c3, %c0_10] : memref<86x128xf32, #tpu.memory_space<vmem>>, vector<1x32xf32>
    %15 = vector.broadcast %14 : vector<1x32xf32> to vector<128x32xf32>
    %16 = arith.addf %13, %15 : vector<128x32xf32>
    %cst_11 = arith.constant 0.000000e+00 : f32
    %17 = vector.broadcast %cst_11 : f32 to vector<128x32xf32>
    %18 = arith.maximumf %16, %17 : vector<128x32xf32>
    %c112 = arith.constant 112 : index
    %c0_12 = arith.constant 0 : index
    %19 = vector.load %arg4[%c112, %c0_12] : memref<2464x128xbf16, #tpu.memory_space<vmem>>, vector<32x32xbf16>
    %20 = arith.truncf %18 : vector<128x32xf32> to vector<128x32xbf16>
    %cst_13 = arith.constant dense<0.000000e+00> : vector<128x32xf32>
    %21 = tpu.matmul %20, %19, %cst_13 {dimension_numbers = #tpu.dot_dimension_numbers<[1], [0], [0], [1], [0, 0, 1, 1], [], []>} : vector<128x32xbf16>, vector<32x32xbf16>, vector<128x32xf32> -> vector<128x32xf32>
    %c4 = arith.constant 4 : index
    %c0_14 = arith.constant 0 : index
    %22 = vector.load %arg5[%c4, %c0_14] : memref<86x128xf32, #tpu.memory_space<vmem>>, vector<1x32xf32>
    %23 = vector.broadcast %22 : vector<1x32xf32> to vector<128x32xf32>
    %24 = arith.addf %21, %23 : vector<128x32xf32>
    %c0_15 = arith.constant 0 : index
    %c0_16 = arith.constant 0 : index
    %25 = vector.load %arg4[%c0_15, %c0_16] : memref<2464x128xbf16, #tpu.memory_space<vmem>>, vector<32x32xbf16>
    %26 = arith.truncf %2 : vector<128x32xf32> to vector<128x32xbf16>
    %cst_17 = arith.constant dense<0.000000e+00> : vector<128x32xf32>
    %27 = tpu.matmul %26, %25, %cst_17 {dimension_numbers = #tpu.dot_dimension_numbers<[1], [0], [0], [1], [0, 0, 1, 1], [], []>} : vector<128x32xbf16>, vector<32x32xbf16>, vector<128x32xf32> -> vector<128x32xf32>
    %c0_18 = arith.constant 0 : index
    %c0_19 = arith.constant 0 : index
    %28 = vector.load %arg5[%c0_18, %c0_19] : memref<86x128xf32, #tpu.memory_space<vmem>>, vector<1x32xf32>
    %29 = vector.broadcast %28 : vector<1x32xf32> to vector<128x32xf32>
    %30 = arith.addf %27, %29 : vector<128x32xf32>
    %31 = arith.negf %30 : vector<128x32xf32>
    %32 = math.exp %31 : vector<128x32xf32>
    %cst_20 = arith.constant 1.000000e+00 : f32
    %33 = vector.broadcast %cst_20 : f32 to vector<128x32xf32>
    %34 = arith.addf %33, %32 : vector<128x32xf32>
    %35 = arith.divf %33, %34 : vector<128x32xf32>
    %36 = arith.mulf %30, %35 : vector<128x32xf32>
    %c32 = arith.constant 32 : index
    %c0_21 = arith.constant 0 : index
    %37 = vector.load %arg4[%c32, %c0_21] : memref<2464x128xbf16, #tpu.memory_space<vmem>>, vector<32x32xbf16>
    %38 = arith.truncf %36 : vector<128x32xf32> to vector<128x32xbf16>
    %cst_22 = arith.constant dense<0.000000e+00> : vector<128x32xf32>
    %39 = tpu.matmul %38, %37, %cst_22 {dimension_numbers = #tpu.dot_dimension_numbers<[1], [0], [0], [1], [0, 0, 1, 1], [], []>} : vector<128x32xbf16>, vector<32x32xbf16>, vector<128x32xf32> -> vector<128x32xf32>
    %c1 = arith.constant 1 : index
    %c0_23 = arith.constant 0 : index
    %40 = vector.load %arg5[%c1, %c0_23] : memref<86x128xf32, #tpu.memory_space<vmem>>, vector<1x32xf32>
    %41 = vector.broadcast %40 : vector<1x32xf32> to vector<128x32xf32>
    %42 = arith.addf %39, %41 : vector<128x32xf32>
    %43 = arith.negf %42 : vector<128x32xf32>
    %44 = math.exp %43 : vector<128x32xf32>
    %cst_24 = arith.constant 1.000000e+00 : f32
    %45 = vector.broadcast %cst_24 : f32 to vector<128x32xf32>
    %46 = arith.addf %45, %44 : vector<128x32xf32>
    %47 = arith.divf %45, %46 : vector<128x32xf32>
    %48 = arith.mulf %42, %47 : vector<128x32xf32>
    %49 = arith.negf %24 : vector<128x32xf32>
    %50 = math.exp %49 : vector<128x32xf32>
    %cst_25 = arith.constant 1.000000e+00 : f32
    %51 = vector.broadcast %cst_25 : f32 to vector<128x32xf32>
    %52 = arith.addf %51, %50 : vector<128x32xf32>
    %53 = arith.divf %51, %52 : vector<128x32xf32>
    %54 = arith.mulf %24, %53 : vector<128x32xf32>
    %55 = tpu.concatenate %48, %54 in 1 : vector<128x32xf32>, vector<128x32xf32> -> vector<128x64xf32>
    %c144 = arith.constant 144 : index
    %c0_26 = arith.constant 0 : index
    %56 = vector.load %arg4[%c144, %c0_26] : memref<2464x128xbf16, #tpu.memory_space<vmem>>, vector<16x32xbf16>
    %57 = arith.truncf %0 : vector<128x16xf32> to vector<128x16xbf16>
    %cst_27 = arith.constant dense<0.000000e+00> : vector<128x32xf32>
    %58 = tpu.matmul %57, %56, %cst_27 {dimension_numbers = #tpu.dot_dimension_numbers<[1], [0], [0], [1], [0, 0, 1, 1], [], []>} : vector<128x16xbf16>, vector<16x32xbf16>, vector<128x32xf32> -> vector<128x32xf32>
    %c5 = arith.constant 5 : index
    %c0_28 = arith.constant 0 : index
    %59 = vector.load %arg5[%c5, %c0_28] : memref<86x128xf32, #tpu.memory_space<vmem>>, vector<1x32xf32>
    %60 = vector.broadcast %59 : vector<1x32xf32> to vector<128x32xf32>
    %61 = arith.addf %58, %60 : vector<128x32xf32>
    %c13 = arith.constant 13 : index
    %c0_29 = arith.constant 0 : index
    %62 = vector.load %arg5[%c13, %c0_29] : memref<86x128xf32, #tpu.memory_space<vmem>>, vector<1x32xf32>
    %63 = vector.broadcast %62 : vector<1x32xf32> to vector<128x32xf32>
    %64 = arith.addf %61, %63 : vector<128x32xf32>
    %c288 = arith.constant 288 : index
    %c0_30 = arith.constant 0 : index
    %65 = vector.load %arg4[%c288, %c0_30] : memref<2464x128xbf16, #tpu.memory_space<vmem>>, vector<32x32xbf16>
    %66 = arith.truncf %64 : vector<128x32xf32> to vector<128x32xbf16>
    %cst_31 = arith.constant dense<0.000000e+00> : vector<128x32xf32>
    %67 = tpu.matmul %66, %65, %cst_31 {dimension_numbers = #tpu.dot_dimension_numbers<[1], [0], [0], [1], [0, 0, 1, 1], [], []>} : vector<128x32xbf16>, vector<32x32xbf16>, vector<128x32xf32> -> vector<128x32xf32>
    %c14 = arith.constant 14 : index
    %c0_32 = arith.constant 0 : index
    %68 = vector.load %arg5[%c14, %c0_32] : memref<86x128xf32, #tpu.memory_space<vmem>>, vector<1x32xf32>
    %69 = vector.broadcast %68 : vector<1x32xf32> to vector<128x32xf32>
    %70 = arith.addf %67, %69 : vector<128x32xf32>
    %cst_33 = arith.constant 0.000000e+00 : f32
    %71 = vector.broadcast %cst_33 : f32 to vector<128x32xf32>
    %72 = arith.maximumf %70, %71 : vector<128x32xf32>
    %c23 = arith.constant 23 : index
    %c0_34 = arith.constant 0 : index
    %73 = vector.load %arg5[%c23, %c0_34] : memref<86x128xf32, #tpu.memory_space<vmem>>, vector<1x64xf32>
    %c352 = arith.constant 352 : index
    %c0_35 = arith.constant 0 : index
    %74 = vector.load %arg4[%c352, %c0_35] : memref<2464x128xbf16, #tpu.memory_space<vmem>>, vector<64x64xbf16>
    %75 = arith.truncf %55 : vector<128x64xf32> to vector<128x64xbf16>
    %cst_36 = arith.constant dense<0.000000e+00> : vector<128x64xf32>
    %76 = tpu.matmul %75, %74, %cst_36 {dimension_numbers = #tpu.dot_dimension_numbers<[1], [0], [0], [1], [0, 0, 1, 1], [], []>} : vector<128x64xbf16>, vector<64x64xbf16>, vector<128x64xf32> -> vector<128x64xf32>
    %c17 = arith.constant 17 : index
    %c0_37 = arith.constant 0 : index
    %77 = vector.load %arg5[%c17, %c0_37] : memref<86x128xf32, #tpu.memory_space<vmem>>, vector<1x64xf32>
    %78 = vector.broadcast %77 : vector<1x64xf32> to vector<128x64xf32>
    %79 = arith.addf %76, %78 : vector<128x64xf32>
    %c18 = arith.constant 18 : index
    %c0_38 = arith.constant 0 : index
    %80 = vector.load %arg5[%c18, %c0_38] : memref<86x128xf32, #tpu.memory_space<vmem>>, vector<1x64xf32>
    %81 = vector.broadcast %80 : vector<1x64xf32> to vector<128x64xf32>
    %82 = arith.addf %79, %81 : vector<128x64xf32>
    %83 = vector.broadcast %73 : vector<1x64xf32> to vector<128x64xf32>
    %84 = arith.addf %83, %82 : vector<128x64xf32>
    %c0_39 = arith.constant 0 : index
    %c0_40 = arith.constant 0 : index
    %85 = vector.load %arg6[%c0_39, %c0_40] : memref<288x128xf32, #tpu.memory_space<vmem>>, vector<64x64xf32>
    %cst_41 = arith.constant dense<0.000000e+00> : vector<128x64xf32>
    %86 = tpu.matmul %84, %85, %cst_41 {dimension_numbers = #tpu.dot_dimension_numbers<[1], [0], [0], [1], [0, 0, 1, 1], [], []>} : vector<128x64xf32>, vector<64x64xf32>, vector<128x64xf32> -> vector<128x64xf32>
    %87 = arith.mulf %84, %84 : vector<128x64xf32>
    %cst_42 = arith.constant dense<0.000000e+00> : vector<128x64xf32>
    %88 = tpu.matmul %87, %85, %cst_42 {dimension_numbers = #tpu.dot_dimension_numbers<[1], [0], [0], [1], [0, 0, 1, 1], [], []>} : vector<128x64xf32>, vector<64x64xf32>, vector<128x64xf32> -> vector<128x64xf32>
    %89 = arith.mulf %86, %86 : vector<128x64xf32>
    %90 = arith.subf %88, %89 : vector<128x64xf32>
    %cst_43 = arith.constant 0.000000e+00 : f32
    %91 = vector.broadcast %cst_43 : f32 to vector<128x64xf32>
    %92 = arith.maximumf %90, %91 : vector<128x64xf32>
    %93 = arith.subf %84, %86 : vector<128x64xf32>
    %cst_44 = arith.constant 9.99999974E-6 : f32
    %94 = vector.broadcast %cst_44 : f32 to vector<128x64xf32>
    %95 = arith.addf %92, %94 : vector<128x64xf32>
    %96 = math.rsqrt %95 : vector<128x64xf32>
    %97 = arith.mulf %93, %96 : vector<128x64xf32>
    %c19 = arith.constant 19 : index
    %c0_45 = arith.constant 0 : index
    %98 = vector.load %arg5[%c19, %c0_45] : memref<86x128xf32, #tpu.memory_space<vmem>>, vector<1x64xf32>
    %99 = vector.broadcast %98 : vector<1x64xf32> to vector<128x64xf32>
    %100 = arith.mulf %97, %99 : vector<128x64xf32>
    %c20 = arith.constant 20 : index
    %c0_46 = arith.constant 0 : index
    %101 = vector.load %arg5[%c20, %c0_46] : memref<86x128xf32, #tpu.memory_space<vmem>>, vector<1x64xf32>
    %102 = vector.broadcast %101 : vector<1x64xf32> to vector<128x64xf32>
    %103 = arith.addf %100, %102 : vector<128x64xf32>
    %104 = arith.negf %103 : vector<128x64xf32>
    %105 = math.exp %104 : vector<128x64xf32>
    %cst_47 = arith.constant 1.000000e+00 : f32
    %106 = vector.broadcast %cst_47 : f32 to vector<128x64xf32>
    %107 = arith.addf %106, %105 : vector<128x64xf32>
    %108 = arith.divf %106, %107 : vector<128x64xf32>
    %109 = arith.mulf %103, %108 : vector<128x64xf32>
    %c416 = arith.constant 416 : index
    %c0_48 = arith.constant 0 : index
    %110 = vector.load %arg4[%c416, %c0_48] : memref<2464x128xbf16, #tpu.memory_space<vmem>>, vector<64x64xbf16>
    %111 = arith.truncf %109 : vector<128x64xf32> to vector<128x64xbf16>
    %cst_49 = arith.constant dense<0.000000e+00> : vector<128x64xf32>
    %112 = tpu.matmul %111, %110, %cst_49 {dimension_numbers = #tpu.dot_dimension_numbers<[1], [0], [0], [1], [0, 0, 1, 1], [], []>} : vector<128x64xbf16>, vector<64x64xbf16>, vector<128x64xf32> -> vector<128x64xf32>
    %c21 = arith.constant 21 : index
    %c0_50 = arith.constant 0 : index
    %113 = vector.load %arg5[%c21, %c0_50] : memref<86x128xf32, #tpu.memory_space<vmem>>, vector<1x64xf32>
    %114 = vector.broadcast %113 : vector<1x64xf32> to vector<128x64xf32>
    %115 = arith.addf %112, %114 : vector<128x64xf32>
    %c480 = arith.constant 480 : index
    %c0_51 = arith.constant 0 : index
    %116 = vector.load %arg4[%c480, %c0_51] : memref<2464x128xbf16, #tpu.memory_space<vmem>>, vector<32x64xbf16>
    %117 = arith.truncf %72 : vector<128x32xf32> to vector<128x32xbf16>
    %cst_52 = arith.constant dense<0.000000e+00> : vector<128x64xf32>
    %118 = tpu.matmul %117, %116, %cst_52 {dimension_numbers = #tpu.dot_dimension_numbers<[1], [0], [0], [1], [0, 0, 1, 1], [], []>} : vector<128x32xbf16>, vector<32x64xbf16>, vector<128x64xf32> -> vector<128x64xf32>
    %c22 = arith.constant 22 : index
    %c0_53 = arith.constant 0 : index
    %119 = vector.load %arg5[%c22, %c0_53] : memref<86x128xf32, #tpu.memory_space<vmem>>, vector<1x64xf32>
    %120 = vector.broadcast %119 : vector<1x64xf32> to vector<128x64xf32>
    %121 = arith.addf %118, %120 : vector<128x64xf32>
    %122 = arith.addf %121, %115 : vector<128x64xf32>
    %c0_54 = arith.constant 0 : index
    %c0_55 = arith.constant 0 : index
    %123 = vector.load %arg6[%c0_54, %c0_55] : memref<288x128xf32, #tpu.memory_space<vmem>>, vector<64x64xf32>
    %cst_56 = arith.constant dense<0.000000e+00> : vector<128x64xf32>
    %124 = tpu.matmul %122, %123, %cst_56 {dimension_numbers = #tpu.dot_dimension_numbers<[1], [0], [0], [1], [0, 0, 1, 1], [], []>} : vector<128x64xf32>, vector<64x64xf32>, vector<128x64xf32> -> vector<128x64xf32>
    %125 = arith.mulf %122, %122 : vector<128x64xf32>
    %cst_57 = arith.constant dense<0.000000e+00> : vector<128x64xf32>
    %126 = tpu.matmul %125, %123, %cst_57 {dimension_numbers = #tpu.dot_dimension_numbers<[1], [0], [0], [1], [0, 0, 1, 1], [], []>} : vector<128x64xf32>, vector<64x64xf32>, vector<128x64xf32> -> vector<128x64xf32>
    %127 = arith.mulf %124, %124 : vector<128x64xf32>
    %128 = arith.subf %126, %127 : vector<128x64xf32>
    %cst_58 = arith.constant 0.000000e+00 : f32
    %129 = vector.broadcast %cst_58 : f32 to vector<128x64xf32>
    %130 = arith.maximumf %128, %129 : vector<128x64xf32>
    %131 = arith.subf %122, %124 : vector<128x64xf32>
    %cst_59 = arith.constant 9.99999974E-6 : f32
    %132 = vector.broadcast %cst_59 : f32 to vector<128x64xf32>
    %133 = arith.addf %130, %132 : vector<128x64xf32>
    %134 = math.rsqrt %133 : vector<128x64xf32>
    %135 = arith.mulf %131, %134 : vector<128x64xf32>
    %c24 = arith.constant 24 : index
    %c0_60 = arith.constant 0 : index
    %136 = vector.load %arg5[%c24, %c0_60] : memref<86x128xf32, #tpu.memory_space<vmem>>, vector<1x64xf32>
    %137 = vector.broadcast %136 : vector<1x64xf32> to vector<128x64xf32>
    %138 = arith.mulf %135, %137 : vector<128x64xf32>
    %c25 = arith.constant 25 : index
    %c0_61 = arith.constant 0 : index
    %139 = vector.load %arg5[%c25, %c0_61] : memref<86x128xf32, #tpu.memory_space<vmem>>, vector<1x64xf32>
    %140 = vector.broadcast %139 : vector<1x64xf32> to vector<128x64xf32>
    %141 = arith.addf %138, %140 : vector<128x64xf32>
    %142 = arith.negf %141 : vector<128x64xf32>
    %143 = math.exp %142 : vector<128x64xf32>
    %cst_62 = arith.constant 1.000000e+00 : f32
    %144 = vector.broadcast %cst_62 : f32 to vector<128x64xf32>
    %145 = arith.addf %144, %143 : vector<128x64xf32>
    %146 = arith.divf %144, %145 : vector<128x64xf32>
    %147 = arith.mulf %141, %146 : vector<128x64xf32>
    %c512 = arith.constant 512 : index
    %c0_63 = arith.constant 0 : index
    %148 = vector.load %arg4[%c512, %c0_63] : memref<2464x128xbf16, #tpu.memory_space<vmem>>, vector<64x64xbf16>
    %149 = arith.truncf %147 : vector<128x64xf32> to vector<128x64xbf16>
    %cst_64 = arith.constant dense<0.000000e+00> : vector<128x64xf32>
    %150 = tpu.matmul %149, %148, %cst_64 {dimension_numbers = #tpu.dot_dimension_numbers<[1], [0], [0], [1], [0, 0, 1, 1], [], []>} : vector<128x64xbf16>, vector<64x64xbf16>, vector<128x64xf32> -> vector<128x64xf32>
    %c26 = arith.constant 26 : index
    %c0_65 = arith.constant 0 : index
    %151 = vector.load %arg5[%c26, %c0_65] : memref<86x128xf32, #tpu.memory_space<vmem>>, vector<1x64xf32>
    %152 = vector.broadcast %151 : vector<1x64xf32> to vector<128x64xf32>
    %153 = arith.addf %150, %152 : vector<128x64xf32>
    %c576 = arith.constant 576 : index
    %c0_66 = arith.constant 0 : index
    %154 = vector.load %arg4[%c576, %c0_66] : memref<2464x128xbf16, #tpu.memory_space<vmem>>, vector<64x64xbf16>
    %155 = arith.truncf %55 : vector<128x64xf32> to vector<128x64xbf16>
    %cst_67 = arith.constant dense<0.000000e+00> : vector<128x64xf32>
    %156 = tpu.matmul %155, %154, %cst_67 {dimension_numbers = #tpu.dot_dimension_numbers<[1], [0], [0], [1], [0, 0, 1, 1], [], []>} : vector<128x64xbf16>, vector<64x64xbf16>, vector<128x64xf32> -> vector<128x64xf32>
    %c27 = arith.constant 27 : index
    %c0_68 = arith.constant 0 : index
    %157 = vector.load %arg5[%c27, %c0_68] : memref<86x128xf32, #tpu.memory_space<vmem>>, vector<1x64xf32>
    %158 = vector.broadcast %157 : vector<1x64xf32> to vector<128x64xf32>
    %159 = arith.addf %156, %158 : vector<128x64xf32>
    %c28 = arith.constant 28 : index
    %c0_69 = arith.constant 0 : index
    %160 = vector.load %arg5[%c28, %c0_69] : memref<86x128xf32, #tpu.memory_space<vmem>>, vector<1x64xf32>
    %161 = vector.broadcast %160 : vector<1x64xf32> to vector<128x64xf32>
    %162 = arith.addf %159, %161 : vector<128x64xf32>
    %163 = arith.addf %153, %162 : vector<128x64xf32>
    %c0_70 = arith.constant 0 : index
    %c0_71 = arith.constant 0 : index
    %164 = vector.load %arg6[%c0_70, %c0_71] : memref<288x128xf32, #tpu.memory_space<vmem>>, vector<64x64xf32>
    %cst_72 = arith.constant dense<0.000000e+00> : vector<128x64xf32>
    %165 = tpu.matmul %163, %164, %cst_72 {dimension_numbers = #tpu.dot_dimension_numbers<[1], [0], [0], [1], [0, 0, 1, 1], [], []>} : vector<128x64xf32>, vector<64x64xf32>, vector<128x64xf32> -> vector<128x64xf32>
    %166 = arith.mulf %163, %163 : vector<128x64xf32>
    %cst_73 = arith.constant dense<0.000000e+00> : vector<128x64xf32>
    %167 = tpu.matmul %166, %164, %cst_73 {dimension_numbers = #tpu.dot_dimension_numbers<[1], [0], [0], [1], [0, 0, 1, 1], [], []>} : vector<128x64xf32>, vector<64x64xf32>, vector<128x64xf32> -> vector<128x64xf32>
    %168 = arith.mulf %165, %165 : vector<128x64xf32>
    %169 = arith.subf %167, %168 : vector<128x64xf32>
    %cst_74 = arith.constant 0.000000e+00 : f32
    %170 = vector.broadcast %cst_74 : f32 to vector<128x64xf32>
    %171 = arith.maximumf %169, %170 : vector<128x64xf32>
    %172 = arith.subf %163, %165 : vector<128x64xf32>
    %cst_75 = arith.constant 9.99999974E-6 : f32
    %173 = vector.broadcast %cst_75 : f32 to vector<128x64xf32>
    %174 = arith.addf %171, %173 : vector<128x64xf32>
    %175 = math.rsqrt %174 : vector<128x64xf32>
    %176 = arith.mulf %172, %175 : vector<128x64xf32>
    %c29 = arith.constant 29 : index
    %c0_76 = arith.constant 0 : index
    %177 = vector.load %arg5[%c29, %c0_76] : memref<86x128xf32, #tpu.memory_space<vmem>>, vector<1x64xf32>
    %178 = vector.broadcast %177 : vector<1x64xf32> to vector<128x64xf32>
    %179 = arith.mulf %176, %178 : vector<128x64xf32>
    %c30 = arith.constant 30 : index
    %c0_77 = arith.constant 0 : index
    %180 = vector.load %arg5[%c30, %c0_77] : memref<86x128xf32, #tpu.memory_space<vmem>>, vector<1x64xf32>
    %181 = vector.broadcast %180 : vector<1x64xf32> to vector<128x64xf32>
    %182 = arith.addf %179, %181 : vector<128x64xf32>
    %183 = arith.negf %182 : vector<128x64xf32>
    %184 = math.exp %183 : vector<128x64xf32>
    %cst_78 = arith.constant 1.000000e+00 : f32
    %185 = vector.broadcast %cst_78 : f32 to vector<128x64xf32>
    %186 = arith.addf %185, %184 : vector<128x64xf32>
    %187 = arith.divf %185, %186 : vector<128x64xf32>
    %188 = arith.mulf %182, %187 : vector<128x64xf32>
    %c640 = arith.constant 640 : index
    %c0_79 = arith.constant 0 : index
    %189 = vector.load %arg4[%c640, %c0_79] : memref<2464x128xbf16, #tpu.memory_space<vmem>>, vector<64x64xbf16>
    %190 = arith.truncf %188 : vector<128x64xf32> to vector<128x64xbf16>
    %cst_80 = arith.constant dense<0.000000e+00> : vector<128x64xf32>
    %191 = tpu.matmul %190, %189, %cst_80 {dimension_numbers = #tpu.dot_dimension_numbers<[1], [0], [0], [1], [0, 0, 1, 1], [], []>} : vector<128x64xbf16>, vector<64x64xbf16>, vector<128x64xf32> -> vector<128x64xf32>
    %c31 = arith.constant 31 : index
    %c0_81 = arith.constant 0 : index
    %192 = vector.load %arg5[%c31, %c0_81] : memref<86x128xf32, #tpu.memory_space<vmem>>, vector<1x64xf32>
    %193 = vector.broadcast %192 : vector<1x64xf32> to vector<128x64xf32>
    %194 = arith.addf %191, %193 : vector<128x64xf32>
    %195 = arith.addf %122, %194 : vector<128x64xf32>
    %c704 = arith.constant 704 : index
    %c0_82 = arith.constant 0 : index
    %196 = vector.load %arg4[%c704, %c0_82] : memref<2464x128xbf16, #tpu.memory_space<vmem>>, vector<64x64xbf16>
    %197 = arith.truncf %195 : vector<128x64xf32> to vector<128x64xbf16>
    %cst_83 = arith.constant dense<0.000000e+00> : vector<128x64xf32>
    %198 = tpu.matmul %197, %196, %cst_83 {dimension_numbers = #tpu.dot_dimension_numbers<[1], [0], [0], [1], [0, 0, 1, 1], [], []>} : vector<128x64xbf16>, vector<64x64xbf16>, vector<128x64xf32> -> vector<128x64xf32>
    %c32_84 = arith.constant 32 : index
    %c0_85 = arith.constant 0 : index
    %199 = vector.load %arg5[%c32_84, %c0_85] : memref<86x128xf32, #tpu.memory_space<vmem>>, vector<1x64xf32>
    %200 = vector.broadcast %199 : vector<1x64xf32> to vector<128x64xf32>
    %201 = arith.addf %198, %200 : vector<128x64xf32>
    %cst_86 = arith.constant 0.000000e+00 : f32
    %202 = vector.broadcast %cst_86 : f32 to vector<128x64xf32>
    %203 = arith.maximumf %201, %202 : vector<128x64xf32>
    %c0_87 = arith.constant 0 : index
    %c0_88 = arith.constant 0 : index
    %204 = vector.load %arg6[%c0_87, %c0_88] : memref<288x128xf32, #tpu.memory_space<vmem>>, vector<64x64xf32>
    %cst_89 = arith.constant dense<0.000000e+00> : vector<128x64xf32>
    %205 = tpu.matmul %203, %204, %cst_89 {dimension_numbers = #tpu.dot_dimension_numbers<[1], [0], [0], [1], [0, 0, 1, 1], [], []>} : vector<128x64xf32>, vector<64x64xf32>, vector<128x64xf32> -> vector<128x64xf32>
    %206 = arith.mulf %203, %203 : vector<128x64xf32>
    %cst_90 = arith.constant dense<0.000000e+00> : vector<128x64xf32>
    %207 = tpu.matmul %206, %204, %cst_90 {dimension_numbers = #tpu.dot_dimension_numbers<[1], [0], [0], [1], [0, 0, 1, 1], [], []>} : vector<128x64xf32>, vector<64x64xf32>, vector<128x64xf32> -> vector<128x64xf32>
    %208 = arith.mulf %205, %205 : vector<128x64xf32>
    %209 = arith.subf %207, %208 : vector<128x64xf32>
    %cst_91 = arith.constant 0.000000e+00 : f32
    %210 = vector.broadcast %cst_91 : f32 to vector<128x64xf32>
    %211 = arith.maximumf %209, %210 : vector<128x64xf32>
    %212 = arith.subf %203, %205 : vector<128x64xf32>
    %cst_92 = arith.constant 9.99999974E-6 : f32
    %213 = vector.broadcast %cst_92 : f32 to vector<128x64xf32>
    %214 = arith.addf %211, %213 : vector<128x64xf32>
    %215 = math.rsqrt %214 : vector<128x64xf32>
    %216 = arith.mulf %212, %215 : vector<128x64xf32>
    %c33 = arith.constant 33 : index
    %c0_93 = arith.constant 0 : index
    %217 = vector.load %arg5[%c33, %c0_93] : memref<86x128xf32, #tpu.memory_space<vmem>>, vector<1x64xf32>
    %218 = vector.broadcast %217 : vector<1x64xf32> to vector<128x64xf32>
    %219 = arith.mulf %216, %218 : vector<128x64xf32>
    %c34 = arith.constant 34 : index
    %c0_94 = arith.constant 0 : index
    %220 = vector.load %arg5[%c34, %c0_94] : memref<86x128xf32, #tpu.memory_space<vmem>>, vector<1x64xf32>
    %221 = vector.broadcast %220 : vector<1x64xf32> to vector<128x64xf32>
    %222 = arith.addf %219, %221 : vector<128x64xf32>
    %c768 = arith.constant 768 : index
    %c0_95 = arith.constant 0 : index
    %223 = vector.load %arg4[%c768, %c0_95] : memref<2464x128xbf16, #tpu.memory_space<vmem>>, vector<64x64xbf16>
    %224 = arith.truncf %222 : vector<128x64xf32> to vector<128x64xbf16>
    %cst_96 = arith.constant dense<0.000000e+00> : vector<128x64xf32>
    %225 = tpu.matmul %224, %223, %cst_96 {dimension_numbers = #tpu.dot_dimension_numbers<[1], [0], [0], [1], [0, 0, 1, 1], [], []>} : vector<128x64xbf16>, vector<64x64xbf16>, vector<128x64xf32> -> vector<128x64xf32>
    %c35 = arith.constant 35 : index
    %c0_97 = arith.constant 0 : index
    %226 = vector.load %arg5[%c35, %c0_97] : memref<86x128xf32, #tpu.memory_space<vmem>>, vector<1x64xf32>
    %227 = vector.broadcast %226 : vector<1x64xf32> to vector<128x64xf32>
    %228 = arith.addf %225, %227 : vector<128x64xf32>
    %c832 = arith.constant 832 : index
    %c0_98 = arith.constant 0 : index
    %229 = vector.load %arg4[%c832, %c0_98] : memref<2464x128xbf16, #tpu.memory_space<vmem>>, vector<64x64xbf16>
    %230 = arith.truncf %228 : vector<128x64xf32> to vector<128x64xbf16>
    %cst_99 = arith.constant dense<0.000000e+00> : vector<128x64xf32>
    %231 = tpu.matmul %230, %229, %cst_99 {dimension_numbers = #tpu.dot_dimension_numbers<[1], [0], [0], [1], [0, 0, 1, 1], [], []>} : vector<128x64xbf16>, vector<64x64xbf16>, vector<128x64xf32> -> vector<128x64xf32>
    %232 = arith.addf %203, %231 : vector<128x64xf32>
    %c36 = arith.constant 36 : index
    %c0_100 = arith.constant 0 : index
    %233 = vector.load %arg5[%c36, %c0_100] : memref<86x128xf32, #tpu.memory_space<vmem>>, vector<1x64xf32>
    %234 = vector.broadcast %233 : vector<1x64xf32> to vector<128x64xf32>
    %235 = arith.addf %232, %234 : vector<128x64xf32>
    %c896 = arith.constant 896 : index
    %c0_101 = arith.constant 0 : index
    %236 = vector.load %arg4[%c896, %c0_101] : memref<2464x128xbf16, #tpu.memory_space<vmem>>, vector<64x64xbf16>
    %237 = arith.truncf %235 : vector<128x64xf32> to vector<128x64xbf16>
    %cst_102 = arith.constant dense<0.000000e+00> : vector<128x64xf32>
    %238 = tpu.matmul %237, %236, %cst_102 {dimension_numbers = #tpu.dot_dimension_numbers<[1], [0], [0], [1], [0, 0, 1, 1], [], []>} : vector<128x64xbf16>, vector<64x64xbf16>, vector<128x64xf32> -> vector<128x64xf32>
    %c37 = arith.constant 37 : index
    %c0_103 = arith.constant 0 : index
    %239 = vector.load %arg5[%c37, %c0_103] : memref<86x128xf32, #tpu.memory_space<vmem>>, vector<1x64xf32>
    %240 = vector.broadcast %239 : vector<1x64xf32> to vector<128x64xf32>
    %241 = arith.addf %238, %240 : vector<128x64xf32>
    %cst_104 = arith.constant 0.000000e+00 : f32
    %242 = vector.broadcast %cst_104 : f32 to vector<128x64xf32>
    %243 = arith.maximumf %241, %242 : vector<128x64xf32>
    %c0_105 = arith.constant 0 : index
    %c0_106 = arith.constant 0 : index
    %244 = vector.load %arg6[%c0_105, %c0_106] : memref<288x128xf32, #tpu.memory_space<vmem>>, vector<64x64xf32>
    %cst_107 = arith.constant dense<0.000000e+00> : vector<128x64xf32>
    %245 = tpu.matmul %243, %244, %cst_107 {dimension_numbers = #tpu.dot_dimension_numbers<[1], [0], [0], [1], [0, 0, 1, 1], [], []>} : vector<128x64xf32>, vector<64x64xf32>, vector<128x64xf32> -> vector<128x64xf32>
    %246 = arith.mulf %243, %243 : vector<128x64xf32>
    %cst_108 = arith.constant dense<0.000000e+00> : vector<128x64xf32>
    %247 = tpu.matmul %246, %244, %cst_108 {dimension_numbers = #tpu.dot_dimension_numbers<[1], [0], [0], [1], [0, 0, 1, 1], [], []>} : vector<128x64xf32>, vector<64x64xf32>, vector<128x64xf32> -> vector<128x64xf32>
    %248 = arith.mulf %245, %245 : vector<128x64xf32>
    %249 = arith.subf %247, %248 : vector<128x64xf32>
    %cst_109 = arith.constant 0.000000e+00 : f32
    %250 = vector.broadcast %cst_109 : f32 to vector<128x64xf32>
    %251 = arith.maximumf %249, %250 : vector<128x64xf32>
    %252 = arith.subf %243, %245 : vector<128x64xf32>
    %cst_110 = arith.constant 9.99999974E-6 : f32
    %253 = vector.broadcast %cst_110 : f32 to vector<128x64xf32>
    %254 = arith.addf %251, %253 : vector<128x64xf32>
    %255 = math.rsqrt %254 : vector<128x64xf32>
    %256 = arith.mulf %252, %255 : vector<128x64xf32>
    %c38 = arith.constant 38 : index
    %c0_111 = arith.constant 0 : index
    %257 = vector.load %arg5[%c38, %c0_111] : memref<86x128xf32, #tpu.memory_space<vmem>>, vector<1x64xf32>
    %258 = vector.broadcast %257 : vector<1x64xf32> to vector<128x64xf32>
    %259 = arith.mulf %256, %258 : vector<128x64xf32>
    %c39 = arith.constant 39 : index
    %c0_112 = arith.constant 0 : index
    %260 = vector.load %arg5[%c39, %c0_112] : memref<86x128xf32, #tpu.memory_space<vmem>>, vector<1x64xf32>
    %261 = vector.broadcast %260 : vector<1x64xf32> to vector<128x64xf32>
    %262 = arith.addf %259, %261 : vector<128x64xf32>
    %263 = arith.negf %262 : vector<128x64xf32>
    %264 = math.exp %263 : vector<128x64xf32>
    %cst_113 = arith.constant 1.000000e+00 : f32
    %265 = vector.broadcast %cst_113 : f32 to vector<128x64xf32>
    %266 = arith.addf %265, %264 : vector<128x64xf32>
    %267 = arith.divf %265, %266 : vector<128x64xf32>
    %268 = arith.mulf %262, %267 : vector<128x64xf32>
    %c960 = arith.constant 960 : index
    %c0_114 = arith.constant 0 : index
    %269 = vector.load %arg4[%c960, %c0_114] : memref<2464x128xbf16, #tpu.memory_space<vmem>>, vector<64x64xbf16>
    %270 = arith.truncf %268 : vector<128x64xf32> to vector<128x64xbf16>
    %cst_115 = arith.constant dense<0.000000e+00> : vector<128x64xf32>
    %271 = tpu.matmul %270, %269, %cst_115 {dimension_numbers = #tpu.dot_dimension_numbers<[1], [0], [0], [1], [0, 0, 1, 1], [], []>} : vector<128x64xbf16>, vector<64x64xbf16>, vector<128x64xf32> -> vector<128x64xf32>
    %c40 = arith.constant 40 : index
    %c0_116 = arith.constant 0 : index
    %272 = vector.load %arg5[%c40, %c0_116] : memref<86x128xf32, #tpu.memory_space<vmem>>, vector<1x64xf32>
    %273 = vector.broadcast %272 : vector<1x64xf32> to vector<128x64xf32>
    %274 = arith.addf %271, %273 : vector<128x64xf32>
    %c1024 = arith.constant 1024 : index
    %c0_117 = arith.constant 0 : index
    %275 = vector.load %arg4[%c1024, %c0_117] : memref<2464x128xbf16, #tpu.memory_space<vmem>>, vector<64x64xbf16>
    %276 = arith.truncf %55 : vector<128x64xf32> to vector<128x64xbf16>
    %cst_118 = arith.constant dense<0.000000e+00> : vector<128x64xf32>
    %277 = tpu.matmul %276, %275, %cst_118 {dimension_numbers = #tpu.dot_dimension_numbers<[1], [0], [0], [1], [0, 0, 1, 1], [], []>} : vector<128x64xbf16>, vector<64x64xbf16>, vector<128x64xf32> -> vector<128x64xf32>
    %c41 = arith.constant 41 : index
    %c0_119 = arith.constant 0 : index
    %278 = vector.load %arg5[%c41, %c0_119] : memref<86x128xf32, #tpu.memory_space<vmem>>, vector<1x64xf32>
    %279 = vector.broadcast %278 : vector<1x64xf32> to vector<128x64xf32>
    %280 = arith.addf %277, %279 : vector<128x64xf32>
    %c42 = arith.constant 42 : index
    %c0_120 = arith.constant 0 : index
    %281 = vector.load %arg5[%c42, %c0_120] : memref<86x128xf32, #tpu.memory_space<vmem>>, vector<1x64xf32>
    %282 = vector.broadcast %281 : vector<1x64xf32> to vector<128x64xf32>
    %283 = arith.addf %280, %282 : vector<128x64xf32>
    %284 = arith.addf %274, %283 : vector<128x64xf32>
    %c0_121 = arith.constant 0 : index
    %c0_122 = arith.constant 0 : index
    %285 = vector.load %arg6[%c0_121, %c0_122] : memref<288x128xf32, #tpu.memory_space<vmem>>, vector<64x64xf32>
    %cst_123 = arith.constant dense<0.000000e+00> : vector<128x64xf32>
    %286 = tpu.matmul %284, %285, %cst_123 {dimension_numbers = #tpu.dot_dimension_numbers<[1], [0], [0], [1], [0, 0, 1, 1], [], []>} : vector<128x64xf32>, vector<64x64xf32>, vector<128x64xf32> -> vector<128x64xf32>
    %287 = arith.mulf %284, %284 : vector<128x64xf32>
    %cst_124 = arith.constant dense<0.000000e+00> : vector<128x64xf32>
    %288 = tpu.matmul %287, %285, %cst_124 {dimension_numbers = #tpu.dot_dimension_numbers<[1], [0], [0], [1], [0, 0, 1, 1], [], []>} : vector<128x64xf32>, vector<64x64xf32>, vector<128x64xf32> -> vector<128x64xf32>
    %289 = arith.mulf %286, %286 : vector<128x64xf32>
    %290 = arith.subf %288, %289 : vector<128x64xf32>
    %cst_125 = arith.constant 0.000000e+00 : f32
    %291 = vector.broadcast %cst_125 : f32 to vector<128x64xf32>
    %292 = arith.maximumf %290, %291 : vector<128x64xf32>
    %293 = arith.subf %284, %286 : vector<128x64xf32>
    %cst_126 = arith.constant 9.99999974E-6 : f32
    %294 = vector.broadcast %cst_126 : f32 to vector<128x64xf32>
    %295 = arith.addf %292, %294 : vector<128x64xf32>
    %296 = math.rsqrt %295 : vector<128x64xf32>
    %297 = arith.mulf %293, %296 : vector<128x64xf32>
    %c43 = arith.constant 43 : index
    %c0_127 = arith.constant 0 : index
    %298 = vector.load %arg5[%c43, %c0_127] : memref<86x128xf32, #tpu.memory_space<vmem>>, vector<1x64xf32>
    %299 = vector.broadcast %298 : vector<1x64xf32> to vector<128x64xf32>
    %300 = arith.mulf %297, %299 : vector<128x64xf32>
    %c44 = arith.constant 44 : index
    %c0_128 = arith.constant 0 : index
    %301 = vector.load %arg5[%c44, %c0_128] : memref<86x128xf32, #tpu.memory_space<vmem>>, vector<1x64xf32>
    %302 = vector.broadcast %301 : vector<1x64xf32> to vector<128x64xf32>
    %303 = arith.addf %300, %302 : vector<128x64xf32>
    %304 = arith.negf %303 : vector<128x64xf32>
    %305 = math.exp %304 : vector<128x64xf32>
    %cst_129 = arith.constant 1.000000e+00 : f32
    %306 = vector.broadcast %cst_129 : f32 to vector<128x64xf32>
    %307 = arith.addf %306, %305 : vector<128x64xf32>
    %308 = arith.divf %306, %307 : vector<128x64xf32>
    %309 = arith.mulf %303, %308 : vector<128x64xf32>
    %c1088 = arith.constant 1088 : index
    %c0_130 = arith.constant 0 : index
    %310 = vector.load %arg4[%c1088, %c0_130] : memref<2464x128xbf16, #tpu.memory_space<vmem>>, vector<64x64xbf16>
    %311 = arith.truncf %309 : vector<128x64xf32> to vector<128x64xbf16>
    %cst_131 = arith.constant dense<0.000000e+00> : vector<128x64xf32>
    %312 = tpu.matmul %311, %310, %cst_131 {dimension_numbers = #tpu.dot_dimension_numbers<[1], [0], [0], [1], [0, 0, 1, 1], [], []>} : vector<128x64xbf16>, vector<64x64xbf16>, vector<128x64xf32> -> vector<128x64xf32>
    %c45 = arith.constant 45 : index
    %c0_132 = arith.constant 0 : index
    %313 = vector.load %arg5[%c45, %c0_132] : memref<86x128xf32, #tpu.memory_space<vmem>>, vector<1x64xf32>
    %314 = vector.broadcast %313 : vector<1x64xf32> to vector<128x64xf32>
    %315 = arith.addf %312, %314 : vector<128x64xf32>
    %316 = arith.addf %243, %315 : vector<128x64xf32>
    %317 = tpu.concatenate %316, %122 in 1 : vector<128x64xf32>, vector<128x64xf32> -> vector<128x128xf32>
    %c160 = arith.constant 160 : index
    %c0_133 = arith.constant 0 : index
    %318 = vector.load %arg6[%c160, %c0_133] : memref<288x128xf32, #tpu.memory_space<vmem>>, vector<128x128xf32>
    %cst_134 = arith.constant dense<0.000000e+00> : vector<128x128xf32>
    %319 = tpu.matmul %317, %318, %cst_134 {dimension_numbers = #tpu.dot_dimension_numbers<[1], [0], [0], [1], [0, 0, 1, 1], [], []>} : vector<128x128xf32>, vector<128x128xf32>, vector<128x128xf32> -> vector<128x128xf32>
    %320 = arith.mulf %317, %317 : vector<128x128xf32>
    %cst_135 = arith.constant dense<0.000000e+00> : vector<128x128xf32>
    %321 = tpu.matmul %320, %318, %cst_135 {dimension_numbers = #tpu.dot_dimension_numbers<[1], [0], [0], [1], [0, 0, 1, 1], [], []>} : vector<128x128xf32>, vector<128x128xf32>, vector<128x128xf32> -> vector<128x128xf32>
    %322 = arith.mulf %319, %319 : vector<128x128xf32>
    %323 = arith.subf %321, %322 : vector<128x128xf32>
    %cst_136 = arith.constant 0.000000e+00 : f32
    %324 = vector.broadcast %cst_136 : f32 to vector<128x128xf32>
    %325 = arith.maximumf %323, %324 : vector<128x128xf32>
    %326 = arith.subf %317, %319 : vector<128x128xf32>
    %cst_137 = arith.constant 9.99999974E-6 : f32
    %327 = vector.broadcast %cst_137 : f32 to vector<128x128xf32>
    %328 = arith.addf %325, %327 : vector<128x128xf32>
    %329 = math.rsqrt %328 : vector<128x128xf32>
    %330 = arith.mulf %326, %329 : vector<128x128xf32>
    %c46 = arith.constant 46 : index
    %c0_138 = arith.constant 0 : index
    %331 = vector.load %arg5[%c46, %c0_138] : memref<86x128xf32, #tpu.memory_space<vmem>>, vector<1x128xf32>
    %332 = vector.broadcast %331 : vector<1x128xf32> to vector<128x128xf32>
    %333 = arith.mulf %330, %332 : vector<128x128xf32>
    %c47 = arith.constant 47 : index
    %c0_139 = arith.constant 0 : index
    %334 = vector.load %arg5[%c47, %c0_139] : memref<86x128xf32, #tpu.memory_space<vmem>>, vector<1x128xf32>
    %335 = vector.broadcast %334 : vector<1x128xf32> to vector<128x128xf32>
    %336 = arith.addf %333, %335 : vector<128x128xf32>
    %337 = arith.negf %336 : vector<128x128xf32>
    %338 = math.exp %337 : vector<128x128xf32>
    %cst_140 = arith.constant 1.000000e+00 : f32
    %339 = vector.broadcast %cst_140 : f32 to vector<128x128xf32>
    %340 = arith.addf %339, %338 : vector<128x128xf32>
    %341 = arith.divf %339, %340 : vector<128x128xf32>
    %342 = arith.mulf %336, %341 : vector<128x128xf32>
    %c1152 = arith.constant 1152 : index
    %c0_141 = arith.constant 0 : index
    %343 = vector.load %arg4[%c1152, %c0_141] : memref<2464x128xbf16, #tpu.memory_space<vmem>>, vector<128x64xbf16>
    %344 = arith.truncf %342 : vector<128x128xf32> to vector<128x128xbf16>
    %cst_142 = arith.constant dense<0.000000e+00> : vector<128x64xf32>
    %345 = tpu.matmul %344, %343, %cst_142 {dimension_numbers = #tpu.dot_dimension_numbers<[1], [0], [0], [1], [0, 0, 1, 1], [], []>} : vector<128x128xbf16>, vector<128x64xbf16>, vector<128x64xf32> -> vector<128x64xf32>
    %c48 = arith.constant 48 : index
    %c0_143 = arith.constant 0 : index
    %346 = vector.load %arg5[%c48, %c0_143] : memref<86x128xf32, #tpu.memory_space<vmem>>, vector<1x64xf32>
    %347 = vector.broadcast %346 : vector<1x64xf32> to vector<128x64xf32>
    %348 = arith.addf %345, %347 : vector<128x64xf32>
    %c1280 = arith.constant 1280 : index
    %c0_144 = arith.constant 0 : index
    %349 = vector.load %arg4[%c1280, %c0_144] : memref<2464x128xbf16, #tpu.memory_space<vmem>>, vector<64x64xbf16>
    %350 = arith.truncf %55 : vector<128x64xf32> to vector<128x64xbf16>
    %cst_145 = arith.constant dense<0.000000e+00> : vector<128x64xf32>
    %351 = tpu.matmul %350, %349, %cst_145 {dimension_numbers = #tpu.dot_dimension_numbers<[1], [0], [0], [1], [0, 0, 1, 1], [], []>} : vector<128x64xbf16>, vector<64x64xbf16>, vector<128x64xf32> -> vector<128x64xf32>
    %c49 = arith.constant 49 : index
    %c0_146 = arith.constant 0 : index
    %352 = vector.load %arg5[%c49, %c0_146] : memref<86x128xf32, #tpu.memory_space<vmem>>, vector<1x64xf32>
    %353 = vector.broadcast %352 : vector<1x64xf32> to vector<128x64xf32>
    %354 = arith.addf %351, %353 : vector<128x64xf32>
    %c50 = arith.constant 50 : index
    %c0_147 = arith.constant 0 : index
    %355 = vector.load %arg5[%c50, %c0_147] : memref<86x128xf32, #tpu.memory_space<vmem>>, vector<1x64xf32>
    %356 = vector.broadcast %355 : vector<1x64xf32> to vector<128x64xf32>
    %357 = arith.addf %354, %356 : vector<128x64xf32>
    %358 = arith.addf %348, %357 : vector<128x64xf32>
    %c0_148 = arith.constant 0 : index
    %c0_149 = arith.constant 0 : index
    %359 = vector.load %arg6[%c0_148, %c0_149] : memref<288x128xf32, #tpu.memory_space<vmem>>, vector<64x64xf32>
    %cst_150 = arith.constant dense<0.000000e+00> : vector<128x64xf32>
    %360 = tpu.matmul %358, %359, %cst_150 {dimension_numbers = #tpu.dot_dimension_numbers<[1], [0], [0], [1], [0, 0, 1, 1], [], []>} : vector<128x64xf32>, vector<64x64xf32>, vector<128x64xf32> -> vector<128x64xf32>
    %361 = arith.mulf %358, %358 : vector<128x64xf32>
    %cst_151 = arith.constant dense<0.000000e+00> : vector<128x64xf32>
    %362 = tpu.matmul %361, %359, %cst_151 {dimension_numbers = #tpu.dot_dimension_numbers<[1], [0], [0], [1], [0, 0, 1, 1], [], []>} : vector<128x64xf32>, vector<64x64xf32>, vector<128x64xf32> -> vector<128x64xf32>
    %363 = arith.mulf %360, %360 : vector<128x64xf32>
    %364 = arith.subf %362, %363 : vector<128x64xf32>
    %cst_152 = arith.constant 0.000000e+00 : f32
    %365 = vector.broadcast %cst_152 : f32 to vector<128x64xf32>
    %366 = arith.maximumf %364, %365 : vector<128x64xf32>
    %367 = arith.subf %358, %360 : vector<128x64xf32>
    %cst_153 = arith.constant 9.99999974E-6 : f32
    %368 = vector.broadcast %cst_153 : f32 to vector<128x64xf32>
    %369 = arith.addf %366, %368 : vector<128x64xf32>
    %370 = math.rsqrt %369 : vector<128x64xf32>
    %371 = arith.mulf %367, %370 : vector<128x64xf32>
    %c51 = arith.constant 51 : index
    %c0_154 = arith.constant 0 : index
    %372 = vector.load %arg5[%c51, %c0_154] : memref<86x128xf32, #tpu.memory_space<vmem>>, vector<1x64xf32>
    %373 = vector.broadcast %372 : vector<1x64xf32> to vector<128x64xf32>
    %374 = arith.mulf %371, %373 : vector<128x64xf32>
    %c52 = arith.constant 52 : index
    %c0_155 = arith.constant 0 : index
    %375 = vector.load %arg5[%c52, %c0_155] : memref<86x128xf32, #tpu.memory_space<vmem>>, vector<1x64xf32>
    %376 = vector.broadcast %375 : vector<1x64xf32> to vector<128x64xf32>
    %377 = arith.addf %374, %376 : vector<128x64xf32>
    %378 = arith.negf %377 : vector<128x64xf32>
    %379 = math.exp %378 : vector<128x64xf32>
    %cst_156 = arith.constant 1.000000e+00 : f32
    %380 = vector.broadcast %cst_156 : f32 to vector<128x64xf32>
    %381 = arith.addf %380, %379 : vector<128x64xf32>
    %382 = arith.divf %380, %381 : vector<128x64xf32>
    %383 = arith.mulf %377, %382 : vector<128x64xf32>
    %c1344 = arith.constant 1344 : index
    %c0_157 = arith.constant 0 : index
    %384 = vector.load %arg4[%c1344, %c0_157] : memref<2464x128xbf16, #tpu.memory_space<vmem>>, vector<64x64xbf16>
    %385 = arith.truncf %383 : vector<128x64xf32> to vector<128x64xbf16>
    %cst_158 = arith.constant dense<0.000000e+00> : vector<128x64xf32>
    %386 = tpu.matmul %385, %384, %cst_158 {dimension_numbers = #tpu.dot_dimension_numbers<[1], [0], [0], [1], [0, 0, 1, 1], [], []>} : vector<128x64xbf16>, vector<64x64xbf16>, vector<128x64xf32> -> vector<128x64xf32>
    %c53 = arith.constant 53 : index
    %c0_159 = arith.constant 0 : index
    %387 = vector.load %arg5[%c53, %c0_159] : memref<86x128xf32, #tpu.memory_space<vmem>>, vector<1x64xf32>
    %388 = vector.broadcast %387 : vector<1x64xf32> to vector<128x64xf32>
    %389 = arith.addf %386, %388 : vector<128x64xf32>
    %c1408 = arith.constant 1408 : index
    %c0_160 = arith.constant 0 : index
    %390 = vector.load %arg4[%c1408, %c0_160] : memref<2464x128xbf16, #tpu.memory_space<vmem>>, vector<128x64xbf16>
    %391 = arith.truncf %317 : vector<128x128xf32> to vector<128x128xbf16>
    %cst_161 = arith.constant dense<0.000000e+00> : vector<128x64xf32>
    %392 = tpu.matmul %391, %390, %cst_161 {dimension_numbers = #tpu.dot_dimension_numbers<[1], [0], [0], [1], [0, 0, 1, 1], [], []>} : vector<128x128xbf16>, vector<128x64xbf16>, vector<128x64xf32> -> vector<128x64xf32>
    %c54 = arith.constant 54 : index
    %c0_162 = arith.constant 0 : index
    %393 = vector.load %arg5[%c54, %c0_162] : memref<86x128xf32, #tpu.memory_space<vmem>>, vector<1x64xf32>
    %394 = vector.broadcast %393 : vector<1x64xf32> to vector<128x64xf32>
    %395 = arith.addf %392, %394 : vector<128x64xf32>
    %396 = arith.addf %395, %389 : vector<128x64xf32>
    %397 = tpu.concatenate %396, %72 in 1 : vector<128x64xf32>, vector<128x32xf32> -> vector<128x96xf32>
    %c64_163 = arith.constant 64 : index
    %c0_164 = arith.constant 0 : index
    %398 = vector.load %arg6[%c64_163, %c0_164] : memref<288x128xf32, #tpu.memory_space<vmem>>, vector<96x96xf32>
    %cst_165 = arith.constant dense<0.000000e+00> : vector<128x96xf32>
    %399 = tpu.matmul %397, %398, %cst_165 {dimension_numbers = #tpu.dot_dimension_numbers<[1], [0], [0], [1], [0, 0, 1, 1], [], []>} : vector<128x96xf32>, vector<96x96xf32>, vector<128x96xf32> -> vector<128x96xf32>
    %400 = arith.mulf %397, %397 : vector<128x96xf32>
    %cst_166 = arith.constant dense<0.000000e+00> : vector<128x96xf32>
    %401 = tpu.matmul %400, %398, %cst_166 {dimension_numbers = #tpu.dot_dimension_numbers<[1], [0], [0], [1], [0, 0, 1, 1], [], []>} : vector<128x96xf32>, vector<96x96xf32>, vector<128x96xf32> -> vector<128x96xf32>
    %402 = arith.mulf %399, %399 : vector<128x96xf32>
    %403 = arith.subf %401, %402 : vector<128x96xf32>
    %cst_167 = arith.constant 0.000000e+00 : f32
    %404 = vector.broadcast %cst_167 : f32 to vector<128x96xf32>
    %405 = arith.maximumf %403, %404 : vector<128x96xf32>
    %406 = arith.subf %397, %399 : vector<128x96xf32>
    %cst_168 = arith.constant 9.99999974E-6 : f32
    %407 = vector.broadcast %cst_168 : f32 to vector<128x96xf32>
    %408 = arith.addf %405, %407 : vector<128x96xf32>
    %409 = math.rsqrt %408 : vector<128x96xf32>
    %410 = arith.mulf %406, %409 : vector<128x96xf32>
    %c55 = arith.constant 55 : index
    %c0_169 = arith.constant 0 : index
    %411 = vector.load %arg5[%c55, %c0_169] : memref<86x128xf32, #tpu.memory_space<vmem>>, vector<1x96xf32>
    %412 = vector.broadcast %411 : vector<1x96xf32> to vector<128x96xf32>
    %413 = arith.mulf %410, %412 : vector<128x96xf32>
    %c56 = arith.constant 56 : index
    %c0_170 = arith.constant 0 : index
    %414 = vector.load %arg5[%c56, %c0_170] : memref<86x128xf32, #tpu.memory_space<vmem>>, vector<1x96xf32>
    %415 = vector.broadcast %414 : vector<1x96xf32> to vector<128x96xf32>
    %416 = arith.addf %413, %415 : vector<128x96xf32>
    %417 = arith.negf %416 : vector<128x96xf32>
    %418 = math.exp %417 : vector<128x96xf32>
    %cst_171 = arith.constant 1.000000e+00 : f32
    %419 = vector.broadcast %cst_171 : f32 to vector<128x96xf32>
    %420 = arith.addf %419, %418 : vector<128x96xf32>
    %421 = arith.divf %419, %420 : vector<128x96xf32>
    %422 = arith.mulf %416, %421 : vector<128x96xf32>
    %c1536 = arith.constant 1536 : index
    %c0_172 = arith.constant 0 : index
    %423 = vector.load %arg4[%c1536, %c0_172] : memref<2464x128xbf16, #tpu.memory_space<vmem>>, vector<96x64xbf16>
    %424 = arith.truncf %422 : vector<128x96xf32> to vector<128x96xbf16>
    %cst_173 = arith.constant dense<0.000000e+00> : vector<128x64xf32>
    %425 = tpu.matmul %424, %423, %cst_173 {dimension_numbers = #tpu.dot_dimension_numbers<[1], [0], [0], [1], [0, 0, 1, 1], [], []>} : vector<128x96xbf16>, vector<96x64xbf16>, vector<128x64xf32> -> vector<128x64xf32>
    %c57 = arith.constant 57 : index
    %c0_174 = arith.constant 0 : index
    %426 = vector.load %arg5[%c57, %c0_174] : memref<86x128xf32, #tpu.memory_space<vmem>>, vector<1x64xf32>
    %427 = vector.broadcast %426 : vector<1x64xf32> to vector<128x64xf32>
    %428 = arith.addf %425, %427 : vector<128x64xf32>
    %c1632 = arith.constant 1632 : index
    %c0_175 = arith.constant 0 : index
    %429 = vector.load %arg4[%c1632, %c0_175] : memref<2464x128xbf16, #tpu.memory_space<vmem>>, vector<64x64xbf16>
    %430 = arith.truncf %55 : vector<128x64xf32> to vector<128x64xbf16>
    %cst_176 = arith.constant dense<0.000000e+00> : vector<128x64xf32>
    %431 = tpu.matmul %430, %429, %cst_176 {dimension_numbers = #tpu.dot_dimension_numbers<[1], [0], [0], [1], [0, 0, 1, 1], [], []>} : vector<128x64xbf16>, vector<64x64xbf16>, vector<128x64xf32> -> vector<128x64xf32>
    %c58 = arith.constant 58 : index
    %c0_177 = arith.constant 0 : index
    %432 = vector.load %arg5[%c58, %c0_177] : memref<86x128xf32, #tpu.memory_space<vmem>>, vector<1x64xf32>
    %433 = vector.broadcast %432 : vector<1x64xf32> to vector<128x64xf32>
    %434 = arith.addf %431, %433 : vector<128x64xf32>
    %c59 = arith.constant 59 : index
    %c0_178 = arith.constant 0 : index
    %435 = vector.load %arg5[%c59, %c0_178] : memref<86x128xf32, #tpu.memory_space<vmem>>, vector<1x64xf32>
    %436 = vector.broadcast %435 : vector<1x64xf32> to vector<128x64xf32>
    %437 = arith.addf %434, %436 : vector<128x64xf32>
    %438 = arith.addf %428, %437 : vector<128x64xf32>
    %c0_179 = arith.constant 0 : index
    %c0_180 = arith.constant 0 : index
    %439 = vector.load %arg6[%c0_179, %c0_180] : memref<288x128xf32, #tpu.memory_space<vmem>>, vector<64x64xf32>
    %cst_181 = arith.constant dense<0.000000e+00> : vector<128x64xf32>
    %440 = tpu.matmul %438, %439, %cst_181 {dimension_numbers = #tpu.dot_dimension_numbers<[1], [0], [0], [1], [0, 0, 1, 1], [], []>} : vector<128x64xf32>, vector<64x64xf32>, vector<128x64xf32> -> vector<128x64xf32>
    %441 = arith.mulf %438, %438 : vector<128x64xf32>
    %cst_182 = arith.constant dense<0.000000e+00> : vector<128x64xf32>
    %442 = tpu.matmul %441, %439, %cst_182 {dimension_numbers = #tpu.dot_dimension_numbers<[1], [0], [0], [1], [0, 0, 1, 1], [], []>} : vector<128x64xf32>, vector<64x64xf32>, vector<128x64xf32> -> vector<128x64xf32>
    %443 = arith.mulf %440, %440 : vector<128x64xf32>
    %444 = arith.subf %442, %443 : vector<128x64xf32>
    %cst_183 = arith.constant 0.000000e+00 : f32
    %445 = vector.broadcast %cst_183 : f32 to vector<128x64xf32>
    %446 = arith.maximumf %444, %445 : vector<128x64xf32>
    %447 = arith.subf %438, %440 : vector<128x64xf32>
    %cst_184 = arith.constant 9.99999974E-6 : f32
    %448 = vector.broadcast %cst_184 : f32 to vector<128x64xf32>
    %449 = arith.addf %446, %448 : vector<128x64xf32>
    %450 = math.rsqrt %449 : vector<128x64xf32>
    %451 = arith.mulf %447, %450 : vector<128x64xf32>
    %c60 = arith.constant 60 : index
    %c0_185 = arith.constant 0 : index
    %452 = vector.load %arg5[%c60, %c0_185] : memref<86x128xf32, #tpu.memory_space<vmem>>, vector<1x64xf32>
    %453 = vector.broadcast %452 : vector<1x64xf32> to vector<128x64xf32>
    %454 = arith.mulf %451, %453 : vector<128x64xf32>
    %c61 = arith.constant 61 : index
    %c0_186 = arith.constant 0 : index
    %455 = vector.load %arg5[%c61, %c0_186] : memref<86x128xf32, #tpu.memory_space<vmem>>, vector<1x64xf32>
    %456 = vector.broadcast %455 : vector<1x64xf32> to vector<128x64xf32>
    %457 = arith.addf %454, %456 : vector<128x64xf32>
    %458 = arith.negf %457 : vector<128x64xf32>
    %459 = math.exp %458 : vector<128x64xf32>
    %cst_187 = arith.constant 1.000000e+00 : f32
    %460 = vector.broadcast %cst_187 : f32 to vector<128x64xf32>
    %461 = arith.addf %460, %459 : vector<128x64xf32>
    %462 = arith.divf %460, %461 : vector<128x64xf32>
    %463 = arith.mulf %457, %462 : vector<128x64xf32>
    %c1696 = arith.constant 1696 : index
    %c0_188 = arith.constant 0 : index
    %464 = vector.load %arg4[%c1696, %c0_188] : memref<2464x128xbf16, #tpu.memory_space<vmem>>, vector<64x64xbf16>
    %465 = arith.truncf %463 : vector<128x64xf32> to vector<128x64xbf16>
    %cst_189 = arith.constant dense<0.000000e+00> : vector<128x64xf32>
    %466 = tpu.matmul %465, %464, %cst_189 {dimension_numbers = #tpu.dot_dimension_numbers<[1], [0], [0], [1], [0, 0, 1, 1], [], []>} : vector<128x64xbf16>, vector<64x64xbf16>, vector<128x64xf32> -> vector<128x64xf32>
    %c62 = arith.constant 62 : index
    %c0_190 = arith.constant 0 : index
    %467 = vector.load %arg5[%c62, %c0_190] : memref<86x128xf32, #tpu.memory_space<vmem>>, vector<1x64xf32>
    %468 = vector.broadcast %467 : vector<1x64xf32> to vector<128x64xf32>
    %469 = arith.addf %466, %468 : vector<128x64xf32>
    %c1760 = arith.constant 1760 : index
    %c0_191 = arith.constant 0 : index
    %470 = vector.load %arg4[%c1760, %c0_191] : memref<2464x128xbf16, #tpu.memory_space<vmem>>, vector<96x64xbf16>
    %471 = arith.truncf %397 : vector<128x96xf32> to vector<128x96xbf16>
    %cst_192 = arith.constant dense<0.000000e+00> : vector<128x64xf32>
    %472 = tpu.matmul %471, %470, %cst_192 {dimension_numbers = #tpu.dot_dimension_numbers<[1], [0], [0], [1], [0, 0, 1, 1], [], []>} : vector<128x96xbf16>, vector<96x64xbf16>, vector<128x64xf32> -> vector<128x64xf32>
    %c63 = arith.constant 63 : index
    %c0_193 = arith.constant 0 : index
    %473 = vector.load %arg5[%c63, %c0_193] : memref<86x128xf32, #tpu.memory_space<vmem>>, vector<1x64xf32>
    %474 = vector.broadcast %473 : vector<1x64xf32> to vector<128x64xf32>
    %475 = arith.addf %472, %474 : vector<128x64xf32>
    %476 = arith.addf %475, %469 : vector<128x64xf32>
    %c1856 = arith.constant 1856 : index
    %c0_194 = arith.constant 0 : index
    %477 = vector.load %arg4[%c1856, %c0_194] : memref<2464x128xbf16, #tpu.memory_space<vmem>>, vector<64x64xbf16>
    %478 = arith.truncf %476 : vector<128x64xf32> to vector<128x64xbf16>
    %cst_195 = arith.constant dense<0.000000e+00> : vector<128x64xf32>
    %479 = tpu.matmul %478, %477, %cst_195 {dimension_numbers = #tpu.dot_dimension_numbers<[1], [0], [0], [1], [0, 0, 1, 1], [], []>} : vector<128x64xbf16>, vector<64x64xbf16>, vector<128x64xf32> -> vector<128x64xf32>
    %c64_196 = arith.constant 64 : index
    %c0_197 = arith.constant 0 : index
    %480 = vector.load %arg5[%c64_196, %c0_197] : memref<86x128xf32, #tpu.memory_space<vmem>>, vector<1x64xf32>
    %481 = vector.broadcast %480 : vector<1x64xf32> to vector<128x64xf32>
    %482 = arith.addf %479, %481 : vector<128x64xf32>
    %cst_198 = arith.constant 0.000000e+00 : f32
    %483 = vector.broadcast %cst_198 : f32 to vector<128x64xf32>
    %484 = arith.maximumf %482, %483 : vector<128x64xf32>
    %485 = tpu.concatenate %484, %64 in 1 : vector<128x64xf32>, vector<128x32xf32> -> vector<128x96xf32>
    %c2112 = arith.constant 2112 : index
    %c0_199 = arith.constant 0 : index
    %486 = vector.load %arg4[%c2112, %c0_199] : memref<2464x128xbf16, #tpu.memory_space<vmem>>, vector<96x32xbf16>
    %487 = arith.truncf %485 : vector<128x96xf32> to vector<128x96xbf16>
    %cst_200 = arith.constant dense<0.000000e+00> : vector<128x32xf32>
    %488 = tpu.matmul %487, %486, %cst_200 {dimension_numbers = #tpu.dot_dimension_numbers<[1], [0], [0], [1], [0, 0, 1, 1], [], []>} : vector<128x96xbf16>, vector<96x32xbf16>, vector<128x32xf32> -> vector<128x32xf32>
    %c72 = arith.constant 72 : index
    %c0_201 = arith.constant 0 : index
    %489 = vector.load %arg5[%c72, %c0_201] : memref<86x128xf32, #tpu.memory_space<vmem>>, vector<1x32xf32>
    %490 = vector.broadcast %489 : vector<1x32xf32> to vector<128x32xf32>
    %491 = arith.addf %488, %490 : vector<128x32xf32>
    %c73 = arith.constant 73 : index
    %c0_202 = arith.constant 0 : index
    %492 = vector.load %arg5[%c73, %c0_202] : memref<86x128xf32, #tpu.memory_space<vmem>>, vector<1x32xf32>
    %493 = vector.broadcast %492 : vector<1x32xf32> to vector<128x32xf32>
    %494 = arith.addf %491, %493 : vector<128x32xf32>
    %495 = tpu.concatenate %494, %61 in 1 : vector<128x32xf32>, vector<128x32xf32> -> vector<128x64xf32>
    %c2368 = arith.constant 2368 : index
    %c0_203 = arith.constant 0 : index
    %496 = vector.load %arg4[%c2368, %c0_203] : memref<2464x128xbf16, #tpu.memory_space<vmem>>, vector<64x32xbf16>
    %497 = arith.truncf %495 : vector<128x64xf32> to vector<128x64xbf16>
    %cst_204 = arith.constant dense<0.000000e+00> : vector<128x32xf32>
    %498 = tpu.matmul %497, %496, %cst_204 {dimension_numbers = #tpu.dot_dimension_numbers<[1], [0], [0], [1], [0, 0, 1, 1], [], []>} : vector<128x64xbf16>, vector<64x32xbf16>, vector<128x32xf32> -> vector<128x32xf32>
    %c81 = arith.constant 81 : index
    %c0_205 = arith.constant 0 : index
    %499 = vector.load %arg5[%c81, %c0_205] : memref<86x128xf32, #tpu.memory_space<vmem>>, vector<1x32xf32>
    %500 = vector.broadcast %499 : vector<1x32xf32> to vector<128x32xf32>
    %501 = arith.addf %498, %500 : vector<128x32xf32>
    %c82 = arith.constant 82 : index
    %c0_206 = arith.constant 0 : index
    %502 = vector.load %arg5[%c82, %c0_206] : memref<86x128xf32, #tpu.memory_space<vmem>>, vector<1x32xf32>
    %503 = vector.broadcast %502 : vector<1x32xf32> to vector<128x32xf32>
    %504 = arith.addf %501, %503 : vector<128x32xf32>
    %c85 = arith.constant 85 : index
    %c0_207 = arith.constant 0 : index
    %505 = vector.load %arg5[%c85, %c0_207] : memref<86x128xf32, #tpu.memory_space<vmem>>, vector<1x16xf32>
    %506 = vector.shape_cast %505 : vector<1x16xf32> to vector<1x16xf32>
    %507 = vector.broadcast %506 : vector<1x16xf32> to vector<128x16xf32>
    %cst_208 = arith.constant 0.000000e+00 : f32
    %508 = vector.broadcast %cst_208 : f32 to vector<128x48xf32>
    %509 = tpu.concatenate %507, %24, %504, %508 in 1 : vector<128x16xf32>, vector<128x32xf32>, vector<128x32xf32>, vector<128x48xf32> -> vector<128x128xf32>
    %c0_209 = arith.constant 0 : index
    %c0_210 = arith.constant 0 : index
    %510 = vector.load %arg7[%c0_209, %c0_210] : memref<128x128xf32, #tpu.memory_space<vmem>>, vector<128x128xf32>
    tpu.vector_store %arg7[%c0_209, %c0_210], %509 {strides = array<i32>} : memref<128x128xf32, #tpu.memory_space<vmem>>, vector<128x128xf32>,
    return
  }
  func.func @transform_0(%arg0: i32) -> (i32, i32) {
    %c0_i32 = arith.constant 0 : i32
    %c0_i32_0 = arith.constant 0 : i32
    return %arg0, %c0_i32 : i32, i32
  }
  func.func @transform_1(%arg0: i32) -> (i32, i32) {
    %c0_i32 = arith.constant 0 : i32
    %c0_i32_0 = arith.constant 0 : i32
    return %arg0, %c0_i32 : i32, i32
  }
  func.func @transform_2(%arg0: i32) -> (i32, i32) {
    %c0_i32 = arith.constant 0 : i32
    %c0_i32_0 = arith.constant 0 : i32
    return %arg0, %c0_i32 : i32, i32
  }
  func.func @transform_3(%arg0: i32) -> (i32, i32) {
    %c0_i32 = arith.constant 0 : i32
    %c0_i32_0 = arith.constant 0 : i32
    %c0_i32_1 = arith.constant 0 : i32
    return %c0_i32, %c0_i32_0 : i32, i32
  }
  func.func @transform_4(%arg0: i32) -> (i32, i32) {
    %c0_i32 = arith.constant 0 : i32
    %c0_i32_0 = arith.constant 0 : i32
    %c0_i32_1 = arith.constant 0 : i32
    return %c0_i32, %c0_i32_0 : i32, i32
  }
  func.func @transform_5(%arg0: i32) -> (i32, i32) {
    %c0_i32 = arith.constant 0 : i32
    %c0_i32_0 = arith.constant 0 : i32
    %c0_i32_1 = arith.constant 0 : i32
    return %c0_i32, %c0_i32_0 : i32, i32
  }
  func.func @transform_6(%arg0: i32) -> (i32, i32) {
    %c0_i32 = arith.constant 0 : i32
    %c0_i32_0 = arith.constant 0 : i32
    return %arg0, %c0_i32 : i32, i32
  }
}

</mosaic_0001>

<bundles_post_ra>
// kernel: tpu_custom_call.1
= control target key start
LH: loop header
LB: loop body
LE: loop exit
PB: predicated region body
PF: predicated region fallthrough
CT: control target
= control target key end

     0   :  { %11 = vsyncpa [#allocation3], 0  ;;  %s24495_s0 = inlined_call_operand.vmem [shape: f32[256,16], index: 0, kind: input, shape index: {}]   ;;  %s24496_s1 = inlined_call_operand.vmem [shape: f32[256,16], index: 1, kind: input, shape index: {}]   ;;  %s24497_s2 = inlined_call_operand.vmem [shape: f32[256,32], index: 2, kind: input, shape index: {}]   ;;  %s24498_s3 = inlined_call_operand.hbm [shape: bf16[2464,128], index: 3, kind: input, shape index: {}]   ;;  %s24499_s4 = inlined_call_operand.vmem [shape: f32[86,128], index: 4, kind: input, shape index: {}]   ;;  %s24500_s5 = inlined_call_operand.vmem [shape: f32[288,128], index: 5, kind: input, shape index: {}]   ;;  %s24501_s6 = inlined_call_operand.hbm [shape: f32[256,128], index: 6, kind: output, shape index: {}]  }
   0x1   :  { %12 = vsyncpa [#allocation4], 0 }
   0x2   :  { %14 = vsyncpa [#allocation4 + $0x1], 0  ;;  %s18968_s21 = smov 0   ;;  %s18970_s22 = smov 0  }
   0x3   :  { %s18972_s23 = smov 0   ;;  %s18974_s24 = smov 0  }
   0x4 LB: > { %s18989_s25 = sadd.s32 4294967295, %s18921_s24   ;;  %s13303_s26 = sadd.s32 4294967294, %s18921_s24   ;;  %s18921_s24 = sphi %s18974_s24, %s24937_s24   ;;  %s18917_s23 = sphi %s18972_s23, %s24936_s23   ;;  %s18913_s22 = sphi %s18970_s22, %s24935_s22   ;;  %s18909_s21 = sphi %s18968_s21, %s24934_s21  }
   0x5   : > { %s18993_s27 = sadd.s32 1, %s18921_s24   ;;  %s168_s28 = sadd.s32 1, %s18917_s23 }
   0x6   : > { %s165_s29 = ssub.s32 %s18921_s24, %s18993_s27  ;;  %p178_p0 = scmp.ne.s32.totalorder %s18917_s23, %s18913_s22 }
   0x7   : > { %p166_p1 = scmp.eq.s32.totalorder %s165_s29, 0  ;;  %p179_p2 = scmp.eq.s32.totalorder %s18989_s25, 1 }
   0x8   : > { %p184_p3 = scmp.ne.s32.totalorder %s18913_s22, %s18909_s21  ;;  %p185_p4 = scmp.eq.s32.totalorder %s13303_s26, 1 }
   0x9   : > { %s19004_s30 = scalar_select %p166_p1, %s18917_s23, %s168_s28  }
   0xa   : > { %p19006_p5 = por %p179_p2, %p178_p0  ;;  %p19010_p6 = por %p185_p4, %p184_p3 }
   0xb   : > { %p13304_p7 = scmp.ge.s32.totalorder %s18921_s24, 1  ;;  %p192_p8 = scmp.lt.s32.totalorder %s18921_s24, 3 }
   0xc   : > { %s24627_s7 = scalar_select %p19006_p5, 1, 0 }
   0xd   : > { %s24628_s8 = scalar_select %p19010_p6, 1, 0 }
   0xe   : > { %p24502_p9 = scmp.eq.s32.totalorder %s18989_s25, 0  ;;  %p19017_p10 = pnand %p13304_p7, %p192_p8 }
   0xf   : > { %s18923_s10 = smov [#allocation2]   ;;  %s18827_s15 = scalar_lea.hbm %s24498_s3, 19712 }
  0x10   : > { %s24629_s9 = scalar_select %p19017_p10, 1, 0 }
  0x11   : > { %s204_s11 = sshll.u32 %s18923_s10, 4  ;;  %p17447_p11 = pneg %p19017_p10  ;;  %s205_s11 = int_to_ptr.vmem [resolvable:$true] %s204_s11 }
  0x12   : > { %p18828_p13 = scmp.ne.s32.totalorder %s24498_s3, %s18827_s15  ;;  %p18834_p3 = scmp.lt.u32.totalorder %s18827_s15, %s24498_s3 }
  0x13   : > { %p19025_p12 = pnand %p24502_p9, %p17447_p11 }
  0x15   : > { %p18829_p0 = pneg %p19025_p12 }
  0x17   : > { %p18830_p1 = pnand %p18829_p0, %p18828_p13 }
  0x19   : > { %p18831_p2 = pneg %p18830_p1 }
  0x1b   : > { %p18836_p4 = pnand %p18834_p3, %p18831_p2 }
  0x1d   : > { %18839 = shalt.err (!%p18836_p4)
}
  0x1e   : > { %s18840_s20 = scalar_lea.vmem %s205_s11, 19712  ;;  %p18848_p9 = scmp.lt.s32.totalorder %s205_s11, %s205_s11 }
  0x1f   : > { %p18841_p7 = scmp.ne.s32.totalorder %s205_s11, %s18840_s20  ;;  %p18849_p6 = scmp.lt.s32.totalorder %s18840_s20, %s18840_s20 }
  0x21   : > { %p18843_p8 = pnand %p18841_p7, %p18829_p0  ;;  %p18850_p5 = por %p18849_p6, %p18848_p9 }
  0x23   : > { %p18844_p11 = pneg %p18843_p8 }
  0x25   : > { %p18851_p10 = pnand %p18850_p5, %p18844_p11 }
  0x27   : > { %18854 = shalt.err (!%p18851_p10)
}
  0x28   : > { %s18924_s26 = smov 64   ;;  %s18925_s28 = smov 4  }
  0x29   : > { %17450 = dma.hbm_to_vmem [thread:$0]  (!%p19025_p12), %s24498_s3, 19712, %s205_s11, [#allocation3], %s18924_s26, %s18924_s26, %s18925_s28  }
  0x2a   : > { %p24631_p13 = scmp.ne.s32.totalorder %s24629_s9, 0 }
  0x2c   : > { %253 = sbr.rel (%p24631_p13) target bundleno = 7943 (0x1f07), region = 44 }
  0x33   : > { %p24632_p1 = scmp.eq.s32.totalorder %s18989_s25, 0 }
  0x35   : > { %18900 = dma.done.wait (%p24632_p1), [#allocation3], 19712   ;;  %p24633_p0 = pmov %p24632_p1 }
  0x36   : > { %s13310_s13 = sshll.u32 %s18989_s25, 4  ;;  %v17619_v0 = vld [vmem:[#allocation2 + $0x20] sm:$0xff]   ;;  %vm382_vm0 = vcmask 130048   ;;  %v17620_v23 = vld [vmem:[#allocation2 + $0x28] sm:$0xff]   ;;  %v17621_v26 = vld [vmem:[#allocation2 + $0x30] sm:$0xff]   ;;  %vm549_vm1 = vcmask 261120  }
  0x37   : > { %18902 = vsyncadd (%p24633_p0), [#allocation3], 4294947584  ;;  %p294_p5 = scmp.lt.s32.totalorder %s13310_s13, 31  ;;  %15087 = vmatprep.subr.bf16.mxu0 %v17619_v0  ;;  %17039 = vmatprep.subr.bf16.mxu1 %v17619_v0  ;;  %v17622_v27 = vld [vmem:[#allocation2] sm:$0xff]   ;;  %v17624_v28 = vld [vmem:[#allocation2 + $0x38] sm:$0xff]   ;;  %vm1928_vm2 = vcmask 523264  }
  0x38   : > { %15088 = vmatpush3.bf16.msra.mxu0 %v17619_v0  ;;  %17040 = vmatpush3.bf16.msra.mxu1 %v17619_v0  ;;  %v13316_v29 = vld [vmem:[%s24499_s4 + $0x2] ss:$0 sm:$0xff]  ;;  %v17623_v60 = vld [vmem:[#allocation2 + $0x8] sm:$0xff]   ;;  %vm10206_vm3 = vcmask 785408   ;;  %s18929_s29 = smov 48   ;;  %s290_s10 = sand.u32 1, %s18913_s22  }
  0x39   : > { %s24939_s13 = smov (!%p294_p5, %s13310_s13), 31  ;;  %15105 = vmatprep.subr.bf16.mxu1 %v17620_v23  ;;  %15125 = vmatprep.subr.bf16.mxu0 %v17624_v28  ;;  %vm13141_vm4 = vcmask 392192   ;;  %vm13158_vm5 = vcmask 654336   ;;  %s14214_s15 = sshll.u32 %s18989_s25, 11 }
  0x3a   : > { %s19052_s14 = sshll.u32 %s24939_s13, 3  ;;  %s18927_s13 = smov 64  }
  0x3b   : > { %s19058_s11 = scalar_lea.vmem %s24496_s1, %s19052_s14  ;;  %s19096_s19 = scalar_lea.vmem %s24497_s2, %s19052_s14 }
  0x3c   : > { %v329_v1 = vld [vmem:[%s19058_s11] sm:$0xff]  ;;  %v330_v2 = vld [vmem:[%s19058_s11 + $0x8] sm:$0xff]  ;;  %v331_v3 = vld [vmem:[%s19058_s11 + $0x10] sm:$0xff]  ;;  %s19233_s12 = scalar_lea.vmem %s24495_s0, %s19052_s14  ;;  %s24444_s17 = scalar_lea.hbm %s24501_s6, %s14214_s15 }
  0x3d   : > { %v363_v4 = vpack.c.bf16 %v330_v2, %v329_v1  ;;  %v332_v5 = vld [vmem:[%s19058_s11 + $0x18] sm:$0xff]  ;;  %v333_v6 = vld [vmem:[%s19058_s11 + $0x20] sm:$0xff]  ;;  %v334_v7 = vld [vmem:[%s19058_s11 + $0x28] sm:$0xff]  ;;  %s24454_s18 = scalar_lea.sflag [#allocation4], %s290_s10  ;;  %p24932_p9 = scmp.ne.s32.totalorder %s24627_s7, 0 }
  0x3e   : > { %v364_v8 = vpack.c.bf16 %v332_v5, %v331_v3  ;;  %v365_v9 = vpack.c.bf16 %v334_v7, %v333_v6  ;;  %v337_v10 = vld [vmem:[%s19058_s11 + $0x40] sm:$0xff]  ;;  %v338_v11 = vld [vmem:[%s19058_s11 + $0x48] sm:$0xff]  ;;  %v339_v12 = vld [vmem:[%s19058_s11 + $0x50] sm:$0xff]  ;;  %s18930_s20 = smov [#allocation5]  }
  0x3f   : > { %15089 = vmatprep.mubr.msk.bf16.mxu0 %vm382_vm0, %v363_v4  ;;  %v340_v13 = vld [vmem:[%s19058_s11 + $0x58] sm:$0xff]  ;;  %v335_v14 = vld [vmem:[%s19058_s11 + $0x30] sm:$0xff]  ;;  %v367_v15 = vpack.c.bf16 %v338_v11, %v337_v10  ;;  %v341_v17 = vld [vmem:[%s19058_s11 + $0x60] sm:$0xff]  ;;  %s18859_s26 = sshll.u32 %s18930_s20, 4  ;;  %s18860_s26 = int_to_ptr.vmem [resolvable:$false] %s18859_s26 }
  0x40   : > { %v368_v16 = vpack.c.bf16 %v340_v13, %v339_v12  ;;  %v342_v18 = vld [vmem:[%s19058_s11 + $0x68] sm:$0xff]  ;;  %15090 = vmatmul.mubr.msk.bf16.vlgmr.msra.gmra.mrb[0].mxu0 %vm382_vm0, %v364_v8  ;;  %v336_v19 = vld [vmem:[%s19058_s11 + $0x38] sm:$0xff]  ;;  %v343_v21 = vld [vmem:[%s19058_s11 + $0x70] sm:$0xff]  ;;  %s18861_s28 = scalar_lea.vmem %s18860_s26, 4096 }
  0x41   : > { %v369_v20 = vpack.c.bf16 %v342_v18, %v341_v17  ;;  %15093 = vmatprep.mubr.msk.bf16.mxu0 %vm382_vm0, %v365_v9  ;;  %15097 = vmatprep.mubr.msk.bf16.mxu1 %vm382_vm0, %v367_v15  ;;  %v344_v22 = vld [vmem:[%s19058_s11 + $0x78] sm:$0xff]  ;;  %v366_v24 = vpack.c.bf16 %v336_v19, %v335_v14  ;;  %s18926_s11 = smov 32  }
  0x42   : > { %15098 = vmatmul.mubr.msk.bf16.vlgmr.msra.gmra.mrb[0].mxu1 %vm382_vm0, %v368_v16  ;;  %v370_v25 = vpack.c.bf16 %v344_v22, %v343_v21  ;;  %15126 = vmatpush3.bf16.msra.mxu0 %v17624_v28  ;;  %v349_v28 = vld [vmem:[%s19096_s19 + $0x20] sm:$0xff] }
  0x43   : > { %15101 = vmatprep.mubr.msk.bf16.mxu1 %vm382_vm0, %v369_v20  ;;  %15106 = vmatpush3.bf16.msra.mxu1 %v17620_v23  ;;  %v345_v23 = vld [vmem:[%s19096_s19] sm:$0xff] }
  0x44   : > { %15107 = vmatprep.subr.bf16.mxu1 %v17621_v26 }
  0x47   : > { %15108 = vmatpush3.bf16.msra.mxu1 %v17621_v26  ;;  %v347_v26 = vld [vmem:[%s19096_s19 + $0x10] sm:$0xff] }
  0x48   : > { %15094 = vmatmul.mubr.msk.bf16.gmra.mrb[4].mxu0 %vm382_vm0, %v366_v24  ;;  %15145 = vmatprep.subr.bf16.mxu1 %v17622_v27  ;;  %v346_v24 = vld [vmem:[%s19096_s19 + $0x8] sm:$0xff] }
  0x4a   : > { %15102 = vmatmul.mubr.msk.bf16.gmra.mrb[4].mxu1 %vm382_vm0, %v370_v25  ;;  %v841_v25 = vpack.c.bf16 %v346_v24, %v345_v23 }
 0x113   : > { %v15091_v30 = vpop.f32.mrb[0].mxu0 }
 0x114   : > { %v450_v31 = vadd.f32 %v15091_v30, %v13316_v29  ;;  %v441_v32 = vpop.f32.mrb[1].mxu0 }
 0x115   : > { %v442_v33 = vadd.f32 %v13316_v29, %v441_v32  ;;  %v15092_v34 = vpop.f32.mrb[2].mxu0  ;;  %v15099_v35 = vpop.f32.mrb[0].mxu1  ;;  %v351_v32 = vld [vmem:[%s19096_s19 + $0x30] sm:$0xff] }
 0x116   : > { %v453_v36 = vadd.f32 %v15092_v34, %v13316_v29  ;;  %v444_v37 = vpop.f32.mrb[3].mxu0  ;;  %v482_v38 = vadd.f32 %v15099_v35, %v13316_v29  ;;  %v473_v39 = vpop.f32.mrb[1].mxu1  ;;  %v506_v43 = vmax.f32 %v450_v31, 0.0  ;;  %v353_v34 = vld [vmem:[%s19096_s19 + $0x40] sm:$0xff]  ;;  %v354_v35 = vld [vmem:[%s19096_s19 + $0x48] sm:$0xff] }
 0x117   : > { %v445_v40 = vadd.f32 %v13316_v29, %v444_v37  ;;  %v474_v41 = vadd.f32 %v13316_v29, %v473_v39  ;;  %v15100_v42 = vpop.f32.mrb[2].mxu1  ;;  %v504_v48 = vmax.f32 %v442_v33, 0.0  ;;  %v352_v33 = vld [vmem:[%s19096_s19 + $0x38] sm:$0xff]  ;;  %v845_v37 = vpack.c.bf16 %v354_v35, %v353_v34 }
 0x118   : > { %v507_v44 = vmax.f32 %v453_v36, 0.0  ;;  %v514_v45 = vmax.f32 %v482_v38, 0.0  ;;  %v485_v46 = vadd.f32 %v15100_v42, %v13316_v29  ;;  %v476_v47 = vpop.f32.mrb[3].mxu1  ;;  %v844_v36 = vpack.c.bf16 %v352_v33, %v351_v32  ;;  %v355_v38 = vld [vmem:[%s19096_s19 + $0x50] sm:$0xff]  ;;  %v356_v39 = vld [vmem:[%s19096_s19 + $0x58] sm:$0xff] }
 0x119   : > { %v505_v49 = vmax.f32 %v445_v40, 0.0  ;;  %v512_v50 = vmax.f32 %v474_v41, 0.0  ;;  %v477_v51 = vadd.f32 %v13316_v29, %v476_v47  ;;  %v357_v40 = vld [vmem:[%s19096_s19 + $0x60] sm:$0xff]  ;;  %v358_v41 = vld [vmem:[%s19096_s19 + $0x68] sm:$0xff]  ;;  %v846_v42 = vpack.c.bf16 %v356_v39, %v355_v38 }
 0x11a   : > { %v525_v52 = vpack.c.bf16 %v507_v44, %v506_v43  ;;  %v515_v53 = vmax.f32 %v485_v46, 0.0  ;;  %v847_v43 = vpack.c.bf16 %v358_v41, %v357_v40  ;;  %v359_v44 = vld [vmem:[%s19096_s19 + $0x70] sm:$0xff]  ;;  %v17625_v47 = vld [vmem:[#allocation2 + $0x40] sm:$0xff]  }
 0x11b   : > { %v15095_v54 = vpop.f32.mrb[4].mxu0  ;;  %v524_v55 = vpack.c.bf16 %v505_v49, %v504_v48  ;;  %v513_v56 = vmax.f32 %v477_v51, 0.0  ;;  %15127 = vmatprep.subr.bf16.mxu0 %v17625_v47  ;;  %v17626_v48 = vld [vmem:[#allocation2 + $0x10] sm:$0xff]   ;;  %v13326_v49 = vld [vmem:[%s24499_s4 + $0x3] ss:$0 sm:$0xff] }
 0x11c   : > { %v466_v57 = vadd.f32 %v15095_v54, %v13316_v29  ;;  %v457_v58 = vpop.f32.mrb[5].mxu0  ;;  %v529_v59 = vpack.c.bf16 %v515_v53, %v514_v45  ;;  %v360_v45 = vld [vmem:[%s19096_s19 + $0x78] sm:$0xff]  ;;  %15128 = vmatpush3.bf16.msra.mxu0 %v17625_v47  ;;  %v19137_v41 = vld [vmem:[%s24499_s4] ss:$0 sm:$0xff] }
 0x11d   : > { %v458_v61 = vadd.f32 %v13316_v29, %v457_v58  ;;  %v15096_v62 = vpop.f32.mrb[6].mxu0  ;;  %15109 = vmatprep.mubr.msk.bf16.mxu1 %vm549_vm1, %v524_v55  ;;  %v528_v63 = vpack.c.bf16 %v513_v56, %v512_v50  ;;  %v15103_v0 = vpop.f32.mrb[4].mxu1  ;;  %v848_v46 = vpack.c.bf16 %v360_v45, %v359_v44  ;;  %15165 = vmatprep.subr.bf16.mxu0 %v17626_v48 }
 0x11e   : > { %v469_v1 = vadd.f32 %v15096_v62, %v13316_v29  ;;  %v460_v2 = vpop.f32.mrb[7].mxu0  ;;  %15110 = vmatmul.mubr.msk.bf16.vlgmr.msra.gmra.mrb[8].mxu1 %vm549_vm1, %v525_v52  ;;  %v498_v3 = vadd.f32 %v15103_v0, %v13316_v29  ;;  %v489_v4 = vpop.f32.mrb[5].mxu1  ;;  %v510_v8 = vmax.f32 %v466_v57, 0.0 }
 0x11f   : > { %v461_v5 = vadd.f32 %v13316_v29, %v460_v2  ;;  %v490_v6 = vadd.f32 %v13316_v29, %v489_v4  ;;  %v15104_v7 = vpop.f32.mrb[6].mxu1  ;;  %15146 = vmatpush3.bf16.msra.mxu1 %v17622_v27  ;;  %v508_v13 = vmax.f32 %v458_v61, 0.0  ;;  %v348_v27 = vld [vmem:[%s19096_s19 + $0x18] sm:$0xff] }
 0x120   : > { %v511_v9 = vmax.f32 %v469_v1, 0.0  ;;  %v518_v10 = vmax.f32 %v498_v3, 0.0  ;;  %v501_v11 = vadd.f32 %v15104_v7, %v13316_v29  ;;  %v492_v12 = vpop.f32.mrb[7].mxu1  ;;  %15147 = vmatprep.subr.bf16.mxu1 %v17623_v60  ;;  %v842_v30 = vpack.c.bf16 %v348_v27, %v347_v26  ;;  %v17627_v3 = vld [vmem:[#allocation2 + $0x18] sm:$0xff]  }
 0x121   : > { %v509_v14 = vmax.f32 %v461_v5, 0.0  ;;  %v516_v15 = vmax.f32 %v490_v6, 0.0  ;;  %v493_v16 = vadd.f32 %v13316_v29, %v492_v12  ;;  %v350_v29 = vld [vmem:[%s19096_s19 + $0x28] sm:$0xff] }
 0x122   : > { %v527_v17 = vpack.c.bf16 %v511_v9, %v510_v8  ;;  %v519_v18 = vmax.f32 %v501_v11, 0.0  ;;  %v843_v31 = vpack.c.bf16 %v350_v29, %v349_v28 }
 0x123   : > { %v526_v19 = vpack.c.bf16 %v509_v14, %v508_v13  ;;  %v517_v20 = vmax.f32 %v493_v16, 0.0  ;;  %15148 = vmatpush3.bf16.msra.mxu1 %v17623_v60 }
 0x124   : > { %v531_v21 = vpack.c.bf16 %v519_v18, %v518_v10 }
 0x125   : > { %15113 = vmatprep.mubr.msk.bf16.mxu1 %vm549_vm1, %v526_v19  ;;  %v530_v22 = vpack.c.bf16 %v517_v20, %v516_v15 }
 0x126   : > { %15114 = vmatmul.mubr.msk.bf16.gmra.mrb[12].mxu1 %vm549_vm1, %v527_v17 }
 0x127   : > { %15117 = vmatprep.mubr.msk.bf16.mxu1 %vm549_vm1, %v528_v63 }
 0x12e   : > { %15118 = vmatmul.mubr.msk.bf16.gmra.mrb[16].mxu1 %vm549_vm1, %v529_v59 }
 0x12f   : > { %15121 = vmatprep.mubr.msk.bf16.mxu1 %vm549_vm1, %v530_v22 }
 0x136   : > { %15122 = vmatmul.mubr.msk.bf16.gmra.mrb[20].mxu1 %vm549_vm1, %v531_v21 }
 0x137   : > { %15149 = vmatprep.mubr.msk.bf16.mxu1 %vm549_vm1, %v841_v25 }
 0x13e   : > { %15150 = vmatmul.mubr.msk.bf16.vlgmr.msra.gmra.mrb[24].mxu1 %vm549_vm1, %v842_v30 }
 0x13f   : > { %15153 = vmatprep.mubr.msk.bf16.mxu1 %vm549_vm1, %v843_v31 }
 0x146   : > { %15154 = vmatmul.mubr.msk.bf16.gmra.mrb[28].mxu1 %vm549_vm1, %v844_v36 }
 0x147   : > { %15157 = vmatprep.mubr.msk.bf16.mxu1 %vm549_vm1, %v845_v37 }
 0x14e   : > { %15158 = vmatmul.mubr.msk.bf16.gmra.mrb[32].mxu1 %vm549_vm1, %v846_v42 }
 0x14f   : > { %15161 = vmatprep.mubr.msk.bf16.mxu1 %vm549_vm1, %v847_v43 }
 0x156   : > { %15162 = vmatmul.mubr.msk.bf16.gmra.mrb[36].mxu1 %vm549_vm1, %v848_v46 }
 0x1f1   : > { %v15111_v50 = vpop.f32.mrb[8].mxu1 }
 0x1f2   : > { %v617_v51 = vadd.f32 %v15111_v50, %v13326_v49  ;;  %v608_v52 = vpop.f32.mrb[9].mxu1 }
 0x1f3   : > { %v609_v53 = vadd.f32 %v13326_v49, %v608_v52  ;;  %v15112_v54 = vpop.f32.mrb[10].mxu1 }
 0x1f4   : > { %v620_v55 = vadd.f32 %v15112_v54, %v13326_v49  ;;  %v611_v56 = vpop.f32.mrb[11].mxu1  ;;  %v673_v58 = vmax.f32 %v617_v51, 0.0 }
 0x1f5   : > { %v612_v57 = vadd.f32 %v13326_v49, %v611_v56  ;;  %v671_v60 = vmax.f32 %v609_v53, 0.0 }
 0x1f6   : > { %v674_v59 = vmax.f32 %v620_v55, 0.0 }
 0x1f7   : > { %v672_v61 = vmax.f32 %v612_v57, 0.0 }
 0x1f8   : > { %v692_v62 = vpack.c.bf16 %v674_v59, %v673_v58 }
 0x1f9   : > { %v691_v63 = vpack.c.bf16 %v672_v61, %v671_v60  ;;  %v15115_v0 = vpop.f32.mrb[12].mxu1 }
 0x1fa   : > { %v633_v1 = vadd.f32 %v15115_v0, %v13326_v49  ;;  %v624_v2 = vpop.f32.mrb[13].mxu1 }
 0x1fb   : > { %v625_v4 = vadd.f32 %v13326_v49, %v624_v2  ;;  %v15116_v5 = vpop.f32.mrb[14].mxu1  ;;  %15129 = vmatprep.mubr.msk.bf16.mxu0 %vm549_vm1, %v691_v63 }
 0x1fc   : > { %v636_v6 = vadd.f32 %v15116_v5, %v13326_v49  ;;  %v627_v7 = vpop.f32.mrb[15].mxu1  ;;  %15130 = vmatmul.mubr.msk.bf16.vlgmr.msra.gmra.mrb[8].mxu0 %vm549_vm1, %v692_v62  ;;  %v677_v9 = vmax.f32 %v633_v1, 0.0 }
 0x1fd   : > { %v628_v8 = vadd.f32 %v13326_v49, %v627_v7  ;;  %15166 = vmatpush3.bf16.msra.mxu0 %v17626_v48  ;;  %v675_v11 = vmax.f32 %v625_v4, 0.0 }
 0x1fe   : > { %v678_v10 = vmax.f32 %v636_v6, 0.0  ;;  %15167 = vmatprep.subr.bf16.mxu0 %v17627_v3 }
 0x1ff   : > { %v676_v12 = vmax.f32 %v628_v8, 0.0 }
 0x200   : > { %v694_v13 = vpack.c.bf16 %v678_v10, %v677_v9 }
 0x201   : > { %v693_v14 = vpack.c.bf16 %v676_v12, %v675_v11  ;;  %v15119_v15 = vpop.f32.mrb[16].mxu1  ;;  %15168 = vmatpush3.bf16.msra.mxu0 %v17627_v3 }
 0x202   : > { %v649_v16 = vadd.f32 %v15119_v15, %v13326_v49  ;;  %v640_v17 = vpop.f32.mrb[17].mxu1 }
 0x203   : > { %v641_v18 = vadd.f32 %v13326_v49, %v640_v17  ;;  %v15120_v19 = vpop.f32.mrb[18].mxu1  ;;  %15133 = vmatprep.mubr.msk.bf16.mxu0 %vm549_vm1, %v693_v14 }
 0x204   : > { %v652_v20 = vadd.f32 %v15120_v19, %v13326_v49  ;;  %v643_v21 = vpop.f32.mrb[19].mxu1  ;;  %15134 = vmatmul.mubr.msk.bf16.gmra.mrb[12].mxu0 %vm549_vm1, %v694_v13  ;;  %v681_v23 = vmax.f32 %v649_v16, 0.0 }
 0x205   : > { %v644_v22 = vadd.f32 %v13326_v49, %v643_v21  ;;  %v679_v25 = vmax.f32 %v641_v18, 0.0 }
 0x206   : > { %v682_v24 = vmax.f32 %v652_v20, 0.0 }
 0x207   : > { %v680_v26 = vmax.f32 %v644_v22, 0.0 }
 0x208   : > { %v696_v27 = vpack.c.bf16 %v682_v24, %v681_v23 }
 0x209   : > { %v695_v28 = vpack.c.bf16 %v680_v26, %v679_v25  ;;  %v15123_v29 = vpop.f32.mrb[20].mxu1 }
 0x20a   : > { %v665_v30 = vadd.f32 %v15123_v29, %v13326_v49  ;;  %v656_v31 = vpop.f32.mrb[21].mxu1 }
 0x20b   : > { %v657_v32 = vadd.f32 %v13326_v49, %v656_v31  ;;  %v15124_v33 = vpop.f32.mrb[22].mxu1  ;;  %15137 = vmatprep.mubr.msk.bf16.mxu0 %vm549_vm1, %v695_v28 }
 0x20c   : > { %v668_v34 = vadd.f32 %v15124_v33, %v13326_v49  ;;  %v659_v35 = vpop.f32.mrb[23].mxu1  ;;  %15138 = vmatmul.mubr.msk.bf16.gmra.mrb[16].mxu0 %vm549_vm1, %v696_v27  ;;  %v685_v37 = vmax.f32 %v665_v30, 0.0 }
 0x20d   : > { %v660_v36 = vadd.f32 %v13326_v49, %v659_v35  ;;  %v683_v39 = vmax.f32 %v657_v32, 0.0 }
 0x20e   : > { %v686_v38 = vmax.f32 %v668_v34, 0.0 }
 0x20f   : > { %v684_v40 = vmax.f32 %v660_v36, 0.0 }
 0x210   : > { %v698_v42 = vpack.c.bf16 %v686_v38, %v685_v37 }
 0x211   : > { %v697_v43 = vpack.c.bf16 %v684_v40, %v683_v39  ;;  %v15151_v44 = vpop.f32.mrb[24].mxu1 }
 0x212   : > { %v19140_v45 = vadd.f32 %v15151_v44, %v19137_v41  ;;  %v924_v46 = vpop.f32.mrb[25].mxu1 }
 0x213   : > { %15141 = vmatprep.mubr.msk.bf16.mxu0 %vm549_vm1, %v697_v43  ;;  %v19144_v47 = vadd.f32 %v19137_v41, %v924_v46  ;;  %v15152_v48 = vpop.f32.mrb[26].mxu1 }
 0x214   : > { %15142 = vmatmul.mubr.msk.bf16.gmra.mrb[20].mxu0 %vm549_vm1, %v698_v42  ;;  %v13361_v49 = vmul.f32 -1.442695, %v19140_v45  ;;  %v19149_v50 = vadd.f32 %v15152_v48, %v19137_v41  ;;  %v927_v51 = vpop.f32.mrb[27].mxu1 }
 0x215   : > { %v13359_v52 = vmul.f32 -1.442695, %v19144_v47  ;;  %v19153_v53 = vadd.f32 %v19137_v41, %v927_v51 }
 0x216   : > { %17739 = vpow2.f32 %v13361_v49  ;;  %v13362_v54 = vmul.f32 -1.442695, %v19149_v50 }
 0x217   : > { %17741 = vpow2.f32 %v13359_v52  ;;  %v13360_v55 = vmul.f32 -1.442695, %v19153_v53 }
 0x218   : > { %17743 = vpow2.f32 %v13362_v54 }
 0x219   : > { %17745 = vpow2.f32 %v13360_v55  ;;  %v15155_v56 = vpop.f32.mrb[28].mxu1 }
 0x21a   : > { %v19158_v57 = vadd.f32 %v15155_v56, %v19137_v41  ;;  %v940_v58 = vpop.f32.mrb[29].mxu1 }
 0x21b   : > { %v19161_v59 = vadd.f32 %v19137_v41, %v940_v58  ;;  %v15156_v60 = vpop.f32.mrb[30].mxu1 }
 0x21c   : > { %v13365_v61 = vmul.f32 -1.442695, %v19158_v57  ;;  %v19165_v62 = vadd.f32 %v15156_v60, %v19137_v41  ;;  %v943_v63 = vpop.f32.mrb[31].mxu1 }
 0x21d   : > { %v13363_v0 = vmul.f32 -1.442695, %v19161_v59  ;;  %v19169_v1 = vadd.f32 %v19137_v41, %v943_v63 }
 0x21e   : > { %17747 = vpow2.f32 %v13365_v61  ;;  %v13366_v2 = vmul.f32 -1.442695, %v19165_v62 }
 0x21f   : > { %17749 = vpow2.f32 %v13363_v0  ;;  %v13364_v3 = vmul.f32 -1.442695, %v19169_v1 }
 0x220   : > { %v17740_v4 = vpop.eup %17739  ;;  %17751 = vpow2.f32 %v13366_v2 }
 0x221   : > { %v17742_v5 = vpop.eup %17741  ;;  %v1037_v6 = vadd.f32 1.0, %v17740_v4  ;;  %17753 = vpow2.f32 %v13364_v3  ;;  %v15159_v7 = vpop.f32.mrb[32].mxu1 }
 0x222   : > { %v17744_v8 = vpop.eup %17743  ;;  %v1035_v9 = vadd.f32 1.0, %v17742_v5  ;;  %v19174_v10 = vadd.f32 %v15159_v7, %v19137_v41  ;;  %v956_v11 = vpop.f32.mrb[33].mxu1 }
 0x223   : > { %v17746_v12 = vpop.eup %17745  ;;  %17755 = vrcp.f32 %v1037_v6  ;;  %v1038_v13 = vadd.f32 1.0, %v17744_v8  ;;  %v19177_v14 = vadd.f32 %v19137_v41, %v956_v11  ;;  %v15160_v15 = vpop.f32.mrb[34].mxu1 }
 0x224   : > { %17757 = vrcp.f32 %v1035_v9  ;;  %v1036_v16 = vadd.f32 1.0, %v17746_v12  ;;  %v13369_v17 = vmul.f32 -1.442695, %v19174_v10  ;;  %v19181_v18 = vadd.f32 %v15160_v15, %v19137_v41  ;;  %v959_v19 = vpop.f32.mrb[35].mxu1 }
 0x225   : > { %17759 = vrcp.f32 %v1038_v13  ;;  %v13367_v20 = vmul.f32 -1.442695, %v19177_v14  ;;  %v19185_v21 = vadd.f32 %v19137_v41, %v959_v19 }
 0x226   : > { %17761 = vrcp.f32 %v1036_v16  ;;  %v13370_v22 = vmul.f32 -1.442695, %v19181_v18 }
 0x227   : > { %17763 = vpow2.f32 %v13369_v17  ;;  %v13368_v23 = vmul.f32 -1.442695, %v19185_v21 }
 0x228   : > { %v17748_v24 = vpop.eup %17747  ;;  %17765 = vpow2.f32 %v13367_v20 }
 0x229   : > { %v17750_v25 = vpop.eup %17749  ;;  %v1041_v26 = vadd.f32 1.0, %v17748_v24  ;;  %17767 = vpow2.f32 %v13370_v22  ;;  %v15163_v27 = vpop.f32.mrb[36].mxu1 }
 0x22a   : > { %v17752_v28 = vpop.eup %17751  ;;  %v1039_v29 = vadd.f32 1.0, %v17750_v25  ;;  %17769 = vpow2.f32 %v13368_v23  ;;  %v19190_v30 = vadd.f32 %v15163_v27, %v19137_v41  ;;  %v972_v31 = vpop.f32.mrb[37].mxu1 }
 0x22b   : > { %v17754_v32 = vpop.eup %17753  ;;  %17771 = vrcp.f32 %v1041_v26  ;;  %v1042_v33 = vadd.f32 1.0, %v17752_v28  ;;  %v19193_v34 = vadd.f32 %v19137_v41, %v972_v31  ;;  %v15164_v35 = vpop.f32.mrb[38].mxu1 }
 0x22c   : > { %17773 = vrcp.f32 %v1039_v29  ;;  %v1040_v36 = vadd.f32 1.0, %v17754_v32  ;;  %v13373_v37 = vmul.f32 -1.442695, %v19190_v30  ;;  %v19197_v38 = vadd.f32 %v15164_v35, %v19137_v41  ;;  %v975_v39 = vpop.f32.mrb[39].mxu1 }
 0x22d   : > { %v17756_v40 = vpop.eup %17755  ;;  %17775 = vrcp.f32 %v1042_v33  ;;  %v13371_v42 = vmul.f32 -1.442695, %v19193_v34  ;;  %v19201_v43 = vadd.f32 %v19137_v41, %v975_v39 }
 0x22e   : > { %v17758_v44 = vpop.eup %17757  ;;  %v1085_v46 = vmul.f32 %v17756_v40, %v19140_v45  ;;  %17777 = vrcp.f32 %v1040_v36  ;;  %v13374_v48 = vmul.f32 -1.442695, %v19197_v38  ;;  %v315_v40 = vld [vmem:[%s19233_s12 + $0x10] sm:$0xff] }
 0x22f   : > { %v17760_v49 = vpop.eup %17759  ;;  %v1083_v51 = vmul.f32 %v17758_v44, %v19144_v47  ;;  %17779 = vpow2.f32 %v13373_v37  ;;  %v13372_v52 = vmul.f32 -1.442695, %v19201_v43 }
 0x230   : > { %v17762_v54 = vpop.eup %17761  ;;  %v1086_v55 = vmul.f32 %v17760_v49, %v19149_v50  ;;  %17781 = vpow2.f32 %v13371_v42  ;;  %v316_v42 = vld [vmem:[%s19233_s12 + $0x18] sm:$0xff] }
 0x231   : > { %v17764_v56 = vpop.eup %17763  ;;  %v1084_v41 = vmul.f32 %v17762_v54, %v19153_v53  ;;  %17783 = vpow2.f32 %v13374_v48  ;;  %v1556_v44 = vpack.c.bf16 %v316_v42, %v315_v40  ;;  %v17629_v48 = vld [vmem:[#allocation2 + $0xb0] sm:$0xff]   ;;  %v320_v54 = vld [vmem:[%s19233_s12 + $0x38] sm:$0xff] }
 0x232   : > { %v17766_v58 = vpop.eup %17765  ;;  %v1104_v60 = vpack.c.bf16 %v1086_v55, %v1085_v46  ;;  %v1045_v45 = vadd.f32 1.0, %v17764_v56  ;;  %17785 = vpow2.f32 %v13372_v52  ;;  %v318_v46 = vld [vmem:[%s19233_s12 + $0x28] sm:$0xff]  ;;  %v319_v52 = vld [vmem:[%s19233_s12 + $0x30] sm:$0xff]  ;;  %v321_v55 = vld [vmem:[%s19233_s12 + $0x40] sm:$0xff] }
 0x233   : > { %v17768_v61 = vpop.eup %17767  ;;  %v1043_v63 = vadd.f32 1.0, %v17766_v58  ;;  %v1103_v0 = vpack.c.bf16 %v1084_v41, %v1083_v51  ;;  %v17630_v51 = vld [vmem:[#allocation2 + $0xb8] sm:$0xff]   ;;  %v322_v56 = vld [vmem:[%s19233_s12 + $0x48] sm:$0xff]  ;;  %v17631_v41 = vld [vmem:[#allocation2 + $0xc0] sm:$0xff]   ;;  %v1558_v58 = vpack.c.bf16 %v320_v54, %v319_v52 }
 0x234   : > { %v17770_v2 = vpop.eup %17769  ;;  %17787 = vrcp.f32 %v1045_v45  ;;  %v1046_v47 = vadd.f32 1.0, %v17768_v61  ;;  %v1559_v45 = vpack.c.bf16 %v322_v56, %v321_v55 }
 0x235   : > { %v17772_v3 = vpop.eup %17771  ;;  %17789 = vrcp.f32 %v1043_v63  ;;  %v1044_v4 = vadd.f32 1.0, %v17770_v2  ;;  %15169 = vmatprep.mubr.msk.bf16.mxu0 %vm549_vm1, %v1103_v0 }
 0x236   : > { %v17774_v50 = vpop.eup %17773  ;;  %v1089_v5 = vmul.f32 %v17772_v3, %v19158_v57  ;;  %17791 = vrcp.f32 %v1046_v47  ;;  %15170 = vmatmul.mubr.msk.bf16.vlgmr.msra.gmra.mrb[24].mxu0 %vm549_vm1, %v1104_v60  ;;  %v19251_v60 = vld [vmem:[%s24499_s4 + $0x4] ss:$0 sm:$0xff]  ;;  %v323_v3 = vld [vmem:[%s19233_s12 + $0x50] sm:$0xff] }
 0x237   : > { %v17776_v53 = vpop.eup %17775  ;;  %v1087_v6 = vmul.f32 %v17774_v50, %v19161_v59  ;;  %17793 = vrcp.f32 %v1044_v4  ;;  %v324_v4 = vld [vmem:[%s19233_s12 + $0x58] sm:$0xff] }
 0x238   : > { %v17778_v7 = vpop.eup %17777  ;;  %v1090_v8 = vmul.f32 %v17776_v53, %v19165_v62 }
 0x239   : > { %v17780_v9 = vpop.eup %17779  ;;  %v1088_v11 = vmul.f32 %v17778_v7, %v19169_v1  ;;  %v326_v7 = vld [vmem:[%s19233_s12 + $0x68] sm:$0xff] }
 0x23a   : > { %v17782_v12 = vpop.eup %17781  ;;  %v1049_v13 = vadd.f32 1.0, %v17780_v9  ;;  %v1106_v15 = vpack.c.bf16 %v1090_v8, %v1089_v5 }
 0x23b   : > { %v17784_v16 = vpop.eup %17783  ;;  %v1047_v17 = vadd.f32 1.0, %v17782_v12  ;;  %v1105_v19 = vpack.c.bf16 %v1088_v11, %v1087_v6  ;;  %v325_v6 = vld [vmem:[%s19233_s12 + $0x60] sm:$0xff]  ;;  %v1560_v12 = vpack.c.bf16 %v324_v4, %v323_v3 }
 0x23c   : > { %v17786_v57 = vpop.eup %17785  ;;  %17795 = vrcp.f32 %v1049_v13  ;;  %v1050_v20 = vadd.f32 1.0, %v17784_v16 }
 0x23d   : > { %17797 = vrcp.f32 %v1047_v17  ;;  %v1048_v22 = vadd.f32 1.0, %v17786_v57  ;;  %15173 = vmatprep.mubr.msk.bf16.mxu0 %vm549_vm1, %v1105_v19 }
 0x23e   : > { %v17788_v59 = vpop.eup %17787  ;;  %17799 = vrcp.f32 %v1050_v20  ;;  %15174 = vmatmul.mubr.msk.bf16.gmra.mrb[28].mxu0 %vm549_vm1, %v1106_v15  ;;  %v1561_v15 = vpack.c.bf16 %v326_v7, %v325_v6 }
 0x23f   : > { %v17790_v62 = vpop.eup %17789  ;;  %v1093_v1 = vmul.f32 %v17788_v59, %v19174_v10  ;;  %17801 = vrcp.f32 %v1048_v22  ;;  %v327_v22 = vld [vmem:[%s19233_s12 + $0x70] sm:$0xff]  ;;  %v328_v59 = vld [vmem:[%s19233_s12 + $0x78] sm:$0xff] }
 0x240   : > { %v17792_v23 = vpop.eup %17791  ;;  %v1091_v24 = vmul.f32 %v17790_v62, %v19177_v14 }
 0x241   : > { %v17794_v25 = vpop.eup %17793  ;;  %v1094_v26 = vmul.f32 %v17792_v23, %v19181_v18 }
 0x242   : > { %v1092_v27 = vmul.f32 %v17794_v25, %v19185_v21 }
 0x243   : > { %v1108_v28 = vpack.c.bf16 %v1094_v26, %v1093_v1 }
 0x244   : > { %v1107_v29 = vpack.c.bf16 %v1092_v27, %v1091_v24  ;;  %v1562_v27 = vpack.c.bf16 %v328_v59, %v327_v22 }
 0x246   : > { %v17796_v31 = vpop.eup %17795  ;;  %15177 = vmatprep.mubr.msk.bf16.mxu0 %vm549_vm1, %v1107_v29 }
 0x247   : > { %v17798_v32 = vpop.eup %17797  ;;  %v1097_v33 = vmul.f32 %v17796_v31, %v19190_v30  ;;  %15178 = vmatmul.mubr.msk.bf16.gmra.mrb[32].mxu0 %vm549_vm1, %v1108_v28  ;;  %v17628_v30 = vld [vmem:[#allocation2 + $0x48] sm:$0xff]  }
 0x248   : > { %v17800_v10 = vpop.eup %17799  ;;  %v1095_v35 = vmul.f32 %v17798_v32, %v19193_v34  ;;  %v313_v34 = vld [vmem:[%s19233_s12] sm:$0xff]  ;;  %15185 = vmatprep.subr.bf16.mxu1 %v17628_v30 }
 0x249   : > { %v17802_v14 = vpop.eup %17801  ;;  %v1098_v36 = vmul.f32 %v17800_v10, %v19197_v38  ;;  %v314_v38 = vld [vmem:[%s19233_s12 + $0x8] sm:$0xff]  ;;  %15186 = vmatpush3.bf16.msra.mxu1 %v17628_v30 }
 0x24a   : > { %v1096_v18 = vmul.f32 %v17802_v14, %v19201_v43  ;;  %v1555_v39 = vpack.c.bf16 %v314_v38, %v313_v34  ;;  %v317_v43 = vld [vmem:[%s19233_s12 + $0x20] sm:$0xff]  ;;  %15223 = vmatprep.subr.bf16.mxu1 %v17629_v48  ;;  %s18928_s12 = smov 16  }
 0x24b   : > { %v1110_v21 = vpack.c.bf16 %v1098_v36, %v1097_v33  ;;  %v1557_v49 = vpack.c.bf16 %v318_v46, %v317_v43 }
 0x24c   : > { %v1109_v37 = vpack.c.bf16 %v1096_v18, %v1095_v35  ;;  %15187 = vmatprep.mubr.msk.bf16.mxu1 %vm382_vm0, %v1555_v39 }
 0x24d   : > { %15188 = vmatmul.mubr.msk.bf16.vlgmr.msra.gmra.mrb[40].mxu1 %vm382_vm0, %v1556_v44 }
 0x24e   : > { %15181 = vmatprep.mubr.msk.bf16.mxu0 %vm549_vm1, %v1109_v37  ;;  %15191 = vmatprep.mubr.msk.bf16.mxu1 %vm382_vm0, %v1557_v49 }
 0x24f   : > { %15182 = vmatmul.mubr.msk.bf16.gmra.mrb[36].mxu0 %vm549_vm1, %v1110_v21  ;;  %15224 = vmatpush3.bf16.msra.mxu1 %v17629_v48 }
 0x250   : > { %15225 = vmatprep.subr.bf16.mxu1 %v17630_v51 }
 0x253   : > { %15226 = vmatpush3.bf16.msra.mxu1 %v17630_v51 }
 0x254   : > { %15227 = vmatprep.subr.bf16.mxu1 %v17631_v41 }
 0x255   : > { %15192 = vmatmul.mubr.msk.bf16.gmra.mrb[44].mxu1 %vm382_vm0, %v1558_v58 }
 0x256   : > { %15195 = vmatprep.mubr.msk.bf16.mxu1 %vm382_vm0, %v1559_v45 }
 0x257   : > { %15228 = vmatpush3.bf16.msra.mxu1 %v17631_v41 }
 0x25d   : > { %15196 = vmatmul.mubr.msk.bf16.gmra.mrb[48].mxu1 %vm382_vm0, %v1560_v12 }
 0x25e   : > { %15199 = vmatprep.mubr.msk.bf16.mxu1 %vm382_vm0, %v1561_v15 }
 0x265   : > { %15200 = vmatmul.mubr.msk.bf16.gmra.mrb[52].mxu1 %vm382_vm0, %v1562_v27 }
 0x2cf   : > { %v15131_v61 = vpop.f32.mrb[8].mxu0 }
 0x2d0   : > { %v19254_v63 = vadd.f32 %v15131_v61, %v19251_v60  ;;  %v774_v0 = vpop.f32.mrb[9].mxu0 }
 0x2d1   : > { %v19258_v2 = vadd.f32 %v19251_v60, %v774_v0  ;;  %v15132_v47 = vpop.f32.mrb[10].mxu0 }
 0x2d2   : > { %24634 = vst [vmem:[#allocation8_spill] sm:$0xff] %v19254_v63  ;;  %v13404_v50 = vmul.f32 -1.442695, %v19254_v63  ;;  %v19265_v5 = vadd.f32 %v15132_v47, %v19251_v60  ;;  %v777_v53 = vpop.f32.mrb[11].mxu0  ;;  %v17632_v47 = vld [vmem:[#allocation2 + $0xc8] sm:$0xff]  }
 0x2d3   : > { %24635 = vst [vmem:[#allocation9_spill] sm:$0xff] %v19258_v2  ;;  %v13402_v8 = vmul.f32 -1.442695, %v19258_v2  ;;  %v19271_v9 = vadd.f32 %v19251_v60, %v777_v53  ;;  %15229 = vmatprep.subr.bf16.mxu1 %v17632_v47 }
 0x2d4   : > { %24636 = vst [vmem:[#allocation10_spill] sm:$0xff] %v19265_v5  ;;  %17803 = vpow2.f32 %v13404_v50  ;;  %v13405_v11 = vmul.f32 -1.442695, %v19265_v5  ;;  %15230 = vmatpush3.bf16.msra.mxu1 %v17632_v47 }
 0x2d5   : > { %24637 = vst [vmem:[#allocation11_spill] sm:$0xff] %v19271_v9  ;;  %17805 = vpow2.f32 %v13402_v8  ;;  %v13403_v13 = vmul.f32 -1.442695, %v19271_v9 }
 0x2d6   : > { %17807 = vpow2.f32 %v13405_v11 }
 0x2d7   : > { %17809 = vpow2.f32 %v13403_v13  ;;  %v15135_v16 = vpop.f32.mrb[12].mxu0 }
 0x2d8   : > { %v19276_v17 = vadd.f32 %v15135_v16, %v19251_v60  ;;  %v790_v19 = vpop.f32.mrb[13].mxu0 }
 0x2d9   : > { %v19280_v57 = vadd.f32 %v19251_v60, %v790_v19  ;;  %v15136_v20 = vpop.f32.mrb[14].mxu0 }
 0x2da   : > { %24638 = vst [vmem:[#allocation12_spill] sm:$0xff] %v19276_v17  ;;  %v13408_v62 = vmul.f32 -1.442695, %v19276_v17  ;;  %v19287_v1 = vadd.f32 %v15136_v20, %v19251_v60  ;;  %v793_v23 = vpop.f32.mrb[15].mxu0 }
 0x2db   : > { %24639 = vst [vmem:[#allocation13_spill] sm:$0xff] %v19280_v57  ;;  %v13406_v24 = vmul.f32 -1.442695, %v19280_v57  ;;  %v19291_v25 = vadd.f32 %v19251_v60, %v793_v23 }
 0x2dc   : > { %24640 = vst [vmem:[#allocation14_spill] sm:$0xff] %v19287_v1  ;;  %17811 = vpow2.f32 %v13408_v62  ;;  %v13409_v26 = vmul.f32 -1.442695, %v19287_v1 }
 0x2dd   : > { %24641 = vst [vmem:[#allocation15_spill] sm:$0xff] %v19291_v25  ;;  %17813 = vpow2.f32 %v13406_v24  ;;  %v13407_v28 = vmul.f32 -1.442695, %v19291_v25 }
 0x2de   : > { %v17804_v29 = vpop.eup %17803  ;;  %17815 = vpow2.f32 %v13409_v26 }
 0x2df   : > { %v17806_v31 = vpop.eup %17805  ;;  %v1411_v32 = vadd.f32 1.0, %v17804_v29  ;;  %17817 = vpow2.f32 %v13407_v28  ;;  %v15139_v33 = vpop.f32.mrb[16].mxu0 }
 0x2e0   : > { %v17808_v10 = vpop.eup %17807  ;;  %v1409_v35 = vadd.f32 1.0, %v17806_v31  ;;  %v19296_v14 = vadd.f32 %v15139_v33, %v19251_v60  ;;  %v806_v36 = vpop.f32.mrb[17].mxu0 }
 0x2e1   : > { %v17810_v18 = vpop.eup %17809  ;;  %17819 = vrcp.f32 %v1411_v32  ;;  %v1412_v21 = vadd.f32 1.0, %v17808_v10  ;;  %v19300_v37 = vadd.f32 %v19251_v60, %v806_v36  ;;  %v15140_v30 = vpop.f32.mrb[18].mxu0 }
 0x2e2   : > { %24642 = vst [vmem:[#allocation16_spill] sm:$0xff] %v19296_v14  ;;  %17821 = vrcp.f32 %v1409_v35  ;;  %v1410_v34 = vadd.f32 1.0, %v17810_v18  ;;  %v13412_v38 = vmul.f32 -1.442695, %v19296_v14  ;;  %v19304_v39 = vadd.f32 %v15140_v30, %v19251_v60  ;;  %v809_v40 = vpop.f32.mrb[19].mxu0 }
 0x2e3   : > { %24643 = vst [vmem:[#allocation17_spill] sm:$0xff] %v19300_v37  ;;  %17823 = vrcp.f32 %v1412_v21  ;;  %v13410_v42 = vmul.f32 -1.442695, %v19300_v37  ;;  %v19308_v43 = vadd.f32 %v19251_v60, %v809_v40 }
 0x2e4   : > { %24644 = vst [vmem:[#allocation18_spill] sm:$0xff] %v19304_v39  ;;  %17825 = vrcp.f32 %v1410_v34  ;;  %v13413_v44 = vmul.f32 -1.442695, %v19304_v39 }
 0x2e5   : > { %24645 = vst [vmem:[#allocation19_spill] sm:$0xff] %v19308_v43  ;;  %17827 = vpow2.f32 %v13412_v38  ;;  %v13411_v46 = vmul.f32 -1.442695, %v19308_v43 }
 0x2e6   : > { %v17812_v48 = vpop.eup %17811  ;;  %17829 = vpow2.f32 %v13410_v42 }
 0x2e7   : > { %v17814_v49 = vpop.eup %17813  ;;  %v1415_v51 = vadd.f32 1.0, %v17812_v48  ;;  %17831 = vpow2.f32 %v13413_v44  ;;  %v15143_v52 = vpop.f32.mrb[20].mxu0 }
 0x2e8   : > { %v17816_v54 = vpop.eup %17815  ;;  %v1413_v55 = vadd.f32 1.0, %v17814_v49  ;;  %17833 = vpow2.f32 %v13411_v46  ;;  %v19313_v56 = vadd.f32 %v15143_v52, %v19251_v60  ;;  %v822_v41 = vpop.f32.mrb[21].mxu0 }
 0x2e9   : > { %v17818_v58 = vpop.eup %17817  ;;  %17835 = vrcp.f32 %v1415_v51  ;;  %v1416_v45 = vadd.f32 1.0, %v17816_v54  ;;  %v19316_v61 = vadd.f32 %v19251_v60, %v822_v41  ;;  %v15144_v0 = vpop.f32.mrb[22].mxu0 }
 0x2ea   : > { %24646 = vst [vmem:[#allocation20_spill] sm:$0xff] %v19313_v56  ;;  %17837 = vrcp.f32 %v1413_v55  ;;  %v1414_v3 = vadd.f32 1.0, %v17818_v58  ;;  %v13416_v4 = vmul.f32 -1.442695, %v19313_v56  ;;  %v19320_v50 = vadd.f32 %v15144_v0, %v19251_v60  ;;  %v825_v53 = vpop.f32.mrb[23].mxu0 }
 0x2eb   : > { %24647 = vst [vmem:[#allocation21_spill] sm:$0xff] %v19316_v61  ;;  %v17820_v6 = vpop.eup %17819  ;;  %17839 = vrcp.f32 %v1416_v45  ;;  %v13414_v7 = vmul.f32 -1.442695, %v19316_v61  ;;  %v19324_v8 = vadd.f32 %v19251_v60, %v825_v53 }
 0x2ec   : > { %24648 = vst [vmem:[#allocation22_spill] sm:$0xff] %v19320_v50  ;;  %v17822_v11 = vpop.eup %17821  ;;  %17841 = vrcp.f32 %v1414_v3  ;;  %v13417_v12 = vmul.f32 -1.442695, %v19320_v50  ;;  %v1459_v32 = vmul.f32 %v17820_v6, %v19254_v63 }
 0x2ed   : > { %24649 = vst [vmem:[#allocation23_spill] sm:$0xff] %v19324_v8  ;;  %v17824_v13 = vpop.eup %17823  ;;  %17843 = vpow2.f32 %v13416_v4  ;;  %v13415_v15 = vmul.f32 -1.442695, %v19324_v8  ;;  %v1457_v20 = vmul.f32 %v17822_v11, %v19258_v2 }
 0x2ee   : > { %v17826_v16 = vpop.eup %17825  ;;  %17845 = vpow2.f32 %v13414_v7  ;;  %v1460_v26 = vmul.f32 %v17824_v13, %v19265_v5 }
 0x2ef   : > { %v17828_v19 = vpop.eup %17827  ;;  %17847 = vpow2.f32 %v13417_v12  ;;  %v1458_v22 = vmul.f32 %v17826_v16, %v19271_v9 }
 0x2f0   : > { %v17830_v60 = vpop.eup %17829  ;;  %v1419_v59 = vadd.f32 1.0, %v17828_v19  ;;  %17849 = vpow2.f32 %v13415_v15  ;;  %v17504_v35 = vpack.i.bf16 %v1460_v26, %v1459_v32  ;;  %v17633_v19 = vld [vmem:[#allocation2 + $0x90] sm:$0xff]  }
 0x2f1   : > { %v17832_v62 = vpop.eup %17831  ;;  %v1417_v23 = vadd.f32 1.0, %v17830_v60  ;;  %v17499_v24 = vpack.i.bf16 %v1458_v22, %v1457_v20  ;;  %15203 = vmatprep.subr.bf16.mxu0 %v17633_v19 }
 0x2f2   : > { %v17834_v27 = vpop.eup %17833  ;;  %17851 = vrcp.f32 %v1419_v59  ;;  %v1420_v28 = vadd.f32 1.0, %v17832_v62  ;;  %15204 = vmatpush3.bf16.msra.mxu0 %v17633_v19 }
 0x2f3   : > { %v17836_v29 = vpop.eup %17835  ;;  %17853 = vrcp.f32 %v1417_v23  ;;  %v1418_v31 = vadd.f32 1.0, %v17834_v27  ;;  %17500 = vrot.lane.b32.xlu0 %v17499_v24, %s18926_s11 }
 0x2f4   : > { %v17838_v33 = vpop.eup %17837  ;;  %17855 = vrcp.f32 %v1420_v28  ;;  %v1463_v52 = vmul.f32 %v17836_v29, %v19276_v17 }
 0x2f5   : > { %v17840_v10 = vpop.eup %17839  ;;  %17857 = vrcp.f32 %v1418_v31  ;;  %v1461_v21 = vmul.f32 %v17838_v33, %v19280_v57 }
 0x2f6   : > { %v17842_v36 = vpop.eup %17841  ;;  %v1464_v46 = vmul.f32 %v17840_v10, %v19287_v1 }
 0x2f7   : > { %v17844_v18 = vpop.eup %17843  ;;  %17505 = vrot.lane.b32.xlu0 %v17504_v35, %s18926_s11  ;;  %v1462_v30 = vmul.f32 %v17842_v36, %v19291_v25  ;;  %v17634_v36 = vld [vmem:[#allocation2 + $0x98] sm:$0xff]  }
 0x2f8   : > { %v17846_v34 = vpop.eup %17845  ;;  %v1423_v38 = vadd.f32 1.0, %v17844_v18  ;;  %v17514_v41 = vpack.i.bf16 %v1464_v46, %v1463_v52  ;;  %15205 = vmatprep.subr.bf16.mxu0 %v17634_v36 }
 0x2f9   : > { %v17848_v40 = vpop.eup %17847  ;;  %v1421_v42 = vadd.f32 1.0, %v17846_v34  ;;  %v17509_v44 = vpack.i.bf16 %v1462_v30, %v1461_v21  ;;  %15206 = vmatpush3.bf16.msra.mxu0 %v17634_v36 }
 0x2fa   : > { %v17850_v48 = vpop.eup %17849  ;;  %17859 = vrcp.f32 %v1423_v38  ;;  %v1424_v49 = vadd.f32 1.0, %v17848_v40  ;;  %v2091_v38 = vld [vmem:[%s24500_s5] sm:$0xff]  ;;  %v2092_v40 = vld [vmem:[%s24500_s5 + $0x8] sm:$0xff] }
 0x2fb   : > { %17861 = vrcp.f32 %v1421_v42  ;;  %v1422_v51 = vadd.f32 1.0, %v17850_v48  ;;  %17510 = vrot.lane.b32.xlu1 %v17509_v44, %s18926_s11  ;;  %v19358_v42 = vpack.c.bf16 %v2092_v40, %v2091_v38  ;;  %v13375_v44 = vld [vmem:[%s24499_s4 + $0x1] ss:$0 sm:$0xff] }
 0x2fc   : > { %v17852_v54 = vpop.eup %17851  ;;  %17863 = vrcp.f32 %v1424_v49 }
 0x2fd   : > { %v17854_v55 = vpop.eup %17853  ;;  %17865 = vrcp.f32 %v1422_v51  ;;  %v1467_v0 = vmul.f32 %v17852_v54, %v19296_v14  ;;  %24650 = vst [vmem:[#allocation24_spill] sm:$0xff] %v19358_v42  ;;  %16672 = vmatprep.subr.bf16.mxu0 %v19358_v42  ;;  %16688 = vmatprep.subr.bf16.mxu1 %v19358_v42 }
 0x2fe   : > { %v17856_v58 = vpop.eup %17855  ;;  %v1465_v3 = vmul.f32 %v17854_v55, %v19300_v37 }
 0x2ff   : > { %v17858_v45 = vpop.eup %17857  ;;  %17515 = vrot.lane.b32.xlu1 %v17514_v41, %s18926_s11  ;;  %v1468_v47 = vmul.f32 %v17856_v58, %v19304_v39 }
 0x300   : > { %v1466_v4 = vmul.f32 %v17858_v45, %v19308_v43 }
 0x301   : > { %v17524_v53 = vpack.i.bf16 %v1468_v47, %v1467_v0 }
 0x302   : > { %v17519_v6 = vpack.i.bf16 %v1466_v4, %v1465_v3 }
 0x303   : > { %17525 = vrot.lane.b32.xlu1 %v17524_v53, %s18926_s11 }
 0x304   : > { %v17860_v7 = vpop.eup %17859  ;;  %17520 = vrot.lane.b32.xlu0 %v17519_v6, %s18926_s11 }
 0x305   : > { %v17862_v11 = vpop.eup %17861  ;;  %v1471_v15 = vmul.f32 %v17860_v7, %v19313_v56 }
 0x306   : > { %v17864_v12 = vpop.eup %17863  ;;  %v1469_v20 = vmul.f32 %v17862_v11, %v19316_v61 }
 0x307   : > { %v17866_v13 = vpop.eup %17865  ;;  %v1472_v16 = vmul.f32 %v17864_v12, %v19320_v50 }
 0x308   : > { %v1470_v22 = vmul.f32 %v17866_v13, %v19324_v8 }
 0x309   : > { %v17534_v60 = vpack.i.bf16 %v1472_v16, %v1471_v15  ;;  %v15171_v59 = vpop.f32.mrb[24].mxu0 }
 0x30a   : > { %v17529_v62 = vpack.i.bf16 %v1470_v22, %v1469_v20  ;;  %v1186_v23 = vpop.f32.mrb[25].mxu0  ;;  %v19371_v52 = vadd.f32 %v15171_v59, %v13375_v44 }
 0x30b   : > { %17535 = vrot.lane.b32.xlu1 %v17534_v60, %s18926_s11  ;;  %v15172_v24 = vpop.f32.mrb[26].mxu0  ;;  %v19365_v46 = vadd.f32 %v13375_v44, %v1186_v23 }
 0x30c   : > { %17530 = vrot.lane.b32.xlu0 %v17529_v62, %s18926_s11  ;;  %v1189_v26 = vpop.f32.mrb[27].mxu0  ;;  %v19373_v54 = vadd.f32 %v15172_v24, %v13375_v44  ;;  %v13388_v58 = vmul.f32 -1.442695, %v19371_v52 }
 0x30d   : > { %v19367_v48 = vadd.f32 %v13375_v44, %v1189_v26  ;;  %v13386_v49 = vmul.f32 -1.442695, %v19365_v46 }
 0x30e   : > { %v13389_v45 = vmul.f32 -1.442695, %v19373_v54 }
 0x30f   : > { %v13387_v51 = vmul.f32 -1.442695, %v19367_v48  ;;  %17867 = vpow2.f32 %v13386_v49 }
 0x311   : > { %v15175_v27 = vpop.f32.mrb[28].mxu0  ;;  %17869 = vpow2.f32 %v13387_v51 }
 0x312   : > { %v1202_v28 = vpop.f32.mrb[29].mxu0  ;;  %17871 = vpow2.f32 %v13388_v58  ;;  %v19383_v3 = vadd.f32 %v15175_v27, %v13375_v44 }
 0x313   : > { %v15176_v29 = vpop.f32.mrb[30].mxu0  ;;  %v19375_v55 = vadd.f32 %v13375_v44, %v1202_v28  ;;  %17873 = vpow2.f32 %v13389_v45 }
 0x314   : > { %v1205_v31 = vpop.f32.mrb[31].mxu0  ;;  %v19385_v4 = vadd.f32 %v15176_v29, %v13375_v44  ;;  %v13392_v7 = vmul.f32 -1.442695, %v19383_v3 }
 0x315   : > { %v19377_v41 = vadd.f32 %v13375_v44, %v1205_v31  ;;  %v13390_v0 = vmul.f32 -1.442695, %v19375_v55 }
 0x316   : > { %v13393_v12 = vmul.f32 -1.442695, %v19385_v4 }
 0x317   : > { %v13391_v47 = vmul.f32 -1.442695, %v19377_v41  ;;  %17875 = vpow2.f32 %v13390_v0 }
 0x319   : > { %17877 = vpow2.f32 %v13391_v47  ;;  %v17868_v53 = vpop.eup %17867 }
 0x31a   : > { %v15179_v32 = vpop.f32.mrb[32].mxu0  ;;  %v1297_v15 = vadd.f32 1.0, %v17868_v53  ;;  %17879 = vpow2.f32 %v13392_v7 }
 0x31b   : > { %v1218_v33 = vpop.f32.mrb[33].mxu0  ;;  %v17870_v6 = vpop.eup %17869  ;;  %v19388_v11 = vadd.f32 %v15179_v32, %v13375_v44  ;;  %17881 = vpow2.f32 %v13393_v12 }
 0x31c   : > { %v15180_v10 = vpop.f32.mrb[34].mxu0  ;;  %v19391_v13 = vadd.f32 %v13375_v44, %v1218_v33  ;;  %v1298_v19 = vadd.f32 1.0, %v17870_v6  ;;  %v17872_v60 = vpop.eup %17871  ;;  %17883 = vrcp.f32 %v1297_v15 }
 0x31d   : > { %v1221_v35 = vpop.f32.mrb[35].mxu0  ;;  %v19393_v16 = vadd.f32 %v15180_v10, %v13375_v44  ;;  %v13396_v22 = vmul.f32 -1.442695, %v19388_v11  ;;  %v17874_v62 = vpop.eup %17873  ;;  %v1299_v28 = vadd.f32 1.0, %v17872_v60 }
 0x31e   : > { %v19395_v20 = vadd.f32 %v13375_v44, %v1221_v35  ;;  %v13394_v59 = vmul.f32 -1.442695, %v19391_v13  ;;  %17885 = vrcp.f32 %v1298_v19  ;;  %v1300_v31 = vadd.f32 1.0, %v17874_v62 }
 0x31f   : > { %v13397_v23 = vmul.f32 -1.442695, %v19393_v16  ;;  %17887 = vpow2.f32 %v13396_v22 }
 0x320   : > { %v13395_v26 = vmul.f32 -1.442695, %v19395_v20  ;;  %17889 = vpow2.f32 %v13394_v59 }
 0x321   : > { %v17876_v24 = vpop.eup %17875  ;;  %17891 = vpow2.f32 %v13397_v23 }
 0x322   : > { %v15183_v18 = vpop.f32.mrb[36].mxu0  ;;  %v1301_v33 = vadd.f32 1.0, %v17876_v24  ;;  %17893 = vpow2.f32 %v13395_v26 }
 0x323   : > { %v1234_v21 = vpop.f32.mrb[37].mxu0  ;;  %v17878_v27 = vpop.eup %17877  ;;  %v19401_v29 = vadd.f32 %v15183_v18, %v13375_v44  ;;  %17895 = vrcp.f32 %v1299_v28 }
 0x324   : > { %v15184_v30 = vpop.f32.mrb[38].mxu0  ;;  %v19403_v32 = vadd.f32 %v13375_v44, %v1234_v21  ;;  %v1302_v35 = vadd.f32 1.0, %v17878_v27  ;;  %17897 = vrcp.f32 %v1300_v31  ;;  %v17880_v18 = vpop.eup %17879 }
 0x325   : > { %v1237_v34 = vpop.f32.mrb[39].mxu0  ;;  %v19405_v10 = vadd.f32 %v15184_v30, %v13375_v44  ;;  %v13400_v38 = vmul.f32 -1.442695, %v19401_v29  ;;  %17899 = vrcp.f32 %v1301_v33  ;;  %v17882_v21 = vpop.eup %17881 }
 0x326   : > { %v19407_v36 = vadd.f32 %v13375_v44, %v1237_v34  ;;  %v13398_v40 = vmul.f32 -1.442695, %v19403_v32  ;;  %17901 = vrcp.f32 %v1302_v35  ;;  %v17884_v30 = vpop.eup %17883  ;;  %v1303_v44 = vadd.f32 1.0, %v17880_v18 }
 0x327   : > { %v13401_v49 = vmul.f32 -1.442695, %v19405_v10  ;;  %17903 = vpow2.f32 %v13400_v38  ;;  %v1304_v0 = vadd.f32 1.0, %v17882_v21  ;;  %v1345_v19 = vmul.f32 %v17884_v30, %v19365_v46 }
 0x328   : > { %v13399_v51 = vmul.f32 -1.442695, %v19407_v36  ;;  %v17886_v58 = vpop.eup %17885  ;;  %17905 = vpow2.f32 %v13398_v40 }
 0x329   : > { %v17888_v34 = vpop.eup %17887  ;;  %17907 = vpow2.f32 %v13401_v49  ;;  %v1346_v62 = vmul.f32 %v17886_v58, %v19367_v48 }
 0x32a   : > { %v17890_v45 = vpop.eup %17889  ;;  %17909 = vpow2.f32 %v13399_v51  ;;  %v1307_v6 = vadd.f32 1.0, %v17888_v34 }
 0x32b   : > { %v17892_v47 = vpop.eup %17891  ;;  %17911 = vrcp.f32 %v1303_v44  ;;  %v1305_v12 = vadd.f32 1.0, %v17890_v45  ;;  %v2093_v44 = vld [vmem:[%s24500_s5 + $0x10] sm:$0xff] }
 0x32c   : > { %v17894_v53 = vpop.eup %17893  ;;  %17913 = vrcp.f32 %v1304_v0  ;;  %v1308_v22 = vadd.f32 1.0, %v17892_v47 }
 0x32d   : > { %v17896_v7 = vpop.eup %17895  ;;  %v1306_v23 = vadd.f32 1.0, %v17894_v53  ;;  %17915 = vrcp.f32 %v1307_v6 }
 0x32e   : > { %v17898_v15 = vpop.eup %17897  ;;  %17917 = vrcp.f32 %v1305_v12  ;;  %v1347_v46 = vmul.f32 %v17896_v7, %v19371_v52 }
 0x32f   : > { %v17900_v59 = vpop.eup %17899  ;;  %17919 = vrcp.f32 %v1308_v22  ;;  %v1348_v18 = vmul.f32 %v17898_v15, %v19373_v54  ;;  %v2094_v54 = vld [vmem:[%s24500_s5 + $0x18] sm:$0xff] }
 0x330   : > { %v17902_v27 = vpop.eup %17901  ;;  %17921 = vrcp.f32 %v1306_v23  ;;  %v1349_v45 = vmul.f32 %v17900_v59, %v19375_v55 }
 0x331   : > { %v17904_v28 = vpop.eup %17903  ;;  %v1350_v7 = vmul.f32 %v17902_v27, %v19377_v41  ;;  %v2095_v41 = vld [vmem:[%s24500_s5 + $0x20] sm:$0xff] }
 0x332   : > { %v17906_v35 = vpop.eup %17905  ;;  %v1311_v30 = vadd.f32 1.0, %v17904_v28 }
 0x333   : > { %v17908_v48 = vpop.eup %17907  ;;  %v1309_v58 = vadd.f32 1.0, %v17906_v35 }
 0x334   : > { %v17910_v51 = vpop.eup %17909  ;;  %v1312_v0 = vadd.f32 1.0, %v17908_v48  ;;  %17923 = vrcp.f32 %v1311_v30 }
 0x335   : > { %v17912_v6 = vpop.eup %17911  ;;  %v1310_v12 = vadd.f32 1.0, %v17910_v51  ;;  %17925 = vrcp.f32 %v1309_v58 }
 0x336   : > { %v17914_v22 = vpop.eup %17913  ;;  %17927 = vrcp.f32 %v1312_v0 }
 0x337   : > { %v17916_v23 = vpop.eup %17915  ;;  %17929 = vrcp.f32 %v1310_v12 }
 0x338   : > { %v17918_v28 = vpop.eup %17917 }
 0x365   : > { %v17501_v60 = vpop.permute.xlu0 %17500 }
 0x366   : > { %v17503_v24 = vunpack.i.h.bf16 %v17501_v60  ;;  %v17502_v26 = vunpack.i.l.bf16 %v17501_v60  ;;  %v19437_v60 = vpack.c.bf16 %v2094_v54, %v2093_v44 }
 0x368   : > { %v1538_v31 = vsel %vm549_vm1, %v1346_v62, %v17503_v24  ;;  %v1537_v33 = vsel %vm549_vm1, %v1345_v19, %v17502_v26  ;;  %24653 = vst [vmem:[#allocation27_spill] sm:$0xff] %v19437_v60  ;;  %v2096_v62 = vld [vmem:[%s24500_s5 + $0x28] sm:$0xff]  ;;  %v1351_v24 = vmul.f32 %v17912_v6, %v19383_v3 }
 0x369   : > { %v19418_v38 = vpack.c.bf16 %v1538_v31, %v1537_v33  ;;  %v17506_v40 = vpop.permute.xlu0 %17505  ;;  %v1352_v31 = vmul.f32 %v17914_v22, %v19385_v4  ;;  %v1355_v4 = vmul.f32 %v17916_v23, %v19388_v11 }
 0x36a   : > { %v17508_v49 = vunpack.i.h.bf16 %v17506_v40  ;;  %v17507_v21 = vunpack.i.l.bf16 %v17506_v40  ;;  %v19455_v40 = vpack.c.bf16 %v2096_v62, %v2095_v41 }
 0x36b   : > { %24651 = vst [vmem:[#allocation25_spill] sm:$0xff] %v19418_v38  ;;  %15231 = vmatprep.mubr.msk.bf16.mxu1 %vm1928_vm2, %v19418_v38 }
 0x36c   : > { %v1540_v34 = vsel %vm549_vm1, %v1348_v18, %v17508_v49  ;;  %v1539_v52 = vsel %vm549_vm1, %v1347_v46, %v17507_v21  ;;  %v17920_v46 = vpop.eup %17919  ;;  %24655 = vst [vmem:[#allocation29_spill] sm:$0xff] %v19455_v40 }
 0x36d   : > { %v19432_v47 = vpack.c.bf16 %v1540_v34, %v1539_v52  ;;  %v17511_v53 = vpop.permute.xlu1 %17510  ;;  %v17922_v48 = vpop.eup %17921  ;;  %v1356_v51 = vmul.f32 %v17920_v46, %v19393_v16  ;;  %v1353_v52 = vmul.f32 %v17918_v28, %v19391_v13 }
 0x36e   : > { %v17513_v15 = vunpack.i.h.bf16 %v17511_v53  ;;  %v17512_v19 = vunpack.i.l.bf16 %v17511_v53  ;;  %v1354_v44 = vmul.f32 %v17922_v48, %v19395_v20  ;;  %v17924_v11 = vpop.eup %17923  ;;  %v19506_v48 = vld [vmem:[%s24499_s4 + $0xd] ss:$0 sm:$0xff] }
 0x36f   : > { %24652 = vst [vmem:[#allocation26_spill] sm:$0xff] %v19432_v47  ;;  %15232 = vmatmul.mubr.msk.bf16.vlgmr.msra.gmra.mrb[56].mxu1 %vm1928_vm2, %v19432_v47  ;;  %v1359_v22 = vmul.f32 %v17924_v11, %v19401_v29 }
 0x370   : > { %v1542_v55 = vsel %vm549_vm1, %v1350_v7, %v17513_v15  ;;  %v1541_v59 = vsel %vm549_vm1, %v1349_v45, %v17512_v19  ;;  %16690 = vmatpush3.bf16.msra.mxu1 %v19358_v42  ;;  %v17926_v7 = vpop.eup %17925 }
 0x371   : > { %v19449_v26 = vpack.c.bf16 %v1542_v55, %v1541_v59  ;;  %v17516_v27 = vpop.permute.xlu1 %17515  ;;  %16692 = vmatprep.subr.bf16.mxu1 %v19437_v60  ;;  %v17928_v12 = vpop.eup %17927  ;;  %v1357_v23 = vmul.f32 %v17926_v7, %v19403_v32  ;;  %v19501_v32 = vld [vmem:[%s24499_s4 + $0x5] ss:$0 sm:$0xff] }
 0x372   : > { %v17518_v33 = vunpack.i.h.bf16 %v17516_v27  ;;  %v17517_v35 = vunpack.i.l.bf16 %v17516_v27  ;;  %v17930_v15 = vpop.eup %17929  ;;  %v1360_v55 = vmul.f32 %v17928_v12, %v19405_v10 }
 0x373   : > { %24654 = vst [vmem:[#allocation28_spill] sm:$0xff] %v19449_v26  ;;  %15235 = vmatprep.mubr.msk.bf16.mxu1 %vm1928_vm2, %v19449_v26  ;;  %v19711_v26 = vld [vmem:[%s24499_s4 + $0x17] ss:$0 sm:$0xff] }
 0x374   : > { %v1544_v3 = vsel %vm549_vm1, %v1352_v31, %v17518_v33  ;;  %v1543_v18 = vsel %vm549_vm1, %v1351_v24, %v17517_v35  ;;  %16694 = vmatpush3.bf16.msra.mxu1 %v19437_v60  ;;  %v1358_v24 = vmul.f32 %v17930_v15, %v19407_v36  ;;  %v15189_v36 = vpop.f32.mrb[40].mxu1 }
 0x375   : > { %v19460_v49 = vpack.c.bf16 %v1544_v3, %v1543_v18  ;;  %v17526_v21 = vpop.permute.xlu1 %17525  ;;  %16696 = vmatprep.subr.bf16.mxu1 %v19455_v40  ;;  %v19509_v3 = vadd.f32 %v15189_v36, %v19501_v32  ;;  %v1632_v18 = vpop.f32.mrb[41].mxu1 }
 0x376   : > { %v17528_v30 = vunpack.i.h.bf16 %v17526_v21  ;;  %v17527_v58 = vunpack.i.l.bf16 %v17526_v21  ;;  %v17521_v34 = vpop.permute.xlu0 %17520  ;;  %v19512_v21 = vadd.f32 %v19501_v32, %v1632_v18 }
 0x377   : > { %24656 = vst [vmem:[#allocation30_spill] sm:$0xff] %v19460_v49  ;;  %v17523_v54 = vunpack.i.h.bf16 %v17521_v34  ;;  %v17522_v45 = vunpack.i.l.bf16 %v17521_v34  ;;  %15236 = vmatmul.mubr.msk.bf16.gmra.mrb[60].mxu1 %vm1928_vm2, %v19460_v49  ;;  %24661 = vst [vmem:[#allocation35_spill] sm:$0xff] %v19509_v3 }
 0x378   : > { %v1548_v0 = vsel %vm549_vm1, %v1356_v51, %v17528_v30  ;;  %v1547_v53 = vsel %vm549_vm1, %v1355_v4, %v17527_v58  ;;  %16698 = vmatpush3.bf16.msra.mxu1 %v19455_v40  ;;  %24662 = vst [vmem:[#allocation36_spill] sm:$0xff] %v19512_v21  ;;  %v15190_v4 = vpop.f32.mrb[42].mxu1  ;;  %v19516_v51 = vadd.f32 %v19506_v48, %v19509_v3 }
 0x379   : > { %v19472_v16 = vpack.c.bf16 %v1548_v0, %v1547_v53  ;;  %v1546_v6 = vsel %vm549_vm1, %v1354_v44, %v17523_v54  ;;  %v1545_v13 = vsel %vm549_vm1, %v1353_v52, %v17522_v45  ;;  %v19519_v30 = vadd.f32 %v15190_v4, %v19501_v32  ;;  %v1635_v58 = vpop.f32.mrb[43].mxu1 }
 0x37a   : > { %v19476_v20 = vpack.c.bf16 %v1546_v6, %v1545_v13  ;;  %24663 = vst [vmem:[#allocation37_spill] sm:$0xff] %v19516_v51  ;;  %v19523_v34 = vadd.f32 %v19506_v48, %v19512_v21  ;;  %v19526_v52 = vadd.f32 %v19501_v32, %v1635_v58  ;;  %v15193_v0 = vpop.f32.mrb[44].mxu1 }
 0x37b   : > { %24657 = vst [vmem:[#allocation31_spill] sm:$0xff] %v19472_v16  ;;  %24664 = vst [vmem:[#allocation38_spill] sm:$0xff] %v19519_v30  ;;  %v19530_v44 = vadd.f32 %v19506_v48, %v19519_v30  ;;  %v19541_v11 = vadd.f32 %v15193_v0, %v19501_v32  ;;  %v1648_v6 = vpop.f32.mrb[45].mxu1 }
 0x37c   : > { %24658 = vst [vmem:[#allocation32_spill] sm:$0xff] %v19476_v20  ;;  %15239 = vmatprep.mubr.msk.bf16.mxu1 %vm1928_vm2, %v19476_v20  ;;  %24665 = vst [vmem:[#allocation39_spill] sm:$0xff] %v19523_v34  ;;  %v19534_v54 = vadd.f32 %v19506_v48, %v19526_v52  ;;  %v19544_v13 = vadd.f32 %v19501_v32, %v1648_v6  ;;  %v15194_v7 = vpop.f32.mrb[46].mxu1 }
 0x37d   : > { %v17536_v19 = vpop.permute.xlu1 %17535  ;;  %24666 = vst [vmem:[#allocation40_spill] sm:$0xff] %v19526_v52  ;;  %24667 = vst [vmem:[#allocation41_spill] sm:$0xff] %v19530_v44  ;;  %v1721_v45 = vpack.c.bf16 %v19530_v44, %v19516_v51  ;;  %v19549_v12 = vadd.f32 %v19506_v48, %v19541_v11  ;;  %v19552_v15 = vadd.f32 %v15194_v7, %v19501_v32 }
 0x37e   : > { %v17538_v59 = vunpack.i.h.bf16 %v17536_v19  ;;  %v17537_v41 = vunpack.i.l.bf16 %v17536_v19  ;;  %v17531_v62 = vpop.permute.xlu0 %17530  ;;  %24668 = vst [vmem:[#allocation42_spill] sm:$0xff] %v19534_v54  ;;  %v1720_v53 = vpack.c.bf16 %v19534_v54, %v19523_v34  ;;  %24669 = vst [vmem:[#allocation43_spill] sm:$0xff] %v19541_v11  ;;  %v1651_v19 = vpop.f32.mrb[47].mxu1  ;;  %v19909_v11 = vld [vmem:[#allocation2 + $0xf0] sm:$0xff]  }
 0x37f   : > { %v17533_v27 = vunpack.i.h.bf16 %v17531_v62  ;;  %v17532_v28 = vunpack.i.l.bf16 %v17531_v62  ;;  %15240 = vmatmul.mubr.msk.bf16.gmra.mrb[64].mxu1 %vm1928_vm2, %v19472_v16  ;;  %24670 = vst [vmem:[#allocation44_spill] sm:$0xff] %v19544_v13  ;;  %24671 = vst [vmem:[#allocation45_spill] sm:$0xff] %v19549_v12 }
 0x380   : > { %v1552_v31 = vsel %vm549_vm1, %v1360_v55, %v17538_v59  ;;  %v1551_v33 = vsel %vm549_vm1, %v1359_v22, %v17537_v41  ;;  %15207 = vmatprep.mubr.msk.bf16.mxu0 %vm549_vm1, %v1720_v53  ;;  %24672 = vst [vmem:[#allocation46_spill] sm:$0xff] %v19552_v15  ;;  %v19557_v22 = vadd.f32 %v19506_v48, %v19544_v13 }
 0x381   : > { %v19488_v35 = vpack.c.bf16 %v1552_v31, %v1551_v33  ;;  %v1550_v29 = vsel %vm549_vm1, %v1358_v24, %v17533_v27  ;;  %v1549_v10 = vsel %vm549_vm1, %v1357_v23, %v17532_v28  ;;  %15208 = vmatmul.mubr.msk.bf16.vlgmr.msra.gmra.mrb[40].mxu0 %vm549_vm1, %v1721_v45  ;;  %v19560_v55 = vadd.f32 %v19501_v32, %v1651_v19  ;;  %v15197_v23 = vpop.f32.mrb[48].mxu1 }
 0x382   : > { %v19492_v46 = vpack.c.bf16 %v1550_v29, %v1549_v10  ;;  %24673 = vst [vmem:[#allocation47_spill] sm:$0xff] %v19557_v22  ;;  %16674 = vmatpush3.bf16.msra.mxu0 %v19358_v42  ;;  %v19565_v59 = vadd.f32 %v19506_v48, %v19552_v15  ;;  %v19578_v27 = vadd.f32 %v15197_v23, %v19501_v32  ;;  %v1664_v28 = vpop.f32.mrb[49].mxu1 }
 0x383   : > { %24659 = vst [vmem:[#allocation33_spill] sm:$0xff] %v19488_v35  ;;  %24674 = vst [vmem:[#allocation48_spill] sm:$0xff] %v19560_v55  ;;  %16676 = vmatprep.subr.bf16.mxu0 %v19437_v60  ;;  %v19570_v41 = vadd.f32 %v19506_v48, %v19560_v55  ;;  %v19582_v31 = vadd.f32 %v19501_v32, %v1664_v28  ;;  %v15198_v33 = vpop.f32.mrb[50].mxu1 }
 0x384   : > { %24660 = vst [vmem:[#allocation34_spill] sm:$0xff] %v19492_v46  ;;  %15243 = vmatprep.mubr.msk.bf16.mxu1 %vm1928_vm2, %v19492_v46  ;;  %24675 = vst [vmem:[#allocation49_spill] sm:$0xff] %v19565_v59  ;;  %v1723_v62 = vpack.c.bf16 %v19565_v59, %v19549_v12  ;;  %v19591_v36 = vadd.f32 %v19506_v48, %v19578_v27  ;;  %v19594_v18 = vadd.f32 %v15198_v33, %v19501_v32  ;;  %v1667_v4 = vpop.f32.mrb[51].mxu1 }
 0x385   : > { %24676 = vst [vmem:[#allocation50_spill] sm:$0xff] %v19570_v41  ;;  %v1722_v24 = vpack.c.bf16 %v19570_v41, %v19557_v22  ;;  %24677 = vst [vmem:[#allocation51_spill] sm:$0xff] %v19578_v27  ;;  %v19599_v58 = vadd.f32 %v19506_v48, %v19582_v31  ;;  %v19602_v45 = vadd.f32 %v19501_v32, %v1667_v4  ;;  %v17635_v27 = vld [vmem:[#allocation2 + $0xd0] sm:$0xff]  }
 0x386   : > { %16678 = vmatpush3.bf16.msra.mxu0 %v19437_v60  ;;  %24678 = vst [vmem:[#allocation52_spill] sm:$0xff] %v19582_v31  ;;  %24679 = vst [vmem:[#allocation53_spill] sm:$0xff] %v19591_v36  ;;  %v19611_v6 = vadd.f32 %v19506_v48, %v19594_v18  ;;  %v17637_v31 = vld [vmem:[#allocation2 + $0xe0] sm:$0xff]  }
 0x387   : > { %15244 = vmatmul.mubr.msk.bf16.gmra.mrb[68].mxu1 %vm1928_vm2, %v19488_v35  ;;  %16680 = vmatprep.subr.bf16.mxu0 %v19455_v40  ;;  %24680 = vst [vmem:[#allocation54_spill] sm:$0xff] %v19594_v18  ;;  %24681 = vst [vmem:[#allocation55_spill] sm:$0xff] %v19599_v58  ;;  %v19615_v7 = vadd.f32 %v19506_v48, %v19602_v45  ;;  %v17636_v18 = vld [vmem:[#allocation2 + $0xd8] sm:$0xff]  }
 0x388   : > { %15211 = vmatprep.mubr.msk.bf16.mxu0 %vm549_vm1, %v1722_v24  ;;  %24682 = vst [vmem:[#allocation56_spill] sm:$0xff] %v19602_v45  ;;  %24683 = vst [vmem:[#allocation57_spill] sm:$0xff] %v19611_v6  ;;  %v1725_v19 = vpack.c.bf16 %v19611_v6, %v19591_v36  ;;  %v17638_v45 = vld [vmem:[#allocation2 + $0xe8] sm:$0xff]  }
 0x389   : > { %15212 = vmatmul.mubr.msk.bf16.gmra.mrb[44].mxu0 %vm549_vm1, %v1723_v62  ;;  %24684 = vst [vmem:[#allocation58_spill] sm:$0xff] %v19615_v7  ;;  %v15201_v62 = vpop.f32.mrb[52].mxu1  ;;  %v1724_v23 = vpack.c.bf16 %v19615_v7, %v19599_v58 }
 0x38a   : > { %16682 = vmatpush3.bf16.msra.mxu0 %v19455_v40  ;;  %v19622_v24 = vadd.f32 %v15201_v62, %v19501_v32  ;;  %v1680_v28 = vpop.f32.mrb[53].mxu1 }
 0x38b   : > { %v19625_v33 = vadd.f32 %v19501_v32, %v1680_v28  ;;  %v15202_v4 = vpop.f32.mrb[54].mxu1  ;;  %15215 = vmatprep.mubr.msk.bf16.mxu0 %vm549_vm1, %v1724_v23 }
 0x38c   : > { %24685 = vst [vmem:[#allocation59_spill] sm:$0xff] %v19622_v24  ;;  %v19634_v53 = vadd.f32 %v19506_v48, %v19622_v24  ;;  %v19637_v62 = vadd.f32 %v15202_v4, %v19501_v32  ;;  %v1683_v0 = vpop.f32.mrb[55].mxu1 }
 0x38d   : > { %24686 = vst [vmem:[#allocation60_spill] sm:$0xff] %v19625_v33  ;;  %v19642_v28 = vadd.f32 %v19506_v48, %v19625_v33  ;;  %v19645_v23 = vadd.f32 %v19501_v32, %v1683_v0  ;;  %v2097_v0 = vld [vmem:[%s24500_s5 + $0x30] sm:$0xff] }
 0x38e   : > { %24687 = vst [vmem:[#allocation61_spill] sm:$0xff] %v19634_v53  ;;  %24688 = vst [vmem:[#allocation62_spill] sm:$0xff] %v19637_v62  ;;  %v19653_v4 = vadd.f32 %v19506_v48, %v19637_v62 }
 0x38f   : > { %24689 = vst [vmem:[#allocation63_spill] sm:$0xff] %v19642_v28  ;;  %24690 = vst [vmem:[#allocation64_spill] sm:$0xff] %v19645_v23 }
 0x390   : > { %24691 = vst [vmem:[#allocation65_spill] sm:$0xff] %v19653_v4  ;;  %v1727_v35 = vpack.c.bf16 %v19653_v4, %v19634_v53 }
 0x391   : > { %15216 = vmatmul.mubr.msk.bf16.gmra.mrb[48].mxu0 %vm549_vm1, %v1725_v19  ;;  %v19657_v19 = vadd.f32 %v19506_v48, %v19645_v23 }
 0x393   : > { %24692 = vst [vmem:[#allocation66_spill] sm:$0xff] %v19657_v19  ;;  %v1726_v32 = vpack.c.bf16 %v19657_v19, %v19642_v28 }
 0x395   : > { %15219 = vmatprep.mubr.msk.bf16.mxu0 %vm549_vm1, %v1726_v32  ;;  %v19702_v32 = vld [vmem:[%s24499_s4 + $0x12] ss:$0 sm:$0xff] }
 0x399   : > { %15220 = vmatmul.mubr.msk.bf16.gmra.mrb[52].mxu0 %vm549_vm1, %v1727_v35  ;;  %v2098_v35 = vld [vmem:[%s24500_s5 + $0x38] sm:$0xff] }
 0x39a   : > { %v19683_v10 = vpack.c.bf16 %v2098_v35, %v2097_v0  ;;  %v19697_v0 = vld [vmem:[%s24499_s4 + $0x11] ss:$0 sm:$0xff] }
 0x39c   : > { %24693 = vst [vmem:[#allocation67_spill] sm:$0xff] %v19683_v10  ;;  %16684 = vmatprep.subr.bf16.mxu0 %v19683_v10  ;;  %16700 = vmatprep.subr.bf16.mxu1 %v19683_v10 }
 0x39d   : > { %16686 = vmatpush3.bf16.msra.mxu0 %v19683_v10  ;;  %16702 = vmatpush3.bf16.msra.mxu1 %v19683_v10 }
 0x39e   : > { %16704 = vmatprep.subr.bf16.mxu1 %v19358_v42  ;;  %15327 = vmatprep.subr.bf16.mxu0 %v17635_v27 }
 0x442   : > { %v15233_v35 = vpop.f32.mrb[56].mxu1 }
 0x443   : > { %v1996_v46 = vadd.f32 %v15233_v35, %v19697_v0  ;;  %v1987_v29 = vpop.f32.mrb[57].mxu1 }
 0x444   : > { %v1988_v48 = vadd.f32 %v19697_v0, %v1987_v29  ;;  %v15234_v16 = vpop.f32.mrb[58].mxu1 }
 0x445   : > { %v2057_v20 = vadd.f32 %v19702_v32, %v1996_v46  ;;  %v1999_v49 = vadd.f32 %v15234_v16, %v19697_v0  ;;  %v1990_v47 = vpop.f32.mrb[59].mxu1 }
 0x446   : > { %v2055_v38 = vadd.f32 %v19702_v32, %v1988_v48  ;;  %v1991_v50 = vadd.f32 %v19697_v0, %v1990_v47 }
 0x447   : > { %v2058_v35 = vadd.f32 %v19702_v32, %v1999_v49  ;;  %v19721_v46 = vadd.f32 %v19711_v26, %v2057_v20 }
 0x448   : > { %v2056_v56 = vadd.f32 %v19702_v32, %v1991_v50  ;;  %v19718_v29 = vadd.f32 %v19711_v26, %v2055_v38 }
 0x44a   : > { %v19724_v16 = vadd.f32 %v19711_v26, %v2056_v56  ;;  %v15237_v8 = vpop.f32.mrb[60].mxu1  ;;  %15263 = vmatprep.mubr.msk.f32.mxu0 %vm1928_vm2, %v19718_v29  ;;  %v2292_v47 = vmul.f32 %v19718_v29, %v19718_v29  ;;  %v19738_v56 = vadd.f32 %v19711_v26, %v2058_v35 }
 0x44b   : > { %v2012_v49 = vadd.f32 %v15237_v8, %v19697_v0  ;;  %v2003_v48 = vpop.f32.mrb[61].mxu1 }
 0x44c   : > { %v2293_v50 = vmul.f32 %v19724_v16, %v19724_v16  ;;  %v2004_v38 = vadd.f32 %v19697_v0, %v2003_v48  ;;  %v15238_v20 = vpop.f32.mrb[62].mxu1  ;;  %15264 = vmatmul.mubr.msk.f32.vlgmr.msra.gmra.mrb[56].mxu0 %vm1928_vm2, %v19724_v16  ;;  %15303 = vmatprep.mubr.msk.f32.mxu1 %vm1928_vm2, %v2292_v47  ;;  %v2294_v48 = vmul.f32 %v19721_v46, %v19721_v46 }
 0x44d   : > { %v2061_v61 = vadd.f32 %v19702_v32, %v2012_v49  ;;  %v2015_v39 = vadd.f32 %v15238_v20, %v19697_v0  ;;  %v2006_v8 = vpop.f32.mrb[63].mxu1  ;;  %15266 = vmatprep.mubr.msk.f32.mxu0 %vm1928_vm2, %v19721_v46  ;;  %15328 = vmatpush3.bf16.msra.mxu0 %v17635_v27 }
 0x44e   : > { %v2059_v14 = vadd.f32 %v19702_v32, %v2004_v38  ;;  %v2007_v43 = vadd.f32 %v19697_v0, %v2006_v8  ;;  %15304 = vmatmul.mubr.msk.f32.vlgmr.msra.gmra.mrb[72].mxu1 %vm1928_vm2, %v2293_v50  ;;  %v2295_v38 = vmul.f32 %v19738_v56, %v19738_v56  ;;  %15329 = vmatprep.subr.bf16.mxu0 %v17636_v18 }
 0x44f   : > { %v2062_v35 = vadd.f32 %v19702_v32, %v2015_v39  ;;  %15306 = vmatprep.mubr.msk.f32.mxu1 %vm1928_vm2, %v2294_v48  ;;  %16706 = vmatpush3.bf16.msra.mxu1 %v19358_v42  ;;  %v19762_v50 = vadd.f32 %v19711_v26, %v2061_v61 }
 0x450   : > { %v2060_v47 = vadd.f32 %v19702_v32, %v2007_v43  ;;  %15267 = vmatmul.mubr.msk.f32.gmra.mrb[58].mxu0 %vm1928_vm2, %v19738_v56  ;;  %v19756_v49 = vadd.f32 %v19711_v26, %v2059_v14  ;;  %16708 = vmatprep.subr.bf16.mxu1 %v19437_v60 }
 0x451   : > { %v19774_v48 = vadd.f32 %v19711_v26, %v2062_v35  ;;  %v2298_v35 = vmul.f32 %v19762_v50, %v19762_v50  ;;  %15330 = vmatpush3.bf16.msra.mxu0 %v17636_v18 }
 0x452   : > { %v15241_v39 = vpop.f32.mrb[64].mxu1  ;;  %15269 = vmatprep.mubr.msk.f32.mxu0 %vm1928_vm2, %v19756_v49  ;;  %15307 = vmatmul.mubr.msk.f32.gmra.mrb[74].mxu1 %vm1928_vm2, %v2295_v38  ;;  %v19768_v43 = vadd.f32 %v19711_v26, %v2060_v47  ;;  %v2296_v14 = vmul.f32 %v19756_v49, %v19756_v49 }
 0x453   : > { %v2028_v20 = vadd.f32 %v15241_v39, %v19697_v0  ;;  %v2019_v8 = vpop.f32.mrb[65].mxu1  ;;  %16710 = vmatpush3.bf16.msra.mxu1 %v19437_v60  ;;  %15331 = vmatprep.subr.bf16.mxu0 %v17637_v31 }
 0x454   : > { %v2020_v61 = vadd.f32 %v19697_v0, %v2019_v8  ;;  %v15242_v37 = vpop.f32.mrb[66].mxu1  ;;  %15270 = vmatmul.mubr.msk.f32.gmra.mrb[60].mxu0 %vm1928_vm2, %v19768_v43  ;;  %15309 = vmatprep.mubr.msk.f32.mxu1 %vm1928_vm2, %v2296_v14  ;;  %v2297_v47 = vmul.f32 %v19768_v43, %v19768_v43 }
 0x455   : > { %v2065_v38 = vadd.f32 %v19702_v32, %v2028_v20  ;;  %v2031_v39 = vadd.f32 %v15242_v37, %v19697_v0  ;;  %v2022_v1 = vpop.f32.mrb[67].mxu1  ;;  %15272 = vmatprep.mubr.msk.f32.mxu0 %vm1928_vm2, %v19762_v50  ;;  %16712 = vmatprep.subr.bf16.mxu1 %v19455_v40  ;;  %v2299_v37 = vmul.f32 %v19774_v48, %v19774_v48 }
 0x456   : > { %v2063_v8 = vadd.f32 %v19702_v32, %v2020_v61  ;;  %v2023_v14 = vadd.f32 %v19697_v0, %v2022_v1  ;;  %15310 = vmatmul.mubr.msk.f32.gmra.mrb[76].mxu1 %vm1928_vm2, %v2297_v47  ;;  %15332 = vmatpush3.bf16.msra.mxu0 %v17637_v31 }
 0x457   : > { %15312 = vmatprep.mubr.msk.f32.mxu1 %vm1928_vm2, %v2298_v35  ;;  %16714 = vmatpush3.bf16.msra.mxu1 %v19455_v40  ;;  %v2066_v20 = vadd.f32 %v19702_v32, %v2031_v39  ;;  %v19806_v1 = vadd.f32 %v19711_v26, %v2065_v38 }
 0x458   : > { %v2064_v17 = vadd.f32 %v19702_v32, %v2023_v14  ;;  %15273 = vmatmul.mubr.msk.f32.gmra.mrb[62].mxu0 %vm1928_vm2, %v19774_v48  ;;  %v19802_v61 = vadd.f32 %v19711_v26, %v2063_v8  ;;  %16716 = vmatprep.subr.bf16.mxu1 %v19683_v10 }
 0x459   : > { %15333 = vmatprep.subr.bf16.mxu0 %v17638_v45 }
 0x45a   : > { %v15245_v47 = vpop.f32.mrb[68].mxu1  ;;  %15275 = vmatprep.mubr.msk.f32.mxu0 %vm1928_vm2, %v19802_v61  ;;  %15313 = vmatmul.mubr.msk.f32.gmra.mrb[78].mxu1 %vm1928_vm2, %v2299_v37  ;;  %v19812_v39 = vadd.f32 %v19711_v26, %v2064_v17  ;;  %v2300_v35 = vmul.f32 %v19802_v61, %v19802_v61  ;;  %v19825_v37 = vadd.f32 %v19711_v26, %v2066_v20 }
 0x45b   : > { %v2044_v8 = vadd.f32 %v15245_v47, %v19697_v0  ;;  %v2035_v14 = vpop.f32.mrb[69].mxu1  ;;  %16718 = vmatpush3.bf16.msra.mxu1 %v19683_v10  ;;  %15334 = vmatpush3.bf16.msra.mxu0 %v17638_v45 }
 0x45c   : > { %v2036_v38 = vadd.f32 %v19697_v0, %v2035_v14  ;;  %v15246_v25 = vpop.f32.mrb[70].mxu1  ;;  %15276 = vmatmul.mubr.msk.f32.gmra.mrb[64].mxu0 %vm1928_vm2, %v19812_v39  ;;  %15315 = vmatprep.mubr.msk.f32.mxu1 %vm1928_vm2, %v2300_v35  ;;  %v2301_v17 = vmul.f32 %v19812_v39, %v19812_v39  ;;  %v2302_v14 = vmul.f32 %v19806_v1, %v19806_v1 }
 0x45d   : > { %v2069_v57 = vadd.f32 %v19702_v32, %v2044_v8  ;;  %v2047_v47 = vadd.f32 %v15246_v25, %v19697_v0  ;;  %v2038_v5 = vpop.f32.mrb[71].mxu1  ;;  %15278 = vmatprep.mubr.msk.f32.mxu0 %vm1928_vm2, %v19806_v1  ;;  %16720 = vmatprep.subr.bf16.mxu1 %v19358_v42  ;;  %v2303_v9 = vmul.f32 %v19825_v37, %v19825_v37 }
 0x45e   : > { %v2067_v35 = vadd.f32 %v19702_v32, %v2036_v38  ;;  %v2039_v63 = vadd.f32 %v19697_v0, %v2038_v5  ;;  %15316 = vmatmul.mubr.msk.f32.gmra.mrb[80].mxu1 %vm1928_vm2, %v2301_v17  ;;  %15351 = vmatprep.subr.bf16.mxu0 %v19909_v11 }
 0x45f   : > { %15318 = vmatprep.mubr.msk.f32.mxu1 %vm1928_vm2, %v2302_v14  ;;  %v2070_v20 = vadd.f32 %v19702_v32, %v2047_v47  ;;  %v19848_v38 = vadd.f32 %v19711_v26, %v2069_v57 }
 0x460   : > { %v2068_v25 = vadd.f32 %v19702_v32, %v2039_v63  ;;  %15279 = vmatmul.mubr.msk.f32.gmra.mrb[66].mxu0 %vm1928_vm2, %v19825_v37  ;;  %v19843_v8 = vadd.f32 %v19711_v26, %v2067_v35 }
 0x461   : > { %v19864_v32 = vadd.f32 %v19711_v26, %v2070_v20 }
 0x462   : > { %15281 = vmatprep.mubr.msk.f32.mxu0 %vm1928_vm2, %v19843_v8  ;;  %15319 = vmatmul.mubr.msk.f32.gmra.mrb[82].mxu1 %vm1928_vm2, %v2303_v9  ;;  %v19854_v5 = vadd.f32 %v19711_v26, %v2068_v25  ;;  %v2304_v63 = vmul.f32 %v19843_v8, %v19843_v8  ;;  %v2306_v9 = vmul.f32 %v19848_v38, %v19848_v38  ;;  %v19877_v26 = vpop.f32.mrb[40].mxu0 }
 0x463   : > { %v2307_v0 = vmul.f32 %v19864_v32, %v19864_v32  ;;  %v19879_v17 = vpop.f32.mrb[41].mxu0 }
 0x464   : > { %15282 = vmatmul.mubr.msk.f32.gmra.mrb[68].mxu0 %vm1928_vm2, %v19854_v5  ;;  %15321 = vmatprep.mubr.msk.f32.mxu1 %vm1928_vm2, %v2304_v63  ;;  %v2305_v57 = vmul.f32 %v19854_v5, %v19854_v5  ;;  %v19881_v47 = vpop.f32.mrb[42].mxu0 }
 0x465   : > { %15284 = vmatprep.mubr.msk.f32.mxu0 %vm1928_vm2, %v19848_v38  ;;  %v19883_v14 = vpop.f32.mrb[43].mxu0 }
 0x466   : > { %15322 = vmatmul.mubr.msk.f32.gmra.mrb[84].mxu1 %vm1928_vm2, %v2305_v57  ;;  %v19885_v35 = vpop.f32.mrb[44].mxu0 }
 0x467   : > { %15324 = vmatprep.mubr.msk.f32.mxu1 %vm1928_vm2, %v2306_v9  ;;  %v19887_v20 = vpop.f32.mrb[45].mxu0 }
 0x468   : > { %15285 = vmatmul.mubr.msk.f32.gmra.mrb[70].mxu0 %vm1928_vm2, %v19864_v32  ;;  %v19889_v25 = vpop.f32.mrb[46].mxu0 }
 0x469   : > { %v19891_v63 = vpop.f32.mrb[47].mxu0 }
 0x46a   : > { %15325 = vmatmul.mubr.msk.f32.gmra.mrb[86].mxu1 %vm1928_vm2, %v2307_v0  ;;  %v19893_v57 = vpop.f32.mrb[48].mxu0 }
 0x46b   : > { %v19895_v9 = vpop.f32.mrb[49].mxu0 }
 0x46c   : > { %v19897_v0 = vpop.f32.mrb[50].mxu0 }
 0x46d   : > { %v19899_v2 = vpop.f32.mrb[51].mxu0 }
 0x46e   : > { %v19901_v24 = vpop.f32.mrb[52].mxu0 }
 0x46f   : > { %24694 = vst [vmem:[#allocation68_spill] sm:$0xff] %v19901_v24  ;;  %v19903_v62 = vpop.f32.mrb[53].mxu0 }
 0x470   : > { %24695 = vst [vmem:[#allocation69_spill] sm:$0xff] %v19903_v62  ;;  %v19905_v33 = vpop.f32.mrb[54].mxu0 }
 0x471   : > { %24696 = vst [vmem:[#allocation70_spill] sm:$0xff] %v19905_v33  ;;  %v19907_v23 = vpop.f32.mrb[55].mxu0 }
 0x472   : > { %24697 = vst [vmem:[#allocation71_spill] sm:$0xff] %v19907_v23 }
 0x51f   : > { %v19912_v15 = vpop.f32.mrb[56].mxu0 }
 0x520   : > { %v2502_v13 = vmul.f32 %v19912_v15, %v19912_v15  ;;  %v19916_v55 = vpop.f32.mrb[57].mxu0 }
 0x521   : > { %v2501_v27 = vmul.f32 %v19916_v55, %v19916_v55  ;;  %v15305_v18 = vpop.f32.mrb[72].mxu1 }
 0x522   : > { %v2518_v3 = vsub.f32 %v15305_v18, %v2502_v13  ;;  %v2422_v30 = vpop.f32.mrb[73].mxu1 }
 0x523   : > { %v2517_v31 = vsub.f32 %v2422_v30, %v2501_v27  ;;  %v19920_v21 = vpop.f32.mrb[58].mxu0 }
 0x524   : > { %v2534_v45 = vmax.f32 %v2518_v3, 0.0  ;;  %v2504_v52 = vmul.f32 %v19920_v21, %v19920_v21  ;;  %v19924_v53 = vpop.f32.mrb[59].mxu0 }
 0x525   : > { %v2533_v4 = vmax.f32 %v2517_v31, 0.0  ;;  %v2503_v28 = vmul.f32 %v19924_v53, %v19924_v53  ;;  %v15308_v19 = vpop.f32.mrb[74].mxu1 }
 0x526   : > { %v2566_v36 = vadd.f32 1e-05, %v2534_v45  ;;  %v2520_v6 = vsub.f32 %v15308_v19, %v2504_v52  ;;  %v2432_v58 = vpop.f32.mrb[75].mxu1 }
 0x527   : > { %v2565_v7 = vadd.f32 1e-05, %v2533_v4  ;;  %v2519_v13 = vsub.f32 %v2432_v58, %v2503_v28  ;;  %v19928_v18 = vpop.f32.mrb[60].mxu0 }
 0x528   : > { %17931 = vrsqrt.f32 %v2566_v36  ;;  %v2536_v30 = vmax.f32 %v2520_v6, 0.0  ;;  %v2506_v3 = vmul.f32 %v19928_v18, %v19928_v18  ;;  %v19932_v27 = vpop.f32.mrb[61].mxu0 }
 0x529   : > { %17933 = vrsqrt.f32 %v2565_v7  ;;  %v2535_v31 = vmax.f32 %v2519_v13, 0.0  ;;  %v2505_v12 = vmul.f32 %v19932_v27, %v19932_v27  ;;  %v15311_v59 = vpop.f32.mrb[76].mxu1  ;;  %v24698_v62 = vsub.f32 %v19756_v49, %v19932_v27 }
 0x52a   : > { %v2568_v45 = vadd.f32 1e-05, %v2536_v30  ;;  %v2522_v52 = vsub.f32 %v15311_v59, %v2506_v3  ;;  %v2442_v19 = vpop.f32.mrb[77].mxu1  ;;  %v2550_v59 = vsub.f32 %v19724_v16, %v19912_v15  ;;  %v2549_v3 = vsub.f32 %v19718_v29, %v19916_v55 }
 0x52b   : > { %v2567_v4 = vadd.f32 1e-05, %v2535_v31  ;;  %v2521_v58 = vsub.f32 %v2442_v19, %v2505_v12  ;;  %v19936_v28 = vpop.f32.mrb[62].mxu0  ;;  %v2552_v31 = vsub.f32 %v19738_v56, %v19920_v21 }
 0x52c   : > { %17935 = vrsqrt.f32 %v2568_v45  ;;  %v2538_v36 = vmax.f32 %v2522_v52, 0.0  ;;  %v2508_v6 = vmul.f32 %v19936_v28, %v19936_v28  ;;  %v19940_v22 = vpop.f32.mrb[63].mxu0 }
 0x52d   : > { %17937 = vrsqrt.f32 %v2567_v4  ;;  %v2537_v7 = vmax.f32 %v2521_v58, 0.0  ;;  %v2507_v13 = vmul.f32 %v19940_v22, %v19940_v22  ;;  %v15314_v41 = vpop.f32.mrb[78].mxu1  ;;  %v2551_v4 = vsub.f32 %v19721_v46, %v19924_v53 }
 0x52e   : > { %v2524_v30 = vsub.f32 %v15314_v41, %v2508_v6  ;;  %v2452_v12 = vpop.f32.mrb[79].mxu1  ;;  %v2570_v45 = vadd.f32 1e-05, %v2538_v36 }
 0x52f   : > { %v2523_v52 = vsub.f32 %v2452_v12, %v2507_v13  ;;  %v19950_v19 = vpop.f32.mrb[64].mxu0  ;;  %v2569_v58 = vadd.f32 1e-05, %v2537_v7 }
 0x530   : > { %v2540_v51 = vmax.f32 %v2524_v30, 0.0  ;;  %v2510_v15 = vmul.f32 %v19950_v19, %v19950_v19  ;;  %v19956_v41 = vpop.f32.mrb[65].mxu0  ;;  %17939 = vrsqrt.f32 %v2570_v45 }
 0x531   : > { %v2539_v29 = vmax.f32 %v2523_v52, 0.0  ;;  %v2509_v16 = vmul.f32 %v19956_v41, %v19956_v41  ;;  %v15317_v56 = vpop.f32.mrb[80].mxu1  ;;  %17941 = vrsqrt.f32 %v2569_v58 }
 0x532   : > { %v17932_v36 = vpop.eup %17931  ;;  %v2572_v6 = vadd.f32 1e-05, %v2540_v51  ;;  %v2526_v7 = vsub.f32 %v15317_v56, %v2510_v15  ;;  %v2462_v13 = vpop.f32.mrb[81].mxu1 }
 0x533   : > { %v17934_v30 = vpop.eup %17933  ;;  %v2571_v12 = vadd.f32 1e-05, %v2539_v29  ;;  %v2525_v55 = vsub.f32 %v2462_v13, %v2509_v16  ;;  %v19968_v21 = vpop.f32.mrb[66].mxu0  ;;  %v2598_v52 = vmul.f32 %v17932_v36, %v2550_v59 }
 0x534   : > { %v2542_v34 = vmax.f32 %v2526_v7, 0.0  ;;  %v2512_v53 = vmul.f32 %v19968_v21, %v19968_v21  ;;  %v19974_v54 = vpop.f32.mrb[67].mxu0  ;;  %17943 = vrsqrt.f32 %v2572_v6  ;;  %v2597_v36 = vmul.f32 %v17934_v30, %v2549_v3  ;;  %v19983_v6 = vld [vmem:[%s24499_s4 + $0x13] ss:$0 sm:$0xff] }
 0x535   : > { %v2541_v45 = vmax.f32 %v2525_v55, 0.0  ;;  %v2511_v15 = vmul.f32 %v19974_v54, %v19974_v54  ;;  %v15320_v29 = vpop.f32.mrb[82].mxu1  ;;  %17945 = vrsqrt.f32 %v2571_v12 }
 0x536   : > { %v17936_v59 = vpop.eup %17935  ;;  %v2574_v58 = vadd.f32 1e-05, %v2542_v34  ;;  %v2528_v16 = vsub.f32 %v15320_v29, %v2512_v53  ;;  %v2472_v56 = vpop.f32.mrb[83].mxu1 }
 0x537   : > { %v17938_v7 = vpop.eup %17937  ;;  %v2600_v13 = vmul.f32 %v17936_v59, %v2552_v31  ;;  %v2573_v44 = vadd.f32 1e-05, %v2541_v45  ;;  %v2527_v51 = vsub.f32 %v2472_v56, %v2511_v15  ;;  %v19987_v46 = vpop.f32.mrb[68].mxu0  ;;  %v19999_v15 = vld [vmem:[%s24499_s4 + $0x14] ss:$0 sm:$0xff] }
 0x538   : > { %v2599_v10 = vmul.f32 %v17938_v7, %v2551_v4  ;;  %17947 = vrsqrt.f32 %v2574_v58  ;;  %v2544_v34 = vmax.f32 %v2528_v16, 0.0  ;;  %v2514_v3 = vmul.f32 %v19987_v46, %v19987_v46  ;;  %v19991_v53 = vpop.f32.mrb[69].mxu0 }
 0x539   : > { %v2621_v31 = vmul.f32 %v19983_v6, %v2600_v13  ;;  %17949 = vrsqrt.f32 %v2573_v44  ;;  %v2543_v12 = vmax.f32 %v2527_v51, 0.0  ;;  %v15323_v45 = vpop.f32.mrb[84].mxu1  ;;  %v2513_v59 = vmul.f32 %v19991_v53, %v19991_v53 }
 0x53a   : > { %v2620_v4 = vmul.f32 %v19983_v6, %v2599_v10  ;;  %v2576_v29 = vadd.f32 1e-05, %v2544_v34  ;;  %v2482_v58 = vpop.f32.mrb[85].mxu1  ;;  %v2619_v16 = vmul.f32 %v19983_v6, %v2598_v52  ;;  %v2530_v51 = vsub.f32 %v15323_v45, %v2514_v3  ;;  %v17940_v52 = vpop.eup %17939 }
 0x53b   : > { %v20006_v44 = vadd.f32 %v19999_v15, %v2621_v31  ;;  %v2575_v56 = vadd.f32 1e-05, %v2543_v12  ;;  %v20008_v7 = vpop.f32.mrb[70].mxu0  ;;  %v2618_v13 = vmul.f32 %v19983_v6, %v2597_v36  ;;  %v2529_v10 = vsub.f32 %v2482_v58, %v2513_v59  ;;  %v17942_v36 = vpop.eup %17941 }
 0x53c   : > { %v20012_v30 = vadd.f32 %v19999_v15, %v2620_v4  ;;  %17951 = vrsqrt.f32 %v2576_v29  ;;  %v2516_v34 = vmul.f32 %v20008_v7, %v20008_v7  ;;  %v20016_v55 = vpop.f32.mrb[71].mxu0  ;;  %v2546_v12 = vmax.f32 %v2530_v51, 0.0 }
 0x53d   : > { %v13492_v31 = vmul.f32 -1.442695, %v20006_v44  ;;  %17953 = vrsqrt.f32 %v2575_v56  ;;  %v15326_v45 = vpop.f32.mrb[86].mxu1  ;;  %v2545_v59 = vmax.f32 %v2529_v10, 0.0  ;;  %v2515_v58 = vmul.f32 %v20016_v55, %v20016_v55 }
 0x53e   : > { %v13491_v4 = vmul.f32 -1.442695, %v20012_v30  ;;  %v2492_v40 = vpop.f32.mrb[87].mxu1  ;;  %v17944_v60 = vpop.eup %17943  ;;  %v2578_v42 = vadd.f32 1e-05, %v2546_v12  ;;  %v2532_v56 = vsub.f32 %v15326_v45, %v2516_v34  ;;  %v20027_v33 = vadd.f32 %v19999_v15, %v2618_v13 }
 0x53f   : > { %17955 = vpow2.f32 %v13492_v31  ;;  %v17946_v51 = vpop.eup %17945  ;;  %v2577_v3 = vadd.f32 1e-05, %v2545_v59  ;;  %v2531_v24 = vsub.f32 %v2492_v40, %v2515_v58  ;;  %v20030_v23 = vadd.f32 %v19999_v15, %v2619_v16 }
 0x540   : > { %17957 = vpow2.f32 %v13491_v4  ;;  %v2548_v10 = vmax.f32 %v2532_v56, 0.0  ;;  %v13489_v29 = vmul.f32 -1.442695, %v20027_v33  ;;  %v2601_v31 = vmul.f32 %v17942_v36, %v24698_v62 }
 0x541   : > { %17959 = vrsqrt.f32 %v2578_v42  ;;  %v2547_v34 = vmax.f32 %v2531_v24, 0.0  ;;  %v13490_v13 = vmul.f32 -1.442695, %v20030_v23  ;;  %v24699_v45 = vsub.f32 %v19768_v43, %v19928_v18 }
 0x542   : > { %v17948_v12 = vpop.eup %17947  ;;  %17961 = vrsqrt.f32 %v2577_v3  ;;  %v2580_v16 = vadd.f32 1e-05, %v2548_v10  ;;  %v2622_v42 = vmul.f32 %v19983_v6, %v2601_v31  ;;  %v24700_v59 = vsub.f32 %v19762_v50, %v19940_v22 }
 0x543   : > { %v2602_v40 = vmul.f32 %v17940_v52, %v24699_v45  ;;  %v17950_v4 = vpop.eup %17949  ;;  %17963 = vpow2.f32 %v13489_v29  ;;  %v2579_v49 = vadd.f32 1e-05, %v2547_v34  ;;  %v24701_v24 = vsub.f32 %v19774_v48, %v19936_v28 }
 0x544   : > { %v2603_v58 = vmul.f32 %v17946_v51, %v24700_v59  ;;  %17965 = vpow2.f32 %v13490_v13  ;;  %v20049_v43 = vadd.f32 %v19999_v15, %v2622_v42  ;;  %v24702_v52 = vsub.f32 %v19802_v61, %v19956_v41 }
 0x545   : > { %v2623_v62 = vmul.f32 %v19983_v6, %v2602_v40  ;;  %v2604_v27 = vmul.f32 %v17944_v60, %v24701_v24  ;;  %17967 = vrsqrt.f32 %v2580_v16  ;;  %v24703_v60 = vsub.f32 %v19812_v39, %v19950_v19 }
 0x546   : > { %v2624_v18 = vmul.f32 %v19983_v6, %v2603_v58  ;;  %v2605_v3 = vmul.f32 %v17950_v4, %v24702_v52  ;;  %v17952_v22 = vpop.eup %17951  ;;  %17969 = vrsqrt.f32 %v2579_v49  ;;  %v13493_v29 = vmul.f32 -1.442695, %v20049_v43 }
 0x547   : > { %v20056_v50 = vadd.f32 %v19999_v15, %v2623_v62  ;;  %v2625_v36 = vmul.f32 %v19983_v6, %v2604_v27  ;;  %v2606_v48 = vmul.f32 %v17948_v12, %v24703_v60  ;;  %v17954_v28 = vpop.eup %17953  ;;  %v24704_v41 = vsub.f32 %v19825_v37, %v19968_v21 }
 0x548   : > { %v20064_v56 = vadd.f32 %v19999_v15, %v2624_v18  ;;  %v2626_v61 = vmul.f32 %v19983_v6, %v2605_v3  ;;  %v24705_v19 = vsub.f32 %v19806_v1, %v19974_v54  ;;  %17971 = vpow2.f32 %v13493_v29 }
 0x549   : > { %v2608_v51 = vmul.f32 %v17952_v22, %v24704_v41  ;;  %v13494_v10 = vmul.f32 -1.442695, %v20056_v50  ;;  %v20072_v31 = vadd.f32 %v19999_v15, %v2625_v36  ;;  %v2627_v39 = vmul.f32 %v19983_v6, %v2606_v48  ;;  %v17956_v34 = vpop.eup %17955 }
 0x54a   : > { %v2607_v12 = vmul.f32 %v17954_v28, %v24705_v19  ;;  %v13495_v13 = vmul.f32 -1.442695, %v20064_v56  ;;  %v20080_v45 = vadd.f32 %v19999_v15, %v2626_v61  ;;  %v17958_v21 = vpop.eup %17957  ;;  %v2706_v40 = vadd.f32 1.0, %v17956_v34 }
 0x54b   : > { %v2629_v37 = vmul.f32 %v19983_v6, %v2608_v51  ;;  %17973 = vpow2.f32 %v13494_v10  ;;  %v13496_v4 = vmul.f32 -1.442695, %v20072_v31  ;;  %v20085_v16 = vadd.f32 %v19999_v15, %v2627_v39  ;;  %v17960_v42 = vpop.eup %17959 }
 0x54c   : > { %v2705_v54 = vadd.f32 1.0, %v17958_v21  ;;  %17975 = vpow2.f32 %v13495_v13  ;;  %v13497_v1 = vmul.f32 -1.442695, %v20080_v45  ;;  %v2628_v59 = vmul.f32 %v19983_v6, %v2607_v12  ;;  %v17962_v58 = vpop.eup %17961 }
 0x54d   : > { %17977 = vrcp.f32 %v2706_v40  ;;  %v2564_v49 = vsub.f32 %v19864_v32, %v20008_v7  ;;  %v20092_v62 = vadd.f32 %v19999_v15, %v2629_v37  ;;  %v24706_v24 = vsub.f32 %v19854_v5, %v19987_v46  ;;  %v17964_v18 = vpop.eup %17963 }
 0x54e   : > { %17979 = vrcp.f32 %v2705_v54  ;;  %v2563_v52 = vsub.f32 %v19848_v38, %v20016_v55  ;;  %v20100_v3 = vadd.f32 %v19999_v15, %v2628_v59  ;;  %v24707_v22 = vsub.f32 %v19843_v8, %v19991_v53  ;;  %v17966_v32 = vpop.eup %17965 }
 0x54f   : > { %v2610_v27 = vmul.f32 %v17960_v42, %v24706_v24  ;;  %v2703_v7 = vadd.f32 1.0, %v17964_v18  ;;  %17981 = vpow2.f32 %v13496_v4  ;;  %v13498_v60 = vmul.f32 -1.442695, %v20085_v16  ;;  %v17968_v46 = vpop.eup %17967 }
 0x550   : > { %v2609_v36 = vmul.f32 %v17962_v58, %v24707_v22  ;;  %v2704_v48 = vadd.f32 1.0, %v17966_v32  ;;  %17983 = vpow2.f32 %v13497_v1  ;;  %v13499_v28 = vmul.f32 -1.442695, %v20100_v3  ;;  %v17970_v55 = vpop.eup %17969 }
 0x551   : > { %v2631_v5 = vmul.f32 %v19983_v6, %v2610_v27  ;;  %17985 = vrcp.f32 %v2703_v7  ;;  %v13500_v29 = vmul.f32 -1.442695, %v20092_v62  ;;  %v2612_v53 = vmul.f32 %v17968_v46, %v2564_v49 }
 0x552   : > { %v2630_v38 = vmul.f32 %v19983_v6, %v2609_v36  ;;  %17987 = vrcp.f32 %v2704_v48  ;;  %v2611_v41 = vmul.f32 %v17970_v55, %v2563_v52  ;;  %v17972_v10 = vpop.eup %17971 }
 0x553   : > { %v20111_v8 = vadd.f32 %v19999_v15, %v2631_v5  ;;  %17989 = vpow2.f32 %v13498_v60  ;;  %v2633_v51 = vmul.f32 %v19983_v6, %v2612_v53  ;;  %v2707_v34 = vadd.f32 1.0, %v17972_v10 }
 0x554   : > { %v20114_v61 = vadd.f32 %v19999_v15, %v2630_v38  ;;  %17991 = vpow2.f32 %v13499_v28  ;;  %v2632_v19 = vmul.f32 %v19983_v6, %v2611_v41  ;;  %v17640_v38 = vld [vmem:[#allocation2 + $0xf8] sm:$0xff]  }
 0x555   : > { %v17974_v12 = vpop.eup %17973  ;;  %17993 = vpow2.f32 %v13500_v29  ;;  %v13502_v13 = vmul.f32 -1.442695, %v20111_v8  ;;  %v20124_v4 = vadd.f32 %v19999_v15, %v2633_v51 }
 0x556   : > { %v13501_v39 = vmul.f32 -1.442695, %v20114_v61  ;;  %v17976_v37 = vpop.eup %17975  ;;  %v2708_v21 = vadd.f32 1.0, %v17974_v12  ;;  %v20121_v40 = vadd.f32 %v19999_v15, %v2632_v19 }
 0x557   : > { %v17978_v42 = vpop.eup %17977  ;;  %v2709_v54 = vadd.f32 1.0, %v17976_v37  ;;  %v13504_v18 = vmul.f32 -1.442695, %v20124_v4 }
 0x558   : > { %17995 = vpow2.f32 %v13501_v39  ;;  %v17980_v1 = vpop.eup %17979  ;;  %v2754_v6 = vmul.f32 %v17978_v42, %v20006_v44  ;;  %v13503_v59 = vmul.f32 -1.442695, %v20121_v40 }
 0x559   : > { %17997 = vrcp.f32 %v2707_v34  ;;  %v17982_v58 = vpop.eup %17981  ;;  %v2753_v49 = vmul.f32 %v17980_v1, %v20012_v30 }
 0x55a   : > { %17999 = vrcp.f32 %v2708_v21  ;;  %v17984_v24 = vpop.eup %17983  ;;  %v2710_v27 = vadd.f32 1.0, %v17982_v58 }
 0x55b   : > { %18001 = vrcp.f32 %v2709_v54  ;;  %v17986_v15 = vpop.eup %17985  ;;  %v2776_v52 = vpack.c.bf16 %v2754_v6, %v2753_v49  ;;  %v2711_v22 = vadd.f32 1.0, %v17984_v24 }
 0x55c   : > { %18003 = vpow2.f32 %v13502_v13  ;;  %v17988_v36 = vpop.eup %17987  ;;  %v2751_v32 = vmul.f32 %v17986_v15, %v20027_v33 }
 0x55d   : > { %18005 = vpow2.f32 %v13503_v59  ;;  %v17990_v44 = vpop.eup %17989  ;;  %v2752_v7 = vmul.f32 %v17988_v36, %v20030_v23 }
 0x55e   : > { %18007 = vrcp.f32 %v2710_v27  ;;  %v17992_v60 = vpop.eup %17991  ;;  %v2712_v30 = vadd.f32 1.0, %v17990_v44  ;;  %v13429_v27 = vld [vmem:[%s24499_s4 + $0xe] ss:$0 sm:$0xff] }
 0x55f   : > { %18009 = vrcp.f32 %v2711_v22  ;;  %v17994_v5 = vpop.eup %17993  ;;  %v2775_v46 = vpack.c.bf16 %v2752_v7, %v2751_v32  ;;  %v2713_v48 = vadd.f32 1.0, %v17992_v60  ;;  %v20174_v60 = vadd.f32 %v13429_v27, %v19887_v20 }
 0x560   : > { %18011 = vpow2.f32 %v13504_v18  ;;  %v2714_v55 = vadd.f32 1.0, %v17994_v5 }
 0x561   : > { %18013 = vrcp.f32 %v2712_v30  ;;  %15335 = vmatprep.mubr.msk.bf16.mxu0 %vm1928_vm2, %v2775_v46  ;;  %v20177_v30 = vadd.f32 %v13429_v27, %v19891_v63  ;;  %v20190_v63 = vadd.f32 %v19885_v35, %v13429_v27  ;;  %v20193_v46 = vadd.f32 %v19889_v25, %v13429_v27 }
 0x562   : > { %v17996_v28 = vpop.eup %17995  ;;  %18015 = vrcp.f32 %v2713_v48  ;;  %15336 = vmatmul.mubr.msk.bf16.vlgmr.msra.gmra.mrb[72].mxu0 %vm1928_vm2, %v2776_v52 }
 0x563   : > { %v17998_v29 = vpop.eup %17997  ;;  %v2715_v33 = vadd.f32 1.0, %v17996_v28  ;;  %18017 = vrcp.f32 %v2714_v55  ;;  %15352 = vmatpush3.bf16.msra.mxu0 %v19909_v11  ;;  %v1871_v5 = vmax.f32 %v20177_v30, 0.0  ;;  %v20200_v28 = vadd.f32 %v13429_v27, %v19895_v9 }
 0x564   : > { %v18000_v53 = vpop.eup %17999  ;;  %v2755_v23 = vmul.f32 %v17998_v29, %v20049_v43  ;;  %15353 = vmatprep.subr.bf16.mxu0 %v17640_v38  ;;  %v1872_v35 = vmax.f32 %v20190_v63, 0.0  ;;  %v1873_v25 = vmax.f32 %v20193_v46, 0.0  ;;  %v24725_v63 = vld [vmem:[#allocation42_spill] sm:$0xff]  ;;  %v24726_v46 = vld [vmem:[#allocation39_spill] sm:$0xff] }
 0x565   : > { %v18002_v41 = vpop.eup %18001  ;;  %v2756_v51 = vmul.f32 %v18000_v53, %v20056_v50  ;;  %18019 = vrcp.f32 %v2715_v33  ;;  %v1874_v55 = vmax.f32 %v20200_v28, 0.0  ;;  %v20219_v33 = vadd.f32 %v19897_v0, %v13429_v27 }
 0x566   : > { %v18004_v10 = vpop.eup %18003  ;;  %v2757_v12 = vmul.f32 %v18002_v41, %v20064_v56  ;;  %v2940_v9 = vpack.c.bf16 %v1873_v25, %v1872_v35  ;;  %v24727_v28 = vpack.i.bf16 %v24725_v63, %v24726_v46  ;;  %v24770_v46 = vld [vmem:[#allocation62_spill] sm:$0xff] }
 0x567   : > { %v18006_v39 = vpop.eup %18005  ;;  %v2777_v19 = vpack.c.bf16 %v2756_v51, %v2755_v23  ;;  %v2716_v34 = vadd.f32 1.0, %v18004_v10  ;;  %15354 = vmatpush3.bf16.msra.mxu0 %v17640_v38  ;;  %v20203_v38 = vadd.f32 %v13429_v27, %v19899_v2  ;;  %v20216_v2 = vadd.f32 %v19893_v57, %v13429_v27  ;;  %v24708_v23 = vld [vmem:[#allocation69_spill] sm:$0xff]  ;;  %v24709_v51 = vld [vmem:[#allocation71_spill] sm:$0xff] }
 0x568   : > { %v18008_v13 = vpop.eup %18007  ;;  %v2717_v37 = vadd.f32 1.0, %v18006_v39  ;;  %v20226_v41 = vadd.f32 %v13429_v27, %v24708_v23  ;;  %v20229_v10 = vadd.f32 %v13429_v27, %v24709_v51  ;;  %v1877_v0 = vmax.f32 %v20219_v33, 0.0  ;;  %v24716_v51 = vld [vmem:[#allocation67_spill] sm:$0xff]  ;;  %v24734_v33 = vld [vmem:[#allocation49_spill] sm:$0xff] }
 0x569   : > { %v18010_v21 = vpop.eup %18009  ;;  %15339 = vmatprep.mubr.msk.bf16.mxu0 %vm1928_vm2, %v2777_v19  ;;  %v2758_v43 = vmul.f32 %v18008_v13, %v20072_v31  ;;  %18021 = vrcp.f32 %v2716_v34  ;;  %v1875_v29 = vmax.f32 %v20203_v38, 0.0  ;;  %v1876_v57 = vmax.f32 %v20216_v2, 0.0  ;;  %v24710_v34 = vld [vmem:[#allocation68_spill] sm:$0xff]  ;;  %v24728_v38 = vld [vmem:[#allocation41_spill] sm:$0xff] }
 0x56a   : > { %v18012_v11 = vpop.eup %18011  ;;  %18023 = vrcp.f32 %v2717_v37  ;;  %v2759_v42 = vmul.f32 %v18010_v21, %v20080_v45  ;;  %v1878_v39 = vmax.f32 %v20226_v41, 0.0  ;;  %v1879_v19 = vmax.f32 %v20229_v10, 0.0  ;;  %v24711_v37 = vld [vmem:[#allocation70_spill] sm:$0xff]  ;;  %v24735_v41 = vld [vmem:[#allocation45_spill] sm:$0xff] }
 0x56b   : > { %v2778_v50 = vpack.c.bf16 %v2758_v43, %v2757_v12  ;;  %v2718_v54 = vadd.f32 1.0, %v18012_v11  ;;  %v18014_v1 = vpop.eup %18013  ;;  %v2941_v53 = vpack.c.bf16 %v1875_v29, %v1874_v55  ;;  %v2942_v12 = vpack.c.bf16 %v1877_v0, %v1876_v57 }
 0x56c   : > { %v18016_v6 = vpop.eup %18015  ;;  %v2760_v56 = vmul.f32 %v18014_v1, %v20085_v16  ;;  %v20151_v16 = vadd.f32 %v13429_v27, %v19879_v17  ;;  %v20242_v13 = vadd.f32 %v24710_v34, %v13429_v27  ;;  %v20245_v21 = vadd.f32 %v24711_v37, %v13429_v27  ;;  %v13518_v1 = vld [vmem:[%s24499_s4 + $0x16] ss:$0 sm:$0xff] }
 0x56d   : > { %15340 = vmatmul.mubr.msk.bf16.gmra.mrb[76].mxu0 %vm1928_vm2, %v2778_v50  ;;  %18025 = vrcp.f32 %v2718_v54  ;;  %v18018_v59 = vpop.eup %18017  ;;  %v2761_v58 = vmul.f32 %v18016_v6, %v20100_v3  ;;  %v20154_v3 = vadd.f32 %v13429_v27, %v19883_v14  ;;  %v20164_v14 = vadd.f32 %v19877_v26, %v13429_v27  ;;  %v13505_v54 = vld [vmem:[%s24499_s4 + $0x15] ss:$0 sm:$0xff] }
 0x56e   : > { %v2779_v31 = vpack.c.bf16 %v2760_v56, %v2759_v42  ;;  %v2762_v24 = vmul.f32 %v18018_v59, %v20092_v62  ;;  %v1866_v44 = vmax.f32 %v20151_v16, 0.0  ;;  %v2943_v43 = vpack.c.bf16 %v1879_v19, %v1878_v39 }
 0x56f   : > { %v18020_v49 = vpop.eup %18019  ;;  %v1868_v26 = vmax.f32 %v20164_v14, 0.0  ;;  %v1880_v11 = vmax.f32 %v20242_v13, 0.0  ;;  %v1881_v50 = vmax.f32 %v20245_v21, 0.0  ;;  %v20266_v56 = vadd.f32 %v13518_v1, %v13505_v54  ;;  %v24741_v13 = vld [vmem:[#allocation53_spill] sm:$0xff] }
 0x570   : > { %15343 = vmatprep.mubr.msk.bf16.mxu0 %vm1928_vm2, %v2779_v31  ;;  %v2780_v45 = vpack.c.bf16 %v2762_v24, %v2761_v58  ;;  %v2763_v18 = vmul.f32 %v18020_v49, %v20114_v61  ;;  %v1867_v61 = vmax.f32 %v20154_v3, 0.0  ;;  %v24736_v10 = vpack.i.bf16 %v24734_v33, %v24735_v41  ;;  %v24778_v33 = vld [vmem:[#allocation15_spill] sm:$0xff]  ;;  %v24779_v41 = vld [vmem:[#allocation12_spill] sm:$0xff] }
 0x571   : > { %v2944_v42 = vpack.c.bf16 %v1881_v50, %v1880_v11 }
 0x573   : > { %v18022_v15 = vpop.eup %18021 }
 0x574   : > { %v18024_v52 = vpop.eup %18023  ;;  %v2764_v22 = vmul.f32 %v18022_v15, %v20111_v8  ;;  %v20167_v8 = vadd.f32 %v19881_v47, %v13429_v27  ;;  %v24712_v15 = vld [vmem:[#allocation24_spill] sm:$0xff] }
 0x575   : > { %15344 = vmatmul.mubr.msk.bf16.gmra.mrb[80].mxu0 %vm1928_vm2, %v2780_v45  ;;  %v2765_v36 = vmul.f32 %v18024_v52, %v20121_v40  ;;  %v2937_v40 = vpack.c.bf16 %v1867_v61, %v1866_v44 }
 0x576   : > { %v2781_v62 = vpack.c.bf16 %v2764_v22, %v2763_v18  ;;  %v1869_v47 = vmax.f32 %v20167_v8, 0.0 }
 0x577   : > { %v18026_v32 = vpop.eup %18025 }
 0x578   : > { %15347 = vmatprep.mubr.msk.bf16.mxu0 %vm1928_vm2, %v2781_v62  ;;  %v2766_v17 = vmul.f32 %v18026_v32, %v20124_v4  ;;  %v1870_v4 = vmax.f32 %v20174_v60, 0.0  ;;  %v2938_v20 = vpack.c.bf16 %v1869_v47, %v1868_v26 }
 0x57a   : > { %v2782_v7 = vpack.c.bf16 %v2766_v17, %v2765_v36  ;;  %v2939_v48 = vpack.c.bf16 %v1871_v5, %v1870_v4  ;;  %v24713_v36 = vld [vmem:[#allocation27_spill] sm:$0xff] }
 0x57d   : > { %15348 = vmatmul.mubr.msk.bf16.gmra.mrb[84].mxu0 %vm1928_vm2, %v2782_v7 }
 0x57e   : > { %15355 = vmatprep.mubr.msk.bf16.mxu0 %vm549_vm1, %v2937_v40 }
 0x585   : > { %15356 = vmatmul.mubr.msk.bf16.vlgmr.msra.gmra.mrb[72].mxu0 %vm549_vm1, %v2938_v20  ;;  %v24715_v20 = vld [vmem:[#allocation29_spill] sm:$0xff] }
 0x586   : > { %15359 = vmatprep.mubr.msk.bf16.mxu0 %vm549_vm1, %v2939_v48 }
 0x58d   : > { %15360 = vmatmul.mubr.msk.bf16.gmra.mrb[76].mxu0 %vm549_vm1, %v2940_v9 }
 0x58e   : > { %15363 = vmatprep.mubr.msk.bf16.mxu0 %vm549_vm1, %v2941_v53 }
 0x595   : > { %15364 = vmatmul.mubr.msk.bf16.gmra.mrb[80].mxu0 %vm549_vm1, %v2942_v12 }
 0x596   : > { %15367 = vmatprep.mubr.msk.bf16.mxu0 %vm549_vm1, %v2943_v43 }
 0x59d   : > { %15368 = vmatmul.mubr.msk.bf16.gmra.mrb[84].mxu0 %vm549_vm1, %v2944_v42 }
 0x658   : > { %v15357_v6 = vpop.f32.mrb[72].mxu0 }
 0x659   : > { %v3020_v59 = vpop.f32.mrb[73].mxu0  ;;  %v17041_v58 = vadd.f32 %v15357_v6, %v13505_v54 }
 0x65a   : > { %v17043_v49 = vadd.f32 %v13505_v54, %v3020_v59  ;;  %v15358_v31 = vpop.f32.mrb[74].mxu0 }
 0x65b   : > { %v3023_v24 = vpop.f32.mrb[75].mxu0  ;;  %v20273_v18 = vadd.f32 %v17041_v58, %v13518_v1  ;;  %v20287_v22 = vadd.f32 %v20266_v56, %v15358_v31 }
 0x65c   : > { %v20268_v27 = vadd.f32 %v17043_v49, %v13518_v1  ;;  %v20271_v45 = vadd.f32 %v20266_v56, %v3023_v24 }
 0x65e   : > { %8093 = vrot.lane.b32.xlu0 %v20268_v27, %s18927_s13  ;;  %15387 = vmatprep.mubr.msk.f32.mxu1 %vm1928_vm2, %v20268_v27 }
 0x65f   : > { %8095 = vrot.lane.b32.xlu1 %v20271_v45, %s18927_s13  ;;  %15388 = vmatmul.mubr.msk.f32.vlgmr.msra.gmra.mrb[88].mxu1 %vm1928_vm2, %v20271_v45 }
 0x660   : > { %16722 = vmatpush3.bf16.msra.mxu1 %v24712_v15  ;;  %v15361_v52 = vpop.f32.mrb[76].mxu0  ;;  %15390 = vmatprep.mubr.msk.f32.mxu1 %vm1928_vm2, %v20273_v18 }
 0x661   : > { %v3036_v62 = vpop.f32.mrb[77].mxu0  ;;  %16724 = vmatprep.subr.bf16.mxu1 %v24713_v36  ;;  %v20307_v48 = vadd.f32 %v20266_v56, %v15361_v52 }
 0x662   : > { %v20291_v32 = vadd.f32 %v20266_v56, %v3036_v62  ;;  %8097 = vrot.lane.b32.xlu0 %v20273_v18, %s18927_s13  ;;  %v15362_v17 = vpop.f32.mrb[78].mxu0  ;;  %v3292_v62 = vmul.f32 %v20268_v27, %v20268_v27 }
 0x663   : > { %8099 = vrot.lane.b32.xlu1 %v20287_v22, %s18927_s13  ;;  %v3039_v7 = vpop.f32.mrb[79].mxu0  ;;  %15391 = vmatmul.mubr.msk.f32.gmra.mrb[90].mxu1 %vm1928_vm2, %v20287_v22  ;;  %v20319_v53 = vadd.f32 %v20266_v56, %v15362_v17  ;;  %v3293_v17 = vmul.f32 %v20271_v45, %v20271_v45 }
 0x664   : > { %v20300_v40 = vadd.f32 %v20266_v56, %v3039_v7  ;;  %15393 = vmatprep.mubr.msk.f32.mxu1 %vm1928_vm2, %v20291_v32  ;;  %16726 = vmatpush3.bf16.msra.mxu1 %v24713_v36  ;;  %v3295_v7 = vmul.f32 %v20287_v22, %v20287_v22  ;;  %v3296_v16 = vmul.f32 %v20291_v32, %v20291_v32 }
 0x665   : > { %16728 = vmatprep.subr.bf16.mxu1 %v24715_v20 }
 0x666   : > { %24714 = vst [vmem:[#allocation69_spill] sm:$0xff] %v20300_v40  ;;  %8101 = vrot.lane.b32.xlu0 %v20291_v32, %s18927_s13  ;;  %v3297_v3 = vmul.f32 %v20300_v40, %v20300_v40 }
 0x667   : > { %8103 = vrot.lane.b32.xlu1 %v20300_v40, %s18927_s13  ;;  %15394 = vmatmul.mubr.msk.f32.gmra.mrb[92].mxu1 %vm1928_vm2, %v20300_v40 }
 0x668   : > { %v15365_v9 = vpop.f32.mrb[80].mxu0  ;;  %15396 = vmatprep.mubr.msk.f32.mxu1 %vm1928_vm2, %v20307_v48  ;;  %16730 = vmatpush3.bf16.msra.mxu1 %v24715_v20 }
 0x669   : > { %v3052_v23 = vpop.f32.mrb[81].mxu0  ;;  %16732 = vmatprep.subr.bf16.mxu1 %v24716_v51  ;;  %v20339_v42 = vadd.f32 %v20266_v56, %v15365_v9 }
 0x66a   : > { %v20323_v12 = vadd.f32 %v20266_v56, %v3052_v23  ;;  %8105 = vrot.lane.b32.xlu0 %v20307_v48, %s18927_s13  ;;  %v15366_v34 = vpop.f32.mrb[82].mxu0  ;;  %v24746_v23 = vld [vmem:[#allocation65_spill] sm:$0xff] }
 0x66b   : > { %8107 = vrot.lane.b32.xlu1 %v20319_v53, %s18927_s13  ;;  %v3055_v37 = vpop.f32.mrb[83].mxu0  ;;  %15397 = vmatmul.mubr.msk.f32.gmra.mrb[94].mxu1 %vm1928_vm2, %v20319_v53  ;;  %24719 = vst [vmem:[#allocation70_spill] sm:$0xff] %v20339_v42  ;;  %v20350_v1 = vadd.f32 %v20266_v56, %v15366_v34  ;;  %v3302_v60 = vmul.f32 %v20339_v42, %v20339_v42  ;;  %v24747_v34 = vld [vmem:[#allocation61_spill] sm:$0xff] }
 0x66c   : > { %24717 = vst [vmem:[#allocation71_spill] sm:$0xff] %v20323_v12  ;;  %v20332_v43 = vadd.f32 %v20266_v56, %v3055_v37  ;;  %15399 = vmatprep.mubr.msk.f32.mxu1 %vm1928_vm2, %v20323_v12  ;;  %16734 = vmatpush3.bf16.msra.mxu1 %v24716_v51  ;;  %v3300_v14 = vmul.f32 %v20323_v12, %v20323_v12 }
 0x66d   : > { %16736 = vmatprep.subr.bf16.mxu1 %v24712_v15  ;;  %24720 = vst [vmem:[#allocation72_spill] sm:$0xff] %v20350_v1  ;;  %v3303_v30 = vmul.f32 %v20350_v1, %v20350_v1  ;;  %v24748_v37 = vpack.i.bf16 %v24746_v23, %v24747_v34  ;;  %v17642_v23 = vld [vmem:[#allocation2 + $0x108] sm:$0xff]   ;;  %v17643_v34 = vld [vmem:[#allocation2 + $0x110] sm:$0xff]  }
 0x66e   : > { %24718 = vst [vmem:[#allocation68_spill] sm:$0xff] %v20332_v43  ;;  %8109 = vrot.lane.b32.xlu0 %v20323_v12, %s18927_s13  ;;  %v3301_v8 = vmul.f32 %v20332_v43, %v20332_v43 }
 0x66f   : > { %8111 = vrot.lane.b32.xlu1 %v20332_v43, %s18927_s13  ;;  %15400 = vmatmul.mubr.msk.f32.gmra.mrb[96].mxu1 %vm1928_vm2, %v20332_v43 }
 0x670   : > { %v15369_v54 = vpop.f32.mrb[84].mxu0  ;;  %15402 = vmatprep.mubr.msk.f32.mxu1 %vm1928_vm2, %v20339_v42 }
 0x671   : > { %v3068_v6 = vpop.f32.mrb[85].mxu0  ;;  %v20367_v24 = vadd.f32 %v20266_v56, %v15369_v54  ;;  %v24749_v54 = vld [vmem:[#allocation40_spill] sm:$0xff] }
 0x672   : > { %v20353_v59 = vadd.f32 %v20266_v56, %v3068_v6  ;;  %8113 = vrot.lane.b32.xlu0 %v20339_v42, %s18927_s13  ;;  %v15370_v58 = vpop.f32.mrb[86].mxu0  ;;  %v24750_v6 = vld [vmem:[#allocation36_spill] sm:$0xff] }
 0x673   : > { %8115 = vrot.lane.b32.xlu1 %v20350_v1, %s18927_s13  ;;  %v3071_v49 = vpop.f32.mrb[87].mxu0  ;;  %15403 = vmatmul.mubr.msk.f32.gmra.mrb[98].mxu1 %vm1928_vm2, %v20350_v1  ;;  %24723 = vst [vmem:[#allocation75_spill] sm:$0xff] %v20367_v24  ;;  %v20378_v52 = vadd.f32 %v20266_v56, %v15370_v58  ;;  %v24751_v58 = vpack.i.bf16 %v24749_v54, %v24750_v6  ;;  %v20570_v54 = vld [vmem:[#allocation2 + $0x120] sm:$0xff]  }
 0x674   : > { %24721 = vst [vmem:[#allocation73_spill] sm:$0xff] %v20353_v59  ;;  %v20362_v31 = vadd.f32 %v20266_v56, %v3071_v49  ;;  %15405 = vmatprep.mubr.msk.f32.mxu1 %vm1928_vm2, %v20353_v59  ;;  %v3294_v56 = vmul.f32 %v20273_v18, %v20273_v18  ;;  %v24752_v49 = vld [vmem:[#allocation38_spill] sm:$0xff] }
 0x675   : > { %24724 = vst [vmem:[#allocation76_spill] sm:$0xff] %v20378_v52 }
 0x676   : > { %24722 = vst [vmem:[#allocation74_spill] sm:$0xff] %v20362_v31  ;;  %8117 = vrot.lane.b32.xlu0 %v20353_v59, %s18927_s13 }
 0x677   : > { %8119 = vrot.lane.b32.xlu1 %v20362_v31, %s18927_s13  ;;  %15406 = vmatmul.mubr.msk.f32.gmra.mrb[100].mxu1 %vm1928_vm2, %v20362_v31 }
 0x678   : > { %15408 = vmatprep.mubr.msk.f32.mxu1 %vm1928_vm2, %v20367_v24 }
 0x67a   : > { %8121 = vrot.lane.b32.xlu0 %v20367_v24, %s18927_s13 }
 0x67b   : > { %8123 = vrot.lane.b32.xlu1 %v20378_v52, %s18927_s13  ;;  %15409 = vmatmul.mubr.msk.f32.gmra.mrb[102].mxu1 %vm1928_vm2, %v20378_v52 }
 0x67c   : > { %15427 = vmatprep.mubr.msk.f32.mxu1 %vm1928_vm2, %v3292_v62  ;;  %v24753_v62 = vld [vmem:[#allocation35_spill] sm:$0xff] }
 0x67e   : > { %10130 = vrot.lane.b32.xlu0 %v1866_v44, %s18927_s13  ;;  %v3298_v44 = vmul.f32 %v20307_v48, %v20307_v48 }
 0x67f   : > { %10132 = vrot.lane.b32.xlu1 %v1867_v61, %s18927_s13  ;;  %15428 = vmatmul.mubr.msk.f32.vlgmr.msra.gmra.mrb[104].mxu1 %vm1928_vm2, %v3293_v17  ;;  %v3299_v61 = vmul.f32 %v20319_v53, %v20319_v53  ;;  %v24754_v17 = vpack.i.bf16 %v24752_v49, %v24753_v62 }
 0x680   : > { %15430 = vmatprep.mubr.msk.f32.mxu1 %vm1928_vm2, %v3294_v56  ;;  %16738 = vmatpush3.bf16.msra.mxu1 %v24712_v15  ;;  %v24755_v56 = vld [vmem:[#allocation48_spill] sm:$0xff] }
 0x681   : > { %16740 = vmatprep.subr.bf16.mxu1 %v24713_v36 }
 0x682   : > { %10134 = vrot.lane.b32.xlu0 %v1868_v26, %s18927_s13  ;;  %v3304_v26 = vmul.f32 %v20353_v59, %v20353_v59 }
 0x683   : > { %10136 = vrot.lane.b32.xlu1 %v1869_v47, %s18927_s13  ;;  %15431 = vmatmul.mubr.msk.f32.gmra.mrb[106].mxu1 %vm1928_vm2, %v3295_v7  ;;  %v3305_v47 = vmul.f32 %v20362_v31, %v20362_v31  ;;  %v24756_v7 = vld [vmem:[#allocation44_spill] sm:$0xff] }
 0x684   : > { %15433 = vmatprep.mubr.msk.f32.mxu1 %vm1928_vm2, %v3296_v16  ;;  %16742 = vmatpush3.bf16.msra.mxu1 %v24713_v36  ;;  %v24757_v16 = vpack.i.bf16 %v24755_v56, %v24756_v7 }
 0x685   : > { %16744 = vmatprep.subr.bf16.mxu1 %v24715_v20 }
 0x686   : > { %10138 = vrot.lane.b32.xlu0 %v1870_v4, %s18927_s13  ;;  %v3306_v4 = vmul.f32 %v20367_v24, %v20367_v24 }
 0x687   : > { %10140 = vrot.lane.b32.xlu1 %v1871_v5, %s18927_s13  ;;  %15434 = vmatmul.mubr.msk.f32.gmra.mrb[108].mxu1 %vm1928_vm2, %v3297_v3  ;;  %v3307_v5 = vmul.f32 %v20378_v52, %v20378_v52  ;;  %v24758_v3 = vld [vmem:[#allocation46_spill] sm:$0xff] }
 0x688   : > { %15436 = vmatprep.mubr.msk.f32.mxu1 %vm1928_vm2, %v3298_v44  ;;  %16746 = vmatpush3.bf16.msra.mxu1 %v24715_v20  ;;  %v24759_v44 = vld [vmem:[#allocation43_spill] sm:$0xff] }
 0x689   : > { %16748 = vmatprep.subr.bf16.mxu1 %v24716_v51 }
 0x68a   : > { %10142 = vrot.lane.b32.xlu0 %v1872_v35, %s18927_s13  ;;  %v24729_v35 = vld [vmem:[#allocation37_spill] sm:$0xff] }
 0x68b   : > { %10144 = vrot.lane.b32.xlu1 %v1873_v25, %s18927_s13  ;;  %15437 = vmatmul.mubr.msk.f32.gmra.mrb[110].mxu1 %vm1928_vm2, %v3299_v61  ;;  %v24730_v25 = vpack.i.bf16 %v24728_v38, %v24729_v35  ;;  %v24760_v61 = vpack.i.bf16 %v24758_v3, %v24759_v44  ;;  %v24773_v35 = vld [vmem:[#allocation9_spill] sm:$0xff] }
 0x68c   : > { %15439 = vmatprep.mubr.msk.f32.mxu1 %vm1928_vm2, %v3300_v14  ;;  %16750 = vmatpush3.bf16.msra.mxu1 %v24716_v51  ;;  %v24761_v14 = vld [vmem:[#allocation56_spill] sm:$0xff] }
 0x68d   : > { %16752 = vmatprep.subr.bf16.mxu1 %v24712_v15 }
 0x68e   : > { %10146 = vrot.lane.b32.xlu0 %v1874_v55, %s18927_s13  ;;  %v24731_v55 = vld [vmem:[#allocation50_spill] sm:$0xff] }
 0x68f   : > { %10148 = vrot.lane.b32.xlu1 %v1875_v29, %s18927_s13  ;;  %15440 = vmatmul.mubr.msk.f32.gmra.mrb[112].mxu1 %vm1928_vm2, %v3301_v8  ;;  %v24732_v29 = vld [vmem:[#allocation47_spill] sm:$0xff]  ;;  %v24762_v8 = vld [vmem:[#allocation52_spill] sm:$0xff] }
 0x690   : > { %15442 = vmatprep.mubr.msk.f32.mxu1 %vm1928_vm2, %v3302_v60  ;;  %v24733_v2 = vpack.i.bf16 %v24731_v55, %v24732_v29  ;;  %v24763_v60 = vpack.i.bf16 %v24761_v14, %v24762_v8  ;;  %v24775_v55 = vld [vmem:[#allocation8_spill] sm:$0xff]  ;;  %v24776_v29 = vld [vmem:[#allocation10_spill] sm:$0xff] }
 0x692   : > { %10150 = vrot.lane.b32.xlu0 %v1876_v57, %s18927_s13  ;;  %v24737_v57 = vld [vmem:[#allocation58_spill] sm:$0xff] }
 0x693   : > { %10152 = vrot.lane.b32.xlu1 %v1877_v0, %s18927_s13  ;;  %15443 = vmatmul.mubr.msk.f32.gmra.mrb[114].mxu1 %vm1928_vm2, %v3303_v30  ;;  %v24738_v0 = vld [vmem:[#allocation55_spill] sm:$0xff]  ;;  %v24764_v30 = vld [vmem:[#allocation54_spill] sm:$0xff] }
 0x694   : > { %15445 = vmatprep.mubr.msk.f32.mxu1 %vm1928_vm2, %v3304_v26  ;;  %v24765_v26 = vld [vmem:[#allocation51_spill] sm:$0xff] }
 0x696   : > { %10154 = vrot.lane.b32.xlu0 %v1878_v39, %s18927_s13  ;;  %v24739_v39 = vpack.i.bf16 %v24737_v57, %v24738_v0  ;;  %v24781_v57 = vld [vmem:[#allocation17_spill] sm:$0xff]  ;;  %v24782_v0 = vld [vmem:[#allocation19_spill] sm:$0xff] }
 0x697   : > { %10156 = vrot.lane.b32.xlu1 %v1879_v19, %s18927_s13  ;;  %15446 = vmatmul.mubr.msk.f32.gmra.mrb[116].mxu1 %vm1928_vm2, %v3305_v47  ;;  %v24740_v19 = vld [vmem:[#allocation57_spill] sm:$0xff]  ;;  %v24766_v47 = vpack.i.bf16 %v24764_v30, %v24765_v26 }
 0x698   : > { %15448 = vmatprep.mubr.msk.f32.mxu1 %vm1928_vm2, %v3306_v4  ;;  %v24742_v21 = vpack.i.bf16 %v24740_v19, %v24741_v13  ;;  %v24767_v4 = vld [vmem:[#allocation64_spill] sm:$0xff]  ;;  %v24784_v19 = vld [vmem:[#allocation18_spill] sm:$0xff]  ;;  %v24785_v13 = vld [vmem:[#allocation21_spill] sm:$0xff] }
 0x69a   : > { %10158 = vrot.lane.b32.xlu0 %v1880_v11, %s18927_s13  ;;  %v24743_v11 = vld [vmem:[#allocation66_spill] sm:$0xff] }
 0x69b   : > { %10160 = vrot.lane.b32.xlu1 %v1881_v50, %s18927_s13  ;;  %15449 = vmatmul.mubr.msk.f32.gmra.mrb[118].mxu1 %vm1928_vm2, %v3307_v5  ;;  %v24744_v50 = vld [vmem:[#allocation63_spill] sm:$0xff]  ;;  %v24768_v5 = vld [vmem:[#allocation60_spill] sm:$0xff] }
 0x69c   : > { %v24745_v9 = vpack.i.bf16 %v24743_v11, %v24744_v50  ;;  %v24769_v63 = vpack.i.bf16 %v24767_v4, %v24768_v5  ;;  %v24787_v11 = vld [vmem:[#allocation20_spill] sm:$0xff]  ;;  %v24788_v50 = vld [vmem:[#allocation22_spill] sm:$0xff] }
 0x69e   : > { %17540 = vrot.lane.b32.xlu0 %v24727_v28, %s18927_s13  ;;  %v24771_v28 = vld [vmem:[#allocation59_spill] sm:$0xff] }
 0x69f   : > { %17545 = vrot.lane.b32.xlu1 %v24730_v25, %s18927_s13  ;;  %v24772_v38 = vpack.i.bf16 %v24770_v46, %v24771_v28  ;;  %v24774_v25 = vld [vmem:[#allocation11_spill] sm:$0xff] }
 0x6a2   : > { %17550 = vrot.lane.b32.xlu0 %v24733_v2, %s18927_s13  ;;  %v24777_v2 = vld [vmem:[#allocation13_spill] sm:$0xff] }
 0x6a3   : > { %17555 = vrot.lane.b32.xlu1 %v24736_v10, %s18927_s13  ;;  %v24780_v10 = vld [vmem:[#allocation14_spill] sm:$0xff] }
 0x6a6   : > { %17560 = vrot.lane.b32.xlu0 %v24739_v39, %s18927_s13  ;;  %v24783_v39 = vld [vmem:[#allocation16_spill] sm:$0xff] }
 0x6a7   : > { %17565 = vrot.lane.b32.xlu1 %v24742_v21, %s18927_s13  ;;  %v24786_v21 = vld [vmem:[#allocation23_spill] sm:$0xff] }
 0x6aa   : > { %17570 = vrot.lane.b32.xlu0 %v24745_v9, %s18927_s13  ;;  %v17641_v9 = vld [vmem:[#allocation2 + $0x100] sm:$0xff]  }
 0x6ab   : > { %17575 = vrot.lane.b32.xlu1 %v24748_v37, %s18927_s13  ;;  %15451 = vmatprep.subr.bf16.mxu0 %v17641_v9  ;;  %v17644_v37 = vld [vmem:[#allocation2 + $0x118] sm:$0xff]   ;;  %s13309_s13 = sshll.u32 %s290_s10, 7 }
 0x6ac   : > { %15452 = vmatpush3.bf16.msra.mxu0 %v17641_v9  ;;  %s24361_s14 = scalar_lea.vmem [#allocation5], %s13309_s13 }
 0x6ad   : > { %15453 = vmatprep.subr.bf16.mxu0 %v17642_v23  ;;  %s13205_s9 = sshll.u32 %s24361_s14, 4  ;;  %s24446_s9 = int_to_ptr.vmem [resolvable:$true] %s13205_s9 }
 0x6ae   : > { %17580 = vrot.lane.b32.xlu0 %v24751_v58, %s18926_s11  ;;  %s18855_s19 = scalar_lea.vmem %s24446_s9, 2048  ;;  %p18862_p2 = scmp.lt.s32.totalorder %s24446_s9, %s18860_s26 }
 0x6af   : > { %17585 = vrot.lane.b32.xlu1 %v24754_v17, %s18926_s11  ;;  %p18856_p6 = scmp.ne.s32.totalorder %s24446_s9, %s18855_s19  ;;  %p18863_p3 = scmp.lt.s32.totalorder %s18861_s28, %s18855_s19 }
 0x6b0   : > { %15454 = vmatpush3.bf16.msra.mxu0 %v17642_v23 }
 0x6b1   : > { %15455 = vmatprep.subr.bf16.mxu0 %v17643_v34  ;;  %p18857_p10 = pnand %p18856_p6, %p24932_p9  ;;  %p18864_p4 = por %p18863_p3, %p18862_p2 }
 0x6b2   : > { %17590 = vrot.lane.b32.xlu0 %v24757_v16, %s18926_s11 }
 0x6b3   : > { %17595 = vrot.lane.b32.xlu1 %v24760_v61, %s18926_s11  ;;  %p18858_p12 = pneg %p18857_p10 }
 0x6b4   : > { %15456 = vmatpush3.bf16.msra.mxu0 %v17643_v34 }
 0x6b5   : > { %15457 = vmatprep.subr.bf16.mxu0 %v17644_v37  ;;  %p18865_p7 = pnand %p18864_p4, %p18858_p12 }
 0x6b6   : > { %17600 = vrot.lane.b32.xlu0 %v24763_v60, %s18926_s11 }
 0x6b7   : > { %17605 = vrot.lane.b32.xlu1 %v24766_v47, %s18926_s11 }
 0x6b8   : > { %15458 = vmatpush3.bf16.msra.mxu0 %v17644_v37 }
 0x6b9   : > { %15475 = vmatprep.subr.bf16.mxu0 %v20570_v54 }
 0x6ba   : > { %17610 = vrot.lane.b32.xlu0 %v24769_v63, %s18926_s11 }
 0x6bb   : > { %17615 = vrot.lane.b32.xlu1 %v24772_v38, %s18926_s11 }
 0x6be   : > { %13013 = vrot.lane.b32.xlu0 %v24773_v35, %s18928_s12 }
 0x6bf   : > { %13015 = vrot.lane.b32.xlu1 %v24774_v25, %s18928_s12 }
 0x6c2   : > { %13017 = vrot.lane.b32.xlu0 %v24775_v55, %s18928_s12 }
 0x6c3   : > { %13019 = vrot.lane.b32.xlu1 %v24776_v29, %s18928_s12 }
 0x6c6   : > { %13021 = vrot.lane.b32.xlu0 %v24777_v2, %s18928_s12 }
 0x6c7   : > { %13023 = vrot.lane.b32.xlu1 %v24778_v33, %s18928_s12 }
 0x6ca   : > { %13025 = vrot.lane.b32.xlu0 %v24779_v41, %s18928_s12 }
 0x6cb   : > { %13027 = vrot.lane.b32.xlu1 %v24780_v10, %s18928_s12 }
 0x6ce   : > { %13029 = vrot.lane.b32.xlu0 %v24781_v57, %s18928_s12 }
 0x6cf   : > { %13031 = vrot.lane.b32.xlu1 %v24782_v0, %s18928_s12 }
 0x6d2   : > { %13033 = vrot.lane.b32.xlu0 %v24783_v39, %s18928_s12 }
 0x6d3   : > { %13035 = vrot.lane.b32.xlu1 %v24784_v19, %s18928_s12 }
 0x6d6   : > { %13037 = vrot.lane.b32.xlu0 %v24785_v13, %s18928_s12 }
 0x6d7   : > { %13039 = vrot.lane.b32.xlu1 %v24786_v21, %s18928_s12 }
 0x6da   : > { %13041 = vrot.lane.b32.xlu0 %v24787_v11, %s18928_s12 }
 0x6db   : > { %13043 = vrot.lane.b32.xlu1 %v24788_v50, %s18928_s12 }
 0x732   : > { %v20573_v6 = vpop.f32.mrb[88].mxu1 }
 0x733   : > { %v20575_v58 = vpop.f32.mrb[89].mxu1  ;;  %v3502_v47 = vmul.f32 %v20573_v6, %v20573_v6  ;;  %v3550_v11 = vsub.f32 %v20271_v45, %v20573_v6 }
 0x734   : > { %v3501_v5 = vmul.f32 %v20575_v58, %v20575_v58  ;;  %v3549_v34 = vsub.f32 %v20268_v27, %v20575_v58 }
 0x736   : > { %v20577_v49 = vpop.f32.mrb[90].mxu1 }
 0x737   : > { %v20579_v62 = vpop.f32.mrb[91].mxu1  ;;  %v3504_v35 = vmul.f32 %v20577_v49, %v20577_v49  ;;  %v3552_v37 = vsub.f32 %v20287_v22, %v20577_v49 }
 0x738   : > { %v3503_v29 = vmul.f32 %v20579_v62, %v20579_v62 }
 0x73a   : > { %v20581_v17 = vpop.f32.mrb[92].mxu1 }
 0x73b   : > { %v20583_v56 = vpop.f32.mrb[93].mxu1  ;;  %v3506_v39 = vmul.f32 %v20581_v17, %v20581_v17  ;;  %v3554_v6 = vsub.f32 %v20300_v40, %v20581_v17 }
 0x73c   : > { %v3505_v21 = vmul.f32 %v20583_v56, %v20583_v56  ;;  %v3553_v49 = vsub.f32 %v20291_v32, %v20583_v56 }
 0x73e   : > { %v20585_v7 = vpop.f32.mrb[94].mxu1 }
 0x73f   : > { %v20587_v16 = vpop.f32.mrb[95].mxu1 }
 0x740   : > { %v3507_v58 = vmul.f32 %v20587_v16, %v20587_v16  ;;  %v24789_v17 = vsub.f32 %v20307_v48, %v20587_v16 }
 0x742   : > { %v20589_v3 = vpop.f32.mrb[96].mxu1 }
 0x743   : > { %v20591_v44 = vpop.f32.mrb[97].mxu1 }
 0x746   : > { %v20593_v61 = vpop.f32.mrb[98].mxu1 }
 0x747   : > { %v20595_v14 = vpop.f32.mrb[99].mxu1 }
 0x74a   : > { %v20597_v8 = vpop.f32.mrb[100].mxu1 }
 0x74b   : > { %v20599_v60 = vpop.f32.mrb[101].mxu1 }
 0x74e   : > { %v20601_v30 = vpop.f32.mrb[102].mxu1 }
 0x74f   : > { %v20603_v26 = vpop.f32.mrb[103].mxu1 }
 0x752   : > { %v15429_v4 = vpop.f32.mrb[104].mxu1 }
 0x753   : > { %v3518_v63 = vsub.f32 %v15429_v4, %v3502_v47  ;;  %v3422_v46 = vpop.f32.mrb[105].mxu1 }
 0x754   : > { %v3517_v28 = vsub.f32 %v3422_v46, %v3501_v5  ;;  %v3551_v5 = vsub.f32 %v20273_v18, %v20579_v62  ;;  %v3508_v46 = vmul.f32 %v20585_v7, %v20585_v7 }
 0x755   : > { %v3534_v38 = vmax.f32 %v3518_v63, 0.0 }
 0x756   : > { %v3533_v25 = vmax.f32 %v3517_v28, 0.0  ;;  %v15432_v55 = vpop.f32.mrb[106].mxu1 }
 0x757   : > { %v3566_v2 = vadd.f32 1e-05, %v3534_v38  ;;  %v3520_v33 = vsub.f32 %v15432_v55, %v3504_v35  ;;  %v3432_v41 = vpop.f32.mrb[107].mxu1 }
 0x758   : > { %v3565_v10 = vadd.f32 1e-05, %v3533_v25  ;;  %v3519_v57 = vsub.f32 %v3432_v41, %v3503_v29 }
 0x759   : > { %18027 = vrsqrt.f32 %v3566_v2  ;;  %v3536_v0 = vmax.f32 %v3520_v33, 0.0 }
 0x75a   : > { %18029 = vrsqrt.f32 %v3565_v10  ;;  %v3535_v19 = vmax.f32 %v3519_v57, 0.0  ;;  %v15435_v13 = vpop.f32.mrb[108].mxu1 }
 0x75b   : > { %v3568_v50 = vadd.f32 1e-05, %v3536_v0  ;;  %v3522_v9 = vsub.f32 %v15435_v13, %v3506_v39  ;;  %v3442_v23 = vpop.f32.mrb[109].mxu1  ;;  %v3510_v0 = vmul.f32 %v20589_v3, %v20589_v3 }
 0x75c   : > { %v3567_v47 = vadd.f32 1e-05, %v3535_v19  ;;  %v3521_v4 = vsub.f32 %v3442_v23, %v3505_v21  ;;  %v3509_v21 = vmul.f32 %v20591_v44, %v20591_v44 }
 0x75d   : > { %18031 = vrsqrt.f32 %v3568_v50  ;;  %v3538_v63 = vmax.f32 %v3522_v9, 0.0  ;;  %v20650_v9 = vld [vmem:[%s24499_s4 + $0x18] ss:$0 sm:$0xff] }
 0x75e   : > { %18033 = vrsqrt.f32 %v3567_v47  ;;  %v3537_v28 = vmax.f32 %v3521_v4, 0.0  ;;  %v15438_v38 = vpop.f32.mrb[110].mxu1 }
 0x75f   : > { %v3570_v35 = vadd.f32 1e-05, %v3538_v63  ;;  %v3524_v25 = vsub.f32 %v15438_v38, %v3508_v46  ;;  %v3452_v55 = vpop.f32.mrb[111].mxu1  ;;  %v3512_v63 = vmul.f32 %v20593_v61, %v20593_v61  ;;  %v3511_v46 = vmul.f32 %v20595_v14, %v20595_v14 }
 0x760   : > { %v3569_v33 = vadd.f32 1e-05, %v3537_v28  ;;  %v3523_v41 = vsub.f32 %v3452_v55, %v3507_v58  ;;  %v20661_v55 = vld [vmem:[%s24499_s4 + $0x19] ss:$0 sm:$0xff] }
 0x761   : > { %18035 = vrsqrt.f32 %v3570_v35  ;;  %v3540_v57 = vmax.f32 %v3524_v25, 0.0  ;;  %v3514_v35 = vmul.f32 %v20597_v8, %v20597_v8 }
 0x762   : > { %18037 = vrsqrt.f32 %v3569_v33  ;;  %v3539_v19 = vmax.f32 %v3523_v41, 0.0  ;;  %v15441_v13 = vpop.f32.mrb[112].mxu1  ;;  %v3513_v41 = vmul.f32 %v20599_v60, %v20599_v60 }
 0x763   : > { %v18028_v50 = vpop.eup %18027  ;;  %v3572_v23 = vadd.f32 1e-05, %v3540_v57  ;;  %v3526_v47 = vsub.f32 %v15441_v13, %v3510_v0  ;;  %v3462_v4 = vpop.f32.mrb[113].mxu1 }
 0x764   : > { %v18030_v28 = vpop.eup %18029  ;;  %v3571_v38 = vadd.f32 1e-05, %v3539_v19  ;;  %v3525_v58 = vsub.f32 %v3462_v4, %v3509_v21  ;;  %v3598_v25 = vmul.f32 %v18028_v50, %v3550_v11  ;;  %v3516_v19 = vmul.f32 %v20601_v30, %v20601_v30 }
 0x765   : > { %18039 = vrsqrt.f32 %v3572_v23  ;;  %v3542_v33 = vmax.f32 %v3526_v47, 0.0  ;;  %v3597_v57 = vmul.f32 %v18030_v28, %v3549_v34  ;;  %v3515_v23 = vmul.f32 %v20603_v26, %v20603_v26 }
 0x766   : > { %18041 = vrsqrt.f32 %v3571_v38  ;;  %v3541_v0 = vmax.f32 %v3525_v58, 0.0  ;;  %v15444_v13 = vpop.f32.mrb[114].mxu1  ;;  %v3619_v21 = vmul.f32 %v20650_v9, %v3598_v25 }
 0x767   : > { %v18032_v11 = vpop.eup %18031  ;;  %v3574_v50 = vadd.f32 1e-05, %v3542_v33  ;;  %v3528_v4 = vsub.f32 %v15444_v13, %v3512_v63  ;;  %v3472_v39 = vpop.f32.mrb[115].mxu1  ;;  %v3618_v47 = vmul.f32 %v20650_v9, %v3597_v57 }
 0x768   : > { %v18034_v10 = vpop.eup %18033  ;;  %v3600_v2 = vmul.f32 %v18032_v11, %v3552_v37  ;;  %v3573_v34 = vadd.f32 1e-05, %v3541_v0  ;;  %v3527_v28 = vsub.f32 %v3472_v39, %v3511_v46  ;;  %v20672_v38 = vadd.f32 %v20661_v55, %v3619_v21 }
 0x769   : > { %v3599_v58 = vmul.f32 %v18034_v10, %v3551_v5  ;;  %18043 = vrsqrt.f32 %v3574_v50  ;;  %v3544_v62 = vmax.f32 %v3528_v4, 0.0  ;;  %v20675_v25 = vadd.f32 %v20661_v55, %v3618_v47 }
 0x76a   : > { %v3621_v63 = vmul.f32 %v20650_v9, %v3600_v2  ;;  %18045 = vrsqrt.f32 %v3573_v34  ;;  %v3543_v33 = vmax.f32 %v3527_v28, 0.0  ;;  %v15447_v13 = vpop.f32.mrb[116].mxu1  ;;  %v13564_v57 = vmul.f32 -1.442695, %v20672_v38 }
 0x76b   : > { %v18036_v29 = vpop.eup %18035  ;;  %v3620_v37 = vmul.f32 %v20650_v9, %v3599_v58  ;;  %v3576_v39 = vadd.f32 1e-05, %v3544_v62  ;;  %v3530_v46 = vsub.f32 %v15447_v13, %v3514_v35  ;;  %v3482_v0 = vpop.f32.mrb[117].mxu1  ;;  %v13563_v5 = vmul.f32 -1.442695, %v20675_v25 }
 0x76c   : > { %v18038_v10 = vpop.eup %18037  ;;  %v20682_v21 = vadd.f32 %v20661_v55, %v3621_v63  ;;  %v3575_v11 = vadd.f32 1e-05, %v3543_v33  ;;  %v3529_v50 = vsub.f32 %v3482_v0, %v3513_v41  ;;  %18047 = vpow2.f32 %v13564_v57 }
 0x76d   : > { %v20685_v2 = vadd.f32 %v20661_v55, %v3620_v37  ;;  %18049 = vrsqrt.f32 %v3576_v39  ;;  %v3546_v4 = vmax.f32 %v3530_v46, 0.0  ;;  %v3601_v62 = vmul.f32 %v18038_v10, %v3553_v49 }
 0x76e   : > { %v13566_v35 = vmul.f32 -1.442695, %v20682_v21  ;;  %18051 = vrsqrt.f32 %v3575_v11  ;;  %v3545_v47 = vmax.f32 %v3529_v50, 0.0  ;;  %v15450_v34 = vpop.f32.mrb[118].mxu1  ;;  %v3602_v28 = vmul.f32 %v18036_v29, %v3554_v6 }
 0x76f   : > { %v18040_v41 = vpop.eup %18039  ;;  %v13565_v58 = vmul.f32 -1.442695, %v20685_v2  ;;  %v3578_v63 = vadd.f32 1e-05, %v3546_v4  ;;  %v3532_v33 = vsub.f32 %v15450_v34, %v3516_v19  ;;  %v3492_v13 = vpop.f32.mrb[119].mxu1  ;;  %18053 = vpow2.f32 %v13563_v5 }
 0x770   : > { %v18042_v57 = vpop.eup %18041  ;;  %18055 = vpow2.f32 %v13566_v35  ;;  %v3577_v56 = vadd.f32 1e-05, %v3545_v47  ;;  %v3531_v49 = vsub.f32 %v3492_v13, %v3515_v23  ;;  %v3622_v37 = vmul.f32 %v20650_v9, %v3601_v62 }
 0x771   : > { %18057 = vpow2.f32 %v13565_v58  ;;  %v3548_v39 = vmax.f32 %v3532_v33, 0.0  ;;  %v3623_v46 = vmul.f32 %v20650_v9, %v3602_v28  ;;  %v3603_v6 = vmul.f32 %v18042_v57, %v24789_v17 }
 0x772   : > { %18059 = vrsqrt.f32 %v3578_v63  ;;  %v3547_v29 = vmax.f32 %v3531_v49, 0.0  ;;  %v20701_v19 = vadd.f32 %v20661_v55, %v3622_v37  ;;  %v24790_v0 = vsub.f32 %v20319_v53, %v20585_v7 }
 0x773   : > { %v18044_v23 = vpop.eup %18043  ;;  %18061 = vrsqrt.f32 %v3577_v56  ;;  %v3580_v10 = vadd.f32 1e-05, %v3548_v39  ;;  %v20707_v11 = vadd.f32 %v20661_v55, %v3623_v46  ;;  %v3624_v50 = vmul.f32 %v20650_v9, %v3603_v6 }
 0x774   : > { %v3604_v5 = vmul.f32 %v18040_v41, %v24790_v0  ;;  %v18046_v4 = vpop.eup %18045  ;;  %v3579_v16 = vadd.f32 1e-05, %v3547_v29  ;;  %v13567_v62 = vmul.f32 -1.442695, %v20701_v19  ;;  %v24791_v47 = vsub.f32 %v20332_v43, %v20589_v3 }
 0x775   : > { %18063 = vrsqrt.f32 %v3580_v10  ;;  %v13568_v7 = vmul.f32 -1.442695, %v20707_v11  ;;  %v20717_v28 = vadd.f32 %v20661_v55, %v3624_v50  ;;  %v24792_v41 = vsub.f32 %v20323_v12, %v20591_v44 }
 0x776   : > { %v3625_v35 = vmul.f32 %v20650_v9, %v3604_v5  ;;  %v3606_v34 = vmul.f32 %v18044_v23, %v24791_v47  ;;  %v18048_v63 = vpop.eup %18047  ;;  %v3559_v33 = vsub.f32 %v20339_v42, %v20595_v14  ;;  %18065 = vrsqrt.f32 %v3579_v16 }
 0x777   : > { %v3605_v58 = vmul.f32 %v18046_v4, %v24792_v41  ;;  %v18050_v57 = vpop.eup %18049  ;;  %v3704_v56 = vadd.f32 1.0, %v18048_v63  ;;  %18067 = vpow2.f32 %v13567_v62  ;;  %v13569_v49 = vmul.f32 -1.442695, %v20717_v28 }
 0x778   : > { %v20725_v13 = vadd.f32 %v20661_v55, %v3625_v35  ;;  %v3627_v3 = vmul.f32 %v20650_v9, %v3606_v34  ;;  %v18052_v39 = vpop.eup %18051  ;;  %18069 = vpow2.f32 %v13568_v7  ;;  %v24793_v14 = vsub.f32 %v20350_v1, %v20593_v61 }
 0x779   : > { %v3626_v37 = vmul.f32 %v20650_v9, %v3605_v58  ;;  %v18054_v6 = vpop.eup %18053  ;;  %v3562_v29 = vsub.f32 %v20362_v31, %v20597_v8  ;;  %18071 = vrcp.f32 %v3704_v56  ;;  %v3607_v5 = vmul.f32 %v18052_v39, %v3559_v33 }
 0x77a   : > { %v13570_v44 = vmul.f32 -1.442695, %v20725_v13  ;;  %v20732_v46 = vadd.f32 %v20661_v55, %v3627_v3  ;;  %v3608_v17 = vmul.f32 %v18050_v57, %v24793_v14  ;;  %v18056_v23 = vpop.eup %18055  ;;  %v3561_v10 = vsub.f32 %v20353_v59, %v20599_v60 }
 0x77b   : > { %v20740_v0 = vadd.f32 %v20661_v55, %v3626_v37  ;;  %v3703_v50 = vadd.f32 1.0, %v18054_v6  ;;  %18073 = vpow2.f32 %v13569_v49  ;;  %v18058_v16 = vpop.eup %18057  ;;  %v3706_v61 = vadd.f32 1.0, %v18056_v23 }
 0x77c   : > { %v3629_v4 = vmul.f32 %v20650_v9, %v3608_v17  ;;  %18075 = vpow2.f32 %v13570_v44  ;;  %v3628_v8 = vmul.f32 %v20650_v9, %v3607_v5  ;;  %v18060_v35 = vpop.eup %18059  ;;  %v3705_v47 = vadd.f32 1.0, %v18058_v16 }
 0x77d   : > { %v13571_v62 = vmul.f32 -1.442695, %v20740_v0  ;;  %18077 = vrcp.f32 %v3703_v50  ;;  %v13572_v34 = vmul.f32 -1.442695, %v20732_v46  ;;  %v18062_v60 = vpop.eup %18061  ;;  %v3610_v58 = vmul.f32 %v18060_v35, %v3562_v29 }
 0x77e   : > { %v20749_v7 = vadd.f32 %v20661_v55, %v3629_v4  ;;  %18079 = vrcp.f32 %v3706_v61  ;;  %v20752_v41 = vadd.f32 %v20661_v55, %v3628_v8  ;;  %v3564_v63 = vsub.f32 %v20378_v52, %v20601_v30 }
 0x77f   : > { %18081 = vrcp.f32 %v3705_v47  ;;  %v3609_v3 = vmul.f32 %v18062_v60, %v3561_v10  ;;  %v18064_v57 = vpop.eup %18063  ;;  %v3563_v56 = vsub.f32 %v20367_v24, %v20603_v26  ;;  %v3631_v37 = vmul.f32 %v20650_v9, %v3610_v58 }
 0x780   : > { %v13574_v33 = vmul.f32 -1.442695, %v20749_v7  ;;  %18083 = vpow2.f32 %v13571_v62  ;;  %v13573_v49 = vmul.f32 -1.442695, %v20752_v41  ;;  %v18066_v39 = vpop.eup %18065  ;;  %v3612_v14 = vmul.f32 %v18064_v57, %v3564_v63 }
 0x781   : > { %18085 = vpow2.f32 %v13572_v34  ;;  %v3630_v44 = vmul.f32 %v20650_v9, %v3609_v3  ;;  %v18068_v17 = vpop.eup %18067  ;;  %v20763_v30 = vadd.f32 %v20661_v55, %v3631_v37  ;;  %v3611_v6 = vmul.f32 %v18066_v39, %v3563_v56 }
 0x782   : > { %18087 = vpow2.f32 %v13573_v49  ;;  %v18070_v29 = vpop.eup %18069  ;;  %v3707_v5 = vadd.f32 1.0, %v18068_v17  ;;  %v3633_v23 = vmul.f32 %v20650_v9, %v3612_v14  ;;  %v17646_v17 = vld [vmem:[#allocation2 + $0x128] sm:$0xff]  }
 0x783   : > { %18089 = vpow2.f32 %v13574_v33  ;;  %v20766_v26 = vadd.f32 %v20661_v55, %v3630_v44  ;;  %v18072_v10 = vpop.eup %18071  ;;  %v3708_v50 = vadd.f32 1.0, %v18070_v29  ;;  %v3632_v4 = vmul.f32 %v20650_v9, %v3611_v6 }
 0x784   : > { %18091 = vrcp.f32 %v3707_v5  ;;  %v13576_v62 = vmul.f32 -1.442695, %v20763_v30  ;;  %v20773_v8 = vadd.f32 %v20661_v55, %v3633_v23  ;;  %v3752_v47 = vmul.f32 %v18072_v10, %v20672_v38 }
 0x785   : > { %v18074_v16 = vpop.eup %18073  ;;  %v13575_v61 = vmul.f32 -1.442695, %v20766_v26  ;;  %18093 = vrcp.f32 %v3708_v50  ;;  %v20777_v60 = vadd.f32 %v20661_v55, %v3632_v4  ;;  %v17647_v50 = vld [vmem:[#allocation2 + $0x130] sm:$0xff]  }
 0x786   : > { %v18076_v35 = vpop.eup %18075  ;;  %v3709_v34 = vadd.f32 1.0, %v18074_v16  ;;  %v13578_v57 = vmul.f32 -1.442695, %v20773_v8 }
 0x787   : > { %v18078_v58 = vpop.eup %18077  ;;  %v3710_v63 = vadd.f32 1.0, %v18076_v35  ;;  %18095 = vpow2.f32 %v13575_v61  ;;  %v13577_v3 = vmul.f32 -1.442695, %v20777_v60 }
 0x788   : > { %v18080_v9 = vpop.eup %18079  ;;  %v3751_v33 = vmul.f32 %v18078_v58, %v20675_v25  ;;  %18097 = vrcp.f32 %v3709_v34 }
 0x789   : > { %v18082_v56 = vpop.eup %18081  ;;  %v3754_v49 = vmul.f32 %v18080_v9, %v20682_v21  ;;  %18099 = vrcp.f32 %v3710_v63  ;;  %v17648_v63 = vld [vmem:[#allocation2 + $0x138] sm:$0xff]  }
 0x78a   : > { %v18084_v38 = vpop.eup %18083  ;;  %v3775_v37 = vpack.c.bf16 %v3752_v47, %v3751_v33  ;;  %v3753_v55 = vmul.f32 %v18082_v56, %v20685_v2  ;;  %18101 = vpow2.f32 %v13576_v62 }
 0x78b   : > { %v18086_v39 = vpop.eup %18085  ;;  %v3711_v44 = vadd.f32 1.0, %v18084_v38  ;;  %18103 = vpow2.f32 %v13577_v3 }
 0x78c   : > { %v18088_v14 = vpop.eup %18087  ;;  %15459 = vmatprep.mubr.msk.bf16.mxu0 %vm1928_vm2, %v3775_v37  ;;  %v3776_v25 = vpack.c.bf16 %v3754_v49, %v3753_v55  ;;  %v3712_v6 = vadd.f32 1.0, %v18086_v39  ;;  %18105 = vpow2.f32 %v13578_v57 }
 0x78d   : > { %v18090_v29 = vpop.eup %18089  ;;  %18107 = vrcp.f32 %v3711_v44  ;;  %v3713_v5 = vadd.f32 1.0, %v18088_v14 }
 0x78e   : > { %15460 = vmatmul.mubr.msk.bf16.vlgmr.msra.gmra.mrb[88].mxu0 %vm1928_vm2, %v3776_v25  ;;  %18109 = vrcp.f32 %v3712_v6  ;;  %v3714_v21 = vadd.f32 1.0, %v18090_v29  ;;  %v18092_v23 = vpop.eup %18091 }
 0x78f   : > { %15476 = vmatpush3.bf16.msra.mxu0 %v20570_v54  ;;  %18111 = vrcp.f32 %v3713_v5  ;;  %v18094_v2 = vpop.eup %18093  ;;  %v3755_v10 = vmul.f32 %v18092_v23, %v20701_v19  ;;  %v24794_v23 = vld [vmem:[#allocation25_spill] sm:$0xff] }
 0x790   : > { %15477 = vmatprep.subr.bf16.mxu0 %v17646_v17  ;;  %18113 = vrcp.f32 %v3714_v21  ;;  %v3756_v16 = vmul.f32 %v18094_v2, %v20707_v11  ;;  %v24795_v2 = vld [vmem:[#allocation26_spill] sm:$0xff] }
 0x791   : > { %v18096_v4 = vpop.eup %18095 }
 0x792   : > { %v18098_v61 = vpop.eup %18097  ;;  %v3715_v62 = vadd.f32 1.0, %v18096_v4  ;;  %v3777_v47 = vpack.c.bf16 %v3756_v16, %v3755_v10  ;;  %v24800_v10 = vld [vmem:[#allocation34_spill] sm:$0xff]  ;;  %v13579_v4 = vld [vmem:[%s24499_s4 + $0x1a] ss:$0 sm:$0xff]  ;;  %v13592_v16 = vld [vmem:[%s24499_s4 + $0x1b] ss:$0 sm:$0xff] }
 0x793   : > { %v18100_v35 = vpop.eup %18099  ;;  %v3757_v34 = vmul.f32 %v18098_v61, %v20717_v28  ;;  %15478 = vmatpush3.bf16.msra.mxu0 %v17646_v17 }
 0x794   : > { %v18102_v58 = vpop.eup %18101  ;;  %v3758_v54 = vmul.f32 %v18100_v35, %v20725_v13  ;;  %15479 = vmatprep.subr.bf16.mxu0 %v17647_v50  ;;  %18115 = vrcp.f32 %v3715_v62  ;;  %15463 = vmatprep.mubr.msk.bf16.mxu0 %vm1928_vm2, %v3777_v47  ;;  %v20827_v62 = vadd.f32 %v13592_v16, %v13579_v4 }
 0x795   : > { %v18104_v19 = vpop.eup %18103  ;;  %v3716_v9 = vadd.f32 1.0, %v18102_v58 }
 0x796   : > { %v18106_v33 = vpop.eup %18105  ;;  %v3778_v3 = vpack.c.bf16 %v3758_v54, %v3757_v34  ;;  %v3717_v11 = vadd.f32 1.0, %v18104_v19  ;;  %v20832_v54 = vld [vmem:[%s24499_s4 + $0x1c] ss:$0 sm:$0xff] }
 0x797   : > { %v18108_v57 = vpop.eup %18107  ;;  %15480 = vmatpush3.bf16.msra.mxu0 %v17647_v50  ;;  %18117 = vrcp.f32 %v3716_v9  ;;  %v3718_v56 = vadd.f32 1.0, %v18106_v33  ;;  %v24801_v50 = vld [vmem:[#allocation33_spill] sm:$0xff] }
 0x798   : > { %v18110_v49 = vpop.eup %18109  ;;  %15464 = vmatmul.mubr.msk.bf16.gmra.mrb[92].mxu0 %vm1928_vm2, %v3778_v3  ;;  %v3759_v28 = vmul.f32 %v18108_v57, %v20740_v0  ;;  %15481 = vmatprep.subr.bf16.mxu0 %v17648_v63  ;;  %18119 = vrcp.f32 %v3717_v11 }
 0x799   : > { %v18112_v13 = vpop.eup %18111  ;;  %v3760_v38 = vmul.f32 %v18110_v49, %v20732_v46  ;;  %18121 = vrcp.f32 %v3718_v56 }
 0x79a   : > { %v18114_v37 = vpop.eup %18113  ;;  %v3761_v55 = vmul.f32 %v18112_v13, %v20752_v41 }
 0x79b   : > { %v3779_v39 = vpack.c.bf16 %v3760_v38, %v3759_v28  ;;  %v3762_v44 = vmul.f32 %v18114_v37, %v20749_v7  ;;  %15482 = vmatpush3.bf16.msra.mxu0 %v17648_v63 }
 0x79d   : > { %15467 = vmatprep.mubr.msk.bf16.mxu0 %vm1928_vm2, %v3779_v39  ;;  %v3780_v14 = vpack.c.bf16 %v3762_v44, %v3761_v55 }
 0x79e   : > { %v18116_v25 = vpop.eup %18115 }
 0x79f   : > { %v3763_v0 = vmul.f32 %v18116_v25, %v20766_v26  ;;  %v24796_v26 = vld [vmem:[#allocation28_spill] sm:$0xff] }
 0x7a0   : > { %15468 = vmatmul.mubr.msk.bf16.gmra.mrb[96].mxu0 %vm1928_vm2, %v3780_v14 }
 0x7a1   : > { %v18118_v17 = vpop.eup %18117 }
 0x7a2   : > { %v18120_v6 = vpop.eup %18119  ;;  %v3764_v46 = vmul.f32 %v18118_v17, %v20763_v30  ;;  %v24797_v30 = vld [vmem:[#allocation30_spill] sm:$0xff] }
 0x7a3   : > { %v18122_v29 = vpop.eup %18121  ;;  %v3765_v5 = vmul.f32 %v18120_v6, %v20777_v60  ;;  %v24798_v60 = vld [vmem:[#allocation32_spill] sm:$0xff] }
 0x7a4   : > { %v3781_v41 = vpack.c.bf16 %v3764_v46, %v3763_v0  ;;  %v3766_v21 = vmul.f32 %v18122_v29, %v20773_v8  ;;  %v24799_v8 = vld [vmem:[#allocation31_spill] sm:$0xff] }
 0x7a6   : > { %15471 = vmatprep.mubr.msk.bf16.mxu0 %vm1928_vm2, %v3781_v41  ;;  %v3782_v7 = vpack.c.bf16 %v3766_v21, %v3765_v5 }
 0x7a8   : > { %15472 = vmatmul.mubr.msk.bf16.gmra.mrb[100].mxu0 %vm1928_vm2, %v3782_v7 }
 0x7a9   : > { %15483 = vmatprep.mubr.msk.bf16.mxu0 %vm1928_vm2, %v24794_v23 }
 0x7b0   : > { %15484 = vmatmul.mubr.msk.bf16.vlgmr.msra.gmra.mrb[88].mxu0 %vm1928_vm2, %v24795_v2 }
 0x7b1   : > { %15487 = vmatprep.mubr.msk.bf16.mxu0 %vm1928_vm2, %v24796_v26 }
 0x7b8   : > { %15488 = vmatmul.mubr.msk.bf16.gmra.mrb[92].mxu0 %vm1928_vm2, %v24797_v30 }
 0x7b9   : > { %15491 = vmatprep.mubr.msk.bf16.mxu0 %vm1928_vm2, %v24798_v60 }
 0x7c0   : > { %15492 = vmatmul.mubr.msk.bf16.gmra.mrb[96].mxu0 %vm1928_vm2, %v24799_v8 }
 0x7c1   : > { %15495 = vmatprep.mubr.msk.bf16.mxu0 %vm1928_vm2, %v24800_v10 }
 0x7c8   : > { %15496 = vmatmul.mubr.msk.bf16.gmra.mrb[100].mxu0 %vm1928_vm2, %v24801_v50 }
 0x883   : > { %v15485_v61 = vpop.f32.mrb[88].mxu0 }
 0x884   : > { %v17073_v35 = vadd.f32 %v15485_v61, %v13579_v4  ;;  %v4004_v47 = vpop.f32.mrb[89].mxu0 }
 0x885   : > { %v17076_v34 = vadd.f32 %v13579_v4, %v4004_v47  ;;  %v15486_v58 = vpop.f32.mrb[90].mxu0 }
 0x886   : > { %v4007_v63 = vpop.f32.mrb[91].mxu0  ;;  %v17074_v19 = vadd.f32 %v17073_v35, %v13592_v16  ;;  %v17080_v57 = vadd.f32 %v20827_v62, %v15486_v58 }
 0x887   : > { %v17077_v9 = vadd.f32 %v17076_v34, %v13592_v16  ;;  %v17083_v33 = vadd.f32 %v20827_v62, %v4007_v63 }
 0x888   : > { %v20843_v56 = vadd.f32 %v17074_v19, %v20832_v54  ;;  %v20854_v37 = vadd.f32 %v17080_v57, %v20832_v54 }
 0x889   : > { %v20836_v3 = vadd.f32 %v17077_v9, %v20832_v54  ;;  %v20839_v11 = vadd.f32 %v17083_v33, %v20832_v54 }
 0x88b   : > { %v15489_v49 = vpop.f32.mrb[92].mxu0  ;;  %15515 = vmatprep.mubr.msk.f32.mxu1 %vm1928_vm2, %v20836_v3 }
 0x88c   : > { %v4020_v28 = vpop.f32.mrb[93].mxu0  ;;  %15516 = vmatmul.mubr.msk.f32.vlgmr.msra.gmra.mrb[120].mxu1 %vm1928_vm2, %v20839_v11  ;;  %v17086_v39 = vadd.f32 %v20827_v62, %v15489_v49 }
 0x88d   : > { %v17089_v13 = vadd.f32 %v20827_v62, %v4020_v28  ;;  %16754 = vmatpush3.bf16.msra.mxu1 %v24712_v15  ;;  %v15490_v38 = vpop.f32.mrb[94].mxu0  ;;  %15518 = vmatprep.mubr.msk.f32.mxu1 %vm1928_vm2, %v20843_v56 }
 0x88e   : > { %v4023_v55 = vpop.f32.mrb[95].mxu0  ;;  %16756 = vmatprep.subr.bf16.mxu1 %v24713_v36  ;;  %v17092_v0 = vadd.f32 %v20827_v62, %v15490_v38  ;;  %v20873_v17 = vadd.f32 %v17086_v39, %v20832_v54 }
 0x88f   : > { %v20859_v44 = vadd.f32 %v17089_v13, %v20832_v54  ;;  %v17095_v14 = vadd.f32 %v20827_v62, %v4023_v55 }
 0x890   : > { %15519 = vmatmul.mubr.msk.f32.gmra.mrb[122].mxu1 %vm1928_vm2, %v20854_v37  ;;  %v20882_v41 = vadd.f32 %v17092_v0, %v20832_v54  ;;  %v4299_v0 = vmul.f32 %v20843_v56, %v20843_v56 }
 0x891   : > { %v20865_v25 = vadd.f32 %v17095_v14, %v20832_v54  ;;  %15521 = vmatprep.mubr.msk.f32.mxu1 %vm1928_vm2, %v20859_v44  ;;  %16758 = vmatpush3.bf16.msra.mxu1 %v24713_v36  ;;  %v4297_v14 = vmul.f32 %v20836_v3, %v20836_v3 }
 0x892   : > { %16760 = vmatprep.subr.bf16.mxu1 %v24715_v20 }
 0x893   : > { %v15493_v6 = vpop.f32.mrb[96].mxu0 }
 0x894   : > { %v4036_v46 = vpop.f32.mrb[97].mxu0  ;;  %15522 = vmatmul.mubr.msk.f32.gmra.mrb[124].mxu1 %vm1928_vm2, %v20865_v25  ;;  %v17098_v7 = vadd.f32 %v20827_v62, %v15493_v6  ;;  %v4301_v6 = vmul.f32 %v20859_v44, %v20859_v44 }
 0x895   : > { %v17101_v29 = vadd.f32 %v20827_v62, %v4036_v46  ;;  %v15494_v5 = vpop.f32.mrb[98].mxu0  ;;  %15524 = vmatprep.mubr.msk.f32.mxu1 %vm1928_vm2, %v20873_v17  ;;  %16762 = vmatpush3.bf16.msra.mxu1 %v24715_v20  ;;  %v4302_v46 = vmul.f32 %v20865_v25, %v20865_v25 }
 0x896   : > { %v4039_v21 = vpop.f32.mrb[99].mxu0  ;;  %16764 = vmatprep.subr.bf16.mxu1 %v24716_v51  ;;  %v17104_v35 = vadd.f32 %v20827_v62, %v15494_v5  ;;  %v20900_v47 = vadd.f32 %v17098_v7, %v20832_v54  ;;  %v4304_v5 = vmul.f32 %v20882_v41, %v20882_v41 }
 0x897   : > { %v20887_v4 = vadd.f32 %v17101_v29, %v20832_v54  ;;  %v17107_v16 = vadd.f32 %v20827_v62, %v4039_v21  ;;  %v4303_v29 = vmul.f32 %v20873_v17, %v20873_v17 }
 0x898   : > { %15525 = vmatmul.mubr.msk.f32.gmra.mrb[126].mxu1 %vm1928_vm2, %v20882_v41  ;;  %v20908_v9 = vadd.f32 %v17104_v35, %v20832_v54 }
 0x899   : > { %v20893_v61 = vadd.f32 %v17107_v16, %v20832_v54  ;;  %15527 = vmatprep.mubr.msk.f32.mxu1 %vm1928_vm2, %v20887_v4  ;;  %16766 = vmatpush3.bf16.msra.mxu1 %v24716_v51  ;;  %v4305_v21 = vmul.f32 %v20887_v4, %v20887_v4  ;;  %v4307_v16 = vmul.f32 %v20900_v47, %v20900_v47 }
 0x89a   : > { %v4308_v35 = vmul.f32 %v20908_v9, %v20908_v9 }
 0x89b   : > { %v15497_v34 = vpop.f32.mrb[100].mxu0  ;;  %v4306_v7 = vmul.f32 %v20893_v61, %v20893_v61 }
 0x89c   : > { %v4052_v58 = vpop.f32.mrb[101].mxu0  ;;  %15528 = vmatmul.mubr.msk.f32.gmra.mrb[128].mxu1 %vm1928_vm2, %v20893_v61  ;;  %v17110_v57 = vadd.f32 %v20827_v62, %v15497_v34 }
 0x89d   : > { %v17113_v63 = vadd.f32 %v20827_v62, %v4052_v58  ;;  %v15498_v19 = vpop.f32.mrb[102].mxu0  ;;  %15530 = vmatprep.mubr.msk.f32.mxu1 %vm1928_vm2, %v20900_v47 }
 0x89e   : > { %v4055_v33 = vpop.f32.mrb[103].mxu0  ;;  %v17116_v38 = vadd.f32 %v20827_v62, %v15498_v19  ;;  %v20924_v55 = vadd.f32 %v17110_v57, %v20832_v54  ;;  %v17650_v57 = vld [vmem:[#allocation2 + $0x148] sm:$0xff]  }
 0x89f   : > { %v20912_v49 = vadd.f32 %v17113_v63, %v20832_v54  ;;  %v17119_v28 = vadd.f32 %v20827_v62, %v4055_v33  ;;  %v4298_v62 = vmul.f32 %v20839_v11, %v20839_v11  ;;  %v17649_v33 = vld [vmem:[#allocation2 + $0x140] sm:$0xff]  }
 0x8a0   : > { %15531 = vmatmul.mubr.msk.f32.gmra.mrb[130].mxu1 %vm1928_vm2, %v20908_v9  ;;  %v20931_v39 = vadd.f32 %v17116_v38, %v20832_v54  ;;  %v4311_v63 = vmul.f32 %v20924_v55, %v20924_v55  ;;  %15579 = vmatprep.subr.bf16.mxu0 %v17649_v33  ;;  %v17652_v38 = vld [vmem:[#allocation2 + $0x158] sm:$0xff]  }
 0x8a1   : > { %v20918_v13 = vadd.f32 %v17119_v28, %v20832_v54  ;;  %15533 = vmatprep.mubr.msk.f32.mxu1 %vm1928_vm2, %v20912_v49  ;;  %v4300_v54 = vmul.f32 %v20854_v37, %v20854_v37  ;;  %v4309_v34 = vmul.f32 %v20912_v49, %v20912_v49  ;;  %15580 = vmatpush3.bf16.msra.mxu0 %v17649_v33  ;;  %v17651_v28 = vld [vmem:[#allocation2 + $0x150] sm:$0xff]  }
 0x8a2   : > { %v4312_v19 = vmul.f32 %v20931_v39, %v20931_v39  ;;  %15581 = vmatprep.subr.bf16.mxu0 %v17650_v57 }
 0x8a3   : > { %v4310_v58 = vmul.f32 %v20918_v13, %v20918_v13 }
 0x8a4   : > { %15534 = vmatmul.mubr.msk.f32.gmra.mrb[132].mxu1 %vm1928_vm2, %v20918_v13 }
 0x8a5   : > { %15536 = vmatprep.mubr.msk.f32.mxu1 %vm1928_vm2, %v20924_v55  ;;  %15582 = vmatpush3.bf16.msra.mxu0 %v17650_v57 }
 0x8a6   : > { %15583 = vmatprep.subr.bf16.mxu0 %v17651_v28 }
 0x8a8   : > { %15537 = vmatmul.mubr.msk.f32.gmra.mrb[134].mxu1 %vm1928_vm2, %v20931_v39 }
 0x8a9   : > { %15555 = vmatprep.mubr.msk.f32.mxu1 %vm1928_vm2, %v4297_v14  ;;  %15584 = vmatpush3.bf16.msra.mxu0 %v17651_v28  ;;  %v17653_v14 = vld [vmem:[#allocation2 + $0x160] sm:$0xff]  }
 0x8aa   : > { %15585 = vmatprep.subr.bf16.mxu0 %v17652_v38  ;;  %15603 = vmatprep.subr.bf16.mxu1 %v17653_v14 }
 0x8ac   : > { %15556 = vmatmul.mubr.msk.f32.vlgmr.msra.gmra.mrb[136].mxu1 %vm1928_vm2, %v4298_v62  ;;  %v17654_v62 = vld [vmem:[#allocation2 + $0x168] sm:$0xff]  }
 0x8ad   : > { %15558 = vmatprep.mubr.msk.f32.mxu1 %vm1928_vm2, %v4299_v0  ;;  %15586 = vmatpush3.bf16.msra.mxu0 %v17652_v38  ;;  %v17655_v0 = vld [vmem:[#allocation2 + $0x170] sm:$0xff]  }
 0x8ae   : > { %16768 = vmatprep.subr.bf16.mxu0 %v24712_v15  ;;  %15604 = vmatpush3.bf16.msra.mxu1 %v17653_v14 }
 0x8af   : > { %15605 = vmatprep.subr.bf16.mxu1 %v17654_v62 }
 0x8b0   : > { %15559 = vmatmul.mubr.msk.f32.gmra.mrb[138].mxu1 %vm1928_vm2, %v4300_v54 }
 0x8b1   : > { %15561 = vmatprep.mubr.msk.f32.mxu1 %vm1928_vm2, %v4301_v6 }
 0x8b2   : > { %15606 = vmatpush3.bf16.msra.mxu1 %v17654_v62 }
 0x8b3   : > { %15607 = vmatprep.subr.bf16.mxu1 %v17655_v0 }
 0x8b4   : > { %15562 = vmatmul.mubr.msk.f32.gmra.mrb[140].mxu1 %vm1928_vm2, %v4302_v46 }
 0x8b5   : > { %15564 = vmatprep.mubr.msk.f32.mxu1 %vm1928_vm2, %v4303_v29 }
 0x8b6   : > { %15608 = vmatpush3.bf16.msra.mxu1 %v17655_v0 }
 0x8b8   : > { %15565 = vmatmul.mubr.msk.f32.gmra.mrb[142].mxu1 %vm1928_vm2, %v4304_v5 }
 0x8b9   : > { %15567 = vmatprep.mubr.msk.f32.mxu1 %vm1928_vm2, %v4305_v21 }
 0x8bc   : > { %15568 = vmatmul.mubr.msk.f32.gmra.mrb[144].mxu1 %vm1928_vm2, %v4306_v7 }
 0x8bd   : > { %15570 = vmatprep.mubr.msk.f32.mxu1 %vm1928_vm2, %v4307_v16 }
 0x8c0   : > { %15571 = vmatmul.mubr.msk.f32.gmra.mrb[146].mxu1 %vm1928_vm2, %v4308_v35 }
 0x8c1   : > { %15573 = vmatprep.mubr.msk.f32.mxu1 %vm1928_vm2, %v4309_v34 }
 0x8c4   : > { %15574 = vmatmul.mubr.msk.f32.gmra.mrb[148].mxu1 %vm1928_vm2, %v4310_v58 }
 0x8c5   : > { %15576 = vmatprep.mubr.msk.f32.mxu1 %vm1928_vm2, %v4311_v63 }
 0x8c8   : > { %15577 = vmatmul.mubr.msk.f32.gmra.mrb[150].mxu1 %vm1928_vm2, %v4312_v19 }
 0x95f   : > { %v20984_v54 = vpop.f32.mrb[120].mxu1 }
 0x960   : > { %v20986_v6 = vpop.f32.mrb[121].mxu1  ;;  %v4507_v38 = vmul.f32 %v20984_v54, %v20984_v54 }
 0x961   : > { %v4506_v62 = vmul.f32 %v20986_v6, %v20986_v6 }
 0x963   : > { %v20988_v46 = vpop.f32.mrb[122].mxu1 }
 0x964   : > { %v20990_v29 = vpop.f32.mrb[123].mxu1  ;;  %v4509_v60 = vmul.f32 %v20988_v46, %v20988_v46 }
 0x965   : > { %v4508_v2 = vmul.f32 %v20990_v29, %v20990_v29 }
 0x967   : > { %v20992_v5 = vpop.f32.mrb[124].mxu1 }
 0x968   : > { %v20994_v21 = vpop.f32.mrb[125].mxu1 }
 0x96b   : > { %v20996_v7 = vpop.f32.mrb[126].mxu1 }
 0x96c   : > { %v20998_v16 = vpop.f32.mrb[127].mxu1 }
 0x96f   : > { %v21000_v35 = vpop.f32.mrb[128].mxu1 }
 0x970   : > { %v21002_v34 = vpop.f32.mrb[129].mxu1 }
 0x973   : > { %v21004_v58 = vpop.f32.mrb[130].mxu1 }
 0x974   : > { %v21006_v63 = vpop.f32.mrb[131].mxu1 }
 0x977   : > { %v21008_v19 = vpop.f32.mrb[132].mxu1 }
 0x978   : > { %v21010_v33 = vpop.f32.mrb[133].mxu1 }
 0x97b   : > { %v21012_v57 = vpop.f32.mrb[134].mxu1 }
 0x97c   : > { %v21014_v28 = vpop.f32.mrb[135].mxu1 }
 0x97f   : > { %v15557_v14 = vpop.f32.mrb[136].mxu1 }
 0x980   : > { %v4523_v0 = vsub.f32 %v15557_v14, %v4507_v38  ;;  %v4427_v50 = vpop.f32.mrb[137].mxu1  ;;  %v4511_v38 = vmul.f32 %v20992_v5, %v20992_v5 }
 0x981   : > { %v4522_v10 = vsub.f32 %v4427_v50, %v4506_v62 }
 0x982   : > { %v4539_v8 = vmax.f32 %v4523_v0, 0.0 }
 0x983   : > { %v4538_v30 = vmax.f32 %v4522_v10, 0.0  ;;  %v15560_v26 = vpop.f32.mrb[138].mxu1  ;;  %v4510_v10 = vmul.f32 %v20994_v21, %v20994_v21 }
 0x984   : > { %v4571_v23 = vadd.f32 1e-05, %v4539_v8  ;;  %v4525_v31 = vsub.f32 %v15560_v26, %v4509_v60  ;;  %v4437_v59 = vpop.f32.mrb[139].mxu1  ;;  %v4555_v26 = vsub.f32 %v20839_v11, %v20984_v54  ;;  %v4512_v8 = vmul.f32 %v20998_v16, %v20998_v16 }
 0x985   : > { %v4570_v52 = vadd.f32 1e-05, %v4538_v30  ;;  %v4524_v24 = vsub.f32 %v4437_v59, %v4508_v2  ;;  %v4554_v59 = vsub.f32 %v20836_v3, %v20986_v6  ;;  %v4557_v2 = vsub.f32 %v20854_v37, %v20988_v46 }
 0x986   : > { %18123 = vrsqrt.f32 %v4571_v23  ;;  %v4541_v43 = vmax.f32 %v4525_v31, 0.0 }
 0x987   : > { %18125 = vrsqrt.f32 %v4570_v52  ;;  %v4540_v50 = vmax.f32 %v4524_v24, 0.0  ;;  %v15563_v14 = vpop.f32.mrb[140].mxu1  ;;  %v4513_v52 = vmul.f32 %v20996_v7, %v20996_v7 }
 0x988   : > { %v4573_v62 = vadd.f32 1e-05, %v4541_v43  ;;  %v4527_v0 = vsub.f32 %v15563_v14, %v4511_v38  ;;  %v4447_v12 = vpop.f32.mrb[141].mxu1  ;;  %v4556_v43 = vsub.f32 %v20843_v56, %v20990_v29  ;;  %v4515_v14 = vmul.f32 %v21000_v35, %v21000_v35 }
 0x989   : > { %v4572_v23 = vadd.f32 1e-05, %v4540_v50  ;;  %v4526_v31 = vsub.f32 %v4447_v12, %v4510_v10  ;;  %v4519_v10 = vmul.f32 %v21008_v19, %v21008_v19 }
 0x98a   : > { %18127 = vrsqrt.f32 %v4573_v62  ;;  %v4543_v24 = vmax.f32 %v4527_v0, 0.0 }
 0x98b   : > { %18129 = vrsqrt.f32 %v4572_v23  ;;  %v4542_v30 = vmax.f32 %v4526_v31, 0.0  ;;  %v15566_v60 = vpop.f32.mrb[142].mxu1  ;;  %v4514_v23 = vmul.f32 %v21002_v34, %v21002_v34 }
 0x98c   : > { %v4575_v11 = vadd.f32 1e-05, %v4543_v24  ;;  %v4529_v37 = vsub.f32 %v15566_v60, %v4513_v52  ;;  %v4457_v54 = vpop.f32.mrb[143].mxu1  ;;  %v21059_v24 = vld [vmem:[%s24499_s4 + $0x1d] ss:$0 sm:$0xff] }
 0x98d   : > { %v4574_v46 = vadd.f32 1e-05, %v4542_v30  ;;  %v4528_v29 = vsub.f32 %v4457_v54, %v4512_v8  ;;  %v4517_v8 = vmul.f32 %v21004_v58, %v21004_v58 }
 0x98e   : > { %18131 = vrsqrt.f32 %v4575_v11  ;;  %v4545_v50 = vmax.f32 %v4529_v37, 0.0  ;;  %v4516_v11 = vmul.f32 %v21006_v63, %v21006_v63 }
 0x98f   : > { %18133 = vrsqrt.f32 %v4574_v46  ;;  %v4544_v62 = vmax.f32 %v4528_v29, 0.0  ;;  %v15569_v0 = vpop.f32.mrb[144].mxu1 }
 0x990   : > { %v18124_v31 = vpop.eup %18123  ;;  %v4577_v52 = vadd.f32 1e-05, %v4545_v50  ;;  %v4531_v30 = vsub.f32 %v15569_v0, %v4515_v14  ;;  %v4467_v60 = vpop.f32.mrb[145].mxu1  ;;  %v21070_v50 = vld [vmem:[%s24499_s4 + $0x1e] ss:$0 sm:$0xff]  ;;  %v4518_v0 = vmul.f32 %v21010_v33, %v21010_v33 }
 0x991   : > { %v18126_v37 = vpop.eup %18125  ;;  %v4603_v54 = vmul.f32 %v18124_v31, %v4555_v26  ;;  %v4576_v46 = vadd.f32 1e-05, %v4544_v62  ;;  %v4530_v29 = vsub.f32 %v4467_v60, %v4514_v23  ;;  %v4521_v26 = vmul.f32 %v21012_v57, %v21012_v57 }
 0x992   : > { %v4602_v38 = vmul.f32 %v18126_v37, %v4554_v59  ;;  %18135 = vrsqrt.f32 %v4577_v52  ;;  %v4547_v14 = vmax.f32 %v4531_v30, 0.0  ;;  %v4520_v37 = vmul.f32 %v21014_v28, %v21014_v28 }
 0x993   : > { %18137 = vrsqrt.f32 %v4576_v46  ;;  %v4546_v56 = vmax.f32 %v4530_v29, 0.0  ;;  %v15572_v6 = vpop.f32.mrb[146].mxu1  ;;  %v4624_v62 = vmul.f32 %v21059_v24, %v4603_v54 }
 0x994   : > { %v18128_v23 = vpop.eup %18127  ;;  %v4579_v59 = vadd.f32 1e-05, %v4547_v14  ;;  %v4533_v31 = vsub.f32 %v15572_v6, %v4517_v8  ;;  %v4477_v60 = vpop.f32.mrb[147].mxu1  ;;  %v4623_v52 = vmul.f32 %v21059_v24, %v4602_v38 }
 0x995   : > { %v18130_v30 = vpop.eup %18129  ;;  %v4605_v3 = vmul.f32 %v18128_v23, %v4557_v2  ;;  %v4578_v12 = vadd.f32 1e-05, %v4546_v56  ;;  %v4532_v46 = vsub.f32 %v4477_v60, %v4516_v11  ;;  %v21081_v29 = vadd.f32 %v21070_v50, %v4624_v62 }
 0x996   : > { %v4604_v1 = vmul.f32 %v18130_v30, %v4556_v43  ;;  %18139 = vrsqrt.f32 %v4579_v59  ;;  %v4549_v42 = vmax.f32 %v4533_v31, 0.0  ;;  %v21084_v54 = vadd.f32 %v21070_v50, %v4623_v52 }
 0x997   : > { %v4626_v6 = vmul.f32 %v21059_v24, %v4605_v3  ;;  %18141 = vrsqrt.f32 %v4578_v12  ;;  %v4548_v8 = vmax.f32 %v4532_v46, 0.0  ;;  %v15575_v14 = vpop.f32.mrb[148].mxu1  ;;  %v13641_v38 = vmul.f32 -1.442695, %v21081_v29 }
 0x998   : > { %v18132_v40 = vpop.eup %18131  ;;  %v4625_v2 = vmul.f32 %v21059_v24, %v4604_v1  ;;  %v4581_v56 = vadd.f32 1e-05, %v4549_v42  ;;  %v4535_v11 = vsub.f32 %v15575_v14, %v4519_v10  ;;  %v4487_v62 = vpop.f32.mrb[149].mxu1  ;;  %v13640_v43 = vmul.f32 -1.442695, %v21084_v54 }
 0x999   : > { %v18134_v23 = vpop.eup %18133  ;;  %v21091_v59 = vadd.f32 %v21070_v50, %v4626_v6  ;;  %v24802_v3 = vsub.f32 %v20865_v25, %v20992_v5  ;;  %v4580_v31 = vadd.f32 1e-05, %v4548_v8  ;;  %v4534_v60 = vsub.f32 %v4487_v62, %v4518_v0 }
 0x99a   : > { %v21097_v52 = vadd.f32 %v21070_v50, %v4625_v2  ;;  %v24803_v42 = vsub.f32 %v20859_v44, %v20994_v21  ;;  %18143 = vrsqrt.f32 %v4581_v56  ;;  %v4551_v10 = vmax.f32 %v4535_v11, 0.0 }
 0x99b   : > { %v4607_v12 = vmul.f32 %v18132_v40, %v24802_v3  ;;  %v13643_v30 = vmul.f32 -1.442695, %v21091_v59  ;;  %18145 = vrsqrt.f32 %v4580_v31  ;;  %v4550_v46 = vmax.f32 %v4534_v60, 0.0  ;;  %v15578_v6 = vpop.f32.mrb[150].mxu1 }
 0x99c   : > { %v4606_v1 = vmul.f32 %v18134_v23, %v24803_v42  ;;  %v18136_v25 = vpop.eup %18135  ;;  %v13642_v40 = vmul.f32 -1.442695, %v21097_v52  ;;  %v4583_v5 = vadd.f32 1e-05, %v4551_v10  ;;  %v4537_v0 = vsub.f32 %v15578_v6, %v4521_v26  ;;  %v4497_v8 = vpop.f32.mrb[151].mxu1 }
 0x99d   : > { %v4628_v14 = vmul.f32 %v21059_v24, %v4607_v12  ;;  %18147 = vpow2.f32 %v13640_v43  ;;  %v18138_v2 = vpop.eup %18137  ;;  %v24804_v44 = vsub.f32 %v20882_v41, %v20996_v7  ;;  %v4582_v56 = vadd.f32 1e-05, %v4550_v46 }
 0x99e   : > { %18149 = vpow2.f32 %v13643_v30  ;;  %v4536_v11 = vsub.f32 %v4497_v8, %v4520_v37  ;;  %v24805_v62 = vsub.f32 %v20873_v17, %v20998_v16  ;;  %v4553_v3 = vmax.f32 %v4537_v0, 0.0 }
 0x99f   : > { %v4609_v21 = vmul.f32 %v18136_v25, %v24804_v44  ;;  %18151 = vpow2.f32 %v13642_v40  ;;  %v4627_v12 = vmul.f32 %v21059_v24, %v4606_v1  ;;  %v21113_v43 = vadd.f32 %v21070_v50, %v4628_v14 }
 0x9a0   : > { %v4608_v23 = vmul.f32 %v18138_v2, %v24805_v62  ;;  %18153 = vrsqrt.f32 %v4583_v5  ;;  %v4552_v26 = vmax.f32 %v4536_v11, 0.0  ;;  %v18140_v60 = vpop.eup %18139  ;;  %v4585_v41 = vadd.f32 1e-05, %v4553_v3 }
 0x9a1   : > { %v4630_v31 = vmul.f32 %v21059_v24, %v4609_v21  ;;  %18155 = vrsqrt.f32 %v4582_v56  ;;  %v21117_v7 = vadd.f32 %v21070_v50, %v4627_v12  ;;  %v18142_v17 = vpop.eup %18141  ;;  %v24806_v16 = vsub.f32 %v20893_v61, %v21000_v35 }
 0x9a2   : > { %v4629_v37 = vmul.f32 %v21059_v24, %v4608_v23  ;;  %v4584_v1 = vadd.f32 1e-05, %v4552_v26  ;;  %18157 = vpow2.f32 %v13641_v38  ;;  %v13645_v10 = vmul.f32 -1.442695, %v21113_v43 }
 0x9a3   : > { %v4611_v42 = vmul.f32 %v18140_v60, %v24806_v16  ;;  %v24807_v30 = vsub.f32 %v20887_v4, %v21002_v34  ;;  %18159 = vrsqrt.f32 %v4585_v41  ;;  %v13644_v6 = vmul.f32 -1.442695, %v21117_v7 }
 0x9a4   : > { %v21129_v14 = vadd.f32 %v21070_v50, %v4629_v37  ;;  %v4565_v25 = vsub.f32 %v20908_v9, %v21004_v58  ;;  %18161 = vrsqrt.f32 %v4584_v1  ;;  %v21134_v61 = vadd.f32 %v21070_v50, %v4630_v31  ;;  %v18144_v38 = vpop.eup %18143 }
 0x9a5   : > { %v4610_v46 = vmul.f32 %v18142_v17, %v24807_v30  ;;  %v4632_v35 = vmul.f32 %v21059_v24, %v4611_v42  ;;  %v4564_v4 = vsub.f32 %v20900_v47, %v21006_v63  ;;  %18163 = vpow2.f32 %v13644_v6  ;;  %v18146_v5 = vpop.eup %18145 }
 0x9a6   : > { %v13646_v34 = vmul.f32 -1.442695, %v21129_v14  ;;  %v4613_v0 = vmul.f32 %v18144_v38, %v4565_v25  ;;  %18165 = vpow2.f32 %v13645_v10  ;;  %v13647_v9 = vmul.f32 -1.442695, %v21134_v61 }
 0x9a7   : > { %v4631_v40 = vmul.f32 %v21059_v24, %v4610_v46  ;;  %v21143_v58 = vadd.f32 %v21070_v50, %v4632_v35  ;;  %v18148_v8 = vpop.eup %18147  ;;  %v4612_v2 = vmul.f32 %v18146_v5, %v4564_v4  ;;  %v4567_v63 = vsub.f32 %v20918_v13, %v21008_v19 }
 0x9a8   : > { %18167 = vpow2.f32 %v13646_v34  ;;  %v18150_v47 = vpop.eup %18149  ;;  %v4708_v21 = vadd.f32 1.0, %v18148_v8  ;;  %v4634_v56 = vmul.f32 %v21059_v24, %v4613_v0  ;;  %v4566_v62 = vsub.f32 %v20912_v49, %v21010_v33 }
 0x9a9   : > { %v21146_v44 = vadd.f32 %v21070_v50, %v4631_v40  ;;  %18169 = vpow2.f32 %v13647_v9  ;;  %v18152_v11 = vpop.eup %18151  ;;  %v4711_v23 = vadd.f32 1.0, %v18150_v47  ;;  %v4633_v12 = vmul.f32 %v21059_v24, %v4612_v2 }
 0x9aa   : > { %v18154_v26 = vpop.eup %18153  ;;  %v4710_v31 = vadd.f32 1.0, %v18152_v11  ;;  %18171 = vrcp.f32 %v4708_v21  ;;  %v13649_v60 = vmul.f32 -1.442695, %v21143_v58  ;;  %v21157_v13 = vadd.f32 %v21070_v50, %v4634_v56 }
 0x9ab   : > { %v13648_v3 = vmul.f32 -1.442695, %v21146_v44  ;;  %v18156_v19 = vpop.eup %18155  ;;  %v4569_v41 = vsub.f32 %v20931_v39, %v21012_v57  ;;  %18173 = vrcp.f32 %v4711_v23  ;;  %v4615_v37 = vmul.f32 %v18154_v26, %v4567_v63 }
 0x9ac   : > { %v21162_v49 = vadd.f32 %v21070_v50, %v4633_v12  ;;  %v18158_v33 = vpop.eup %18157  ;;  %v4568_v17 = vsub.f32 %v20924_v55, %v21014_v28  ;;  %18175 = vrcp.f32 %v4710_v31  ;;  %v4614_v16 = vmul.f32 %v18156_v19, %v4566_v62 }
 0x9ad   : > { %v13651_v42 = vmul.f32 -1.442695, %v21157_v13  ;;  %v18160_v1 = vpop.eup %18159  ;;  %v4709_v10 = vadd.f32 1.0, %v18158_v33  ;;  %18177 = vpow2.f32 %v13648_v3  ;;  %v4636_v39 = vmul.f32 %v21059_v24, %v4615_v37 }
 0x9ae   : > { %v13650_v30 = vmul.f32 -1.442695, %v21162_v49  ;;  %v18162_v57 = vpop.eup %18161  ;;  %v4617_v46 = vmul.f32 %v18160_v1, %v4569_v41  ;;  %18179 = vpow2.f32 %v13649_v60  ;;  %v4635_v6 = vmul.f32 %v21059_v24, %v4614_v16 }
 0x9af   : > { %v18164_v25 = vpop.eup %18163  ;;  %v4616_v35 = vmul.f32 %v18162_v57, %v4568_v17  ;;  %18181 = vrcp.f32 %v4709_v10  ;;  %v21171_v55 = vadd.f32 %v21070_v50, %v4636_v39 }
 0x9b0   : > { %v18166_v28 = vpop.eup %18165  ;;  %v4712_v38 = vadd.f32 1.0, %v18164_v25  ;;  %18183 = vpow2.f32 %v13650_v30  ;;  %v21174_v4 = vadd.f32 %v21070_v50, %v4635_v6  ;;  %v4638_v34 = vmul.f32 %v21059_v24, %v4617_v46 }
 0x9b1   : > { %v4713_v5 = vadd.f32 1.0, %v18166_v28  ;;  %18185 = vpow2.f32 %v13651_v42  ;;  %v4637_v0 = vmul.f32 %v21059_v24, %v4616_v35  ;;  %v13653_v21 = vmul.f32 -1.442695, %v21171_v55 }
 0x9b2   : > { %v18168_v40 = vpop.eup %18167  ;;  %18187 = vrcp.f32 %v4712_v38  ;;  %v13652_v2 = vmul.f32 -1.442695, %v21174_v4  ;;  %v21180_v47 = vadd.f32 %v21070_v50, %v4638_v34 }
 0x9b3   : > { %v18170_v9 = vpop.eup %18169  ;;  %v4714_v8 = vadd.f32 1.0, %v18168_v40  ;;  %18189 = vrcp.f32 %v4713_v5  ;;  %v21184_v56 = vadd.f32 %v21070_v50, %v4637_v0 }
 0x9b4   : > { %v4715_v63 = vadd.f32 1.0, %v18170_v9  ;;  %v18172_v11 = vpop.eup %18171  ;;  %v13655_v23 = vmul.f32 -1.442695, %v21180_v47 }
 0x9b5   : > { %18191 = vrcp.f32 %v4714_v8  ;;  %v18174_v62 = vpop.eup %18173  ;;  %v13654_v24 = vmul.f32 -1.442695, %v21184_v56  ;;  %v4756_v50 = vmul.f32 %v18172_v11, %v21084_v54 }
 0x9b6   : > { %18193 = vrcp.f32 %v4715_v63  ;;  %v18176_v3 = vpop.eup %18175  ;;  %v4759_v12 = vmul.f32 %v18174_v62, %v21091_v59 }
 0x9b7   : > { %18195 = vpow2.f32 %v13652_v2  ;;  %v18178_v26 = vpop.eup %18177  ;;  %v4758_v31 = vmul.f32 %v18176_v3, %v21097_v52 }
 0x9b8   : > { %18197 = vpow2.f32 %v13653_v21  ;;  %v18180_v60 = vpop.eup %18179  ;;  %v4716_v19 = vadd.f32 1.0, %v18178_v26 }
 0x9b9   : > { %18199 = vpow2.f32 %v13654_v24  ;;  %v18182_v41 = vpop.eup %18181  ;;  %v4781_v37 = vpack.c.bf16 %v4759_v12, %v4758_v31  ;;  %v4717_v33 = vadd.f32 1.0, %v18180_v60 }
 0x9ba   : > { %18201 = vpow2.f32 %v13655_v23  ;;  %v18184_v17 = vpop.eup %18183  ;;  %v4757_v16 = vmul.f32 %v18182_v41, %v21081_v29 }
 0x9bb   : > { %18203 = vrcp.f32 %v4716_v19  ;;  %v18186_v42 = vpop.eup %18185  ;;  %v4718_v59 = vadd.f32 1.0, %v18184_v17 }
 0x9bc   : > { %18205 = vrcp.f32 %v4717_v33  ;;  %v18188_v1 = vpop.eup %18187  ;;  %v4780_v10 = vpack.c.bf16 %v4757_v16, %v4756_v50  ;;  %v4719_v52 = vadd.f32 1.0, %v18186_v42  ;;  %v17656_v50 = vld [vmem:[#allocation2 + $0x178] sm:$0xff]  }
 0x9bd   : > { %v18190_v30 = vpop.eup %18189  ;;  %v4760_v39 = vmul.f32 %v18188_v1, %v21117_v7  ;;  %18207 = vrcp.f32 %v4718_v59  ;;  %15609 = vmatprep.subr.bf16.mxu1 %v17656_v50 }
 0x9be   : > { %15587 = vmatprep.mubr.msk.bf16.mxu0 %vm1928_vm2, %v4780_v10  ;;  %v4761_v57 = vmul.f32 %v18190_v30, %v21113_v43  ;;  %18209 = vrcp.f32 %v4719_v52  ;;  %15610 = vmatpush3.bf16.msra.mxu1 %v17656_v50 }
 0x9bf   : > { %v18192_v54 = vpop.eup %18191  ;;  %15588 = vmatmul.mubr.msk.bf16.vlgmr.msra.gmra.mrb[104].mxu0 %vm1928_vm2, %v4781_v37  ;;  %16784 = vmatprep.subr.bf16.mxu1 %v24712_v15 }
 0x9c0   : > { %v18194_v46 = vpop.eup %18193  ;;  %v4762_v29 = vmul.f32 %v18192_v54, %v21129_v14  ;;  %v4782_v25 = vpack.c.bf16 %v4761_v57, %v4760_v39  ;;  %16770 = vmatpush3.bf16.msra.mxu0 %v24712_v15 }
 0x9c1   : > { %v18196_v6 = vpop.eup %18195  ;;  %v4763_v35 = vmul.f32 %v18194_v46, %v21134_v61  ;;  %16772 = vmatprep.subr.bf16.mxu0 %v24713_v36 }
 0x9c2   : > { %v18198_v28 = vpop.eup %18197  ;;  %v4720_v7 = vadd.f32 1.0, %v18196_v6  ;;  %15591 = vmatprep.mubr.msk.bf16.mxu0 %vm1928_vm2, %v4782_v25  ;;  %v24808_v25 = vld [vmem:[#allocation69_spill] sm:$0xff] }
 0x9c3   : > { %v18200_v38 = vpop.eup %18199  ;;  %v4783_v43 = vpack.c.bf16 %v4763_v35, %v4762_v29  ;;  %v4721_v34 = vadd.f32 1.0, %v18198_v28 }
 0x9c4   : > { %v18202_v40 = vpop.eup %18201  ;;  %18211 = vrcp.f32 %v4720_v7  ;;  %v4722_v5 = vadd.f32 1.0, %v18200_v38  ;;  %16774 = vmatpush3.bf16.msra.mxu0 %v24713_v36 }
 0x9c5   : > { %v18204_v0 = vpop.eup %18203  ;;  %18213 = vrcp.f32 %v4721_v34  ;;  %v4723_v14 = vadd.f32 1.0, %v18202_v40  ;;  %16776 = vmatprep.subr.bf16.mxu0 %v24715_v20 }
 0x9c6   : > { %v18206_v61 = vpop.eup %18205  ;;  %v4764_v9 = vmul.f32 %v18204_v0, %v21146_v44  ;;  %18215 = vrcp.f32 %v4722_v5  ;;  %v24809_v0 = vld [vmem:[#allocation70_spill] sm:$0xff] }
 0x9c7   : > { %v4765_v8 = vmul.f32 %v18206_v61, %v21143_v58  ;;  %18217 = vrcp.f32 %v4723_v14  ;;  %v18208_v2 = vpop.eup %18207  ;;  %15592 = vmatmul.mubr.msk.bf16.gmra.mrb[108].mxu0 %vm1928_vm2, %v4783_v43  ;;  %v24810_v61 = vld [vmem:[#allocation72_spill] sm:$0xff] }
 0x9c8   : > { %v18210_v63 = vpop.eup %18209  ;;  %v4766_v11 = vmul.f32 %v18208_v2, %v21162_v49  ;;  %16778 = vmatpush3.bf16.msra.mxu0 %v24715_v20 }
 0x9c9   : > { %v4784_v21 = vpack.c.bf16 %v4765_v8, %v4764_v9  ;;  %v4767_v62 = vmul.f32 %v18210_v63, %v21157_v13  ;;  %16780 = vmatprep.subr.bf16.mxu0 %v24716_v51  ;;  %v24811_v8 = vld [vmem:[#allocation71_spill] sm:$0xff]  ;;  %v24812_v63 = vld [vmem:[#allocation68_spill] sm:$0xff] }
 0x9cb   : > { %15595 = vmatprep.mubr.msk.bf16.mxu0 %vm1928_vm2, %v4784_v21  ;;  %v4785_v44 = vpack.c.bf16 %v4767_v62, %v4766_v11 }
 0x9cc   : > { %16782 = vmatpush3.bf16.msra.mxu0 %v24716_v51 }
 0x9ce   : > { %v18212_v58 = vpop.eup %18211 }
 0x9cf   : > { %v18214_v24 = vpop.eup %18213  ;;  %v4768_v23 = vmul.f32 %v18212_v58, %v21174_v4  ;;  %15596 = vmatmul.mubr.msk.bf16.gmra.mrb[112].mxu0 %vm1928_vm2, %v4785_v44 }
 0x9d0   : > { %v18216_v3 = vpop.eup %18215  ;;  %v4769_v49 = vmul.f32 %v18214_v24, %v21171_v55  ;;  %v21223_v55 = vld [vmem:[%s24499_s4 + $0x1f] ss:$0 sm:$0xff] }
 0x9d1   : > { %v18218_v12 = vpop.eup %18217  ;;  %v4770_v26 = vmul.f32 %v18216_v3, %v21184_v56 }
 0x9d2   : > { %v4786_v13 = vpack.c.bf16 %v4769_v49, %v4768_v23  ;;  %v4771_v31 = vmul.f32 %v18218_v12, %v21180_v47 }
 0x9d4   : > { %15599 = vmatprep.mubr.msk.bf16.mxu0 %vm1928_vm2, %v4786_v13  ;;  %v4787_v60 = vpack.c.bf16 %v4771_v31, %v4770_v26  ;;  %v24813_v13 = vld [vmem:[#allocation75_spill] sm:$0xff] }
 0x9d7   : > { %15600 = vmatmul.mubr.msk.bf16.gmra.mrb[116].mxu0 %vm1928_vm2, %v4787_v60  ;;  %v24814_v60 = vld [vmem:[#allocation76_spill] sm:$0xff] }
 0xa92   : > { %v15589_v4 = vpop.f32.mrb[104].mxu0 }
 0xa93   : > { %v4884_v56 = vadd.f32 %v15589_v4, %v21223_v55  ;;  %v4875_v19 = vpop.f32.mrb[105].mxu0  ;;  %v24815_v4 = vld [vmem:[#allocation73_spill] sm:$0xff] }
 0xa94   : > { %v4876_v47 = vadd.f32 %v21223_v55, %v4875_v19  ;;  %v15590_v41 = vpop.f32.mrb[106].mxu0  ;;  %v24816_v19 = vld [vmem:[#allocation74_spill] sm:$0xff] }
 0xa95   : > { %v4887_v37 = vadd.f32 %v15590_v41, %v21223_v55  ;;  %v4878_v33 = vpop.f32.mrb[107].mxu0  ;;  %v4940_v16 = vadd.f32 %v20273_v18, %v4884_v56 }
 0xa96   : > { %v4879_v17 = vadd.f32 %v21223_v55, %v4878_v33  ;;  %v4938_v59 = vadd.f32 %v20268_v27, %v4876_v47  ;;  %v21275_v33 = vld [vmem:[%s24499_s4 + $0x20] ss:$0 sm:$0xff] }
 0xa97   : > { %v4941_v42 = vadd.f32 %v20287_v22, %v4887_v37 }
 0xa98   : > { %v4939_v1 = vadd.f32 %v20271_v45, %v4879_v17 }
 0xa99   : > { %v4963_v10 = vpack.c.bf16 %v4941_v42, %v4940_v16 }
 0xa9a   : > { %v4962_v52 = vpack.c.bf16 %v4939_v1, %v4938_v59  ;;  %v15593_v30 = vpop.f32.mrb[108].mxu0 }
 0xa9b   : > { %v4900_v39 = vadd.f32 %v15593_v30, %v21223_v55  ;;  %v4891_v54 = vpop.f32.mrb[109].mxu0 }
 0xa9c   : > { %v4892_v57 = vadd.f32 %v21223_v55, %v4891_v54  ;;  %v15594_v46 = vpop.f32.mrb[110].mxu0  ;;  %15611 = vmatprep.mubr.msk.bf16.mxu1 %vm1928_vm2, %v4962_v52 }
 0xa9d   : > { %v4903_v29 = vadd.f32 %v15594_v46, %v21223_v55  ;;  %v4894_v18 = vpop.f32.mrb[111].mxu0  ;;  %15612 = vmatmul.mubr.msk.bf16.vlgmr.msra.gmra.mrb[152].mxu1 %vm1928_vm2, %v4963_v10  ;;  %v4944_v45 = vadd.f32 %v20307_v48, %v4900_v39 }
 0xa9e   : > { %v4895_v27 = vadd.f32 %v21223_v55, %v4894_v18  ;;  %16786 = vmatpush3.bf16.msra.mxu1 %v24712_v15  ;;  %v4942_v6 = vadd.f32 %v20291_v32, %v4892_v57 }
 0xa9f   : > { %v4945_v22 = vadd.f32 %v20319_v53, %v4903_v29  ;;  %16788 = vmatprep.subr.bf16.mxu1 %v24713_v36 }
 0xaa0   : > { %v4943_v35 = vadd.f32 %v24808_v25, %v4895_v27 }
 0xaa1   : > { %v4965_v28 = vpack.c.bf16 %v4945_v22, %v4944_v45 }
 0xaa2   : > { %v4964_v7 = vpack.c.bf16 %v4943_v35, %v4942_v6  ;;  %v15597_v38 = vpop.f32.mrb[112].mxu0  ;;  %16790 = vmatpush3.bf16.msra.mxu1 %v24713_v36 }
 0xaa3   : > { %v4916_v43 = vadd.f32 %v15597_v38, %v21223_v55  ;;  %v4907_v34 = vpop.f32.mrb[113].mxu0  ;;  %16792 = vmatprep.subr.bf16.mxu1 %v24715_v20 }
 0xaa4   : > { %v4908_v48 = vadd.f32 %v21223_v55, %v4907_v34  ;;  %v15598_v40 = vpop.f32.mrb[114].mxu0  ;;  %15615 = vmatprep.mubr.msk.bf16.mxu1 %vm1928_vm2, %v4964_v7 }
 0xaa5   : > { %v4919_v53 = vadd.f32 %v15598_v40, %v21223_v55  ;;  %v4910_v32 = vpop.f32.mrb[115].mxu0  ;;  %15616 = vmatmul.mubr.msk.bf16.gmra.mrb[156].mxu1 %vm1928_vm2, %v4965_v28  ;;  %v4948_v14 = vadd.f32 %v24809_v0, %v4916_v43 }
 0xaa6   : > { %v4911_v5 = vadd.f32 %v21223_v55, %v4910_v32  ;;  %16794 = vmatpush3.bf16.msra.mxu1 %v24715_v20  ;;  %v4946_v2 = vadd.f32 %v24811_v8, %v4908_v48 }
 0xaa7   : > { %v4949_v9 = vadd.f32 %v24810_v61, %v4919_v53  ;;  %16796 = vmatprep.subr.bf16.mxu1 %v24716_v51 }
 0xaa8   : > { %v4947_v21 = vadd.f32 %v24812_v63, %v4911_v5 }
 0xaa9   : > { %v4967_v11 = vpack.c.bf16 %v4949_v9, %v4948_v14 }
 0xaaa   : > { %v4966_v62 = vpack.c.bf16 %v4947_v21, %v4946_v2  ;;  %v15601_v44 = vpop.f32.mrb[116].mxu0  ;;  %16798 = vmatpush3.bf16.msra.mxu1 %v24716_v51 }
 0xaab   : > { %v4932_v58 = vadd.f32 %v15601_v44, %v21223_v55  ;;  %v4923_v24 = vpop.f32.mrb[117].mxu0 }
 0xaac   : > { %v4924_v23 = vadd.f32 %v21223_v55, %v4923_v24  ;;  %v15602_v3 = vpop.f32.mrb[118].mxu0  ;;  %15619 = vmatprep.mubr.msk.bf16.mxu1 %vm1928_vm2, %v4966_v62 }
 0xaad   : > { %v4935_v49 = vadd.f32 %v15602_v3, %v21223_v55  ;;  %v4926_v12 = vpop.f32.mrb[119].mxu0  ;;  %15620 = vmatmul.mubr.msk.bf16.gmra.mrb[160].mxu1 %vm1928_vm2, %v4967_v11  ;;  %v4952_v31 = vadd.f32 %v24813_v13, %v4932_v58 }
 0xaae   : > { %v4927_v26 = vadd.f32 %v21223_v55, %v4926_v12  ;;  %v4950_v56 = vadd.f32 %v24815_v4, %v4924_v23 }
 0xaaf   : > { %v4953_v50 = vadd.f32 %v24814_v60, %v4935_v49 }
 0xab0   : > { %v4951_v47 = vadd.f32 %v24816_v19, %v4927_v26 }
 0xab1   : > { %v4969_v41 = vpack.c.bf16 %v4953_v50, %v4952_v31 }
 0xab2   : > { %v4968_v37 = vpack.c.bf16 %v4951_v47, %v4950_v56 }
 0xab4   : > { %15623 = vmatprep.mubr.msk.bf16.mxu1 %vm1928_vm2, %v4968_v37 }
 0xab5   : > { %15624 = vmatmul.mubr.msk.bf16.gmra.mrb[164].mxu1 %vm1928_vm2, %v4969_v41 }
 0xb70   : > { %v15613_v55 = vpop.f32.mrb[152].mxu1 }
 0xb71   : > { %v5066_v17 = vadd.f32 %v15613_v55, %v21275_v33  ;;  %v5057_v16 = vpop.f32.mrb[153].mxu1 }
 0xb72   : > { %v5058_v42 = vadd.f32 %v21275_v33, %v5057_v16  ;;  %v15614_v59 = vpop.f32.mrb[154].mxu1 }
 0xb73   : > { %v5060_v1 = vpop.f32.mrb[155].mxu1  ;;  %v5069_v52 = vadd.f32 %v15614_v59, %v21275_v33  ;;  %v21283_v39 = vmax.f32 %v5066_v17, 0.0  ;;  %v17657_v59 = vld [vmem:[#allocation2 + $0x180] sm:$0xff]  }
 0xb74   : > { %v21279_v10 = vmax.f32 %v5058_v42, 0.0  ;;  %v5061_v30 = vadd.f32 %v21275_v33, %v5060_v1  ;;  %15707 = vmatprep.subr.bf16.mxu0 %v17657_v59  ;;  %v17658_v1 = vld [vmem:[#allocation2 + $0x188] sm:$0xff]  }
 0xb75   : > { %v21291_v46 = vmax.f32 %v5069_v52, 0.0  ;;  %v5331_v22 = vmul.f32 %v21283_v39, %v21283_v39  ;;  %v17659_v52 = vld [vmem:[#allocation2 + $0x190] sm:$0xff]  }
 0xb76   : > { %v21285_v54 = vmax.f32 %v5061_v30, 0.0  ;;  %15643 = vmatprep.mubr.msk.f32.mxu0 %vm1928_vm2, %v21279_v10  ;;  %v5329_v57 = vmul.f32 %v21279_v10, %v21279_v10  ;;  %v17660_v30 = vld [vmem:[#allocation2 + $0x198] sm:$0xff]  }
 0xb77   : > { %v5332_v43 = vmul.f32 %v21291_v46, %v21291_v46 }
 0xb78   : > { %v5330_v29 = vmul.f32 %v21285_v54, %v21285_v54  ;;  %v15617_v18 = vpop.f32.mrb[156].mxu1  ;;  %15644 = vmatmul.mubr.msk.f32.vlgmr.msra.gmra.mrb[120].mxu0 %vm1928_vm2, %v21285_v54  ;;  %15683 = vmatprep.mubr.msk.f32.mxu1 %vm1928_vm2, %v5329_v57  ;;  %v17661_v57 = vld [vmem:[#allocation2 + $0x1a0] sm:$0xff]  }
 0xb79   : > { %v5082_v27 = vadd.f32 %v15617_v18, %v21275_v33  ;;  %v5073_v45 = vpop.f32.mrb[157].mxu1  ;;  %15646 = vmatprep.mubr.msk.f32.mxu0 %vm1928_vm2, %v21283_v39  ;;  %15708 = vmatpush3.bf16.msra.mxu0 %v17657_v59  ;;  %v17663_v18 = vld [vmem:[#allocation2 + $0x1b0] sm:$0xff]  }
 0xb7a   : > { %v5074_v6 = vadd.f32 %v21275_v33, %v5073_v45  ;;  %v15618_v25 = vpop.f32.mrb[158].mxu1  ;;  %15684 = vmatmul.mubr.msk.f32.vlgmr.msra.gmra.mrb[168].mxu1 %vm1928_vm2, %v5330_v29  ;;  %15709 = vmatprep.subr.bf16.mxu0 %v17658_v1  ;;  %v17662_v29 = vld [vmem:[#allocation2 + $0x1a8] sm:$0xff]  }
 0xb7b   : > { %v5076_v35 = vpop.f32.mrb[159].mxu1  ;;  %15686 = vmatprep.mubr.msk.f32.mxu1 %vm1928_vm2, %v5331_v22  ;;  %v5085_v7 = vadd.f32 %v15618_v25, %v21275_v33  ;;  %v21314_v34 = vmax.f32 %v5082_v27, 0.0  ;;  %15731 = vmatprep.subr.bf16.mxu1 %v17661_v57 }
 0xb7c   : > { %v21306_v28 = vmax.f32 %v5074_v6, 0.0  ;;  %v5077_v38 = vadd.f32 %v21275_v33, %v5076_v35  ;;  %15647 = vmatmul.mubr.msk.f32.gmra.mrb[122].mxu0 %vm1928_vm2, %v21291_v46  ;;  %15732 = vmatpush3.bf16.msra.mxu1 %v17661_v57 }
 0xb7d   : > { %v21323_v53 = vmax.f32 %v5085_v7, 0.0  ;;  %v5335_v61 = vmul.f32 %v21314_v34, %v21314_v34  ;;  %15710 = vmatpush3.bf16.msra.mxu0 %v17658_v1  ;;  %15733 = vmatprep.subr.bf16.mxu1 %v17662_v29 }
 0xb7e   : > { %v21316_v48 = vmax.f32 %v5077_v38, 0.0  ;;  %15649 = vmatprep.mubr.msk.f32.mxu0 %vm1928_vm2, %v21306_v28  ;;  %15687 = vmatmul.mubr.msk.f32.gmra.mrb[170].mxu1 %vm1928_vm2, %v5332_v43  ;;  %v5333_v40 = vmul.f32 %v21306_v28, %v21306_v28 }
 0xb7f   : > { %v5336_v62 = vmul.f32 %v21323_v53, %v21323_v53  ;;  %15711 = vmatprep.subr.bf16.mxu0 %v17659_v52 }
 0xb80   : > { %v15621_v32 = vpop.f32.mrb[160].mxu1  ;;  %15650 = vmatmul.mubr.msk.f32.gmra.mrb[124].mxu0 %vm1928_vm2, %v21316_v48  ;;  %15689 = vmatprep.mubr.msk.f32.mxu1 %vm1928_vm2, %v5333_v40  ;;  %v5334_v5 = vmul.f32 %v21316_v48, %v21316_v48 }
 0xb81   : > { %v5098_v0 = vadd.f32 %v15621_v32, %v21275_v33  ;;  %v5089_v14 = vpop.f32.mrb[161].mxu1  ;;  %15652 = vmatprep.mubr.msk.f32.mxu0 %vm1928_vm2, %v21314_v34  ;;  %15712 = vmatpush3.bf16.msra.mxu0 %v17659_v52 }
 0xb82   : > { %v5090_v9 = vadd.f32 %v21275_v33, %v5089_v14  ;;  %v15622_v8 = vpop.f32.mrb[162].mxu1  ;;  %15690 = vmatmul.mubr.msk.f32.gmra.mrb[172].mxu1 %vm1928_vm2, %v5334_v5  ;;  %15713 = vmatprep.subr.bf16.mxu0 %v17660_v30 }
 0xb83   : > { %v5092_v2 = vpop.f32.mrb[163].mxu1  ;;  %15692 = vmatprep.mubr.msk.f32.mxu1 %vm1928_vm2, %v5335_v61  ;;  %v5101_v21 = vadd.f32 %v15622_v8, %v21275_v33  ;;  %v21346_v44 = vmax.f32 %v5098_v0, 0.0  ;;  %15734 = vmatpush3.bf16.msra.mxu1 %v17662_v29 }
 0xb84   : > { %v21338_v63 = vmax.f32 %v5090_v9, 0.0  ;;  %v5093_v11 = vadd.f32 %v21275_v33, %v5092_v2  ;;  %15653 = vmatmul.mubr.msk.f32.gmra.mrb[126].mxu0 %vm1928_vm2, %v21323_v53  ;;  %15735 = vmatprep.subr.bf16.mxu1 %v17663_v18 }
 0xb85   : > { %v21355_v23 = vmax.f32 %v5101_v21, 0.0  ;;  %v5339_v13 = vmul.f32 %v21346_v44, %v21346_v44  ;;  %15714 = vmatpush3.bf16.msra.mxu0 %v17660_v30 }
 0xb86   : > { %v21348_v58 = vmax.f32 %v5093_v11, 0.0  ;;  %15655 = vmatprep.mubr.msk.f32.mxu0 %vm1928_vm2, %v21338_v63  ;;  %15693 = vmatmul.mubr.msk.f32.gmra.mrb[174].mxu1 %vm1928_vm2, %v5336_v62  ;;  %v5337_v24 = vmul.f32 %v21338_v63, %v21338_v63 }
 0xb87   : > { %v5340_v47 = vmul.f32 %v21355_v23, %v21355_v23  ;;  %15736 = vmatpush3.bf16.msra.mxu1 %v17663_v18 }
 0xb88   : > { %v15625_v3 = vpop.f32.mrb[164].mxu1  ;;  %15656 = vmatmul.mubr.msk.f32.gmra.mrb[128].mxu0 %vm1928_vm2, %v21348_v58  ;;  %15695 = vmatprep.mubr.msk.f32.mxu1 %vm1928_vm2, %v5337_v24  ;;  %v5338_v49 = vmul.f32 %v21348_v58, %v21348_v58 }
 0xb89   : > { %v5114_v12 = vadd.f32 %v15625_v3, %v21275_v33  ;;  %v5105_v26 = vpop.f32.mrb[165].mxu1  ;;  %15658 = vmatprep.mubr.msk.f32.mxu0 %vm1928_vm2, %v21346_v44 }
 0xb8a   : > { %v5106_v31 = vadd.f32 %v21275_v33, %v5105_v26  ;;  %v15626_v60 = vpop.f32.mrb[166].mxu1  ;;  %15696 = vmatmul.mubr.msk.f32.gmra.mrb[176].mxu1 %vm1928_vm2, %v5338_v49 }
 0xb8b   : > { %v5108_v50 = vpop.f32.mrb[167].mxu1  ;;  %15698 = vmatprep.mubr.msk.f32.mxu1 %vm1928_vm2, %v5339_v13  ;;  %v5117_v56 = vadd.f32 %v15626_v60, %v21275_v33  ;;  %v21378_v41 = vmax.f32 %v5114_v12, 0.0 }
 0xb8c   : > { %v21370_v4 = vmax.f32 %v5106_v31, 0.0  ;;  %v5109_v19 = vadd.f32 %v21275_v33, %v5108_v50  ;;  %15659 = vmatmul.mubr.msk.f32.gmra.mrb[130].mxu0 %vm1928_vm2, %v21355_v23 }
 0xb8d   : > { %v21387_v17 = vmax.f32 %v5117_v56, 0.0  ;;  %v5343_v16 = vmul.f32 %v21378_v41, %v21378_v41 }
 0xb8e   : > { %v21380_v37 = vmax.f32 %v5109_v19, 0.0  ;;  %15661 = vmatprep.mubr.msk.f32.mxu0 %vm1928_vm2, %v21370_v4  ;;  %15699 = vmatmul.mubr.msk.f32.gmra.mrb[178].mxu1 %vm1928_vm2, %v5340_v47  ;;  %v5341_v55 = vmul.f32 %v21370_v4, %v21370_v4 }
 0xb8f   : > { %v5344_v42 = vmul.f32 %v21387_v17, %v21387_v17 }
 0xb90   : > { %15662 = vmatmul.mubr.msk.f32.gmra.mrb[132].mxu0 %vm1928_vm2, %v21380_v37  ;;  %15701 = vmatprep.mubr.msk.f32.mxu1 %vm1928_vm2, %v5341_v55  ;;  %v5342_v33 = vmul.f32 %v21380_v37, %v21380_v37 }
 0xb91   : > { %15664 = vmatprep.mubr.msk.f32.mxu0 %vm1928_vm2, %v21378_v41 }
 0xb92   : > { %15702 = vmatmul.mubr.msk.f32.gmra.mrb[180].mxu1 %vm1928_vm2, %v5342_v33 }
 0xb93   : > { %15704 = vmatprep.mubr.msk.f32.mxu1 %vm1928_vm2, %v5343_v16 }
 0xb94   : > { %15665 = vmatmul.mubr.msk.f32.gmra.mrb[134].mxu0 %vm1928_vm2, %v21387_v17 }
 0xb96   : > { %15705 = vmatmul.mubr.msk.f32.gmra.mrb[182].mxu1 %vm1928_vm2, %v5344_v42 }
 0xc4b   : > { %v21405_v27 = vpop.f32.mrb[120].mxu0 }
 0xc4c   : > { %v5539_v45 = vmul.f32 %v21405_v27, %v21405_v27  ;;  %v21409_v22 = vpop.f32.mrb[121].mxu0 }
 0xc4d   : > { %v5538_v6 = vmul.f32 %v21409_v22, %v21409_v22  ;;  %v15685_v25 = vpop.f32.mrb[168].mxu1 }
 0xc4e   : > { %v5555_v35 = vsub.f32 %v15685_v25, %v5539_v45  ;;  %v5459_v7 = vpop.f32.mrb[169].mxu1 }
 0xc4f   : > { %v5554_v38 = vsub.f32 %v5459_v7, %v5538_v6  ;;  %v21413_v43 = vpop.f32.mrb[122].mxu0  ;;  %v5587_v7 = vsub.f32 %v21285_v54, %v21405_v27 }
 0xc50   : > { %v5571_v40 = vmax.f32 %v5555_v35, 0.0  ;;  %v5541_v32 = vmul.f32 %v21413_v43, %v21413_v43  ;;  %v21417_v5 = vpop.f32.mrb[123].mxu0 }
 0xc51   : > { %v5570_v0 = vmax.f32 %v5554_v38, 0.0  ;;  %v5540_v14 = vmul.f32 %v21417_v5, %v21417_v5  ;;  %v15688_v61 = vpop.f32.mrb[170].mxu1  ;;  %v5588_v27 = vsub.f32 %v21283_v39, %v21417_v5 }
 0xc52   : > { %v5603_v9 = vadd.f32 1e-05, %v5571_v40  ;;  %v5557_v8 = vsub.f32 %v15688_v61, %v5541_v32  ;;  %v5469_v2 = vpop.f32.mrb[171].mxu1  ;;  %v5589_v61 = vsub.f32 %v21291_v46, %v21413_v43 }
 0xc53   : > { %v5602_v21 = vadd.f32 1e-05, %v5570_v0  ;;  %v5556_v11 = vsub.f32 %v5469_v2, %v5540_v14  ;;  %v21421_v62 = vpop.f32.mrb[124].mxu0  ;;  %v5586_v14 = vsub.f32 %v21279_v10, %v21409_v22 }
 0xc54   : > { %18219 = vrsqrt.f32 %v5603_v9  ;;  %v5573_v24 = vmax.f32 %v5557_v8, 0.0  ;;  %v5543_v3 = vmul.f32 %v21421_v62, %v21421_v62  ;;  %v21425_v49 = vpop.f32.mrb[125].mxu0  ;;  %v5591_v43 = vsub.f32 %v21316_v48, %v21421_v62 }
 0xc55   : > { %18221 = vrsqrt.f32 %v5602_v21  ;;  %v5572_v12 = vmax.f32 %v5556_v11, 0.0  ;;  %v5542_v26 = vmul.f32 %v21425_v49, %v21425_v49  ;;  %v15691_v13 = vpop.f32.mrb[172].mxu1 }
 0xc56   : > { %v5605_v31 = vadd.f32 1e-05, %v5573_v24  ;;  %v5559_v60 = vsub.f32 %v15691_v13, %v5543_v3  ;;  %v5479_v50 = vpop.f32.mrb[173].mxu1 }
 0xc57   : > { %v5604_v56 = vadd.f32 1e-05, %v5572_v12  ;;  %v5558_v19 = vsub.f32 %v5479_v50, %v5542_v26  ;;  %v21429_v47 = vpop.f32.mrb[126].mxu0 }
 0xc58   : > { %18223 = vrsqrt.f32 %v5605_v31  ;;  %v5575_v55 = vmax.f32 %v5559_v60, 0.0  ;;  %v5545_v33 = vmul.f32 %v21429_v47, %v21429_v47  ;;  %v21433_v16 = vpop.f32.mrb[127].mxu0 }
 0xc59   : > { %18225 = vrsqrt.f32 %v5604_v56  ;;  %v5574_v42 = vmax.f32 %v5558_v19, 0.0  ;;  %v5544_v59 = vmul.f32 %v21433_v16, %v21433_v16  ;;  %v15694_v1 = vpop.f32.mrb[174].mxu1  ;;  %v21466_v19 = vld [vmem:[%s24499_s4 + $0x21] ss:$0 sm:$0xff] }
 0xc5a   : > { %v5607_v52 = vadd.f32 1e-05, %v5575_v55  ;;  %v5561_v30 = vsub.f32 %v15694_v1, %v5545_v33  ;;  %v5489_v57 = vpop.f32.mrb[175].mxu1  ;;  %v5590_v55 = vsub.f32 %v21306_v28, %v21425_v49  ;;  %v5593_v33 = vsub.f32 %v21323_v53, %v21429_v47 }
 0xc5b   : > { %v5606_v29 = vadd.f32 1e-05, %v5574_v42  ;;  %v5560_v18 = vsub.f32 %v5489_v57, %v5544_v59  ;;  %v21437_v45 = vpop.f32.mrb[128].mxu0 }
 0xc5c   : > { %18227 = vrsqrt.f32 %v5607_v52  ;;  %v5577_v6 = vmax.f32 %v5561_v30, 0.0  ;;  %v5547_v25 = vmul.f32 %v21437_v45, %v21437_v45  ;;  %v21441_v35 = vpop.f32.mrb[129].mxu0  ;;  %v5592_v30 = vsub.f32 %v21314_v34, %v21433_v16 }
 0xc5d   : > { %18229 = vrsqrt.f32 %v5606_v29  ;;  %v5576_v38 = vmax.f32 %v5560_v18, 0.0  ;;  %v5546_v40 = vmul.f32 %v21441_v35, %v21441_v35  ;;  %v15697_v32 = vpop.f32.mrb[176].mxu1 }
 0xc5e   : > { %v18220_v0 = vpop.eup %18219  ;;  %v5609_v9 = vadd.f32 1e-05, %v5577_v6  ;;  %v5563_v8 = vsub.f32 %v15697_v32, %v5547_v25  ;;  %v5499_v2 = vpop.f32.mrb[177].mxu1 }
 0xc5f   : > { %v18222_v21 = vpop.eup %18221  ;;  %v5635_v11 = vmul.f32 %v18220_v0, %v5587_v7  ;;  %v5608_v24 = vadd.f32 1e-05, %v5576_v38  ;;  %v5562_v3 = vsub.f32 %v5499_v2, %v5546_v40  ;;  %v21453_v12 = vpop.f32.mrb[130].mxu0  ;;  %v21485_v0 = vld [vmem:[%s24499_s4 + $0x22] ss:$0 sm:$0xff] }
 0xc60   : > { %v5634_v26 = vmul.f32 %v18222_v21, %v5586_v14  ;;  %18231 = vrsqrt.f32 %v5609_v9  ;;  %v5579_v13 = vmax.f32 %v5563_v8, 0.0  ;;  %v5549_v22 = vmul.f32 %v21453_v12, %v21453_v12  ;;  %v21457_v31 = vpop.f32.mrb[131].mxu0 }
 0xc61   : > { %18233 = vrsqrt.f32 %v5608_v24  ;;  %v5578_v60 = vmax.f32 %v5562_v3, 0.0  ;;  %v5548_v5 = vmul.f32 %v21457_v31, %v21457_v31  ;;  %v15700_v50 = vpop.f32.mrb[178].mxu1  ;;  %v5656_v2 = vmul.f32 %v21466_v19, %v5635_v11 }
 0xc62   : > { %v18224_v56 = vpop.eup %18223  ;;  %v5611_v42 = vadd.f32 1e-05, %v5579_v13  ;;  %v5565_v62 = vsub.f32 %v15700_v50, %v5549_v22  ;;  %v5509_v59 = vpop.f32.mrb[179].mxu1  ;;  %v5655_v32 = vmul.f32 %v21466_v19, %v5634_v26 }
 0xc63   : > { %v18226_v1 = vpop.eup %18225  ;;  %v5637_v52 = vmul.f32 %v18224_v56, %v5589_v61  ;;  %v5610_v57 = vadd.f32 1e-05, %v5578_v60  ;;  %v5564_v29 = vsub.f32 %v5509_v59, %v5548_v5  ;;  %v21474_v18 = vpop.f32.mrb[132].mxu0  ;;  %v5595_v56 = vsub.f32 %v21348_v58, %v21437_v45 }
 0xc64   : > { %v5636_v6 = vmul.f32 %v18226_v1, %v5588_v27  ;;  %18235 = vrsqrt.f32 %v5611_v42  ;;  %v5581_v25 = vmax.f32 %v5565_v62, 0.0  ;;  %v5551_v49 = vmul.f32 %v21474_v18, %v21474_v18  ;;  %v21478_v7 = vpop.f32.mrb[133].mxu0 }
 0xc65   : > { %v5658_v47 = vmul.f32 %v21466_v19, %v5637_v52  ;;  %18237 = vrsqrt.f32 %v5610_v57  ;;  %v5580_v38 = vmax.f32 %v5564_v29, 0.0  ;;  %v15703_v40 = vpop.f32.mrb[180].mxu1  ;;  %v5550_v9 = vmul.f32 %v21478_v7, %v21478_v7 }
 0xc66   : > { %v18228_v16 = vpop.eup %18227  ;;  %v5657_v14 = vmul.f32 %v21466_v19, %v5636_v6  ;;  %v5613_v61 = vadd.f32 1e-05, %v5581_v25  ;;  %v5519_v8 = vpop.f32.mrb[181].mxu1  ;;  %v5567_v26 = vsub.f32 %v15703_v40, %v5551_v49  ;;  %v5594_v59 = vsub.f32 %v21338_v63, %v21441_v35 }
 0xc67   : > { %v18230_v21 = vpop.eup %18229  ;;  %v5679_v27 = vadd.f32 %v21485_v0, %v5658_v47  ;;  %v5639_v24 = vmul.f32 %v18228_v16, %v5591_v43  ;;  %v5612_v3 = vadd.f32 1e-05, %v5580_v38  ;;  %v21492_v13 = vpop.f32.mrb[134].mxu0  ;;  %v5566_v5 = vsub.f32 %v5519_v8, %v5550_v9 }
 0xc68   : > { %v5678_v22 = vadd.f32 %v21485_v0, %v5657_v14  ;;  %v5638_v60 = vmul.f32 %v18230_v21, %v5590_v55  ;;  %18239 = vrsqrt.f32 %v5613_v61  ;;  %v21495_v50 = vpop.f32.mrb[135].mxu0  ;;  %v5583_v11 = vmax.f32 %v5567_v26, 0.0 }
 0xc69   : > { %18241 = vrsqrt.f32 %v5612_v3  ;;  %v5553_v42 = vmul.f32 %v21492_v13, %v21492_v13  ;;  %v15706_v43 = vpop.f32.mrb[182].mxu1  ;;  %v5582_v1 = vmax.f32 %v5566_v5, 0.0  ;;  %v5552_v55 = vmul.f32 %v21495_v50, %v21495_v50 }
 0xc6a   : > { %v18232_v62 = vpop.eup %18231  ;;  %v5676_v52 = vadd.f32 %v21485_v0, %v5655_v32  ;;  %v5529_v57 = vpop.f32.mrb[183].mxu1  ;;  %v5615_v45 = vadd.f32 1e-05, %v5583_v11  ;;  %v5677_v25 = vadd.f32 %v21485_v0, %v5656_v2  ;;  %v5701_v16 = vpack.c.bf16 %v5679_v27, %v5678_v22 }
 0xc6b   : > { %v18234_v29 = vpop.eup %18233  ;;  %v5641_v6 = vmul.f32 %v18232_v62, %v5593_v33  ;;  %v5569_v49 = vsub.f32 %v15706_v43, %v5553_v42  ;;  %v5614_v38 = vadd.f32 1e-05, %v5582_v1  ;;  %v5568_v40 = vsub.f32 %v5529_v57, %v5552_v55 }
 0xc6c   : > { %v5640_v47 = vmul.f32 %v18234_v29, %v5592_v30  ;;  %18243 = vrsqrt.f32 %v5615_v45  ;;  %v5700_v14 = vpack.c.bf16 %v5677_v25, %v5676_v52  ;;  %v5659_v61 = vmul.f32 %v21466_v19, %v5638_v60 }
 0xc6d   : > { %v5585_v35 = vmax.f32 %v5569_v49, 0.0  ;;  %18245 = vrsqrt.f32 %v5614_v38  ;;  %v5584_v8 = vmax.f32 %v5568_v40, 0.0  ;;  %v5660_v32 = vmul.f32 %v21466_v19, %v5639_v24 }
 0xc6e   : > { %v18236_v9 = vpop.eup %18235  ;;  %v5661_v33 = vmul.f32 %v21466_v19, %v5640_v47  ;;  %15715 = vmatprep.mubr.msk.bf16.mxu0 %vm1928_vm2, %v5700_v14  ;;  %v5680_v2 = vadd.f32 %v21485_v0, %v5659_v61  ;;  %v5662_v27 = vmul.f32 %v21466_v19, %v5641_v6  ;;  %v5597_v24 = vsub.f32 %v21355_v23, %v21453_v12 }
 0xc6f   : > { %v18238_v21 = vpop.eup %18237  ;;  %v5643_v3 = vmul.f32 %v18236_v9, %v5595_v56  ;;  %v5617_v30 = vadd.f32 1e-05, %v5585_v35  ;;  %v5616_v22 = vadd.f32 1e-05, %v5584_v8  ;;  %15716 = vmatmul.mubr.msk.bf16.vlgmr.msra.gmra.mrb[136].mxu0 %vm1928_vm2, %v5701_v16  ;;  %v5681_v60 = vadd.f32 %v21485_v0, %v5660_v32 }
 0xc70   : > { %v5642_v26 = vmul.f32 %v18238_v21, %v5594_v59  ;;  %v5682_v5 = vadd.f32 %v21485_v0, %v5661_v33  ;;  %v5683_v56 = vadd.f32 %v21485_v0, %v5662_v27  ;;  %v5596_v43 = vsub.f32 %v21346_v44, %v21457_v31 }
 0xc71   : > { %18247 = vrsqrt.f32 %v5617_v30  ;;  %v5664_v11 = vmul.f32 %v21466_v19, %v5643_v3  ;;  %v5702_v62 = vpack.c.bf16 %v5681_v60, %v5680_v2  ;;  %v5599_v45 = vsub.f32 %v21380_v37, %v21474_v18 }
 0xc72   : > { %v18240_v42 = vpop.eup %18239  ;;  %18249 = vrsqrt.f32 %v5616_v22  ;;  %v5663_v59 = vmul.f32 %v21466_v19, %v5642_v26  ;;  %v5703_v52 = vpack.c.bf16 %v5683_v56, %v5682_v5  ;;  %v5598_v47 = vsub.f32 %v21370_v4, %v21478_v7  ;;  %v17664_v5 = vld [vmem:[#allocation2 + $0x1b8] sm:$0xff]   ;;  %v17666_v56 = vld [vmem:[#allocation2 + $0x1c8] sm:$0xff]  }
 0xc73   : > { %v18242_v1 = vpop.eup %18241  ;;  %v5645_v55 = vmul.f32 %v18240_v42, %v5597_v24  ;;  %v5685_v57 = vadd.f32 %v21485_v0, %v5664_v11  ;;  %15719 = vmatprep.mubr.msk.bf16.mxu0 %vm1928_vm2, %v5702_v62  ;;  %v5601_v18 = vsub.f32 %v21387_v17, %v21492_v13  ;;  %v5600_v7 = vsub.f32 %v21378_v41, %v21495_v50  ;;  %v17665_v24 = vld [vmem:[#allocation2 + $0x1c0] sm:$0xff]  }
 0xc74   : > { %v5644_v29 = vmul.f32 %v18242_v1, %v5596_v43  ;;  %v5684_v12 = vadd.f32 %v21485_v0, %v5663_v59  ;;  %15737 = vmatprep.subr.bf16.mxu1 %v17664_v5  ;;  %15755 = vmatprep.subr.bf16.mxu0 %v17665_v24 }
 0xc75   : > { %v5666_v6 = vmul.f32 %v21466_v19, %v5645_v55  ;;  %15738 = vmatpush3.bf16.msra.mxu1 %v17664_v5  ;;  %15756 = vmatpush3.bf16.msra.mxu0 %v17665_v24  ;;  %v17668_v24 = vld [vmem:[#allocation2 + $0x1d8] sm:$0xff]  }
 0xc76   : > { %v5704_v31 = vpack.c.bf16 %v5685_v57, %v5684_v12  ;;  %v5665_v25 = vmul.f32 %v21466_v19, %v5644_v29  ;;  %v18244_v49 = vpop.eup %18243  ;;  %16800 = vmatprep.subr.bf16.mxu1 %v24712_v15  ;;  %15757 = vmatprep.subr.bf16.mxu0 %v17666_v56 }
 0xc77   : > { %v5687_v38 = vadd.f32 %v21485_v0, %v5666_v6  ;;  %v18246_v40 = vpop.eup %18245  ;;  %v5647_v16 = vmul.f32 %v18244_v49, %v5599_v45  ;;  %15720 = vmatmul.mubr.msk.bf16.gmra.mrb[140].mxu0 %vm1928_vm2, %v5703_v52 }
 0xc78   : > { %v5686_v14 = vadd.f32 %v21485_v0, %v5665_v25  ;;  %v5646_v35 = vmul.f32 %v18246_v40, %v5598_v47  ;;  %15723 = vmatprep.mubr.msk.bf16.mxu0 %vm1928_vm2, %v5704_v31 }
 0xc79   : > { %v5668_v9 = vmul.f32 %v21466_v19, %v5647_v16  ;;  %15758 = vmatpush3.bf16.msra.mxu0 %v17666_v56 }
 0xc7a   : > { %v5705_v61 = vpack.c.bf16 %v5687_v38, %v5686_v14  ;;  %v5667_v32 = vmul.f32 %v21466_v19, %v5646_v35 }
 0xc7b   : > { %v18248_v8 = vpop.eup %18247  ;;  %v5689_v3 = vadd.f32 %v21485_v0, %v5668_v9 }
 0xc7c   : > { %v18250_v33 = vpop.eup %18249  ;;  %v5649_v21 = vmul.f32 %v18248_v8, %v5601_v18  ;;  %v5688_v2 = vadd.f32 %v21485_v0, %v5667_v32 }
 0xc7d   : > { %v5648_v30 = vmul.f32 %v18250_v33, %v5600_v7 }
 0xc7e   : > { %v5670_v27 = vmul.f32 %v21466_v19, %v5649_v21  ;;  %v5706_v26 = vpack.c.bf16 %v5689_v3, %v5688_v2 }
 0xc7f   : > { %v5669_v13 = vmul.f32 %v21466_v19, %v5648_v30  ;;  %15724 = vmatmul.mubr.msk.bf16.gmra.mrb[144].mxu0 %vm1928_vm2, %v5705_v61  ;;  %v17667_v19 = vld [vmem:[#allocation2 + $0x1d0] sm:$0xff]  }
 0xc80   : > { %v5691_v22 = vadd.f32 %v21485_v0, %v5670_v27  ;;  %15727 = vmatprep.mubr.msk.bf16.mxu0 %vm1928_vm2, %v5706_v26  ;;  %15759 = vmatprep.subr.bf16.mxu0 %v17667_v19 }
 0xc81   : > { %v5690_v50 = vadd.f32 %v21485_v0, %v5669_v13  ;;  %15760 = vmatpush3.bf16.msra.mxu0 %v17667_v19  ;;  %v13716_v0 = vld [vmem:[%s24499_s4 + $0x23] ss:$0 sm:$0xff] }
 0xc82   : > { %15761 = vmatprep.subr.bf16.mxu0 %v17668_v24 }
 0xc83   : > { %v5707_v60 = vpack.c.bf16 %v5691_v22, %v5690_v50 }
 0xc85   : > { %15762 = vmatpush3.bf16.msra.mxu0 %v17668_v24 }
 0xc86   : > { %16816 = vmatprep.subr.bf16.mxu0 %v24712_v15 }
 0xc87   : > { %15728 = vmatmul.mubr.msk.bf16.gmra.mrb[148].mxu0 %vm1928_vm2, %v5707_v60 }
 0xd42   : > { %v15717_v11 = vpop.f32.mrb[136].mxu0 }
 0xd43   : > { %v5795_v42 = vpop.f32.mrb[137].mxu0  ;;  %v5804_v62 = vadd.f32 %v15717_v11, %v13716_v0 }
 0xd44   : > { %v15718_v43 = vpop.f32.mrb[138].mxu0  ;;  %v5796_v55 = vadd.f32 %v13716_v0, %v5795_v42  ;;  %v21575_v42 = vld [vmem:[%s24499_s4 + $0x24] ss:$0 sm:$0xff] }
 0xd45   : > { %v5807_v59 = vadd.f32 %v15718_v43, %v13716_v0  ;;  %v5798_v1 = vpop.f32.mrb[139].mxu0 }
 0xd46   : > { %v5799_v52 = vadd.f32 %v13716_v0, %v5798_v1 }
 0xd47   : > { %v5867_v57 = vpack.c.bf16 %v5807_v59, %v5804_v62 }
 0xd48   : > { %v5866_v29 = vpack.c.bf16 %v5799_v52, %v5796_v55 }
 0xd4a   : > { %v15721_v12 = vpop.f32.mrb[140].mxu0  ;;  %15739 = vmatprep.mubr.msk.bf16.mxu1 %vm1928_vm2, %v5866_v29 }
 0xd4b   : > { %v5811_v6 = vpop.f32.mrb[141].mxu0  ;;  %15740 = vmatmul.mubr.msk.bf16.vlgmr.msra.gmra.mrb[184].mxu1 %vm1928_vm2, %v5867_v57  ;;  %v5820_v31 = vadd.f32 %v15721_v12, %v13716_v0 }
 0xd4c   : > { %v15722_v45 = vpop.f32.mrb[142].mxu0  ;;  %16802 = vmatpush3.bf16.msra.mxu1 %v24712_v15  ;;  %v5812_v47 = vadd.f32 %v13716_v0, %v5811_v6 }
 0xd4d   : > { %v5823_v25 = vadd.f32 %v15722_v45, %v13716_v0  ;;  %v5814_v49 = vpop.f32.mrb[143].mxu0  ;;  %16804 = vmatprep.subr.bf16.mxu1 %v24713_v36 }
 0xd4e   : > { %v5815_v38 = vadd.f32 %v13716_v0, %v5814_v49 }
 0xd4f   : > { %v5869_v40 = vpack.c.bf16 %v5823_v25, %v5820_v31 }
 0xd50   : > { %v5868_v16 = vpack.c.bf16 %v5815_v38, %v5812_v47  ;;  %16806 = vmatpush3.bf16.msra.mxu1 %v24713_v36 }
 0xd51   : > { %16808 = vmatprep.subr.bf16.mxu1 %v24715_v20 }
 0xd52   : > { %v15725_v14 = vpop.f32.mrb[144].mxu0  ;;  %15743 = vmatprep.mubr.msk.bf16.mxu1 %vm1928_vm2, %v5868_v16 }
 0xd53   : > { %v5827_v35 = vpop.f32.mrb[145].mxu0  ;;  %15744 = vmatmul.mubr.msk.bf16.gmra.mrb[188].mxu1 %vm1928_vm2, %v5869_v40  ;;  %v5836_v61 = vadd.f32 %v15725_v14, %v13716_v0 }
 0xd54   : > { %v15726_v18 = vpop.f32.mrb[146].mxu0  ;;  %16810 = vmatpush3.bf16.msra.mxu1 %v24715_v20  ;;  %v5828_v7 = vadd.f32 %v13716_v0, %v5827_v35 }
 0xd55   : > { %v5839_v9 = vadd.f32 %v15726_v18, %v13716_v0  ;;  %v5830_v8 = vpop.f32.mrb[147].mxu0  ;;  %16812 = vmatprep.subr.bf16.mxu1 %v24716_v51 }
 0xd56   : > { %v5831_v32 = vadd.f32 %v13716_v0, %v5830_v8 }
 0xd57   : > { %v5871_v33 = vpack.c.bf16 %v5839_v9, %v5836_v61 }
 0xd58   : > { %v5870_v21 = vpack.c.bf16 %v5831_v32, %v5828_v7  ;;  %16814 = vmatpush3.bf16.msra.mxu1 %v24716_v51 }
 0xd5a   : > { %v15729_v3 = vpop.f32.mrb[148].mxu0  ;;  %15747 = vmatprep.mubr.msk.bf16.mxu1 %vm1928_vm2, %v5870_v21 }
 0xd5b   : > { %v5843_v30 = vpop.f32.mrb[149].mxu0  ;;  %15748 = vmatmul.mubr.msk.bf16.gmra.mrb[192].mxu1 %vm1928_vm2, %v5871_v33  ;;  %v5852_v27 = vadd.f32 %v15729_v3, %v13716_v0 }
 0xd5c   : > { %v15730_v2 = vpop.f32.mrb[150].mxu0  ;;  %v5844_v22 = vadd.f32 %v13716_v0, %v5843_v30 }
 0xd5d   : > { %v5855_v26 = vadd.f32 %v15730_v2, %v13716_v0  ;;  %v5846_v13 = vpop.f32.mrb[151].mxu0 }
 0xd5e   : > { %v5847_v50 = vadd.f32 %v13716_v0, %v5846_v13 }
 0xd5f   : > { %v5873_v60 = vpack.c.bf16 %v5855_v26, %v5852_v27 }
 0xd60   : > { %v5872_v5 = vpack.c.bf16 %v5847_v50, %v5844_v22 }
 0xd62   : > { %15751 = vmatprep.mubr.msk.bf16.mxu1 %vm1928_vm2, %v5872_v5 }
 0xd63   : > { %15752 = vmatmul.mubr.msk.bf16.gmra.mrb[196].mxu1 %vm1928_vm2, %v5873_v60 }
 0xe1e   : > { %v15741_v56 = vpop.f32.mrb[184].mxu1 }
 0xe1f   : > { %v6021_v19 = vadd.f32 %v15741_v56, %v21283_v39  ;;  %v5956_v11 = vpop.f32.mrb[185].mxu1 }
 0xe20   : > { %v6019_v0 = vadd.f32 %v5956_v11, %v21279_v10  ;;  %v15742_v43 = vpop.f32.mrb[186].mxu1 }
 0xe21   : > { %v6022_v62 = vadd.f32 %v15742_v43, %v21291_v46  ;;  %v5959_v59 = vpop.f32.mrb[187].mxu1  ;;  %v6042_v55 = vadd.f32 %v21575_v42, %v6021_v19 }
 0xe22   : > { %v6020_v1 = vadd.f32 %v5959_v59, %v21285_v54  ;;  %v6040_v39 = vadd.f32 %v21575_v42, %v6019_v0 }
 0xe23   : > { %v6043_v52 = vadd.f32 %v21575_v42, %v6022_v62 }
 0xe24   : > { %v6041_v57 = vadd.f32 %v21575_v42, %v6020_v1 }
 0xe25   : > { %v6065_v29 = vpack.c.bf16 %v6043_v52, %v6042_v55 }
 0xe26   : > { %v6064_v12 = vpack.c.bf16 %v6041_v57, %v6040_v39  ;;  %v15745_v6 = vpop.f32.mrb[188].mxu1 }
 0xe27   : > { %v6025_v45 = vadd.f32 %v15745_v6, %v21314_v34  ;;  %v5972_v10 = vpop.f32.mrb[189].mxu1 }
 0xe28   : > { %v6023_v31 = vadd.f32 %v5972_v10, %v21306_v28  ;;  %v15746_v46 = vpop.f32.mrb[190].mxu1  ;;  %15763 = vmatprep.mubr.msk.bf16.mxu0 %vm1928_vm2, %v6064_v12 }
 0xe29   : > { %v6026_v54 = vadd.f32 %v15746_v46, %v21323_v53  ;;  %v5975_v25 = vpop.f32.mrb[191].mxu1  ;;  %15764 = vmatmul.mubr.msk.bf16.vlgmr.msra.gmra.mrb[152].mxu0 %vm1928_vm2, %v6065_v29  ;;  %v6046_v47 = vadd.f32 %v21575_v42, %v6025_v45 }
 0xe2a   : > { %v6024_v49 = vadd.f32 %v5975_v25, %v21316_v48  ;;  %16818 = vmatpush3.bf16.msra.mxu0 %v24712_v15  ;;  %v6044_v28 = vadd.f32 %v21575_v42, %v6023_v31 }
 0xe2b   : > { %v6047_v38 = vadd.f32 %v21575_v42, %v6026_v54  ;;  %16820 = vmatprep.subr.bf16.mxu0 %v24713_v36 }
 0xe2c   : > { %v6045_v34 = vadd.f32 %v21575_v42, %v6024_v49 }
 0xe2d   : > { %v6067_v40 = vpack.c.bf16 %v6047_v38, %v6046_v47 }
 0xe2e   : > { %v6066_v16 = vpack.c.bf16 %v6045_v34, %v6044_v28  ;;  %v15749_v53 = vpop.f32.mrb[192].mxu1  ;;  %16822 = vmatpush3.bf16.msra.mxu0 %v24713_v36 }
 0xe2f   : > { %v6029_v14 = vadd.f32 %v15749_v53, %v21346_v44  ;;  %v5988_v48 = vpop.f32.mrb[193].mxu1  ;;  %16824 = vmatprep.subr.bf16.mxu0 %v24715_v20 }
 0xe30   : > { %v6027_v35 = vadd.f32 %v5988_v48, %v21338_v63  ;;  %v15750_v18 = vpop.f32.mrb[194].mxu1  ;;  %15767 = vmatprep.mubr.msk.bf16.mxu0 %vm1928_vm2, %v6066_v16 }
 0xe31   : > { %v6030_v61 = vadd.f32 %v15750_v18, %v21355_v23  ;;  %v5991_v9 = vpop.f32.mrb[195].mxu1  ;;  %15768 = vmatmul.mubr.msk.bf16.gmra.mrb[156].mxu0 %vm1928_vm2, %v6067_v40  ;;  %v6050_v7 = vadd.f32 %v21575_v42, %v6029_v14 }
 0xe32   : > { %v6028_v8 = vadd.f32 %v5991_v9, %v21348_v58  ;;  %16826 = vmatpush3.bf16.msra.mxu0 %v24715_v20  ;;  %v6048_v63 = vadd.f32 %v21575_v42, %v6027_v35 }
 0xe33   : > { %v6051_v44 = vadd.f32 %v21575_v42, %v6030_v61  ;;  %16828 = vmatprep.subr.bf16.mxu0 %v24716_v51 }
 0xe34   : > { %v6049_v32 = vadd.f32 %v21575_v42, %v6028_v8 }
 0xe35   : > { %v6069_v33 = vpack.c.bf16 %v6051_v44, %v6050_v7 }
 0xe36   : > { %v6068_v21 = vpack.c.bf16 %v6049_v32, %v6048_v63  ;;  %v15753_v23 = vpop.f32.mrb[196].mxu1  ;;  %16830 = vmatpush3.bf16.msra.mxu0 %v24716_v51 }
 0xe37   : > { %v6033_v3 = vadd.f32 %v15753_v23, %v21378_v41  ;;  %v6004_v58 = vpop.f32.mrb[197].mxu1  ;;  %16832 = vmatprep.subr.bf16.mxu0 %v24712_v15 }
 0xe38   : > { %v6031_v30 = vadd.f32 %v6004_v58, %v21370_v4  ;;  %v15754_v2 = vpop.f32.mrb[198].mxu1  ;;  %15771 = vmatprep.mubr.msk.bf16.mxu0 %vm1928_vm2, %v6068_v21 }
 0xe39   : > { %v6034_v27 = vadd.f32 %v15754_v2, %v21387_v17  ;;  %v6007_v26 = vpop.f32.mrb[199].mxu1  ;;  %15772 = vmatmul.mubr.msk.bf16.gmra.mrb[160].mxu0 %vm1928_vm2, %v6069_v33  ;;  %v6054_v22 = vadd.f32 %v21575_v42, %v6033_v3  ;;  %v21627_v17 = vld [vmem:[%s24499_s4 + $0x25] ss:$0 sm:$0xff] }
 0xe3a   : > { %v6032_v13 = vadd.f32 %v6007_v26, %v21380_v37  ;;  %v6052_v41 = vadd.f32 %v21575_v42, %v6031_v30 }
 0xe3b   : > { %v6055_v50 = vadd.f32 %v21575_v42, %v6034_v27 }
 0xe3c   : > { %v6053_v60 = vadd.f32 %v21575_v42, %v6032_v13 }
 0xe3d   : > { %v6071_v5 = vpack.c.bf16 %v6055_v50, %v6054_v22 }
 0xe3e   : > { %v6070_v4 = vpack.c.bf16 %v6053_v60, %v6052_v41 }
 0xe40   : > { %15775 = vmatprep.mubr.msk.bf16.mxu0 %vm1928_vm2, %v6070_v4 }
 0xe41   : > { %15776 = vmatmul.mubr.msk.bf16.gmra.mrb[164].mxu0 %vm1928_vm2, %v6071_v5 }
 0xefc   : > { %v15765_v37 = vpop.f32.mrb[152].mxu0 }
 0xefd   : > { %v6168_v24 = vadd.f32 %v15765_v37, %v21627_v17  ;;  %v6159_v56 = vpop.f32.mrb[153].mxu0 }
 0xefe   : > { %v6160_v19 = vadd.f32 %v21627_v17, %v6159_v56  ;;  %v15766_v11 = vpop.f32.mrb[154].mxu0 }
 0xeff   : > { %v6162_v0 = vpop.f32.mrb[155].mxu0  ;;  %v6171_v43 = vadd.f32 %v15766_v11, %v21627_v17  ;;  %v21635_v59 = vmax.f32 %v6168_v24, 0.0  ;;  %v17669_v11 = vld [vmem:[#allocation2 + $0x1e0] sm:$0xff]  }
 0xf00   : > { %v21631_v42 = vmax.f32 %v6160_v19, 0.0  ;;  %v6163_v62 = vadd.f32 %v21627_v17, %v6162_v0  ;;  %15859 = vmatprep.subr.bf16.mxu1 %v17669_v11  ;;  %v17670_v0 = vld [vmem:[#allocation2 + $0x1e8] sm:$0xff]  }
 0xf01   : > { %v21643_v52 = vmax.f32 %v6171_v43, 0.0  ;;  %v6433_v6 = vmul.f32 %v21635_v59, %v21635_v59  ;;  %v17671_v43 = vld [vmem:[#allocation2 + $0x1f0] sm:$0xff]  }
 0xf02   : > { %v21637_v1 = vmax.f32 %v6163_v62, 0.0  ;;  %15795 = vmatprep.mubr.msk.f32.mxu1 %vm1928_vm2, %v21631_v42  ;;  %v6431_v55 = vmul.f32 %v21631_v42, %v21631_v42  ;;  %v17672_v62 = vld [vmem:[#allocation2 + $0x1f8] sm:$0xff]  }
 0xf03   : > { %v6434_v49 = vmul.f32 %v21643_v52, %v21643_v52 }
 0xf04   : > { %v6432_v39 = vmul.f32 %v21637_v1, %v21637_v1  ;;  %v15769_v57 = vpop.f32.mrb[156].mxu0  ;;  %15796 = vmatmul.mubr.msk.f32.vlgmr.msra.gmra.mrb[200].mxu1 %vm1928_vm2, %v21637_v1  ;;  %15835 = vmatprep.mubr.msk.f32.mxu0 %vm1928_vm2, %v6431_v55  ;;  %v21765_v55 = vld [vmem:[#allocation2 + $0x200] sm:$0xff]  }
 0xf05   : > { %v6184_v29 = vadd.f32 %v15769_v57, %v21627_v17  ;;  %v6175_v12 = vpop.f32.mrb[157].mxu0  ;;  %15798 = vmatprep.mubr.msk.f32.mxu1 %vm1928_vm2, %v21635_v59  ;;  %15860 = vmatpush3.bf16.msra.mxu1 %v17669_v11 }
 0xf06   : > { %v6176_v45 = vadd.f32 %v21627_v17, %v6175_v12  ;;  %v15770_v10 = vpop.f32.mrb[158].mxu0  ;;  %15836 = vmatmul.mubr.msk.f32.vlgmr.msra.gmra.mrb[168].mxu0 %vm1928_vm2, %v6432_v39  ;;  %15861 = vmatprep.subr.bf16.mxu1 %v17670_v0 }
 0xf07   : > { %v6178_v31 = vpop.f32.mrb[159].mxu0  ;;  %15838 = vmatprep.mubr.msk.f32.mxu0 %vm1928_vm2, %v6433_v6  ;;  %16834 = vmatpush3.bf16.msra.mxu0 %v24712_v15  ;;  %v6187_v54 = vadd.f32 %v15770_v10, %v21627_v17  ;;  %v21668_v47 = vmax.f32 %v6184_v29, 0.0 }
 0xf08   : > { %v21659_v46 = vmax.f32 %v6176_v45, 0.0  ;;  %v6179_v25 = vadd.f32 %v21627_v17, %v6178_v31  ;;  %15799 = vmatmul.mubr.msk.f32.gmra.mrb[202].mxu1 %vm1928_vm2, %v21643_v52  ;;  %16836 = vmatprep.subr.bf16.mxu0 %v24713_v36 }
 0xf09   : > { %24818 = vst [vmem:[#allocation39_spill] sm:$0xff] %v21668_v47  ;;  %v21678_v34 = vmax.f32 %v6187_v54, 0.0  ;;  %v6437_v48 = vmul.f32 %v21668_v47, %v21668_v47  ;;  %15862 = vmatpush3.bf16.msra.mxu1 %v17670_v0 }
 0xf0a   : > { %24817 = vst [vmem:[#allocation42_spill] sm:$0xff] %v21659_v46  ;;  %v21670_v38 = vmax.f32 %v6179_v25, 0.0  ;;  %15801 = vmatprep.mubr.msk.f32.mxu1 %vm1928_vm2, %v21659_v46  ;;  %15839 = vmatmul.mubr.msk.f32.gmra.mrb[170].mxu0 %vm1928_vm2, %v6434_v49  ;;  %v6435_v28 = vmul.f32 %v21659_v46, %v21659_v46 }
 0xf0b   : > { %16838 = vmatpush3.bf16.msra.mxu0 %v24713_v36  ;;  %24820 = vst [vmem:[#allocation37_spill] sm:$0xff] %v21678_v34  ;;  %v6438_v44 = vmul.f32 %v21678_v34, %v21678_v34  ;;  %15863 = vmatprep.subr.bf16.mxu1 %v17671_v43 }
 0xf0c   : > { %24819 = vst [vmem:[#allocation41_spill] sm:$0xff] %v21670_v38  ;;  %v15773_v40 = vpop.f32.mrb[160].mxu0  ;;  %15802 = vmatmul.mubr.msk.f32.gmra.mrb[204].mxu1 %vm1928_vm2, %v21670_v38  ;;  %15841 = vmatprep.mubr.msk.f32.mxu0 %vm1928_vm2, %v6435_v28  ;;  %v6436_v16 = vmul.f32 %v21670_v38, %v21670_v38 }
 0xf0d   : > { %v6200_v53 = vadd.f32 %v15773_v40, %v21627_v17  ;;  %v6191_v14 = vpop.f32.mrb[161].mxu0  ;;  %15804 = vmatprep.mubr.msk.f32.mxu1 %vm1928_vm2, %v21668_v47  ;;  %16840 = vmatprep.subr.bf16.mxu0 %v24715_v20 }
 0xf0e   : > { %v6192_v35 = vadd.f32 %v21627_v17, %v6191_v14  ;;  %v15774_v18 = vpop.f32.mrb[162].mxu0  ;;  %15842 = vmatmul.mubr.msk.f32.gmra.mrb[172].mxu0 %vm1928_vm2, %v6436_v16  ;;  %15864 = vmatpush3.bf16.msra.mxu1 %v17671_v43 }
 0xf0f   : > { %v6194_v61 = vpop.f32.mrb[163].mxu0  ;;  %15844 = vmatprep.mubr.msk.f32.mxu0 %vm1928_vm2, %v6437_v48  ;;  %16842 = vmatpush3.bf16.msra.mxu0 %v24715_v20  ;;  %v6203_v8 = vadd.f32 %v15774_v18, %v21627_v17  ;;  %v21704_v63 = vmax.f32 %v6200_v53, 0.0 }
 0xf10   : > { %v21695_v9 = vmax.f32 %v6192_v35, 0.0  ;;  %v6195_v7 = vadd.f32 %v21627_v17, %v6194_v61  ;;  %15805 = vmatmul.mubr.msk.f32.gmra.mrb[206].mxu1 %vm1928_vm2, %v21678_v34  ;;  %16844 = vmatprep.subr.bf16.mxu0 %v24716_v51 }
 0xf11   : > { %24822 = vst [vmem:[#allocation47_spill] sm:$0xff] %v21704_v63  ;;  %v21714_v21 = vmax.f32 %v6203_v8, 0.0  ;;  %v6441_v2 = vmul.f32 %v21704_v63, %v21704_v63  ;;  %15865 = vmatprep.subr.bf16.mxu1 %v17672_v62 }
 0xf12   : > { %24821 = vst [vmem:[#allocation50_spill] sm:$0xff] %v21695_v9  ;;  %v21706_v32 = vmax.f32 %v6195_v7, 0.0  ;;  %15807 = vmatprep.mubr.msk.f32.mxu1 %vm1928_vm2, %v21695_v9  ;;  %15845 = vmatmul.mubr.msk.f32.gmra.mrb[174].mxu0 %vm1928_vm2, %v6438_v44  ;;  %v6439_v33 = vmul.f32 %v21695_v9, %v21695_v9 }
 0xf13   : > { %16846 = vmatpush3.bf16.msra.mxu0 %v24716_v51  ;;  %24824 = vst [vmem:[#allocation45_spill] sm:$0xff] %v21714_v21  ;;  %v6442_v60 = vmul.f32 %v21714_v21, %v21714_v21  ;;  %15866 = vmatpush3.bf16.msra.mxu1 %v17672_v62 }
 0xf14   : > { %24823 = vst [vmem:[#allocation49_spill] sm:$0xff] %v21706_v32  ;;  %v15777_v23 = vpop.f32.mrb[164].mxu0  ;;  %15808 = vmatmul.mubr.msk.f32.gmra.mrb[208].mxu1 %vm1928_vm2, %v21706_v32  ;;  %15847 = vmatprep.mubr.msk.f32.mxu0 %vm1928_vm2, %v6439_v33  ;;  %v6440_v3 = vmul.f32 %v21706_v32, %v21706_v32 }
 0xf15   : > { %v6216_v58 = vadd.f32 %v15777_v23, %v21627_v17  ;;  %v6207_v30 = vpop.f32.mrb[165].mxu0  ;;  %15810 = vmatprep.mubr.msk.f32.mxu1 %vm1928_vm2, %v21704_v63  ;;  %16848 = vmatprep.subr.bf16.mxu0 %v24712_v15 }
 0xf16   : > { %v6208_v27 = vadd.f32 %v21627_v17, %v6207_v30  ;;  %v15778_v26 = vpop.f32.mrb[166].mxu0  ;;  %15848 = vmatmul.mubr.msk.f32.gmra.mrb[176].mxu0 %vm1928_vm2, %v6440_v3  ;;  %15883 = vmatprep.subr.bf16.mxu1 %v21765_v55 }
 0xf17   : > { %v6210_v13 = vpop.f32.mrb[167].mxu0  ;;  %15850 = vmatprep.mubr.msk.f32.mxu0 %vm1928_vm2, %v6441_v2  ;;  %v6219_v50 = vadd.f32 %v15778_v26, %v21627_v17  ;;  %v21738_v5 = vmax.f32 %v6216_v58, 0.0 }
 0xf18   : > { %v21730_v22 = vmax.f32 %v6208_v27, 0.0  ;;  %v6211_v41 = vadd.f32 %v21627_v17, %v6210_v13  ;;  %15811 = vmatmul.mubr.msk.f32.gmra.mrb[210].mxu1 %vm1928_vm2, %v21714_v21 }
 0xf19   : > { %24826 = vst [vmem:[#allocation55_spill] sm:$0xff] %v21738_v5  ;;  %v21747_v24 = vmax.f32 %v6219_v50, 0.0  ;;  %v6445_v56 = vmul.f32 %v21738_v5, %v21738_v5 }
 0xf1a   : > { %24825 = vst [vmem:[#allocation58_spill] sm:$0xff] %v21730_v22  ;;  %v21740_v4 = vmax.f32 %v6211_v41, 0.0  ;;  %15813 = vmatprep.mubr.msk.f32.mxu1 %vm1928_vm2, %v21730_v22  ;;  %15851 = vmatmul.mubr.msk.f32.gmra.mrb[178].mxu0 %vm1928_vm2, %v6442_v60  ;;  %v6443_v37 = vmul.f32 %v21730_v22, %v21730_v22 }
 0xf1b   : > { %24828 = vst [vmem:[#allocation53_spill] sm:$0xff] %v21747_v24  ;;  %v6446_v19 = vmul.f32 %v21747_v24, %v21747_v24 }
 0xf1c   : > { %24827 = vst [vmem:[#allocation57_spill] sm:$0xff] %v21740_v4  ;;  %15814 = vmatmul.mubr.msk.f32.gmra.mrb[212].mxu1 %vm1928_vm2, %v21740_v4  ;;  %15853 = vmatprep.mubr.msk.f32.mxu0 %vm1928_vm2, %v6443_v37  ;;  %v6444_v17 = vmul.f32 %v21740_v4, %v21740_v4 }
 0xf1d   : > { %15816 = vmatprep.mubr.msk.f32.mxu1 %vm1928_vm2, %v21738_v5 }
 0xf1e   : > { %15854 = vmatmul.mubr.msk.f32.gmra.mrb[180].mxu0 %vm1928_vm2, %v6444_v17 }
 0xf1f   : > { %15856 = vmatprep.mubr.msk.f32.mxu0 %vm1928_vm2, %v6445_v56 }
 0xf20   : > { %15817 = vmatmul.mubr.msk.f32.gmra.mrb[214].mxu1 %vm1928_vm2, %v21747_v24 }
 0xf22   : > { %15857 = vmatmul.mubr.msk.f32.gmra.mrb[182].mxu0 %vm1928_vm2, %v6446_v19 }
 0xfd7   : > { %v21768_v39 = vpop.f32.mrb[200].mxu1 }
 0xfd8   : > { %v6641_v57 = vmul.f32 %v21768_v39, %v21768_v39  ;;  %v21772_v29 = vpop.f32.mrb[201].mxu1  ;;  %v6689_v11 = vsub.f32 %v21637_v1, %v21768_v39 }
 0xfd9   : > { %v6640_v12 = vmul.f32 %v21772_v29, %v21772_v29  ;;  %v15837_v6 = vpop.f32.mrb[168].mxu0 }
 0xfda   : > { %v6657_v45 = vsub.f32 %v15837_v6, %v6641_v57  ;;  %v6561_v10 = vpop.f32.mrb[169].mxu0  ;;  %v6688_v57 = vsub.f32 %v21631_v42, %v21772_v29 }
 0xfdb   : > { %v6656_v31 = vsub.f32 %v6561_v10, %v6640_v12  ;;  %v21776_v54 = vpop.f32.mrb[202].mxu1 }
 0xfdc   : > { %v6673_v25 = vmax.f32 %v6657_v45, 0.0  ;;  %v6643_v49 = vmul.f32 %v21776_v54, %v21776_v54  ;;  %v21780_v28 = vpop.f32.mrb[203].mxu1  ;;  %v6691_v12 = vsub.f32 %v21643_v52, %v21776_v54 }
 0xfdd   : > { %v6672_v40 = vmax.f32 %v6656_v31, 0.0  ;;  %v6642_v16 = vmul.f32 %v21780_v28, %v21780_v28  ;;  %v15840_v53 = vpop.f32.mrb[170].mxu0  ;;  %v6690_v31 = vsub.f32 %v21635_v59, %v21780_v28 }
 0xfde   : > { %v6705_v14 = vadd.f32 1e-05, %v6673_v25  ;;  %v6659_v48 = vsub.f32 %v15840_v53, %v6643_v49  ;;  %v6571_v35 = vpop.f32.mrb[171].mxu0 }
 0xfdf   : > { %v6704_v18 = vadd.f32 1e-05, %v6672_v40  ;;  %v6658_v61 = vsub.f32 %v6571_v35, %v6642_v16  ;;  %v21784_v8 = vpop.f32.mrb[204].mxu1 }
 0xfe0   : > { %18251 = vrsqrt.f32 %v6705_v14  ;;  %v6675_v7 = vmax.f32 %v6659_v48, 0.0  ;;  %v6645_v44 = vmul.f32 %v21784_v8, %v21784_v8  ;;  %v21788_v33 = vpop.f32.mrb[205].mxu1  ;;  %v6693_v29 = vsub.f32 %v21670_v38, %v21784_v8 }
 0xfe1   : > { %18253 = vrsqrt.f32 %v6704_v18  ;;  %v6674_v23 = vmax.f32 %v6658_v61, 0.0  ;;  %v6644_v3 = vmul.f32 %v21788_v33, %v21788_v33  ;;  %v15843_v58 = vpop.f32.mrb[172].mxu0  ;;  %v6692_v28 = vsub.f32 %v21659_v46, %v21788_v33 }
 0xfe2   : > { %v6707_v30 = vadd.f32 1e-05, %v6675_v7  ;;  %v6661_v2 = vsub.f32 %v15843_v58, %v6645_v44  ;;  %v6581_v27 = vpop.f32.mrb[173].mxu0 }
 0xfe3   : > { %v6706_v26 = vadd.f32 1e-05, %v6674_v23  ;;  %v6660_v13 = vsub.f32 %v6581_v27, %v6644_v3  ;;  %v21792_v50 = vpop.f32.mrb[206].mxu1 }
 0xfe4   : > { %18255 = vrsqrt.f32 %v6707_v30  ;;  %v6677_v41 = vmax.f32 %v6661_v2, 0.0  ;;  %v6647_v60 = vmul.f32 %v21792_v50, %v21792_v50  ;;  %v21796_v37 = vpop.f32.mrb[207].mxu1  ;;  %v6695_v14 = vsub.f32 %v21678_v34, %v21792_v50 }
 0xfe5   : > { %18257 = vrsqrt.f32 %v6706_v26  ;;  %v6676_v17 = vmax.f32 %v6660_v13, 0.0  ;;  %v6646_v56 = vmul.f32 %v21796_v37, %v21796_v37  ;;  %v15846_v19 = vpop.f32.mrb[174].mxu0  ;;  %v6694_v8 = vsub.f32 %v21668_v47, %v21796_v37 }
 0xfe6   : > { %v6709_v0 = vadd.f32 1e-05, %v6677_v41  ;;  %v6663_v43 = vsub.f32 %v15846_v19, %v6647_v60  ;;  %v6591_v62 = vpop.f32.mrb[175].mxu0 }
 0xfe7   : > { %v6708_v6 = vadd.f32 1e-05, %v6676_v17  ;;  %v6662_v45 = vsub.f32 %v6591_v62, %v6646_v56  ;;  %v21806_v10 = vpop.f32.mrb[208].mxu1  ;;  %v21837_v17 = vld [vmem:[%s24499_s4 + $0x26] ss:$0 sm:$0xff] }
 0xfe8   : > { %18259 = vrsqrt.f32 %v6709_v0  ;;  %v6679_v25 = vmax.f32 %v6663_v43, 0.0  ;;  %v6649_v39 = vmul.f32 %v21806_v10, %v21806_v10  ;;  %v21812_v49 = vpop.f32.mrb[209].mxu1  ;;  %v6697_v27 = vsub.f32 %v21706_v32, %v21806_v10 }
 0xfe9   : > { %18261 = vrsqrt.f32 %v6708_v6  ;;  %v6678_v40 = vmax.f32 %v6662_v45, 0.0  ;;  %v6648_v54 = vmul.f32 %v21812_v49, %v21812_v49  ;;  %v15849_v16 = vpop.f32.mrb[176].mxu0  ;;  %v6696_v56 = vsub.f32 %v21695_v9, %v21812_v49 }
 0xfea   : > { %v18252_v53 = vpop.eup %18251  ;;  %v6711_v48 = vadd.f32 1e-05, %v6679_v25  ;;  %v6665_v35 = vsub.f32 %v15849_v16, %v6649_v39  ;;  %v6601_v18 = vpop.f32.mrb[177].mxu0 }
 0xfeb   : > { %v18254_v61 = vpop.eup %18253  ;;  %v6737_v7 = vmul.f32 %v18252_v53, %v6689_v11  ;;  %v6710_v44 = vadd.f32 1e-05, %v6678_v40  ;;  %v6664_v23 = vsub.f32 %v6601_v18, %v6648_v54  ;;  %v21824_v3 = vpop.f32.mrb[210].mxu1 }
 0xfec   : > { %v6736_v58 = vmul.f32 %v18254_v61, %v6688_v57  ;;  %18263 = vrsqrt.f32 %v6711_v48  ;;  %v6681_v30 = vmax.f32 %v6665_v35, 0.0  ;;  %v6651_v33 = vmul.f32 %v21824_v3, %v21824_v3  ;;  %v21828_v2 = vpop.f32.mrb[211].mxu1 }
 0xfed   : > { %18265 = vrsqrt.f32 %v6710_v44  ;;  %v6680_v26 = vmax.f32 %v6664_v23, 0.0  ;;  %v6650_v13 = vmul.f32 %v21828_v2, %v21828_v2  ;;  %v15852_v41 = vpop.f32.mrb[178].mxu0  ;;  %v6699_v11 = vsub.f32 %v21714_v21, %v21824_v3  ;;  %v21856_v44 = vld [vmem:[%s24499_s4 + $0x27] ss:$0 sm:$0xff] }
 0xfee   : > { %v18256_v60 = vpop.eup %18255  ;;  %v6713_v19 = vadd.f32 1e-05, %v6681_v30  ;;  %v6667_v0 = vsub.f32 %v15852_v41, %v6651_v33  ;;  %v6611_v43 = vpop.f32.mrb[179].mxu0  ;;  %v6698_v45 = vsub.f32 %v21704_v63, %v21828_v2  ;;  %v6757_v18 = vmul.f32 %v21837_v17, %v6736_v58 }
 0xfef   : > { %v18258_v62 = vpop.eup %18257  ;;  %v6739_v57 = vmul.f32 %v18256_v60, %v6691_v12  ;;  %v6712_v6 = vadd.f32 1e-05, %v6680_v26  ;;  %v6666_v25 = vsub.f32 %v6611_v43, %v6650_v13  ;;  %v21845_v39 = vpop.f32.mrb[212].mxu1  ;;  %v6758_v26 = vmul.f32 %v21837_v17, %v6737_v7 }
 0xff0   : > { %v6738_v40 = vmul.f32 %v18258_v62, %v6690_v31  ;;  %18267 = vrsqrt.f32 %v6713_v19  ;;  %v6683_v54 = vmax.f32 %v6667_v0, 0.0  ;;  %v6653_v16 = vmul.f32 %v21845_v39, %v21845_v39  ;;  %v21849_v53 = vpop.f32.mrb[213].mxu1 }
 0xff1   : > { %v6760_v48 = vmul.f32 %v21837_v17, %v6739_v57  ;;  %18269 = vrsqrt.f32 %v6712_v6  ;;  %v6682_v35 = vmax.f32 %v6666_v25, 0.0  ;;  %v15855_v12 = vpop.f32.mrb[180].mxu0  ;;  %v6652_v30 = vmul.f32 %v21849_v53, %v21849_v53 }
 0xff2   : > { %v18260_v61 = vpop.eup %18259  ;;  %v6759_v31 = vmul.f32 %v21837_v17, %v6738_v40  ;;  %v6715_v23 = vadd.f32 1e-05, %v6683_v54  ;;  %v6621_v33 = vpop.f32.mrb[181].mxu0  ;;  %v6669_v19 = vsub.f32 %v15855_v12, %v6653_v16 }
 0xff3   : > { %v18262_v13 = vpop.eup %18261  ;;  %v21863_v41 = vadd.f32 %v21856_v44, %v6760_v48  ;;  %v6741_v58 = vmul.f32 %v18260_v61, %v6693_v29  ;;  %v6714_v60 = vadd.f32 1e-05, %v6682_v35  ;;  %v21865_v0 = vpop.f32.mrb[214].mxu1  ;;  %v6668_v57 = vsub.f32 %v6621_v33, %v6652_v30 }
 0xff4   : > { %v21868_v43 = vadd.f32 %v21856_v44, %v6759_v31  ;;  %v6740_v62 = vmul.f32 %v18262_v13, %v6692_v28  ;;  %18271 = vrsqrt.f32 %v6715_v23  ;;  %v21870_v6 = vpop.f32.mrb[215].mxu1  ;;  %v6685_v7 = vmax.f32 %v6669_v19, 0.0 }
 0xff5   : > { %v13792_v25 = vmul.f32 -1.442695, %v21863_v41  ;;  %18273 = vrsqrt.f32 %v6714_v60  ;;  %v6655_v40 = vmul.f32 %v21865_v0, %v21865_v0  ;;  %v15858_v29 = vpop.f32.mrb[182].mxu0  ;;  %v6701_v48 = vsub.f32 %v21740_v4, %v21845_v39 }
 0xff6   : > { %v18264_v54 = vpop.eup %18263  ;;  %v13791_v16 = vmul.f32 -1.442695, %v21868_v43  ;;  %v6684_v35 = vmax.f32 %v6668_v57, 0.0  ;;  %v6654_v28 = vmul.f32 %v21870_v6, %v21870_v6  ;;  %v6631_v12 = vpop.f32.mrb[183].mxu0  ;;  %v6700_v23 = vsub.f32 %v21730_v22, %v21849_v53 }
 0xff7   : > { %v18266_v61 = vpop.eup %18265  ;;  %18275 = vpow2.f32 %v13792_v25  ;;  %v6743_v31 = vmul.f32 %v18264_v54, %v6695_v14  ;;  %v6717_v30 = vadd.f32 1e-05, %v6685_v7  ;;  %v6671_v60 = vsub.f32 %v15858_v29, %v6655_v40 }
 0xff8   : > { %18277 = vpow2.f32 %v13791_v16  ;;  %v6742_v33 = vmul.f32 %v18266_v61, %v6694_v8  ;;  %v6716_v13 = vadd.f32 1e-05, %v6684_v35  ;;  %v6670_v19 = vsub.f32 %v6631_v12, %v6654_v28 }
 0xff9   : > { %18279 = vrsqrt.f32 %v6717_v30  ;;  %v21889_v57 = vadd.f32 %v21856_v44, %v6757_v18  ;;  %v21892_v25 = vadd.f32 %v21856_v44, %v6758_v26  ;;  %v6687_v14 = vmax.f32 %v6671_v60, 0.0 }
 0xffa   : > { %v18268_v50 = vpop.eup %18267  ;;  %18281 = vrsqrt.f32 %v6716_v13  ;;  %v6761_v53 = vmul.f32 %v21837_v17, %v6740_v62  ;;  %v6762_v7 = vmul.f32 %v21837_v17, %v6741_v58  ;;  %v6686_v8 = vmax.f32 %v6670_v19, 0.0 }
 0xffb   : > { %v18270_v54 = vpop.eup %18269  ;;  %v6745_v37 = vmul.f32 %v18268_v50, %v6697_v27  ;;  %v13789_v40 = vmul.f32 -1.442695, %v21889_v57  ;;  %v13790_v18 = vmul.f32 -1.442695, %v21892_v25  ;;  %v6719_v29 = vadd.f32 1e-05, %v6687_v14 }
 0xffc   : > { %v6744_v26 = vmul.f32 %v18270_v54, %v6696_v56  ;;  %v21905_v16 = vadd.f32 %v21856_v44, %v6761_v53  ;;  %v21908_v58 = vadd.f32 %v21856_v44, %v6762_v7  ;;  %v6718_v62 = vadd.f32 1e-05, %v6686_v8 }
 0xffd   : > { %18283 = vpow2.f32 %v13789_v40  ;;  %v6763_v10 = vmul.f32 %v21837_v17, %v6742_v33  ;;  %v6764_v27 = vmul.f32 %v21837_v17, %v6743_v31  ;;  %v6766_v13 = vmul.f32 %v21837_v17, %v6745_v37 }
 0xffe   : > { %v18272_v35 = vpop.eup %18271  ;;  %18285 = vrsqrt.f32 %v6719_v29  ;;  %v13793_v28 = vmul.f32 -1.442695, %v21905_v16  ;;  %v13794_v49 = vmul.f32 -1.442695, %v21908_v58  ;;  %v6765_v56 = vmul.f32 %v21837_v17, %v6744_v26 }
 0xfff   : > { %v18274_v12 = vpop.eup %18273  ;;  %v6747_v61 = vmul.f32 %v18272_v35, %v6699_v11  ;;  %18287 = vrsqrt.f32 %v6718_v62  ;;  %v21919_v30 = vadd.f32 %v21856_v44, %v6763_v10  ;;  %v21922_v33 = vadd.f32 %v21856_v44, %v6764_v27 }
0x1000   : > { %v6746_v31 = vmul.f32 %v18274_v12, %v6698_v45  ;;  %18289 = vpow2.f32 %v13790_v18  ;;  %v21929_v60 = vadd.f32 %v21856_v44, %v6765_v56  ;;  %v21935_v2 = vadd.f32 %v21856_v44, %v6766_v13 }
0x1001   : > { %v18276_v19 = vpop.eup %18275  ;;  %18291 = vpow2.f32 %v13793_v28  ;;  %v13795_v3 = vmul.f32 -1.442695, %v21919_v30  ;;  %v13796_v11 = vmul.f32 -1.442695, %v21922_v33  ;;  %v6768_v50 = vmul.f32 %v21837_v17, %v6747_v61 }
0x1002   : > { %v18278_v14 = vpop.eup %18277  ;;  %v6845_v53 = vadd.f32 1.0, %v18276_v19  ;;  %18293 = vpow2.f32 %v13794_v49  ;;  %v13797_v45 = vmul.f32 -1.442695, %v21929_v60  ;;  %v6767_v37 = vmul.f32 %v21837_v17, %v6746_v31 }
0x1003   : > { %v18280_v7 = vpop.eup %18279  ;;  %v6844_v54 = vadd.f32 1.0, %v18278_v14  ;;  %18295 = vpow2.f32 %v13795_v3  ;;  %v21940_v8 = vadd.f32 %v21856_v44, %v6768_v50  ;;  %v13798_v26 = vmul.f32 -1.442695, %v21935_v2 }
0x1004   : > { %v18282_v40 = vpop.eup %18281  ;;  %18297 = vrcp.f32 %v6845_v53  ;;  %v6749_v18 = vmul.f32 %v18280_v7, %v6701_v48  ;;  %v21947_v62 = vadd.f32 %v21856_v44, %v6767_v37  ;;  %v6703_v10 = vsub.f32 %v21747_v24, %v21865_v0 }
0x1005   : > { %18299 = vrcp.f32 %v6844_v54  ;;  %v6748_v29 = vmul.f32 %v18282_v40, %v6700_v23  ;;  %v13800_v39 = vmul.f32 -1.442695, %v21940_v8  ;;  %v6702_v23 = vsub.f32 %v21738_v5, %v21870_v6 }
0x1006   : > { %18301 = vpow2.f32 %v13796_v11  ;;  %v6770_v27 = vmul.f32 %v21837_v17, %v6749_v18  ;;  %v13799_v28 = vmul.f32 -1.442695, %v21947_v62 }
0x1007   : > { %v18284_v35 = vpop.eup %18283  ;;  %18303 = vpow2.f32 %v13797_v45  ;;  %v6769_v48 = vmul.f32 %v21837_v17, %v6748_v29 }
0x1008   : > { %v18286_v49 = vpop.eup %18285  ;;  %v6842_v56 = vadd.f32 1.0, %v18284_v35  ;;  %18305 = vpow2.f32 %v13798_v26  ;;  %v21958_v12 = vadd.f32 %v21856_v44, %v6770_v27 }
0x1009   : > { %v18288_v0 = vpop.eup %18287  ;;  %v6751_v61 = vmul.f32 %v18286_v49, %v6703_v10  ;;  %18307 = vpow2.f32 %v13799_v28  ;;  %v21961_v31 = vadd.f32 %v21856_v44, %v6769_v48 }
0x100a   : > { %v18290_v13 = vpop.eup %18289  ;;  %v6750_v19 = vmul.f32 %v18288_v0, %v6702_v23  ;;  %18309 = vrcp.f32 %v6842_v56  ;;  %v13802_v3 = vmul.f32 -1.442695, %v21958_v12 }
0x100b   : > { %v18292_v11 = vpop.eup %18291  ;;  %v6843_v50 = vadd.f32 1.0, %v18290_v13  ;;  %18311 = vpow2.f32 %v13800_v39  ;;  %v6772_v6 = vmul.f32 %v21837_v17, %v6751_v61  ;;  %v13801_v37 = vmul.f32 -1.442695, %v21961_v31 }
0x100c   : > { %v18294_v14 = vpop.eup %18293  ;;  %v6846_v53 = vadd.f32 1.0, %v18292_v11  ;;  %18313 = vpow2.f32 %v13802_v3  ;;  %v6771_v45 = vmul.f32 %v21837_v17, %v6750_v19 }
0x100d   : > { %v18296_v7 = vpop.eup %18295  ;;  %18315 = vrcp.f32 %v6843_v50  ;;  %v6847_v54 = vadd.f32 1.0, %v18294_v14  ;;  %v21972_v27 = vadd.f32 %v21856_v44, %v6772_v6 }
0x100e   : > { %v18298_v40 = vpop.eup %18297  ;;  %18317 = vrcp.f32 %v6846_v53  ;;  %v6848_v18 = vadd.f32 1.0, %v18296_v7  ;;  %v21968_v26 = vadd.f32 %v21856_v44, %v6771_v45 }
0x100f   : > { %v18300_v29 = vpop.eup %18299  ;;  %v6893_v10 = vmul.f32 %v18298_v40, %v21863_v41  ;;  %18319 = vrcp.f32 %v6847_v54  ;;  %v13804_v61 = vmul.f32 -1.442695, %v21972_v27 }
0x1010   : > { %v18302_v35 = vpop.eup %18301  ;;  %v6892_v17 = vmul.f32 %v18300_v29, %v21868_v43  ;;  %18321 = vrcp.f32 %v6848_v18  ;;  %v13803_v28 = vmul.f32 -1.442695, %v21968_v26  ;;  %v17674_v29 = vld [vmem:[#allocation2 + $0x208] sm:$0xff]  }
0x1011   : > { %v18304_v39 = vpop.eup %18303  ;;  %v6849_v48 = vadd.f32 1.0, %v18302_v35  ;;  %18323 = vpow2.f32 %v13801_v37 }
0x1012   : > { %v18306_v49 = vpop.eup %18305  ;;  %v6915_v23 = vpack.c.bf16 %v6893_v10, %v6892_v17  ;;  %v6850_v56 = vadd.f32 1.0, %v18304_v39  ;;  %18325 = vpow2.f32 %v13803_v28 }
0x1013   : > { %v18308_v0 = vpop.eup %18307  ;;  %18327 = vrcp.f32 %v6849_v48  ;;  %v6851_v41 = vadd.f32 1.0, %v18306_v49  ;;  %v17675_v49 = vld [vmem:[#allocation2 + $0x210] sm:$0xff]  }
0x1014   : > { %v18310_v44 = vpop.eup %18309  ;;  %18329 = vrcp.f32 %v6850_v56  ;;  %v6852_v13 = vadd.f32 1.0, %v18308_v0 }
0x1015   : > { %v18312_v19 = vpop.eup %18311  ;;  %18331 = vrcp.f32 %v6851_v41  ;;  %v6890_v3 = vmul.f32 %v18310_v44, %v21889_v57 }
0x1016   : > { %v18314_v43 = vpop.eup %18313  ;;  %v6853_v11 = vadd.f32 1.0, %v18312_v19  ;;  %18333 = vrcp.f32 %v6852_v13  ;;  %v17676_v13 = vld [vmem:[#allocation2 + $0x218] sm:$0xff]  }
0x1017   : > { %v18316_v50 = vpop.eup %18315  ;;  %v6855_v6 = vadd.f32 1.0, %v18314_v43  ;;  %18335 = vpow2.f32 %v13804_v61 }
0x1018   : > { %v18318_v14 = vpop.eup %18317  ;;  %v6891_v53 = vmul.f32 %v18316_v50, %v21892_v25  ;;  %18337 = vrcp.f32 %v6853_v11 }
0x1019   : > { %v18320_v45 = vpop.eup %18319  ;;  %v6894_v7 = vmul.f32 %v18318_v14, %v21905_v16  ;;  %18339 = vrcp.f32 %v6855_v6 }
0x101a   : > { %v18322_v54 = vpop.eup %18321  ;;  %v6914_v37 = vpack.c.bf16 %v6891_v53, %v6890_v3  ;;  %v6895_v40 = vmul.f32 %v18320_v45, %v21908_v58  ;;  %v24830_v53 = vld [vmem:[#allocation26_spill] sm:$0xff] }
0x101b   : > { %v18324_v18 = vpop.eup %18323  ;;  %v6896_v35 = vmul.f32 %v18322_v54, %v21919_v30  ;;  %v24832_v45 = vld [vmem:[#allocation30_spill] sm:$0xff]  ;;  %v24836_v54 = vld [vmem:[#allocation33_spill] sm:$0xff] }
0x101c   : > { %v18326_v57 = vpop.eup %18325  ;;  %15867 = vmatprep.mubr.msk.bf16.mxu1 %vm1928_vm2, %v6914_v37  ;;  %v6916_v10 = vpack.c.bf16 %v6895_v40, %v6894_v7  ;;  %v6854_v17 = vadd.f32 1.0, %v18324_v18  ;;  %v24834_v7 = vld [vmem:[#allocation31_spill] sm:$0xff] }
0x101d   : > { %v18328_v28 = vpop.eup %18327  ;;  %15868 = vmatmul.mubr.msk.bf16.vlgmr.msra.gmra.mrb[216].mxu1 %vm1928_vm2, %v6915_v23  ;;  %v6856_v25 = vadd.f32 1.0, %v18326_v57  ;;  %v13805_v37 = vld [vmem:[%s24499_s4 + $0x28] ss:$0 sm:$0xff]  ;;  %v13818_v40 = vld [vmem:[%s24499_s4 + $0x29] ss:$0 sm:$0xff] }
0x101e   : > { %v18330_v39 = vpop.eup %18329  ;;  %15884 = vmatpush3.bf16.msra.mxu1 %v21765_v55  ;;  %15871 = vmatprep.mubr.msk.bf16.mxu1 %vm1928_vm2, %v6916_v10  ;;  %v6897_v16 = vmul.f32 %v18328_v28, %v21922_v33  ;;  %18341 = vrcp.f32 %v6854_v17  ;;  %v22027_v28 = vld [vmem:[%s24499_s4 + $0x2a] ss:$0 sm:$0xff] }
0x101f   : > { %v18332_v58 = vpop.eup %18331  ;;  %15885 = vmatprep.subr.bf16.mxu1 %v17674_v29  ;;  %v6898_v48 = vmul.f32 %v18330_v39, %v21929_v60  ;;  %18343 = vrcp.f32 %v6856_v25 }
0x1020   : > { %v18334_v56 = vpop.eup %18333  ;;  %v6917_v30 = vpack.c.bf16 %v6897_v16, %v6896_v35  ;;  %v6899_v0 = vmul.f32 %v18332_v58, %v21935_v2 }
0x1021   : > { %v18336_v23 = vpop.eup %18335  ;;  %v6900_v41 = vmul.f32 %v18334_v56, %v21947_v62 }
0x1022   : > { %v18338_v61 = vpop.eup %18337  ;;  %15886 = vmatpush3.bf16.msra.mxu1 %v17674_v29  ;;  %v6918_v55 = vpack.c.bf16 %v6899_v0, %v6898_v48  ;;  %v6857_v44 = vadd.f32 1.0, %v18336_v23  ;;  %v22022_v29 = vadd.f32 %v13818_v40, %v13805_v37 }
0x1023   : > { %15887 = vmatprep.subr.bf16.mxu1 %v17675_v49  ;;  %v6901_v33 = vmul.f32 %v18338_v61, %v21940_v8  ;;  %v18340_v19 = vpop.eup %18339 }
0x1024   : > { %18345 = vrcp.f32 %v6857_v44  ;;  %v6903_v2 = vmul.f32 %v18340_v19, %v21958_v12  ;;  %v24829_v12 = vld [vmem:[#allocation25_spill] sm:$0xff] }
0x1025   : > { %15872 = vmatmul.mubr.msk.bf16.gmra.mrb[220].mxu1 %vm1928_vm2, %v6917_v30  ;;  %v6919_v60 = vpack.c.bf16 %v6901_v33, %v6900_v41 }
0x1026   : > { %15875 = vmatprep.mubr.msk.bf16.mxu1 %vm1928_vm2, %v6918_v55  ;;  %15888 = vmatpush3.bf16.msra.mxu1 %v17675_v49 }
0x1027   : > { %15889 = vmatprep.subr.bf16.mxu1 %v17676_v13 }
0x1028   : > { %v18342_v62 = vpop.eup %18341 }
0x1029   : > { %v6902_v43 = vmul.f32 %v18342_v62, %v21961_v31  ;;  %v18344_v3 = vpop.eup %18343  ;;  %v24831_v31 = vld [vmem:[#allocation28_spill] sm:$0xff] }
0x102a   : > { %15890 = vmatpush3.bf16.msra.mxu1 %v17676_v13  ;;  %v6904_v8 = vmul.f32 %v18344_v3, %v21968_v26  ;;  %v24833_v26 = vld [vmem:[#allocation32_spill] sm:$0xff] }
0x102b   : > { %v6920_v11 = vpack.c.bf16 %v6903_v2, %v6902_v43 }
0x102d   : > { %15876 = vmatmul.mubr.msk.bf16.gmra.mrb[224].mxu1 %vm1928_vm2, %v6919_v60 }
0x102e   : > { %v18346_v50 = vpop.eup %18345  ;;  %15879 = vmatprep.mubr.msk.bf16.mxu1 %vm1928_vm2, %v6920_v11 }
0x102f   : > { %v6905_v6 = vmul.f32 %v18346_v50, %v21972_v27  ;;  %v24835_v27 = vld [vmem:[#allocation34_spill] sm:$0xff] }
0x1031   : > { %v6921_v14 = vpack.c.bf16 %v6905_v6, %v6904_v8 }
0x1035   : > { %15880 = vmatmul.mubr.msk.bf16.gmra.mrb[228].mxu1 %vm1928_vm2, %v6921_v14 }
0x1036   : > { %15891 = vmatprep.mubr.msk.bf16.mxu1 %vm1928_vm2, %v24829_v12 }
0x103d   : > { %15892 = vmatmul.mubr.msk.bf16.vlgmr.msra.gmra.mrb[216].mxu1 %vm1928_vm2, %v24830_v53 }
0x103e   : > { %15895 = vmatprep.mubr.msk.bf16.mxu1 %vm1928_vm2, %v24831_v31 }
0x1045   : > { %15896 = vmatmul.mubr.msk.bf16.gmra.mrb[220].mxu1 %vm1928_vm2, %v24832_v45 }
0x1046   : > { %15899 = vmatprep.mubr.msk.bf16.mxu1 %vm1928_vm2, %v24833_v26 }
0x104d   : > { %15900 = vmatmul.mubr.msk.bf16.gmra.mrb[224].mxu1 %vm1928_vm2, %v24834_v7 }
0x104e   : > { %15903 = vmatprep.mubr.msk.bf16.mxu1 %vm1928_vm2, %v24835_v27 }
0x1055   : > { %15904 = vmatmul.mubr.msk.bf16.gmra.mrb[228].mxu1 %vm1928_vm2, %v24836_v54 }
0x1110   : > { %v15893_v18 = vpop.f32.mrb[216].mxu1 }
0x1111   : > { %v17121_v57 = vadd.f32 %v15893_v18, %v13805_v37  ;;  %v7143_v10 = vpop.f32.mrb[217].mxu1 }
0x1112   : > { %v17124_v35 = vadd.f32 %v13805_v37, %v7143_v10  ;;  %v15894_v17 = vpop.f32.mrb[218].mxu1 }
0x1113   : > { %v7146_v25 = vpop.f32.mrb[219].mxu1  ;;  %v17122_v39 = vadd.f32 %v17121_v57, %v13818_v40  ;;  %v17128_v56 = vadd.f32 %v22022_v29, %v15894_v17 }
0x1114   : > { %v17125_v16 = vadd.f32 %v17124_v35, %v13818_v40  ;;  %v17131_v58 = vadd.f32 %v22022_v29, %v7146_v25 }
0x1115   : > { %v22038_v30 = vadd.f32 %v17122_v39, %v22027_v28  ;;  %v22049_v55 = vadd.f32 %v17128_v56, %v22027_v28 }
0x1116   : > { %v22031_v48 = vadd.f32 %v17125_v16, %v22027_v28  ;;  %v22034_v49 = vadd.f32 %v17131_v58, %v22027_v28 }
0x1118   : > { %v15897_v0 = vpop.f32.mrb[220].mxu1  ;;  %15923 = vmatprep.mubr.msk.f32.mxu0 %vm1928_vm2, %v22031_v48 }
0x1119   : > { %v7159_v23 = vpop.f32.mrb[221].mxu1  ;;  %15924 = vmatmul.mubr.msk.f32.vlgmr.msra.gmra.mrb[184].mxu0 %vm1928_vm2, %v22034_v49  ;;  %v17134_v33 = vadd.f32 %v22022_v29, %v15897_v0 }
0x111a   : > { %v17137_v41 = vadd.f32 %v22022_v29, %v7159_v23  ;;  %16850 = vmatpush3.bf16.msra.mxu0 %v24712_v15  ;;  %v15898_v61 = vpop.f32.mrb[222].mxu1  ;;  %15926 = vmatprep.mubr.msk.f32.mxu0 %vm1928_vm2, %v22038_v30 }
0x111b   : > { %v7162_v44 = vpop.f32.mrb[223].mxu1  ;;  %16852 = vmatprep.subr.bf16.mxu0 %v24713_v36  ;;  %v17140_v2 = vadd.f32 %v22022_v29, %v15898_v61  ;;  %v22068_v62 = vadd.f32 %v17134_v33, %v22027_v28 }
0x111c   : > { %v22054_v13 = vadd.f32 %v17137_v41, %v22027_v28  ;;  %v17143_v19 = vadd.f32 %v22022_v29, %v7162_v44 }
0x111d   : > { %15927 = vmatmul.mubr.msk.f32.gmra.mrb[186].mxu0 %vm1928_vm2, %v22049_v55  ;;  %v22077_v50 = vadd.f32 %v17140_v2, %v22027_v28  ;;  %v7438_v2 = vmul.f32 %v22038_v30, %v22038_v30 }
0x111e   : > { %v22060_v60 = vadd.f32 %v17143_v19, %v22027_v28  ;;  %15929 = vmatprep.mubr.msk.f32.mxu0 %vm1928_vm2, %v22054_v13  ;;  %16854 = vmatpush3.bf16.msra.mxu0 %v24713_v36  ;;  %v7436_v19 = vmul.f32 %v22031_v48, %v22031_v48 }
0x111f   : > { %16856 = vmatprep.subr.bf16.mxu0 %v24715_v20 }
0x1120   : > { %v15901_v43 = vpop.f32.mrb[224].mxu1 }
0x1121   : > { %v7175_v3 = vpop.f32.mrb[225].mxu1  ;;  %15930 = vmatmul.mubr.msk.f32.gmra.mrb[188].mxu0 %vm1928_vm2, %v22060_v60  ;;  %v17146_v14 = vadd.f32 %v22022_v29, %v15901_v43  ;;  %v7440_v43 = vmul.f32 %v22054_v13, %v22054_v13 }
0x1122   : > { %v17149_v11 = vadd.f32 %v22022_v29, %v7175_v3  ;;  %v15902_v8 = vpop.f32.mrb[226].mxu1  ;;  %15932 = vmatprep.mubr.msk.f32.mxu0 %vm1928_vm2, %v22068_v62  ;;  %16858 = vmatpush3.bf16.msra.mxu0 %v24715_v20  ;;  %v7441_v3 = vmul.f32 %v22060_v60, %v22060_v60 }
0x1123   : > { %v7178_v6 = vpop.f32.mrb[227].mxu1  ;;  %16860 = vmatprep.subr.bf16.mxu0 %v24716_v51  ;;  %v17152_v57 = vadd.f32 %v22022_v29, %v15902_v8  ;;  %v22095_v10 = vadd.f32 %v17146_v14, %v22027_v28  ;;  %v7443_v8 = vmul.f32 %v22077_v50, %v22077_v50 }
0x1124   : > { %v22082_v37 = vadd.f32 %v17149_v11, %v22027_v28  ;;  %v17155_v40 = vadd.f32 %v22022_v29, %v7178_v6  ;;  %v7442_v11 = vmul.f32 %v22068_v62, %v22068_v62 }
0x1125   : > { %15933 = vmatmul.mubr.msk.f32.gmra.mrb[190].mxu0 %vm1928_vm2, %v22077_v50  ;;  %v22103_v16 = vadd.f32 %v17152_v57, %v22027_v28 }
0x1126   : > { %v22088_v18 = vadd.f32 %v17155_v40, %v22027_v28  ;;  %15935 = vmatprep.mubr.msk.f32.mxu0 %vm1928_vm2, %v22082_v37  ;;  %16862 = vmatpush3.bf16.msra.mxu0 %v24716_v51  ;;  %v7444_v6 = vmul.f32 %v22082_v37, %v22082_v37  ;;  %v7446_v40 = vmul.f32 %v22095_v10, %v22095_v10 }
0x1127   : > { %v7447_v57 = vmul.f32 %v22103_v16, %v22103_v16 }
0x1128   : > { %v15905_v35 = vpop.f32.mrb[228].mxu1  ;;  %v7445_v14 = vmul.f32 %v22088_v18, %v22088_v18 }
0x1129   : > { %v7191_v17 = vpop.f32.mrb[229].mxu1  ;;  %15936 = vmatmul.mubr.msk.f32.gmra.mrb[192].mxu0 %vm1928_vm2, %v22088_v18  ;;  %v17158_v56 = vadd.f32 %v22022_v29, %v15905_v35 }
0x112a   : > { %v17161_v25 = vadd.f32 %v22022_v29, %v7191_v17  ;;  %v15906_v39 = vpop.f32.mrb[230].mxu1  ;;  %15938 = vmatprep.mubr.msk.f32.mxu0 %vm1928_vm2, %v22095_v10 }
0x112b   : > { %v7194_v58 = vpop.f32.mrb[231].mxu1  ;;  %v17164_v61 = vadd.f32 %v22022_v29, %v15906_v39  ;;  %v22119_v44 = vadd.f32 %v17158_v56, %v22027_v28  ;;  %v17678_v56 = vld [vmem:[#allocation2 + $0x228] sm:$0xff]  }
0x112c   : > { %v22107_v0 = vadd.f32 %v17161_v25, %v22027_v28  ;;  %v17167_v23 = vadd.f32 %v22022_v29, %v7194_v58  ;;  %v7437_v29 = vmul.f32 %v22034_v49, %v22034_v49  ;;  %v17677_v58 = vld [vmem:[#allocation2 + $0x220] sm:$0xff]  }
0x112d   : > { %15939 = vmatmul.mubr.msk.f32.gmra.mrb[194].mxu0 %vm1928_vm2, %v22103_v16  ;;  %v22126_v33 = vadd.f32 %v17164_v61, %v22027_v28  ;;  %v7450_v25 = vmul.f32 %v22119_v44, %v22119_v44  ;;  %15987 = vmatprep.subr.bf16.mxu1 %v17677_v58  ;;  %v17680_v61 = vld [vmem:[#allocation2 + $0x238] sm:$0xff]  }
0x112e   : > { %v22113_v41 = vadd.f32 %v17167_v23, %v22027_v28  ;;  %15941 = vmatprep.mubr.msk.f32.mxu0 %vm1928_vm2, %v22107_v0  ;;  %v7439_v28 = vmul.f32 %v22049_v55, %v22049_v55  ;;  %v7448_v35 = vmul.f32 %v22107_v0, %v22107_v0  ;;  %15988 = vmatpush3.bf16.msra.mxu1 %v17677_v58  ;;  %v17679_v23 = vld [vmem:[#allocation2 + $0x230] sm:$0xff]  }
0x112f   : > { %v7451_v39 = vmul.f32 %v22126_v33, %v22126_v33  ;;  %15989 = vmatprep.subr.bf16.mxu1 %v17678_v56 }
0x1130   : > { %v7449_v17 = vmul.f32 %v22113_v41, %v22113_v41 }
0x1131   : > { %15942 = vmatmul.mubr.msk.f32.gmra.mrb[196].mxu0 %vm1928_vm2, %v22113_v41 }
0x1132   : > { %15944 = vmatprep.mubr.msk.f32.mxu0 %vm1928_vm2, %v22119_v44  ;;  %15990 = vmatpush3.bf16.msra.mxu1 %v17678_v56 }
0x1133   : > { %15991 = vmatprep.subr.bf16.mxu1 %v17679_v23 }
0x1135   : > { %15945 = vmatmul.mubr.msk.f32.gmra.mrb[198].mxu0 %vm1928_vm2, %v22126_v33 }
0x1136   : > { %15963 = vmatprep.mubr.msk.f32.mxu0 %vm1928_vm2, %v7436_v19  ;;  %15992 = vmatpush3.bf16.msra.mxu1 %v17679_v23  ;;  %v8157_v19 = vld [vmem:[%s24500_s5 + $0xa0] sm:$0xff] }
0x1137   : > { %15993 = vmatprep.subr.bf16.mxu1 %v17680_v61 }
0x1139   : > { %15964 = vmatmul.mubr.msk.f32.vlgmr.msra.gmra.mrb[200].mxu0 %vm1928_vm2, %v7437_v29  ;;  %v8158_v29 = vld [vmem:[%s24500_s5 + $0xa8] sm:$0xff] }
0x113a   : > { %15966 = vmatprep.mubr.msk.f32.mxu0 %vm1928_vm2, %v7438_v2  ;;  %15994 = vmatpush3.bf16.msra.mxu1 %v17680_v61  ;;  %v8159_v2 = vld [vmem:[%s24500_s5 + $0xb0] sm:$0xff] }
0x113b   : > { %v8167_v61 = vld [vmem:[%s24500_s5 + $0xf0] sm:$0xff] }
0x113d   : > { %15967 = vmatmul.mubr.msk.f32.gmra.mrb[202].mxu0 %vm1928_vm2, %v7439_v28  ;;  %v22187_v28 = vpack.c.bf16 %v8158_v29, %v8157_v19  ;;  %v8168_v19 = vld [vmem:[%s24500_s5 + $0xf8] sm:$0xff] }
0x113e   : > { %15969 = vmatprep.mubr.msk.f32.mxu0 %vm1928_vm2, %v7440_v43  ;;  %v8160_v43 = vld [vmem:[%s24500_s5 + $0xb8] sm:$0xff] }
0x113f   : > { %16864 = vmatprep.subr.bf16.mxu0 %v22187_v28  ;;  %16896 = vmatprep.subr.bf16.mxu1 %v22187_v28 }
0x1140   : > { %16866 = vmatpush3.bf16.msra.mxu0 %v22187_v28 }
0x1141   : > { %15970 = vmatmul.mubr.msk.f32.gmra.mrb[204].mxu0 %vm1928_vm2, %v7441_v3  ;;  %v22192_v3 = vpack.c.bf16 %v8160_v43, %v8159_v2  ;;  %v22244_v2 = vpack.c.bf16 %v8168_v19, %v8167_v61 }
0x1142   : > { %15972 = vmatprep.mubr.msk.f32.mxu0 %vm1928_vm2, %v7442_v11  ;;  %v8161_v11 = vld [vmem:[%s24500_s5 + $0xc0] sm:$0xff] }
0x1143   : > { %16868 = vmatprep.subr.bf16.mxu0 %v22192_v3 }
0x1144   : > { %16870 = vmatpush3.bf16.msra.mxu0 %v22192_v3 }
0x1145   : > { %15973 = vmatmul.mubr.msk.f32.gmra.mrb[206].mxu0 %vm1928_vm2, %v7443_v8  ;;  %v8162_v8 = vld [vmem:[%s24500_s5 + $0xc8] sm:$0xff] }
0x1146   : > { %15975 = vmatprep.mubr.msk.f32.mxu0 %vm1928_vm2, %v7444_v6  ;;  %v22204_v6 = vpack.c.bf16 %v8162_v8, %v8161_v11 }
0x1148   : > { %16872 = vmatprep.subr.bf16.mxu0 %v22204_v6 }
0x1149   : > { %15976 = vmatmul.mubr.msk.f32.gmra.mrb[208].mxu0 %vm1928_vm2, %v7445_v14  ;;  %v8163_v14 = vld [vmem:[%s24500_s5 + $0xd0] sm:$0xff] }
0x114a   : > { %15978 = vmatprep.mubr.msk.f32.mxu0 %vm1928_vm2, %v7446_v40  ;;  %v8164_v40 = vld [vmem:[%s24500_s5 + $0xd8] sm:$0xff]  ;;  %16874 = vmatpush3.bf16.msra.mxu0 %v22204_v6 }
0x114d   : > { %15979 = vmatmul.mubr.msk.f32.gmra.mrb[210].mxu0 %vm1928_vm2, %v7447_v57 }
0x114e   : > { %15981 = vmatprep.mubr.msk.f32.mxu0 %vm1928_vm2, %v7448_v35  ;;  %v22216_v35 = vpack.c.bf16 %v8164_v40, %v8163_v14 }
0x1150   : > { %16876 = vmatprep.subr.bf16.mxu0 %v22216_v35 }
0x1151   : > { %15982 = vmatmul.mubr.msk.f32.gmra.mrb[212].mxu0 %vm1928_vm2, %v7449_v17 }
0x1152   : > { %15984 = vmatprep.mubr.msk.f32.mxu0 %vm1928_vm2, %v7450_v25  ;;  %v8165_v25 = vld [vmem:[%s24500_s5 + $0xe0] sm:$0xff]  ;;  %16878 = vmatpush3.bf16.msra.mxu0 %v22216_v35 }
0x1155   : > { %15985 = vmatmul.mubr.msk.f32.gmra.mrb[214].mxu0 %vm1928_vm2, %v7451_v39  ;;  %v8166_v39 = vld [vmem:[%s24500_s5 + $0xe8] sm:$0xff] }
0x1156   : > { %v22230_v56 = vpack.c.bf16 %v8166_v39, %v8165_v25 }
0x1158   : > { %16880 = vmatprep.subr.bf16.mxu0 %v22230_v56 }
0x1159   : > { %16882 = vmatpush3.bf16.msra.mxu0 %v22230_v56 }
0x115a   : > { %16884 = vmatprep.subr.bf16.mxu0 %v22244_v2 }
0x115d   : > { %16886 = vmatpush3.bf16.msra.mxu0 %v22244_v2 }
0x11ec   : > { %v22213_v57 = vpop.f32.mrb[184].mxu0 }
0x11ed   : > { %v22218_v17 = vpop.f32.mrb[185].mxu0  ;;  %v7646_v7 = vmul.f32 %v22213_v57, %v22213_v57 }
0x11ee   : > { %v7645_v26 = vmul.f32 %v22218_v17, %v22218_v17 }
0x11f0   : > { %v22227_v58 = vpop.f32.mrb[186].mxu0 }
0x11f1   : > { %v22232_v23 = vpop.f32.mrb[187].mxu0  ;;  %v7648_v4 = vmul.f32 %v22227_v58, %v22227_v58 }
0x11f2   : > { %v7647_v22 = vmul.f32 %v22232_v23, %v22232_v23 }
0x11f4   : > { %v22241_v29 = vpop.f32.mrb[188].mxu0 }
0x11f5   : > { %v22246_v43 = vpop.f32.mrb[189].mxu0  ;;  %v7650_v38 = vmul.f32 %v22241_v29, %v22241_v29 }
0x11f8   : > { %v22249_v11 = vpop.f32.mrb[190].mxu0 }
0x11f9   : > { %v22252_v8 = vpop.f32.mrb[191].mxu0 }
0x11fc   : > { %v22255_v14 = vpop.f32.mrb[192].mxu0 }
0x11fd   : > { %v22257_v40 = vpop.f32.mrb[193].mxu0 }
0x1200   : > { %v22259_v25 = vpop.f32.mrb[194].mxu0 }
0x1201   : > { %v22261_v39 = vpop.f32.mrb[195].mxu0 }
0x1204   : > { %v22263_v61 = vpop.f32.mrb[196].mxu0 }
0x1205   : > { %v22265_v19 = vpop.f32.mrb[197].mxu0 }
0x1208   : > { %v22267_v54 = vpop.f32.mrb[198].mxu0 }
0x1209   : > { %v22269_v27 = vpop.f32.mrb[199].mxu0 }
0x120c   : > { %v15965_v45 = vpop.f32.mrb[200].mxu0 }
0x120d   : > { %v7662_v31 = vsub.f32 %v15965_v45, %v7646_v7  ;;  %v7566_v53 = vpop.f32.mrb[201].mxu0 }
0x120e   : > { %v7661_v12 = vsub.f32 %v7566_v53, %v7645_v26  ;;  %v7649_v53 = vmul.f32 %v22246_v43, %v22246_v43 }
0x120f   : > { %v7678_v24 = vmax.f32 %v7662_v31, 0.0 }
0x1210   : > { %v7677_v5 = vmax.f32 %v7661_v12, 0.0  ;;  %v15968_v32 = vpop.f32.mrb[202].mxu0 }
0x1211   : > { %v7710_v21 = vadd.f32 1e-05, %v7678_v24  ;;  %v7664_v51 = vsub.f32 %v15968_v32, %v7648_v4  ;;  %v7576_v9 = vpop.f32.mrb[203].mxu0  ;;  %v7694_v32 = vsub.f32 %v22034_v49, %v22213_v57 }
0x1212   : > { %v7709_v63 = vadd.f32 1e-05, %v7677_v5  ;;  %v7663_v20 = vsub.f32 %v7576_v9, %v7647_v22  ;;  %v7693_v9 = vsub.f32 %v22031_v48, %v22218_v17 }
0x1213   : > { %18347 = vrsqrt.f32 %v7710_v21  ;;  %v7680_v45 = vmax.f32 %v7664_v51, 0.0  ;;  %v7696_v51 = vsub.f32 %v22049_v55, %v22227_v58  ;;  %v7652_v21 = vmul.f32 %v22249_v11, %v22249_v11 }
0x1214   : > { %18349 = vrsqrt.f32 %v7709_v63  ;;  %v7679_v31 = vmax.f32 %v7663_v20, 0.0  ;;  %v15971_v26 = vpop.f32.mrb[204].mxu0  ;;  %v7651_v63 = vmul.f32 %v22252_v8, %v22252_v8 }
0x1215   : > { %v7712_v7 = vadd.f32 1e-05, %v7680_v45  ;;  %v7666_v34 = vsub.f32 %v15971_v26, %v7650_v38  ;;  %v7586_v12 = vpop.f32.mrb[205].mxu0  ;;  %v7695_v38 = vsub.f32 %v22038_v30, %v22232_v23  ;;  %v7654_v45 = vmul.f32 %v22255_v14, %v22255_v14 }
0x1216   : > { %v7711_v22 = vadd.f32 1e-05, %v7679_v31  ;;  %v7665_v5 = vsub.f32 %v7586_v12, %v7649_v53  ;;  %v7653_v26 = vmul.f32 %v22257_v40, %v22257_v40  ;;  %v7657_v53 = vmul.f32 %v22265_v19, %v22265_v19 }
0x1217   : > { %18351 = vrsqrt.f32 %v7712_v7  ;;  %v7682_v20 = vmax.f32 %v7666_v34, 0.0  ;;  %v22327_v34 = vld [vmem:[%s24499_s4 + $0x2c] ss:$0 sm:$0xff] }
0x1218   : > { %18353 = vrsqrt.f32 %v7711_v22  ;;  %v7681_v4 = vmax.f32 %v7665_v5, 0.0  ;;  %v15974_v24 = vpop.f32.mrb[206].mxu0 }
0x1219   : > { %v7714_v55 = vadd.f32 1e-05, %v7682_v20  ;;  %v7668_v57 = vsub.f32 %v15974_v24, %v7652_v21  ;;  %v7596_v17 = vpop.f32.mrb[207].mxu0  ;;  %v7656_v21 = vmul.f32 %v22259_v25, %v22259_v25  ;;  %v7655_v20 = vmul.f32 %v22261_v39, %v22261_v39 }
0x121a   : > { %v7713_v58 = vadd.f32 1e-05, %v7681_v4  ;;  %v7667_v23 = vsub.f32 %v7596_v17, %v7651_v63  ;;  %v22318_v63 = vld [vmem:[%s24499_s4 + $0x2b] ss:$0 sm:$0xff]  ;;  %v7658_v17 = vmul.f32 %v22263_v61, %v22263_v61 }
0x121b   : > { %18355 = vrsqrt.f32 %v7714_v55  ;;  %v7684_v31 = vmax.f32 %v7668_v57, 0.0 }
0x121c   : > { %18357 = vrsqrt.f32 %v7713_v58  ;;  %v7683_v12 = vmax.f32 %v7667_v23, 0.0  ;;  %v15977_v22 = vpop.f32.mrb[208].mxu0 }
0x121d   : > { %v18348_v5 = vpop.eup %18347  ;;  %v7716_v4 = vadd.f32 1e-05, %v7684_v31  ;;  %v7670_v24 = vsub.f32 %v15977_v22, %v7654_v45  ;;  %v7606_v55 = vpop.f32.mrb[209].mxu0  ;;  %v7660_v45 = vmul.f32 %v22267_v54, %v22267_v54 }
0x121e   : > { %v18350_v57 = vpop.eup %18349  ;;  %v7742_v58 = vmul.f32 %v18348_v5, %v7694_v32  ;;  %v7715_v23 = vadd.f32 1e-05, %v7683_v12  ;;  %v7669_v7 = vsub.f32 %v7606_v55, %v7653_v26  ;;  %v7659_v12 = vmul.f32 %v22269_v27, %v22269_v27 }
0x121f   : > { %v7741_v30 = vmul.f32 %v18350_v57, %v7693_v9  ;;  %18359 = vrsqrt.f32 %v7716_v4  ;;  %v7686_v31 = vmax.f32 %v7670_v24, 0.0 }
0x1220   : > { %18361 = vrsqrt.f32 %v7715_v23  ;;  %v7685_v22 = vmax.f32 %v7669_v7, 0.0  ;;  %v15980_v49 = vpop.f32.mrb[210].mxu0  ;;  %v7763_v32 = vmul.f32 %v22318_v63, %v7742_v58 }
0x1221   : > { %v18352_v26 = vpop.eup %18351  ;;  %v7718_v9 = vadd.f32 1e-05, %v7686_v31  ;;  %v7672_v5 = vsub.f32 %v15980_v49, %v7656_v21  ;;  %v7616_v55 = vpop.f32.mrb[211].mxu0  ;;  %v7762_v57 = vmul.f32 %v22318_v63, %v7741_v30 }
0x1222   : > { %v18354_v48 = vpop.eup %18353  ;;  %v7744_v4 = vmul.f32 %v18352_v26, %v7696_v51  ;;  %v7717_v24 = vadd.f32 1e-05, %v7685_v22  ;;  %v7671_v36 = vsub.f32 %v7616_v55, %v7655_v20  ;;  %v22336_v46 = vadd.f32 %v22327_v34, %v7763_v32 }
0x1223   : > { %v7743_v7 = vmul.f32 %v18354_v48, %v7695_v38  ;;  %18363 = vrsqrt.f32 %v7718_v9  ;;  %v7688_v23 = vmax.f32 %v7672_v5, 0.0  ;;  %v22339_v58 = vadd.f32 %v22327_v34, %v7762_v57 }
0x1224   : > { %v7765_v47 = vmul.f32 %v22318_v63, %v7744_v4  ;;  %18365 = vrsqrt.f32 %v7717_v24  ;;  %v7687_v49 = vmax.f32 %v7671_v36, 0.0  ;;  %v15983_v21 = vpop.f32.mrb[212].mxu0  ;;  %v13867_v30 = vmul.f32 -1.442695, %v22336_v46 }
0x1225   : > { %v18356_v31 = vpop.eup %18355  ;;  %v7764_v51 = vmul.f32 %v22318_v63, %v7743_v7  ;;  %v7720_v20 = vadd.f32 1e-05, %v7688_v23  ;;  %v7674_v22 = vsub.f32 %v15983_v21, %v7658_v17  ;;  %v7626_v32 = vpop.f32.mrb[213].mxu0  ;;  %v13866_v38 = vmul.f32 -1.442695, %v22339_v58 }
0x1226   : > { %v18358_v48 = vpop.eup %18357  ;;  %v22346_v26 = vadd.f32 %v22327_v34, %v7765_v47  ;;  %v24837_v9 = vsub.f32 %v22060_v60, %v22241_v29  ;;  %v7719_v36 = vadd.f32 1e-05, %v7687_v49  ;;  %v7673_v55 = vsub.f32 %v7626_v32, %v7657_v53 }
0x1227   : > { %v22352_v57 = vadd.f32 %v22327_v34, %v7764_v51  ;;  %v24838_v4 = vsub.f32 %v22054_v13, %v22246_v43  ;;  %18367 = vrsqrt.f32 %v7720_v20  ;;  %v7690_v24 = vmax.f32 %v7674_v22, 0.0 }
0x1228   : > { %v7746_v5 = vmul.f32 %v18356_v31, %v24837_v9  ;;  %v13869_v7 = vmul.f32 -1.442695, %v22346_v26  ;;  %18369 = vrsqrt.f32 %v7719_v36  ;;  %v7689_v47 = vmax.f32 %v7673_v55, 0.0  ;;  %v15986_v23 = vpop.f32.mrb[214].mxu0 }
0x1229   : > { %v7745_v17 = vmul.f32 %v18358_v48, %v24838_v4  ;;  %v18360_v60 = vpop.eup %18359  ;;  %v13868_v29 = vmul.f32 -1.442695, %v22352_v57  ;;  %v7722_v53 = vadd.f32 1e-05, %v7690_v24  ;;  %v7676_v49 = vsub.f32 %v15986_v23, %v7660_v45  ;;  %v7636_v31 = vpop.f32.mrb[215].mxu0 }
0x122a   : > { %v7767_v21 = vmul.f32 %v22318_v63, %v7746_v5  ;;  %18371 = vpow2.f32 %v13866_v38  ;;  %v18362_v51 = vpop.eup %18361  ;;  %v24839_v13 = vsub.f32 %v22077_v50, %v22249_v11  ;;  %v7721_v20 = vadd.f32 1e-05, %v7689_v47 }
0x122b   : > { %18373 = vpow2.f32 %v13869_v7  ;;  %v7675_v22 = vsub.f32 %v7636_v31, %v7659_v12  ;;  %v24840_v32 = vsub.f32 %v22068_v62, %v22252_v8  ;;  %v7692_v9 = vmax.f32 %v7676_v49, 0.0 }
0x122c   : > { %v7748_v43 = vmul.f32 %v18360_v60, %v24839_v13  ;;  %18375 = vpow2.f32 %v13868_v29  ;;  %v7766_v5 = vmul.f32 %v22318_v63, %v7745_v17  ;;  %v22368_v38 = vadd.f32 %v22327_v34, %v7767_v21 }
0x122d   : > { %v7747_v48 = vmul.f32 %v18362_v51, %v24840_v32  ;;  %18377 = vrsqrt.f32 %v7722_v53  ;;  %v7691_v45 = vmax.f32 %v7675_v22, 0.0  ;;  %v18364_v55 = vpop.eup %18363  ;;  %v7724_v50 = vadd.f32 1e-05, %v7692_v9 }
0x122e   : > { %v7769_v36 = vmul.f32 %v22318_v63, %v7748_v43  ;;  %18379 = vrsqrt.f32 %v7721_v20  ;;  %v22372_v11 = vadd.f32 %v22327_v34, %v7766_v5  ;;  %v18366_v62 = vpop.eup %18365  ;;  %v24841_v8 = vsub.f32 %v22088_v18, %v22255_v14 }
0x122f   : > { %v7768_v12 = vmul.f32 %v22318_v63, %v7747_v48  ;;  %v7723_v17 = vadd.f32 1e-05, %v7691_v45  ;;  %18381 = vpow2.f32 %v13867_v30  ;;  %v13871_v24 = vmul.f32 -1.442695, %v22368_v38 }
0x1230   : > { %v7750_v4 = vmul.f32 %v18364_v55, %v24841_v8  ;;  %v24842_v7 = vsub.f32 %v22082_v37, %v22257_v40  ;;  %18383 = vrsqrt.f32 %v7724_v50  ;;  %v13870_v23 = vmul.f32 -1.442695, %v22372_v11 }
0x1231   : > { %v22384_v21 = vadd.f32 %v22327_v34, %v7768_v12  ;;  %v7704_v60 = vsub.f32 %v22103_v16, %v22259_v25  ;;  %18385 = vrsqrt.f32 %v7723_v17  ;;  %v22389_v18 = vadd.f32 %v22327_v34, %v7769_v36  ;;  %v18368_v30 = vpop.eup %18367 }
0x1232   : > { %v7749_v47 = vmul.f32 %v18366_v62, %v24842_v7  ;;  %v7771_v14 = vmul.f32 %v22318_v63, %v7750_v4  ;;  %v7703_v37 = vsub.f32 %v22095_v10, %v22261_v39  ;;  %18387 = vpow2.f32 %v13870_v23  ;;  %v18370_v53 = vpop.eup %18369 }
0x1233   : > { %v13872_v40 = vmul.f32 -1.442695, %v22384_v21  ;;  %v7752_v49 = vmul.f32 %v18368_v30, %v7704_v60  ;;  %18389 = vpow2.f32 %v13871_v24  ;;  %v13873_v16 = vmul.f32 -1.442695, %v22389_v18 }
0x1234   : > { %v7770_v29 = vmul.f32 %v22318_v63, %v7749_v47  ;;  %v22398_v25 = vadd.f32 %v22327_v34, %v7771_v14  ;;  %v18372_v31 = vpop.eup %18371  ;;  %v7751_v51 = vmul.f32 %v18370_v53, %v7703_v37  ;;  %v7706_v39 = vsub.f32 %v22113_v41, %v22263_v61 }
0x1235   : > { %18391 = vpow2.f32 %v13872_v40  ;;  %v18374_v10 = vpop.eup %18373  ;;  %v7847_v43 = vadd.f32 1.0, %v18372_v31  ;;  %v7773_v20 = vmul.f32 %v22318_v63, %v7752_v49  ;;  %v7705_v32 = vsub.f32 %v22107_v0, %v22265_v19 }
0x1236   : > { %v22401_v13 = vadd.f32 %v22327_v34, %v7770_v29  ;;  %18393 = vpow2.f32 %v13873_v16  ;;  %v18376_v22 = vpop.eup %18375  ;;  %v7850_v48 = vadd.f32 1.0, %v18374_v10  ;;  %v7772_v5 = vmul.f32 %v22318_v63, %v7751_v51 }
0x1237   : > { %v18378_v45 = vpop.eup %18377  ;;  %v7849_v36 = vadd.f32 1.0, %v18376_v22  ;;  %18395 = vrcp.f32 %v7847_v43  ;;  %v13875_v55 = vmul.f32 -1.442695, %v22398_v25  ;;  %v22412_v41 = vadd.f32 %v22327_v34, %v7773_v20 }
0x1238   : > { %v13874_v9 = vmul.f32 -1.442695, %v22401_v13  ;;  %v18380_v61 = vpop.eup %18379  ;;  %v7708_v50 = vsub.f32 %v22126_v33, %v22267_v54  ;;  %18397 = vrcp.f32 %v7850_v48  ;;  %v7754_v12 = vmul.f32 %v18378_v45, %v7706_v39 }
0x1239   : > { %v22417_v0 = vadd.f32 %v22327_v34, %v7772_v5  ;;  %v18382_v19 = vpop.eup %18381  ;;  %v7707_v62 = vsub.f32 %v22119_v44, %v22269_v27  ;;  %18399 = vrcp.f32 %v7849_v36  ;;  %v7753_v8 = vmul.f32 %v18380_v61, %v7705_v32 }
0x123a   : > { %v13877_v4 = vmul.f32 -1.442695, %v22412_v41  ;;  %v18384_v17 = vpop.eup %18383  ;;  %v7848_v24 = vadd.f32 1.0, %v18382_v19  ;;  %18401 = vpow2.f32 %v13874_v9  ;;  %v7775_v54 = vmul.f32 %v22318_v63, %v7754_v12 }
0x123b   : > { %v13876_v7 = vmul.f32 -1.442695, %v22417_v0  ;;  %v18386_v33 = vpop.eup %18385  ;;  %v7756_v47 = vmul.f32 %v18384_v17, %v7708_v50  ;;  %18403 = vpow2.f32 %v13875_v55  ;;  %v7774_v23 = vmul.f32 %v22318_v63, %v7753_v8 }
0x123c   : > { %v18388_v60 = vpop.eup %18387  ;;  %v7755_v14 = vmul.f32 %v18386_v33, %v7707_v62  ;;  %18405 = vrcp.f32 %v7848_v24  ;;  %v22426_v27 = vadd.f32 %v22327_v34, %v7775_v54 }
0x123d   : > { %v18390_v44 = vpop.eup %18389  ;;  %v7851_v30 = vadd.f32 1.0, %v18388_v60  ;;  %18407 = vpow2.f32 %v13876_v7  ;;  %v22429_v37 = vadd.f32 %v22327_v34, %v7774_v23  ;;  %v7777_v40 = vmul.f32 %v22318_v63, %v7756_v47 }
0x123e   : > { %v7852_v53 = vadd.f32 1.0, %v18390_v44  ;;  %18409 = vpow2.f32 %v13877_v4  ;;  %v7776_v49 = vmul.f32 %v22318_v63, %v7755_v14  ;;  %v13879_v43 = vmul.f32 -1.442695, %v22426_v27 }
0x123f   : > { %v18392_v29 = vpop.eup %18391  ;;  %18411 = vrcp.f32 %v7851_v30  ;;  %v13878_v51 = vmul.f32 -1.442695, %v22429_v37  ;;  %v22435_v10 = vadd.f32 %v22327_v34, %v7777_v40 }
0x1240   : > { %v18394_v16 = vpop.eup %18393  ;;  %v7853_v31 = vadd.f32 1.0, %v18392_v29  ;;  %18413 = vrcp.f32 %v7852_v53  ;;  %v22439_v20 = vadd.f32 %v22327_v34, %v7776_v49 }
0x1241   : > { %v7854_v39 = vadd.f32 1.0, %v18394_v16  ;;  %v18396_v22 = vpop.eup %18395  ;;  %v13881_v48 = vmul.f32 -1.442695, %v22435_v10 }
0x1242   : > { %18415 = vrcp.f32 %v7853_v31  ;;  %v18398_v32 = vpop.eup %18397  ;;  %v13880_v63 = vmul.f32 -1.442695, %v22439_v20  ;;  %v7895_v34 = vmul.f32 %v18396_v22, %v22339_v58 }
0x1243   : > { %18417 = vrcp.f32 %v7854_v39  ;;  %v18400_v9 = vpop.eup %18399  ;;  %v7898_v5 = vmul.f32 %v18398_v32, %v22346_v26 }
0x1244   : > { %18419 = vpow2.f32 %v13878_v51  ;;  %v18402_v45 = vpop.eup %18401  ;;  %v7897_v36 = vmul.f32 %v18400_v9, %v22352_v57 }
0x1245   : > { %18421 = vpow2.f32 %v13879_v43  ;;  %v18404_v55 = vpop.eup %18403  ;;  %v7855_v61 = vadd.f32 1.0, %v18402_v45  ;;  %v8096_v45 = vpop.permute.xlu1 %8095 }
0x1246   : > { %18423 = vpow2.f32 %v13880_v63  ;;  %v18406_v50 = vpop.eup %18405  ;;  %v7920_v12 = vpack.c.bf16 %v7898_v5, %v7897_v36  ;;  %v7856_v19 = vadd.f32 1.0, %v18404_v55  ;;  %v8094_v5 = vpop.permute.xlu0 %8093 }
0x1247   : > { %18425 = vpow2.f32 %v13881_v48  ;;  %v18408_v62 = vpop.eup %18407  ;;  %v7896_v8 = vmul.f32 %v18406_v50, %v22336_v46 }
0x1248   : > { %18427 = vrcp.f32 %v7855_v61  ;;  %v18410_v4 = vpop.eup %18409  ;;  %v7857_v26 = vadd.f32 1.0, %v18408_v62 }
0x1249   : > { %18429 = vrcp.f32 %v7856_v19  ;;  %v18412_v17 = vpop.eup %18411  ;;  %v7919_v24 = vpack.c.bf16 %v7896_v8, %v7895_v34  ;;  %v7858_v57 = vadd.f32 1.0, %v18410_v4  ;;  %v8100_v55 = vpop.permute.xlu1 %8099  ;;  %v22494_v34 = vld [vmem:[%s24499_s4 + $0x2d] ss:$0 sm:$0xff] }
0x124a   : > { %v18414_v7 = vpop.eup %18413  ;;  %v7899_v54 = vmul.f32 %v18412_v17, %v22372_v11  ;;  %18431 = vrcp.f32 %v7857_v26  ;;  %v8098_v36 = vpop.permute.xlu0 %8097 }
0x124b   : > { %15995 = vmatprep.mubr.msk.bf16.mxu1 %vm1928_vm2, %v7919_v24  ;;  %v7900_v33 = vmul.f32 %v18414_v7, %v22368_v38  ;;  %18433 = vrcp.f32 %v7858_v57 }
0x124c   : > { %v18416_v58 = vpop.eup %18415  ;;  %15996 = vmatmul.mubr.msk.bf16.vlgmr.msra.gmra.mrb[232].mxu1 %vm1928_vm2, %v7920_v12 }
0x124d   : > { %v18418_v47 = vpop.eup %18417  ;;  %v7901_v46 = vmul.f32 %v18416_v58, %v22384_v21  ;;  %v7921_v60 = vpack.c.bf16 %v7900_v33, %v7899_v54  ;;  %16898 = vmatpush3.bf16.msra.mxu1 %v22187_v28  ;;  %v8104_v4 = vpop.permute.xlu1 %8103 }
0x124e   : > { %v18420_v23 = vpop.eup %18419  ;;  %v7902_v14 = vmul.f32 %v18418_v47, %v22389_v18  ;;  %16900 = vmatprep.subr.bf16.mxu1 %v22192_v3  ;;  %v8102_v61 = vpop.permute.xlu0 %8101 }
0x124f   : > { %v18422_v44 = vpop.eup %18421  ;;  %v7859_v11 = vadd.f32 1.0, %v18420_v23  ;;  %15999 = vmatprep.mubr.msk.bf16.mxu1 %vm1928_vm2, %v7921_v60 }
0x1250   : > { %v18424_v30 = vpop.eup %18423  ;;  %v7922_v38 = vpack.c.bf16 %v7902_v14, %v7901_v46  ;;  %v7860_v40 = vadd.f32 1.0, %v18422_v44 }
0x1251   : > { %v18426_v29 = vpop.eup %18425  ;;  %18435 = vrcp.f32 %v7859_v11  ;;  %v7861_v53 = vadd.f32 1.0, %v18424_v30  ;;  %16902 = vmatpush3.bf16.msra.mxu1 %v22192_v3  ;;  %v8108_v60 = vpop.permute.xlu1 %8107 }
0x1252   : > { %v18428_v49 = vpop.eup %18427  ;;  %18437 = vrcp.f32 %v7860_v40  ;;  %v7862_v21 = vadd.f32 1.0, %v18426_v29  ;;  %16904 = vmatprep.subr.bf16.mxu1 %v22204_v6  ;;  %v8106_v54 = vpop.permute.xlu0 %8105  ;;  %v24843_v40 = vld [vmem:[#allocation39_spill] sm:$0xff] }
0x1253   : > { %v18430_v18 = vpop.eup %18429  ;;  %v7903_v28 = vmul.f32 %v18428_v49, %v22401_v13  ;;  %18439 = vrcp.f32 %v7861_v53 }
0x1254   : > { %v7904_v16 = vmul.f32 %v18430_v18, %v22398_v25  ;;  %18441 = vrcp.f32 %v7862_v21  ;;  %v18432_v31 = vpop.eup %18431  ;;  %16000 = vmatmul.mubr.msk.bf16.gmra.mrb[236].mxu1 %vm1928_vm2, %v7922_v38  ;;  %v24844_v18 = vld [vmem:[#allocation42_spill] sm:$0xff] }
0x1255   : > { %v18434_v51 = vpop.eup %18433  ;;  %v7905_v43 = vmul.f32 %v18432_v31, %v22417_v0  ;;  %16906 = vmatpush3.bf16.msra.mxu1 %v22204_v6 }
0x1256   : > { %v7923_v39 = vpack.c.bf16 %v7904_v16, %v7903_v28  ;;  %v7906_v3 = vmul.f32 %v18434_v51, %v22412_v41  ;;  %16908 = vmatprep.subr.bf16.mxu1 %v22216_v35  ;;  %v8110_v21 = vpop.permute.xlu0 %8109  ;;  %v24845_v51 = vld [vmem:[#allocation27_spill] sm:$0xff] }
0x1258   : > { %16003 = vmatprep.mubr.msk.bf16.mxu1 %vm1928_vm2, %v7923_v39  ;;  %v7924_v13 = vpack.c.bf16 %v7906_v3, %v7905_v43  ;;  %v24846_v39 = vld [vmem:[#allocation37_spill] sm:$0xff] }
0x1259   : > { %16910 = vmatpush3.bf16.msra.mxu1 %v22216_v35  ;;  %v24847_v3 = vld [vmem:[#allocation41_spill] sm:$0xff] }
0x125a   : > { %16912 = vmatprep.subr.bf16.mxu1 %v22230_v56 }
0x125b   : > { %v18436_v25 = vpop.eup %18435 }
0x125c   : > { %v18438_v22 = vpop.eup %18437  ;;  %v7907_v32 = vmul.f32 %v18436_v25, %v22429_v37  ;;  %16004 = vmatmul.mubr.msk.bf16.gmra.mrb[240].mxu1 %vm1928_vm2, %v7924_v13 }
0x125d   : > { %v18440_v63 = vpop.eup %18439  ;;  %v7908_v6 = vmul.f32 %v18438_v22, %v22426_v27  ;;  %16914 = vmatpush3.bf16.msra.mxu1 %v22230_v56  ;;  %v8169_v27 = vld [vmem:[%s24500_s5 + $0x100] sm:$0xff]  ;;  %v8170_v56 = vld [vmem:[%s24500_s5 + $0x108] sm:$0xff]  ;;  %v8112_v22 = vpop.permute.xlu1 %8111 }
0x125e   : > { %v18442_v0 = vpop.eup %18441  ;;  %v7909_v41 = vmul.f32 %v18440_v63, %v22439_v20  ;;  %16916 = vmatprep.subr.bf16.mxu1 %v22244_v2  ;;  %v16887_v37 = vpack.c.bf16 %v8170_v56, %v8169_v27 }
0x125f   : > { %v7925_v48 = vpack.c.bf16 %v7908_v6, %v7907_v32  ;;  %v7910_v9 = vmul.f32 %v18442_v0, %v22435_v10  ;;  %v8171_v10 = vld [vmem:[%s24500_s5 + $0x110] sm:$0xff] }
0x1260   : > { %16888 = vmatprep.subr.bf16.mxu0 %v16887_v37 }
0x1261   : > { %16007 = vmatprep.mubr.msk.bf16.mxu1 %vm1928_vm2, %v7925_v48  ;;  %v7926_v35 = vpack.c.bf16 %v7910_v9, %v7909_v41  ;;  %16918 = vmatpush3.bf16.msra.mxu1 %v22244_v2  ;;  %v8172_v2 = vld [vmem:[%s24500_s5 + $0x118] sm:$0xff] }
0x1262   : > { %16920 = vmatprep.subr.bf16.mxu1 %v16887_v37  ;;  %16890 = vmatpush3.bf16.msra.mxu0 %v16887_v37  ;;  %v16891_v20 = vpack.c.bf16 %v8172_v2, %v8171_v10  ;;  %v24848_v2 = vld [vmem:[#allocation29_spill] sm:$0xff] }
0x1264   : > { %16008 = vmatmul.mubr.msk.bf16.gmra.mrb[244].mxu1 %vm1928_vm2, %v7926_v35  ;;  %16892 = vmatprep.subr.bf16.mxu0 %v16891_v20  ;;  %v8114_v35 = vpop.permute.xlu0 %8113 }
0x1265   : > { %16922 = vmatpush3.bf16.msra.mxu1 %v16887_v37 }
0x1266   : > { %16924 = vmatprep.subr.bf16.mxu1 %v16891_v20  ;;  %16894 = vmatpush3.bf16.msra.mxu0 %v16891_v20 }
0x1269   : > { %16926 = vmatpush3.bf16.msra.mxu1 %v16891_v20  ;;  %v24849_v20 = vld [vmem:[#allocation47_spill] sm:$0xff] }
0x126a   : > { %16928 = vmatprep.subr.bf16.mxu1 %v24712_v15 }
0x131f   : > { %v15997_v50 = vpop.f32.mrb[232].mxu1 }
0x1320   : > { %v8023_v12 = vadd.f32 %v15997_v50, %v22494_v34  ;;  %v8014_v19 = vpop.f32.mrb[233].mxu1 }
0x1321   : > { %v8015_v62 = vadd.f32 %v22494_v34, %v8014_v19  ;;  %v15998_v8 = vpop.f32.mrb[234].mxu1 }
0x1322   : > { %v8079_v26 = vadd.f32 %v8023_v12, %v21635_v59  ;;  %v8026_v17 = vadd.f32 %v15998_v8, %v22494_v34  ;;  %v8017_v24 = vpop.f32.mrb[235].mxu1  ;;  %v8116_v12 = vpop.permute.xlu1 %8115  ;;  %v24852_v8 = vld [vmem:[#allocation45_spill] sm:$0xff] }
0x1323   : > { %v8077_v57 = vadd.f32 %v8015_v62, %v21631_v42  ;;  %v8018_v7 = vadd.f32 %v22494_v34, %v8017_v24  ;;  %v24851_v62 = vld [vmem:[#allocation67_spill] sm:$0xff] }
0x1324   : > { %v8080_v58 = vadd.f32 %v8026_v17, %v21643_v52  ;;  %v22511_v46 = vsel %vm1928_vm2, %v8079_v26, %v8098_v36  ;;  %v24853_v26 = vld [vmem:[#allocation49_spill] sm:$0xff] }
0x1325   : > { %v8078_v33 = vadd.f32 %v8018_v7, %v21637_v1  ;;  %v22505_v47 = vsel %vm1928_vm2, %v8077_v57, %v8094_v5  ;;  %v8320_v30 = vmul.f32 %v22511_v46, %v22511_v46 }
0x1326   : > { %16043 = vmatprep.mubr.f32.mxu0 %v22505_v47  ;;  %v8318_v59 = vmul.f32 %v22505_v47, %v22505_v47  ;;  %v22525_v38 = vsel %vm1928_vm2, %v8080_v58, %v8100_v55  ;;  %v24850_v55 = vld [vmem:[#allocation50_spill] sm:$0xff] }
0x1327   : > { %v16001_v23 = vpop.f32.mrb[236].mxu1  ;;  %v22514_v42 = vsel %vm1928_vm2, %v8078_v33, %v8096_v45  ;;  %v8321_v31 = vmul.f32 %v22525_v38, %v22525_v38 }
0x1328   : > { %v8039_v52 = vadd.f32 %v16001_v23, %v22494_v34  ;;  %v8030_v14 = vpop.f32.mrb[237].mxu1  ;;  %16044 = vmatmul.mubr.f32.vlgmr.msra.gmra.mrb[216].mxu0 %v22514_v42  ;;  %v8319_v1 = vmul.f32 %v22514_v42, %v22514_v42  ;;  %16099 = vmatprep.mubr.f32.mxu1 %v8318_v59 }
0x1329   : > { %v8031_v44 = vadd.f32 %v22494_v34, %v8030_v14  ;;  %v16002_v11 = vpop.f32.mrb[238].mxu1  ;;  %16046 = vmatprep.mubr.f32.mxu0 %v22511_v46 }
0x132a   : > { %v8083_v29 = vadd.f32 %v8039_v52, %v24843_v40  ;;  %v8042_v53 = vadd.f32 %v16002_v11, %v22494_v34  ;;  %v8033_v49 = vpop.f32.mrb[239].mxu1  ;;  %16100 = vmatmul.mubr.f32.vlgmr.msra.gmra.mrb[248].mxu1 %v8319_v1  ;;  %v8120_v11 = vpop.permute.xlu1 %8119 }
0x132b   : > { %v8081_v28 = vadd.f32 %v8031_v44, %v24844_v18  ;;  %v8034_v16 = vadd.f32 %v22494_v34, %v8033_v49  ;;  %16102 = vmatprep.mubr.f32.mxu1 %v8320_v30  ;;  %16930 = vmatpush3.bf16.msra.mxu1 %v24712_v15  ;;  %v24856_v30 = vld [vmem:[#allocation55_spill] sm:$0xff]  ;;  %v24857_v49 = vld [vmem:[#allocation58_spill] sm:$0xff] }
0x132c   : > { %16047 = vmatmul.mubr.f32.gmra.mrb[218].mxu0 %v22525_v38  ;;  %16932 = vmatprep.subr.bf16.mxu1 %v24845_v51  ;;  %v8084_v43 = vadd.f32 %v8042_v53, %v24846_v39  ;;  %v22545_v63 = vsel %vm1928_vm2, %v8083_v29, %v8106_v54  ;;  %v8118_v54 = vpop.permute.xlu0 %8117 }
0x132d   : > { %v8082_v13 = vadd.f32 %v8034_v16, %v24847_v3  ;;  %v22539_v25 = vsel %vm1928_vm2, %v8081_v28, %v8102_v61  ;;  %v8324_v37 = vmul.f32 %v22545_v63, %v22545_v63 }
0x132e   : > { %16049 = vmatprep.mubr.f32.mxu0 %v22539_v25  ;;  %16103 = vmatmul.mubr.f32.gmra.mrb[250].mxu1 %v8321_v31  ;;  %v8322_v32 = vmul.f32 %v22539_v25, %v22539_v25  ;;  %v22560_v10 = vsel %vm1928_vm2, %v8084_v43, %v8108_v60  ;;  %v24858_v31 = vld [vmem:[#allocation53_spill] sm:$0xff] }
0x132f   : > { %v16005_v6 = vpop.f32.mrb[240].mxu1  ;;  %v22548_v0 = vsel %vm1928_vm2, %v8082_v13, %v8104_v4  ;;  %16934 = vmatpush3.bf16.msra.mxu1 %v24845_v51  ;;  %v8325_v19 = vmul.f32 %v22560_v10, %v22560_v10  ;;  %v24859_v43 = vld [vmem:[#allocation57_spill] sm:$0xff] }
0x1330   : > { %v8055_v41 = vadd.f32 %v16005_v6, %v22494_v34  ;;  %v8046_v48 = vpop.f32.mrb[241].mxu1  ;;  %16050 = vmatmul.mubr.f32.gmra.mrb[220].mxu0 %v22548_v0  ;;  %16105 = vmatprep.mubr.f32.mxu1 %v8322_v32  ;;  %v8323_v9 = vmul.f32 %v22548_v0, %v22548_v0  ;;  %v8122_v16 = vpop.permute.xlu0 %8121 }
0x1331   : > { %v8047_v27 = vadd.f32 %v22494_v34, %v8046_v48  ;;  %v16006_v56 = vpop.f32.mrb[242].mxu1  ;;  %16052 = vmatprep.mubr.f32.mxu0 %v22545_v63  ;;  %16936 = vmatprep.subr.bf16.mxu1 %v24848_v2  ;;  %v8124_v6 = vpop.permute.xlu1 %8123 }
0x1332   : > { %v8087_v5 = vadd.f32 %v8055_v41, %v24849_v20  ;;  %v8058_v45 = vadd.f32 %v16006_v56, %v22494_v34  ;;  %v8049_v36 = vpop.f32.mrb[243].mxu1  ;;  %16106 = vmatmul.mubr.f32.gmra.mrb[252].mxu1 %v8323_v9  ;;  %v17682_v56 = vld [vmem:[#allocation2 + $0x248] sm:$0xff]   ;;  %v17684_v20 = vld [vmem:[#allocation2 + $0x258] sm:$0xff]  }
0x1333   : > { %v8085_v61 = vadd.f32 %v8047_v27, %v24850_v55  ;;  %v8050_v50 = vadd.f32 %v22494_v34, %v8049_v36  ;;  %16108 = vmatprep.mubr.f32.mxu1 %v8324_v37  ;;  %16938 = vmatpush3.bf16.msra.mxu1 %v24848_v2  ;;  %v17681_v27 = vld [vmem:[#allocation2 + $0x240] sm:$0xff]   ;;  %v17683_v37 = vld [vmem:[#allocation2 + $0x250] sm:$0xff]   ;;  %v17688_v55 = vld [vmem:[#allocation2 + $0x278] sm:$0xff]  }
0x1334   : > { %16053 = vmatmul.mubr.f32.gmra.mrb[222].mxu0 %v22560_v10  ;;  %16940 = vmatprep.subr.bf16.mxu1 %v24851_v62  ;;  %v8088_v4 = vadd.f32 %v8058_v45, %v24852_v8  ;;  %v22581_v7 = vsel %vm1928_vm2, %v8087_v5, %v8114_v35  ;;  %v17685_v5 = vld [vmem:[#allocation2 + $0x260] sm:$0xff]   ;;  %v17686_v45 = vld [vmem:[#allocation2 + $0x268] sm:$0xff]   ;;  %v17687_v36 = vld [vmem:[#allocation2 + $0x270] sm:$0xff]  }
0x1335   : > { %v8086_v17 = vadd.f32 %v8050_v50, %v24853_v26  ;;  %v22575_v24 = vsel %vm1928_vm2, %v8085_v61, %v8110_v21  ;;  %24854 = vst [vmem:[#allocation66_spill] sm:$0xff] %v22581_v7  ;;  %v8328_v1 = vmul.f32 %v22581_v7, %v22581_v7  ;;  %16123 = vmatprep.subr.bf16.mxu0 %v17681_v27  ;;  %v22632_v61 = vld [vmem:[#allocation2 + $0x280] sm:$0xff]  }
0x1336   : > { %16055 = vmatprep.mubr.f32.mxu0 %v22575_v24  ;;  %16109 = vmatmul.mubr.f32.gmra.mrb[254].mxu1 %v8325_v19  ;;  %v8326_v57 = vmul.f32 %v22575_v24, %v22575_v24  ;;  %v22596_v44 = vsel %vm1928_vm2, %v8088_v4, %v8116_v12 }
0x1337   : > { %v16009_v58 = vpop.f32.mrb[244].mxu1  ;;  %v22584_v33 = vsel %vm1928_vm2, %v8086_v17, %v8112_v22  ;;  %16942 = vmatpush3.bf16.msra.mxu1 %v24851_v62  ;;  %24855 = vst [vmem:[#allocation63_spill] sm:$0xff] %v22596_v44  ;;  %v8329_v28 = vmul.f32 %v22596_v44, %v22596_v44  ;;  %16124 = vmatpush3.bf16.msra.mxu0 %v17681_v27 }
0x1338   : > { %v8071_v59 = vadd.f32 %v16009_v58, %v22494_v34  ;;  %v8062_v23 = vpop.f32.mrb[245].mxu1  ;;  %16056 = vmatmul.mubr.f32.gmra.mrb[224].mxu0 %v22584_v33  ;;  %v8327_v60 = vmul.f32 %v22584_v33, %v22584_v33  ;;  %16111 = vmatprep.mubr.f32.mxu1 %v8326_v57 }
0x1339   : > { %v8063_v52 = vadd.f32 %v22494_v34, %v8062_v23  ;;  %v16010_v14 = vpop.f32.mrb[246].mxu1  ;;  %16058 = vmatprep.mubr.f32.mxu0 %v22581_v7  ;;  %16944 = vmatprep.subr.bf16.mxu1 %v24712_v15 }
0x133a   : > { %v8091_v40 = vadd.f32 %v8071_v59, %v24856_v30  ;;  %v8074_v29 = vadd.f32 %v16010_v14, %v22494_v34  ;;  %v8065_v53 = vpop.f32.mrb[247].mxu1  ;;  %16112 = vmatmul.mubr.f32.gmra.mrb[0].mxu1 %v8327_v60  ;;  %16125 = vmatprep.subr.bf16.mxu0 %v17682_v56 }
0x133b   : > { %v8089_v21 = vadd.f32 %v8063_v52, %v24857_v49  ;;  %v8066_v18 = vadd.f32 %v22494_v34, %v8065_v53  ;;  %16114 = vmatprep.mubr.f32.mxu1 %v8328_v1  ;;  %16126 = vmatpush3.bf16.msra.mxu0 %v17682_v56 }
0x133c   : > { %16059 = vmatmul.mubr.f32.gmra.mrb[226].mxu0 %v22596_v44  ;;  %v8092_v39 = vadd.f32 %v8074_v29, %v24858_v31  ;;  %v22615_v22 = vsel %vm1928_vm2, %v8091_v40, %v8122_v16  ;;  %16127 = vmatprep.subr.bf16.mxu0 %v17683_v37 }
0x133d   : > { %v8090_v3 = vadd.f32 %v8066_v18, %v24859_v43  ;;  %v22609_v13 = vsel %vm1928_vm2, %v8089_v21, %v8118_v54  ;;  %24861 = vst [vmem:[#allocation61_spill] sm:$0xff] %v22615_v22  ;;  %v8332_v48 = vmul.f32 %v22615_v22, %v22615_v22 }
0x133e   : > { %24860 = vst [vmem:[#allocation65_spill] sm:$0xff] %v22609_v13  ;;  %16061 = vmatprep.mubr.f32.mxu0 %v22609_v13  ;;  %16115 = vmatmul.mubr.f32.gmra.mrb[2].mxu1 %v8329_v28  ;;  %v8330_v34 = vmul.f32 %v22609_v13, %v22609_v13  ;;  %v22627_v9 = vsel %vm1928_vm2, %v8092_v39, %v8124_v6 }
0x133f   : > { %v22618_v32 = vsel %vm1928_vm2, %v8090_v3, %v8120_v11  ;;  %24863 = vst [vmem:[#allocation36_spill] sm:$0xff] %v22627_v9  ;;  %v8333_v35 = vmul.f32 %v22627_v9, %v22627_v9  ;;  %16128 = vmatpush3.bf16.msra.mxu0 %v17683_v37 }
0x1340   : > { %24862 = vst [vmem:[#allocation40_spill] sm:$0xff] %v22618_v32  ;;  %16062 = vmatmul.mubr.f32.gmra.mrb[228].mxu0 %v22618_v32  ;;  %v8331_v41 = vmul.f32 %v22618_v32, %v22618_v32  ;;  %16117 = vmatprep.mubr.f32.mxu1 %v8330_v34 }
0x1341   : > { %16064 = vmatprep.mubr.f32.mxu0 %v22615_v22  ;;  %16129 = vmatprep.subr.bf16.mxu0 %v17684_v20 }
0x1342   : > { %16118 = vmatmul.mubr.f32.gmra.mrb[4].mxu1 %v8331_v41 }
0x1343   : > { %16120 = vmatprep.mubr.f32.mxu1 %v8332_v48  ;;  %16130 = vmatpush3.bf16.msra.mxu0 %v17684_v20 }
0x1344   : > { %16065 = vmatmul.mubr.f32.gmra.mrb[230].mxu0 %v22627_v9  ;;  %16131 = vmatprep.subr.bf16.mxu0 %v17685_v5 }
0x1346   : > { %16121 = vmatmul.mubr.f32.gmra.mrb[6].mxu1 %v8333_v35 }
0x1347   : > { %16132 = vmatpush3.bf16.msra.mxu0 %v17685_v5 }
0x1348   : > { %16133 = vmatprep.subr.bf16.mxu0 %v17686_v45 }
0x134b   : > { %16134 = vmatpush3.bf16.msra.mxu0 %v17686_v45 }
0x134c   : > { %16135 = vmatprep.subr.bf16.mxu0 %v17687_v36 }
0x134f   : > { %16136 = vmatpush3.bf16.msra.mxu0 %v17687_v36 }
0x1350   : > { %16137 = vmatprep.subr.bf16.mxu0 %v17688_v55 }
0x1353   : > { %16138 = vmatpush3.bf16.msra.mxu0 %v17688_v55 }
0x1354   : > { %16155 = vmatprep.subr.bf16.mxu0 %v22632_v61 }
0x13fb   : > { %v22635_v50 = vpop.f32.mrb[216].mxu0 }
0x13fc   : > { %v8480_v12 = vmul.f32 %v22635_v50, %v22635_v50  ;;  %v22639_v19 = vpop.f32.mrb[217].mxu0  ;;  %v8528_v36 = vsub.f32 %v22514_v42, %v22635_v50 }
0x13fd   : > { %v8479_v8 = vmul.f32 %v22639_v19, %v22639_v19  ;;  %v16101_v4 = vpop.f32.mrb[248].mxu1  ;;  %v8527_v55 = vsub.f32 %v22505_v47, %v22639_v19 }
0x13fe   : > { %v8496_v26 = vsub.f32 %v16101_v4, %v8480_v12  ;;  %v8400_v17 = vpop.f32.mrb[249].mxu1 }
0x13ff   : > { %v8495_v57 = vsub.f32 %v8400_v17, %v8479_v8  ;;  %v22643_v54 = vpop.f32.mrb[218].mxu0 }
0x1400   : > { %v8512_v58 = vmax.f32 %v8496_v26, 0.0  ;;  %v8482_v59 = vmul.f32 %v22643_v54, %v22643_v54  ;;  %v22647_v23 = vpop.f32.mrb[219].mxu0  ;;  %v8530_v26 = vsub.f32 %v22525_v38, %v22643_v54 }
0x1401   : > { %v8511_v60 = vmax.f32 %v8495_v57, 0.0  ;;  %v8481_v52 = vmul.f32 %v22647_v23, %v22647_v23  ;;  %v16104_v14 = vpop.f32.mrb[250].mxu1  ;;  %v8529_v50 = vsub.f32 %v22511_v46, %v22647_v23 }
0x1402   : > { %v8544_v1 = vadd.f32 1e-05, %v8512_v58  ;;  %v8498_v11 = vsub.f32 %v16104_v14, %v8482_v59  ;;  %v8410_v30 = vpop.f32.mrb[251].mxu1 }
0x1403   : > { %v8543_v40 = vadd.f32 1e-05, %v8511_v60  ;;  %v8497_v29 = vsub.f32 %v8410_v30, %v8481_v52  ;;  %v22651_v53 = vpop.f32.mrb[220].mxu0 }
0x1404   : > { %18443 = vrsqrt.f32 %v8544_v1  ;;  %v8514_v49 = vmax.f32 %v8498_v11, 0.0  ;;  %v8484_v21 = vmul.f32 %v22651_v53, %v22651_v53  ;;  %v22655_v18 = vpop.f32.mrb[221].mxu0  ;;  %v8532_v19 = vsub.f32 %v22548_v0, %v22651_v53 }
0x1405   : > { %18445 = vrsqrt.f32 %v8543_v40  ;;  %v8513_v28 = vmax.f32 %v8497_v29, 0.0  ;;  %v8483_v16 = vmul.f32 %v22655_v18, %v22655_v18  ;;  %v16107_v31 = vpop.f32.mrb[252].mxu1  ;;  %v8531_v54 = vsub.f32 %v22539_v25, %v22655_v18 }
0x1406   : > { %v8546_v39 = vadd.f32 1e-05, %v8514_v49  ;;  %v8500_v43 = vsub.f32 %v16107_v31, %v8484_v21  ;;  %v8420_v3 = vpop.f32.mrb[253].mxu1  ;;  %v22694_v31 = vld [vmem:[%s24499_s4 + $0x2e] ss:$0 sm:$0xff] }
0x1407   : > { %v8545_v34 = vadd.f32 1e-05, %v8513_v28  ;;  %v8499_v6 = vsub.f32 %v8420_v3, %v8483_v16  ;;  %v22659_v41 = vpop.f32.mrb[222].mxu0 }
0x1408   : > { %18447 = vrsqrt.f32 %v8546_v39  ;;  %v8516_v48 = vmax.f32 %v8500_v43, 0.0  ;;  %v8486_v35 = vmul.f32 %v22659_v41, %v22659_v41  ;;  %v22663_v27 = vpop.f32.mrb[223].mxu0  ;;  %v8534_v11 = vsub.f32 %v22560_v10, %v22659_v41 }
0x1409   : > { %18449 = vrsqrt.f32 %v8545_v34  ;;  %v8515_v56 = vmax.f32 %v8499_v6, 0.0  ;;  %v8485_v37 = vmul.f32 %v22663_v27, %v22663_v27  ;;  %v16110_v20 = vpop.f32.mrb[254].mxu1  ;;  %v8533_v39 = vsub.f32 %v22545_v63, %v22663_v27 }
0x140a   : > { %v8502_v5 = vsub.f32 %v16110_v20, %v8486_v35  ;;  %v8430_v45 = vpop.f32.mrb[255].mxu1  ;;  %v8548_v12 = vadd.f32 1e-05, %v8516_v48 }
0x140b   : > { %v8501_v8 = vsub.f32 %v8430_v45, %v8485_v37  ;;  %v22671_v4 = vpop.f32.mrb[224].mxu0  ;;  %v8547_v17 = vadd.f32 1e-05, %v8515_v56 }
0x140c   : > { %v8518_v57 = vmax.f32 %v8502_v5, 0.0  ;;  %v8488_v58 = vmul.f32 %v22671_v4, %v22671_v4  ;;  %v22677_v59 = vpop.f32.mrb[225].mxu0  ;;  %18451 = vrsqrt.f32 %v8548_v12  ;;  %v8536_v6 = vsub.f32 %v22584_v33, %v22671_v4 }
0x140d   : > { %v8517_v60 = vmax.f32 %v8501_v8, 0.0  ;;  %v8487_v52 = vmul.f32 %v22677_v59, %v22677_v59  ;;  %v16113_v14 = vpop.f32.mrb[0].mxu1  ;;  %18453 = vrsqrt.f32 %v8547_v17 }
0x140e   : > { %v18444_v1 = vpop.eup %18443  ;;  %v8550_v30 = vadd.f32 1e-05, %v8518_v57  ;;  %v8504_v40 = vsub.f32 %v16113_v14, %v8488_v58  ;;  %v8440_v29 = vpop.f32.mrb[1].mxu1 }
0x140f   : > { %v18446_v49 = vpop.eup %18445  ;;  %v8549_v23 = vadd.f32 1e-05, %v8517_v60  ;;  %v8503_v21 = vsub.f32 %v8440_v29, %v8487_v52  ;;  %v22689_v28 = vpop.f32.mrb[226].mxu0  ;;  %v8576_v16 = vmul.f32 %v18444_v1, %v8528_v36 }
0x1410   : > { %v8520_v43 = vmax.f32 %v8504_v40, 0.0  ;;  %v8490_v3 = vmul.f32 %v22689_v28, %v22689_v28  ;;  %v22700_v34 = vpop.f32.mrb[227].mxu0  ;;  %18455 = vrsqrt.f32 %v8550_v30  ;;  %v8575_v36 = vmul.f32 %v18446_v49, %v8527_v55  ;;  %v22716_v55 = vld [vmem:[%s24499_s4 + $0x2f] ss:$0 sm:$0xff] }
0x1411   : > { %v8519_v48 = vmax.f32 %v8503_v21, 0.0  ;;  %v8489_v35 = vmul.f32 %v22700_v34, %v22700_v34  ;;  %v16116_v56 = vpop.f32.mrb[2].mxu1  ;;  %18457 = vrsqrt.f32 %v8549_v23  ;;  %v8597_v60 = vmul.f32 %v22694_v31, %v8576_v16 }
0x1412   : > { %v18448_v37 = vpop.eup %18447  ;;  %v8552_v20 = vadd.f32 1e-05, %v8520_v43  ;;  %v8506_v5 = vsub.f32 %v16116_v56, %v8490_v3  ;;  %v8450_v45 = vpop.f32.mrb[3].mxu1 }
0x1413   : > { %v18450_v12 = vpop.eup %18449  ;;  %v8578_v8 = vmul.f32 %v18448_v37, %v8530_v26  ;;  %v8551_v17 = vadd.f32 1e-05, %v8519_v48  ;;  %v8505_v57 = vsub.f32 %v8450_v45, %v8489_v35  ;;  %v22706_v58 = vpop.f32.mrb[228].mxu0  ;;  %v8535_v26 = vsub.f32 %v22575_v24, %v22677_v59 }
0x1414   : > { %v8577_v52 = vmul.f32 %v18450_v12, %v8529_v50  ;;  %18459 = vrsqrt.f32 %v8552_v20  ;;  %v8522_v14 = vmax.f32 %v8506_v5, 0.0  ;;  %v8492_v1 = vmul.f32 %v22706_v58, %v22706_v58  ;;  %v22711_v30 = vpop.f32.mrb[229].mxu0 }
0x1415   : > { %18461 = vrsqrt.f32 %v8551_v17  ;;  %v8521_v50 = vmax.f32 %v8505_v57, 0.0  ;;  %v16119_v29 = vpop.f32.mrb[4].mxu1  ;;  %v8599_v49 = vmul.f32 %v22694_v31, %v8578_v8  ;;  %v8491_v16 = vmul.f32 %v22711_v30, %v22711_v30 }
0x1416   : > { %v8598_v23 = vmul.f32 %v22694_v31, %v8577_v52  ;;  %v8554_v21 = vadd.f32 1e-05, %v8522_v14  ;;  %v8460_v43 = vpop.f32.mrb[5].mxu1  ;;  %v8508_v48 = vsub.f32 %v16119_v29, %v8492_v1  ;;  %v8596_v59 = vmul.f32 %v22694_v31, %v8575_v36  ;;  %v18452_v12 = vpop.eup %18451 }
0x1417   : > { %v8553_v3 = vadd.f32 1e-05, %v8521_v50  ;;  %v22726_v35 = vpop.f32.mrb[230].mxu0  ;;  %v22730_v56 = vadd.f32 %v22716_v55, %v8597_v60  ;;  %v8537_v37 = vsub.f32 %v22581_v7, %v22700_v34  ;;  %v8507_v20 = vsub.f32 %v8460_v43, %v8491_v16  ;;  %v18454_v60 = vpop.eup %18453 }
0x1418   : > { %18463 = vrsqrt.f32 %v8554_v21  ;;  %v8494_v5 = vmul.f32 %v22726_v35, %v22726_v35  ;;  %v22736_v45 = vpop.f32.mrb[231].mxu0  ;;  %v8524_v17 = vmax.f32 %v8508_v48, 0.0  ;;  %v22743_v1 = vadd.f32 %v22716_v55, %v8596_v59 }
0x1419   : > { %18465 = vrsqrt.f32 %v8553_v3  ;;  %v8493_v36 = vmul.f32 %v22736_v45, %v22736_v45  ;;  %v16122_v57 = vpop.f32.mrb[6].mxu1  ;;  %v8523_v52 = vmax.f32 %v8507_v20, 0.0  ;;  %v13898_v50 = vmul.f32 -1.442695, %v22730_v56 }
0x141a   : > { %v8510_v34 = vsub.f32 %v16122_v57, %v8494_v5  ;;  %v8470_v14 = vpop.f32.mrb[7].mxu1  ;;  %v18456_v29 = vpop.eup %18455  ;;  %v8556_v21 = vadd.f32 1e-05, %v8524_v17  ;;  %v22747_v43 = vadd.f32 %v22716_v55, %v8598_v23  ;;  %v22750_v3 = vadd.f32 %v22716_v55, %v8599_v49 }
0x141b   : > { %v8509_v16 = vsub.f32 %v8470_v14, %v8493_v36  ;;  %v18458_v48 = vpop.eup %18457  ;;  %v8555_v8 = vadd.f32 1e-05, %v8523_v52  ;;  %v13897_v20 = vmul.f32 -1.442695, %v22743_v1  ;;  %18467 = vpow2.f32 %v13898_v50 }
0x141c   : > { %v8526_v40 = vmax.f32 %v8510_v34, 0.0  ;;  %18469 = vrsqrt.f32 %v8556_v21  ;;  %v13899_v5 = vmul.f32 -1.442695, %v22747_v43  ;;  %v13900_v57 = vmul.f32 -1.442695, %v22750_v3 }
0x141d   : > { %v8525_v59 = vmax.f32 %v8509_v16, 0.0  ;;  %18471 = vrsqrt.f32 %v8555_v8  ;;  %v8579_v49 = vmul.f32 %v18454_v60, %v8531_v54  ;;  %v8580_v23 = vmul.f32 %v18452_v12, %v8532_v19 }
0x141e   : > { %v18460_v17 = vpop.eup %18459  ;;  %v8558_v36 = vadd.f32 1e-05, %v8526_v40  ;;  %18473 = vpow2.f32 %v13897_v20  ;;  %v8581_v14 = vmul.f32 %v18458_v48, %v8533_v39  ;;  %v8582_v8 = vmul.f32 %v18456_v29, %v8534_v11 }
0x141f   : > { %v18462_v52 = vpop.eup %18461  ;;  %v8557_v34 = vadd.f32 1e-05, %v8525_v59  ;;  %v8600_v40 = vmul.f32 %v22694_v31, %v8579_v49  ;;  %v8601_v18 = vmul.f32 %v22694_v31, %v8580_v23  ;;  %v8584_v27 = vmul.f32 %v18460_v17, %v8536_v6 }
0x1420   : > { %18475 = vrsqrt.f32 %v8558_v36  ;;  %v8583_v54 = vmul.f32 %v18462_v52, %v8535_v26  ;;  %v8602_v53 = vmul.f32 %v22694_v31, %v8581_v14  ;;  %v8603_v19 = vmul.f32 %v22694_v31, %v8582_v8 }
0x1421   : > { %18477 = vrsqrt.f32 %v8557_v34  ;;  %v22775_v41 = vadd.f32 %v22716_v55, %v8600_v40  ;;  %v22778_v11 = vadd.f32 %v22716_v55, %v8601_v18  ;;  %v8605_v4 = vmul.f32 %v22694_v31, %v8584_v27 }
0x1422   : > { %v18464_v39 = vpop.eup %18463  ;;  %18479 = vpow2.f32 %v13899_v5  ;;  %v8604_v12 = vmul.f32 %v22694_v31, %v8583_v54  ;;  %v22782_v60 = vadd.f32 %v22716_v55, %v8602_v53  ;;  %v22785_v50 = vadd.f32 %v22716_v55, %v8603_v19 }
0x1423   : > { %v18466_v26 = vpop.eup %18465  ;;  %18481 = vpow2.f32 %v13900_v57  ;;  %v13901_v6 = vmul.f32 -1.442695, %v22775_v41  ;;  %v13902_v29 = vmul.f32 -1.442695, %v22778_v11  ;;  %v8539_v48 = vsub.f32 %v22609_v13, %v22711_v30 }
0x1424   : > { %v22791_v21 = vadd.f32 %v22716_v55, %v8604_v12  ;;  %v8585_v16 = vmul.f32 %v18466_v26, %v8537_v37  ;;  %v13903_v20 = vmul.f32 -1.442695, %v22782_v60  ;;  %v22797_v59 = vadd.f32 %v22716_v55, %v8605_v4 }
0x1425   : > { %v24864_v5 = vsub.f32 %v22596_v44, %v22689_v28  ;;  %v18468_v17 = vpop.eup %18467  ;;  %v8542_v36 = vsub.f32 %v22627_v9, %v22726_v35  ;;  %18483 = vpow2.f32 %v13901_v6  ;;  %v13904_v49 = vmul.f32 -1.442695, %v22785_v50 }
0x1426   : > { %v8606_v37 = vmul.f32 %v22694_v31, %v8585_v16  ;;  %v18470_v23 = vpop.eup %18469  ;;  %v8682_v30 = vadd.f32 1.0, %v18468_v17  ;;  %18485 = vpow2.f32 %v13902_v29  ;;  %v13905_v52 = vmul.f32 -1.442695, %v22791_v21 }
0x1427   : > { %v8586_v57 = vmul.f32 %v18464_v39, %v24864_v5  ;;  %v18472_v14 = vpop.eup %18471  ;;  %v8541_v28 = vsub.f32 %v22615_v22, %v22736_v45  ;;  %18487 = vpow2.f32 %v13903_v20  ;;  %v24865_v35 = vsub.f32 %v22618_v32, %v22706_v58 }
0x1428   : > { %v22811_v8 = vadd.f32 %v22716_v55, %v8606_v37  ;;  %v18474_v18 = vpop.eup %18473  ;;  %18489 = vrcp.f32 %v8682_v30  ;;  %v13906_v54 = vmul.f32 -1.442695, %v22797_v59  ;;  %v8587_v19 = vmul.f32 %v18472_v14, %v8539_v48 }
0x1429   : > { %v8607_v34 = vmul.f32 %v22694_v31, %v8586_v57  ;;  %v8588_v40 = vmul.f32 %v18470_v23, %v24865_v35  ;;  %v8681_v39 = vadd.f32 1.0, %v18474_v18  ;;  %18491 = vpow2.f32 %v13904_v49 }
0x142a   : > { %v18476_v27 = vpop.eup %18475  ;;  %v13907_v45 = vmul.f32 -1.442695, %v22811_v8  ;;  %18493 = vpow2.f32 %v13905_v52  ;;  %v8608_v58 = vmul.f32 %v22694_v31, %v8587_v19 }
0x142b   : > { %v22818_v53 = vadd.f32 %v22716_v55, %v8607_v34  ;;  %v8609_v12 = vmul.f32 %v22694_v31, %v8588_v40  ;;  %v18478_v26 = vpop.eup %18477  ;;  %v8590_v4 = vmul.f32 %v18476_v27, %v8542_v36  ;;  %18495 = vrcp.f32 %v8681_v39 }
0x142c   : > { %v18480_v6 = vpop.eup %18479  ;;  %v8589_v29 = vmul.f32 %v18478_v26, %v8541_v28  ;;  %18497 = vpow2.f32 %v13906_v54  ;;  %v22825_v5 = vadd.f32 %v22716_v55, %v8608_v58 }
0x142d   : > { %v18482_v16 = vpop.eup %18481  ;;  %v8683_v20 = vadd.f32 1.0, %v18480_v6  ;;  %v13908_v48 = vmul.f32 -1.442695, %v22818_v53  ;;  %18499 = vpow2.f32 %v13907_v45  ;;  %v22828_v17 = vadd.f32 %v22716_v55, %v8609_v12 }
0x142e   : > { %v8684_v57 = vadd.f32 1.0, %v18482_v16  ;;  %v8610_v49 = vmul.f32 %v22694_v31, %v8589_v29  ;;  %v13909_v36 = vmul.f32 -1.442695, %v22825_v5  ;;  %v8611_v23 = vmul.f32 %v22694_v31, %v8590_v4 }
0x142f   : > { %18501 = vrcp.f32 %v8683_v20  ;;  %v18484_v37 = vpop.eup %18483  ;;  %v13910_v35 = vmul.f32 -1.442695, %v22828_v17 }
0x1430   : > { %18503 = vrcp.f32 %v8684_v57  ;;  %v18486_v30 = vpop.eup %18485  ;;  %v8685_v52 = vadd.f32 1.0, %v18484_v37  ;;  %v22834_v34 = vadd.f32 %v22716_v55, %v8610_v49  ;;  %v22838_v19 = vadd.f32 %v22716_v55, %v8611_v23 }
0x1431   : > { %18505 = vpow2.f32 %v13908_v48  ;;  %v18488_v14 = vpop.eup %18487  ;;  %v8686_v28 = vadd.f32 1.0, %v18486_v30 }
0x1432   : > { %18507 = vpow2.f32 %v13909_v36  ;;  %v18490_v40 = vpop.eup %18489  ;;  %v8687_v18 = vadd.f32 1.0, %v18488_v14  ;;  %v13911_v45 = vmul.f32 -1.442695, %v22834_v34  ;;  %v13912_v55 = vmul.f32 -1.442695, %v22838_v19 }
0x1433   : > { %18509 = vrcp.f32 %v8685_v52  ;;  %v18492_v54 = vpop.eup %18491  ;;  %v8730_v27 = vmul.f32 %v18490_v40, %v22730_v56  ;;  %v17690_v52 = vld [vmem:[#allocation2 + $0x288] sm:$0xff]  }
0x1434   : > { %18511 = vrcp.f32 %v8686_v28  ;;  %v18494_v31 = vpop.eup %18493  ;;  %v8688_v39 = vadd.f32 1.0, %v18492_v54 }
0x1435   : > { %18513 = vrcp.f32 %v8687_v18  ;;  %v18496_v12 = vpop.eup %18495  ;;  %v8689_v26 = vadd.f32 1.0, %v18494_v31 }
0x1436   : > { %18515 = vpow2.f32 %v13910_v35  ;;  %v18498_v58 = vpop.eup %18497  ;;  %v8729_v4 = vmul.f32 %v18496_v12, %v22743_v1 }
0x1437   : > { %18517 = vrcp.f32 %v8688_v39  ;;  %v18500_v6 = vpop.eup %18499  ;;  %v8690_v29 = vadd.f32 1.0, %v18498_v58 }
0x1438   : > { %18519 = vrcp.f32 %v8689_v26  ;;  %v8761_v20 = vpack.c.bf16 %v8730_v27, %v8729_v4  ;;  %v8691_v48 = vadd.f32 1.0, %v18500_v6  ;;  %v17691_v27 = vld [vmem:[#allocation2 + $0x290] sm:$0xff]   ;;  %v17692_v6 = vld [vmem:[#allocation2 + $0x298] sm:$0xff]  }
0x1439   : > { %v18502_v16 = vpop.eup %18501  ;;  %18521 = vpow2.f32 %v13911_v45 }
0x143a   : > { %v18504_v56 = vpop.eup %18503  ;;  %v8731_v57 = vmul.f32 %v18502_v16, %v22747_v43  ;;  %18523 = vrcp.f32 %v8690_v29  ;;  %16139 = vmatprep.mubr.bf16.mxu0 %v8761_v20 }
0x143b   : > { %v18506_v49 = vpop.eup %18505  ;;  %v8732_v36 = vmul.f32 %v18504_v56, %v22750_v3  ;;  %18525 = vrcp.f32 %v8691_v48 }
0x143c   : > { %v18508_v1 = vpop.eup %18507  ;;  %v8692_v37 = vadd.f32 1.0, %v18506_v49  ;;  %18527 = vpow2.f32 %v13912_v55 }
0x143d   : > { %v18510_v23 = vpop.eup %18509  ;;  %v8762_v30 = vpack.c.bf16 %v8732_v36, %v8731_v57  ;;  %v8693_v14 = vadd.f32 1.0, %v18508_v1 }
0x143e   : > { %v18512_v28 = vpop.eup %18511  ;;  %v8733_v35 = vmul.f32 %v18510_v23, %v22775_v41  ;;  %18529 = vrcp.f32 %v8692_v37 }
0x143f   : > { %v18514_v40 = vpop.eup %18513  ;;  %16140 = vmatmul.mubr.bf16.vlgmr.msra.gmra.mrb[232].mxu0 %v8762_v30  ;;  %v8734_v43 = vmul.f32 %v18512_v28, %v22778_v11  ;;  %18531 = vrcp.f32 %v8693_v14  ;;  %v24870_v14 = vld [vmem:[#allocation32_spill] sm:$0xff]  ;;  %v24873_v28 = vld [vmem:[#allocation33_spill] sm:$0xff] }
0x1440   : > { %v18516_v18 = vpop.eup %18515  ;;  %16156 = vmatpush3.bf16.msra.mxu0 %v22632_v61  ;;  %v8735_v3 = vmul.f32 %v18514_v40, %v22782_v60  ;;  %v13922_v40 = vld [vmem:[%s24499_s4 + $0x31] ss:$0 sm:$0xff] }
0x1441   : > { %v18518_v54 = vpop.eup %18517  ;;  %v8763_v31 = vpack.c.bf16 %v8734_v43, %v8733_v35  ;;  %16157 = vmatprep.subr.bf16.mxu0 %v17690_v52  ;;  %v8694_v39 = vadd.f32 1.0, %v18516_v18  ;;  %v13913_v35 = vld [vmem:[%s24499_s4 + $0x30] ss:$0 sm:$0xff] }
0x1442   : > { %v18520_v45 = vpop.eup %18519  ;;  %v8736_v12 = vmul.f32 %v18518_v54, %v22785_v50  ;;  %v22881_v18 = vadd.f32 %v13922_v40, %v13913_v35 }
0x1443   : > { %v18522_v41 = vpop.eup %18521  ;;  %16143 = vmatprep.mubr.bf16.mxu0 %v8763_v31  ;;  %v8737_v26 = vmul.f32 %v18520_v45, %v22791_v21  ;;  %18533 = vrcp.f32 %v8694_v39  ;;  %v22886_v39 = vld [vmem:[%s24499_s4 + $0x32] ss:$0 sm:$0xff] }
0x1444   : > { %v18524_v11 = vpop.eup %18523  ;;  %v8764_v58 = vpack.c.bf16 %v8736_v12, %v8735_v3  ;;  %16158 = vmatpush3.bf16.msra.mxu0 %v17690_v52  ;;  %v8695_v4 = vadd.f32 1.0, %v18522_v41  ;;  %v24867_v52 = vld [vmem:[#allocation26_spill] sm:$0xff] }
0x1445   : > { %v18526_v61 = vpop.eup %18525  ;;  %v8738_v60 = vmul.f32 %v18524_v11, %v22797_v59  ;;  %16159 = vmatprep.subr.bf16.mxu0 %v17691_v27 }
0x1446   : > { %v18528_v29 = vpop.eup %18527  ;;  %18535 = vrcp.f32 %v8695_v4  ;;  %v8739_v50 = vmul.f32 %v18526_v61, %v22811_v8 }
0x1447   : > { %16144 = vmatmul.mubr.bf16.gmra.mrb[236].mxu0 %v8764_v58  ;;  %v8765_v55 = vpack.c.bf16 %v8738_v60, %v8737_v26  ;;  %v8696_v16 = vadd.f32 1.0, %v18528_v29 }
0x1448   : > { %v18530_v20 = vpop.eup %18529  ;;  %16160 = vmatpush3.bf16.msra.mxu0 %v17691_v27 }
0x1449   : > { %v18532_v21 = vpop.eup %18531  ;;  %16147 = vmatprep.mubr.bf16.mxu0 %v8765_v55  ;;  %v8740_v48 = vmul.f32 %v18530_v20, %v22818_v53  ;;  %16161 = vmatprep.subr.bf16.mxu0 %v17692_v6  ;;  %18537 = vrcp.f32 %v8696_v16  ;;  %v24866_v53 = vld [vmem:[#allocation25_spill] sm:$0xff] }
0x144a   : > { %v8741_v59 = vmul.f32 %v18532_v21, %v22825_v5  ;;  %v24868_v5 = vld [vmem:[#allocation28_spill] sm:$0xff] }
0x144b   : > { %v8766_v56 = vpack.c.bf16 %v8740_v48, %v8739_v50 }
0x144c   : > { %16162 = vmatpush3.bf16.msra.mxu0 %v17692_v6 }
0x144d   : > { %v18534_v57 = vpop.eup %18533 }
0x144e   : > { %v8742_v49 = vmul.f32 %v18534_v57, %v22828_v17  ;;  %v24869_v17 = vld [vmem:[#allocation30_spill] sm:$0xff] }
0x144f   : > { %16148 = vmatmul.mubr.bf16.gmra.mrb[240].mxu0 %v8766_v56 }
0x1450   : > { %v18536_v36 = vpop.eup %18535  ;;  %v8767_v1 = vpack.c.bf16 %v8742_v49, %v8741_v59 }
0x1451   : > { %v8743_v8 = vmul.f32 %v18536_v36, %v22834_v34  ;;  %v24871_v34 = vld [vmem:[#allocation31_spill] sm:$0xff] }
0x1452   : > { %16151 = vmatprep.mubr.bf16.mxu0 %v8767_v1 }
0x1453   : > { %v18538_v37 = vpop.eup %18537 }
0x1454   : > { %v8744_v23 = vmul.f32 %v18538_v37, %v22838_v19  ;;  %v24872_v19 = vld [vmem:[#allocation34_spill] sm:$0xff] }
0x1456   : > { %v8768_v30 = vpack.c.bf16 %v8744_v23, %v8743_v8 }
0x1458   : > { %16152 = vmatmul.mubr.bf16.gmra.mrb[244].mxu0 %v8768_v30 }
0x1459   : > { %16163 = vmatprep.mubr.msk.bf16.mxu0 %vm1928_vm2, %v24866_v53 }
0x1460   : > { %16164 = vmatmul.mubr.msk.bf16.vlgmr.msra.gmra.mrb[232].mxu0 %vm1928_vm2, %v24867_v52 }
0x1461   : > { %16167 = vmatprep.mubr.msk.bf16.mxu0 %vm1928_vm2, %v24868_v5 }
0x1468   : > { %16168 = vmatmul.mubr.msk.bf16.gmra.mrb[236].mxu0 %vm1928_vm2, %v24869_v17 }
0x1469   : > { %16171 = vmatprep.mubr.msk.bf16.mxu0 %vm1928_vm2, %v24870_v14 }
0x1470   : > { %16172 = vmatmul.mubr.msk.bf16.gmra.mrb[240].mxu0 %vm1928_vm2, %v24871_v34  ;;  %v10199_v34 = vld [vmem:[%s24500_s5 + $0x68] sm:$0xff] }
0x1471   : > { %16175 = vmatprep.mubr.msk.bf16.mxu0 %vm1928_vm2, %v24872_v19  ;;  %v10198_v19 = vld [vmem:[%s24500_s5 + $0x60] sm:$0xff] }
0x1478   : > { %16176 = vmatmul.mubr.msk.bf16.gmra.mrb[244].mxu0 %vm1928_vm2, %v24873_v28 }
0x1533   : > { %v16165_v43 = vpop.f32.mrb[232].mxu0 }
0x1534   : > { %v17169_v3 = vadd.f32 %v16165_v43, %v13913_v35  ;;  %v8990_v54 = vpop.f32.mrb[233].mxu0 }
0x1535   : > { %v17172_v31 = vadd.f32 %v13913_v35, %v8990_v54  ;;  %v16166_v27 = vpop.f32.mrb[234].mxu0 }
0x1536   : > { %v8993_v45 = vpop.f32.mrb[235].mxu0  ;;  %v17170_v12 = vadd.f32 %v17169_v3, %v13922_v40  ;;  %v17176_v4 = vadd.f32 %v22881_v18, %v16166_v27 }
0x1537   : > { %v17173_v41 = vadd.f32 %v17172_v31, %v13922_v40  ;;  %v17179_v26 = vadd.f32 %v22881_v18, %v8993_v45 }
0x1538   : > { %v22897_v61 = vadd.f32 %v17170_v12, %v22886_v39  ;;  %v22908_v50 = vadd.f32 %v17176_v4, %v22886_v39 }
0x1539   : > { %v22890_v11 = vadd.f32 %v17173_v41, %v22886_v39  ;;  %v22893_v58 = vadd.f32 %v17179_v26, %v22886_v39 }
0x153b   : > { %v16169_v60 = vpop.f32.mrb[236].mxu0  ;;  %16195 = vmatprep.mubr.msk.f32.mxu1 %vm1928_vm2, %v22890_v11 }
0x153c   : > { %v9006_v6 = vpop.f32.mrb[237].mxu0  ;;  %16196 = vmatmul.mubr.msk.f32.vlgmr.msra.gmra.mrb[8].mxu1 %vm1928_vm2, %v22893_v58  ;;  %v17182_v20 = vadd.f32 %v22881_v18, %v16169_v60 }
0x153d   : > { %v17185_v29 = vadd.f32 %v22881_v18, %v9006_v6  ;;  %16946 = vmatpush3.bf16.msra.mxu1 %v24712_v15  ;;  %v16170_v55 = vpop.f32.mrb[238].mxu0  ;;  %16198 = vmatprep.mubr.msk.f32.mxu1 %vm1928_vm2, %v22897_v61 }
0x153e   : > { %v9009_v16 = vpop.f32.mrb[239].mxu0  ;;  %16948 = vmatprep.subr.bf16.mxu1 %v24845_v51  ;;  %v17188_v59 = vadd.f32 %v22881_v18, %v16170_v55  ;;  %v22927_v57 = vadd.f32 %v17182_v20, %v22886_v39 }
0x153f   : > { %v22913_v21 = vadd.f32 %v17185_v29, %v22886_v39  ;;  %v17191_v48 = vadd.f32 %v22881_v18, %v9009_v16 }
0x1540   : > { %16199 = vmatmul.mubr.msk.f32.gmra.mrb[10].mxu1 %vm1928_vm2, %v22908_v50  ;;  %v22936_v37 = vadd.f32 %v17188_v59, %v22886_v39  ;;  %v9285_v59 = vmul.f32 %v22897_v61, %v22897_v61 }
0x1541   : > { %v22919_v56 = vadd.f32 %v17191_v48, %v22886_v39  ;;  %16201 = vmatprep.mubr.msk.f32.mxu1 %vm1928_vm2, %v22913_v21  ;;  %16950 = vmatpush3.bf16.msra.mxu1 %v24845_v51  ;;  %v9283_v48 = vmul.f32 %v22890_v11, %v22890_v11  ;;  %v10203_v51 = vld [vmem:[%s24500_s5 + $0x88] sm:$0xff] }
0x1542   : > { %16952 = vmatprep.subr.bf16.mxu1 %v24848_v2 }
0x1543   : > { %v16173_v49 = vpop.f32.mrb[240].mxu0 }
0x1544   : > { %v9022_v36 = vpop.f32.mrb[241].mxu0  ;;  %16202 = vmatmul.mubr.msk.f32.gmra.mrb[12].mxu1 %vm1928_vm2, %v22919_v56  ;;  %v17194_v30 = vadd.f32 %v22881_v18, %v16173_v49  ;;  %v9287_v49 = vmul.f32 %v22913_v21, %v22913_v21 }
0x1545   : > { %v17197_v1 = vadd.f32 %v22881_v18, %v9022_v36  ;;  %v16174_v8 = vpop.f32.mrb[242].mxu0  ;;  %16204 = vmatprep.mubr.msk.f32.mxu1 %vm1928_vm2, %v22927_v57  ;;  %16954 = vmatpush3.bf16.msra.mxu1 %v24848_v2  ;;  %v9288_v36 = vmul.f32 %v22919_v56, %v22919_v56  ;;  %v10202_v2 = vld [vmem:[%s24500_s5 + $0x80] sm:$0xff] }
0x1546   : > { %v9025_v23 = vpop.f32.mrb[243].mxu0  ;;  %16956 = vmatprep.subr.bf16.mxu1 %v24851_v62  ;;  %v17200_v3 = vadd.f32 %v22881_v18, %v16174_v8  ;;  %v22954_v54 = vadd.f32 %v17194_v30, %v22886_v39  ;;  %v9290_v8 = vmul.f32 %v22936_v37, %v22936_v37 }
0x1547   : > { %v22941_v35 = vadd.f32 %v17197_v1, %v22886_v39  ;;  %v17203_v40 = vadd.f32 %v22881_v18, %v9025_v23  ;;  %v9289_v1 = vmul.f32 %v22927_v57, %v22927_v57 }
0x1548   : > { %16205 = vmatmul.mubr.msk.f32.gmra.mrb[14].mxu1 %vm1928_vm2, %v22936_v37  ;;  %v22962_v41 = vadd.f32 %v17200_v3, %v22886_v39 }
0x1549   : > { %v22947_v43 = vadd.f32 %v17203_v40, %v22886_v39  ;;  %16207 = vmatprep.mubr.msk.f32.mxu1 %vm1928_vm2, %v22941_v35  ;;  %16958 = vmatpush3.bf16.msra.mxu1 %v24851_v62  ;;  %v9291_v23 = vmul.f32 %v22941_v35, %v22941_v35  ;;  %v9293_v40 = vmul.f32 %v22954_v54, %v22954_v54 }
0x154a   : > { %v9294_v3 = vmul.f32 %v22962_v41, %v22962_v41 }
0x154b   : > { %v16177_v31 = vpop.f32.mrb[244].mxu0  ;;  %v9292_v30 = vmul.f32 %v22947_v43, %v22947_v43 }
0x154c   : > { %v9038_v27 = vpop.f32.mrb[245].mxu0  ;;  %16208 = vmatmul.mubr.msk.f32.gmra.mrb[16].mxu1 %vm1928_vm2, %v22947_v43  ;;  %v17206_v4 = vadd.f32 %v22881_v18, %v16177_v31 }
0x154d   : > { %v17209_v45 = vadd.f32 %v22881_v18, %v9038_v27  ;;  %v16178_v12 = vpop.f32.mrb[246].mxu0  ;;  %16210 = vmatprep.mubr.msk.f32.mxu1 %vm1928_vm2, %v22954_v54 }
0x154e   : > { %v9041_v26 = vpop.f32.mrb[247].mxu0  ;;  %v17212_v55 = vadd.f32 %v22881_v18, %v16178_v12  ;;  %v22978_v16 = vadd.f32 %v17206_v4, %v22886_v39  ;;  %v17694_v4 = vld [vmem:[#allocation2 + $0x2a8] sm:$0xff]  }
0x154f   : > { %v22966_v60 = vadd.f32 %v17209_v45, %v22886_v39  ;;  %v17215_v6 = vadd.f32 %v22881_v18, %v9041_v26  ;;  %v9284_v18 = vmul.f32 %v22893_v58, %v22893_v58  ;;  %v17693_v26 = vld [vmem:[#allocation2 + $0x2a0] sm:$0xff]  }
0x1550   : > { %16211 = vmatmul.mubr.msk.f32.gmra.mrb[18].mxu1 %vm1928_vm2, %v22962_v41  ;;  %v22985_v20 = vadd.f32 %v17212_v55, %v22886_v39  ;;  %v9297_v45 = vmul.f32 %v22978_v16, %v22978_v16  ;;  %16259 = vmatprep.subr.bf16.mxu0 %v17693_v26  ;;  %v17696_v55 = vld [vmem:[#allocation2 + $0x2b8] sm:$0xff]  }
0x1551   : > { %v22972_v29 = vadd.f32 %v17215_v6, %v22886_v39  ;;  %16213 = vmatprep.mubr.msk.f32.mxu1 %vm1928_vm2, %v22966_v60  ;;  %v9286_v39 = vmul.f32 %v22908_v50, %v22908_v50  ;;  %v9295_v31 = vmul.f32 %v22966_v60, %v22966_v60  ;;  %16260 = vmatpush3.bf16.msra.mxu0 %v17693_v26  ;;  %v17695_v6 = vld [vmem:[#allocation2 + $0x2b0] sm:$0xff]  }
0x1552   : > { %v9298_v12 = vmul.f32 %v22985_v20, %v22985_v20  ;;  %16261 = vmatprep.subr.bf16.mxu0 %v17694_v4  ;;  %v10196_v26 = vld [vmem:[%s24500_s5 + $0x50] sm:$0xff] }
0x1553   : > { %v9296_v27 = vmul.f32 %v22972_v29, %v22972_v29 }
0x1554   : > { %16214 = vmatmul.mubr.msk.f32.gmra.mrb[20].mxu1 %vm1928_vm2, %v22972_v29 }
0x1555   : > { %16216 = vmatprep.mubr.msk.f32.mxu1 %vm1928_vm2, %v22978_v16  ;;  %16262 = vmatpush3.bf16.msra.mxu0 %v17694_v4 }
0x1556   : > { %16263 = vmatprep.subr.bf16.mxu0 %v17695_v6 }
0x1558   : > { %16217 = vmatmul.mubr.msk.f32.gmra.mrb[22].mxu1 %vm1928_vm2, %v22985_v20 }
0x1559   : > { %16235 = vmatprep.mubr.msk.f32.mxu1 %vm1928_vm2, %v9283_v48  ;;  %16264 = vmatpush3.bf16.msra.mxu0 %v17695_v6  ;;  %v23037_v48 = vld [vmem:[#allocation2 + $0x2c0] sm:$0xff]  }
0x155a   : > { %16265 = vmatprep.subr.bf16.mxu0 %v17696_v55 }
0x155c   : > { %16236 = vmatmul.mubr.msk.f32.vlgmr.msra.gmra.mrb[24].mxu1 %vm1928_vm2, %v9284_v18 }
0x155d   : > { %16238 = vmatprep.mubr.msk.f32.mxu1 %vm1928_vm2, %v9285_v59  ;;  %16266 = vmatpush3.bf16.msra.mxu0 %v17696_v55  ;;  %v10197_v55 = vld [vmem:[%s24500_s5 + $0x58] sm:$0xff] }
0x155e   : > { %16283 = vmatprep.subr.bf16.mxu0 %v23037_v48  ;;  %v23082_v28 = vpack.c.bf16 %v10197_v55, %v10196_v26  ;;  %v10200_v26 = vld [vmem:[%s24500_s5 + $0x70] sm:$0xff]  ;;  %v10201_v55 = vld [vmem:[%s24500_s5 + $0x78] sm:$0xff] }
0x1560   : > { %16239 = vmatmul.mubr.msk.f32.gmra.mrb[26].mxu1 %vm1928_vm2, %v9286_v39  ;;  %24875 = vst [vmem:[#allocation35_spill] sm:$0xff] %v23082_v28 }
0x1561   : > { %16241 = vmatprep.mubr.msk.f32.mxu1 %vm1928_vm2, %v9287_v49 }
0x1564   : > { %16242 = vmatmul.mubr.msk.f32.gmra.mrb[28].mxu1 %vm1928_vm2, %v9288_v36 }
0x1565   : > { %16244 = vmatprep.mubr.msk.f32.mxu1 %vm1928_vm2, %v9289_v1 }
0x1568   : > { %16245 = vmatmul.mubr.msk.f32.gmra.mrb[30].mxu1 %vm1928_vm2, %v9290_v8 }
0x1569   : > { %16247 = vmatprep.mubr.msk.f32.mxu1 %vm1928_vm2, %v9291_v23 }
0x156c   : > { %16248 = vmatmul.mubr.msk.f32.gmra.mrb[32].mxu1 %vm1928_vm2, %v9292_v30 }
0x156d   : > { %16250 = vmatprep.mubr.msk.f32.mxu1 %vm1928_vm2, %v9293_v40 }
0x1570   : > { %16251 = vmatmul.mubr.msk.f32.gmra.mrb[34].mxu1 %vm1928_vm2, %v9294_v3 }
0x1571   : > { %16253 = vmatprep.mubr.msk.f32.mxu1 %vm1928_vm2, %v9295_v31 }
0x1574   : > { %16254 = vmatmul.mubr.msk.f32.gmra.mrb[36].mxu1 %vm1928_vm2, %v9296_v27 }
0x1575   : > { %16256 = vmatprep.mubr.msk.f32.mxu1 %vm1928_vm2, %v9297_v45  ;;  %v10194_v45 = vld [vmem:[%s24500_s5 + $0x40] sm:$0xff] }
0x1578   : > { %16257 = vmatmul.mubr.msk.f32.gmra.mrb[38].mxu1 %vm1928_vm2, %v9298_v12  ;;  %v10195_v12 = vld [vmem:[%s24500_s5 + $0x48] sm:$0xff] }
0x1579   : > { %v23077_v6 = vpack.c.bf16 %v10195_v12, %v10194_v45  ;;  %v23097_v12 = vpack.c.bf16 %v10199_v34, %v10198_v19  ;;  %v23111_v19 = vpack.c.bf16 %v10201_v55, %v10200_v26 }
0x157b   : > { %24874 = vst [vmem:[#allocation38_spill] sm:$0xff] %v23077_v6  ;;  %16960 = vmatprep.subr.bf16.mxu1 %v23077_v6  ;;  %24876 = vst [vmem:[#allocation48_spill] sm:$0xff] %v23097_v12 }
0x157c   : > { %16962 = vmatpush3.bf16.msra.mxu1 %v23077_v6  ;;  %24877 = vst [vmem:[#allocation44_spill] sm:$0xff] %v23111_v19 }
0x157d   : > { %16964 = vmatprep.subr.bf16.mxu1 %v23082_v28 }
0x1580   : > { %16966 = vmatpush3.bf16.msra.mxu1 %v23082_v28 }
0x1581   : > { %16968 = vmatprep.subr.bf16.mxu1 %v23097_v12 }
0x1584   : > { %16970 = vmatpush3.bf16.msra.mxu1 %v23097_v12 }
0x1585   : > { %16972 = vmatprep.subr.bf16.mxu1 %v23111_v19 }
0x1588   : > { %16974 = vmatpush3.bf16.msra.mxu1 %v23111_v19 }
0x160f   : > { %v23040_v18 = vpop.f32.mrb[8].mxu1 }
0x1610   : > { %v23042_v59 = vpop.f32.mrb[9].mxu1  ;;  %v9493_v17 = vmul.f32 %v23040_v18, %v23040_v18 }
0x1611   : > { %v9492_v5 = vmul.f32 %v23042_v59, %v23042_v59 }
0x1613   : > { %v23044_v39 = vpop.f32.mrb[10].mxu1 }
0x1614   : > { %v23046_v49 = vpop.f32.mrb[11].mxu1  ;;  %v9495_v15 = vmul.f32 %v23044_v39, %v23044_v39 }
0x1617   : > { %v23048_v36 = vpop.f32.mrb[12].mxu1 }
0x1618   : > { %v23050_v1 = vpop.f32.mrb[13].mxu1  ;;  %v9497_v32 = vmul.f32 %v23048_v36, %v23048_v36 }
0x161b   : > { %v23052_v8 = vpop.f32.mrb[14].mxu1 }
0x161c   : > { %v23054_v23 = vpop.f32.mrb[15].mxu1 }
0x161f   : > { %v23056_v30 = vpop.f32.mrb[16].mxu1 }
0x1620   : > { %v23058_v40 = vpop.f32.mrb[17].mxu1 }
0x1623   : > { %v23060_v3 = vpop.f32.mrb[18].mxu1 }
0x1624   : > { %v23062_v31 = vpop.f32.mrb[19].mxu1 }
0x1627   : > { %v23064_v27 = vpop.f32.mrb[20].mxu1 }
0x1628   : > { %v23075_v4 = vpop.f32.mrb[21].mxu1 }
0x162b   : > { %v23091_v14 = vpop.f32.mrb[22].mxu1 }
0x162c   : > { %v23094_v45 = vpop.f32.mrb[23].mxu1 }
0x162f   : > { %v16237_v52 = vpop.f32.mrb[24].mxu1 }
0x1630   : > { %v9509_v53 = vsub.f32 %v16237_v52, %v9493_v17  ;;  %v9413_v34 = vpop.f32.mrb[25].mxu1  ;;  %v9494_v52 = vmul.f32 %v23046_v49, %v23046_v49 }
0x1631   : > { %v9508_v62 = vsub.f32 %v9413_v34, %v9492_v5  ;;  %v23125_v34 = vpack.c.bf16 %v10203_v51, %v10202_v2  ;;  %v9541_v51 = vsub.f32 %v22893_v58, %v23040_v18  ;;  %v9540_v2 = vsub.f32 %v22890_v11, %v23042_v59  ;;  %v23178_v11 = vld [vmem:[%s24499_s4 + $0x34] ss:$0 sm:$0xff] }
0x1632   : > { %v9525_v6 = vmax.f32 %v9509_v53, 0.0 }
0x1633   : > { %v9524_v17 = vmax.f32 %v9508_v62, 0.0  ;;  %v16240_v28 = vpop.f32.mrb[26].mxu1  ;;  %24878 = vst [vmem:[#allocation46_spill] sm:$0xff] %v23125_v34  ;;  %v9496_v62 = vmul.f32 %v23050_v1, %v23050_v1  ;;  %16976 = vmatprep.subr.bf16.mxu1 %v23125_v34 }
0x1634   : > { %v9557_v5 = vadd.f32 1e-05, %v9525_v6  ;;  %v9511_v26 = vsub.f32 %v16240_v28, %v9495_v15  ;;  %v9423_v55 = vpop.f32.mrb[27].mxu1  ;;  %16978 = vmatpush3.bf16.msra.mxu1 %v23125_v34 }
0x1635   : > { %v9556_v9 = vadd.f32 1e-05, %v9524_v17  ;;  %v9510_v22 = vsub.f32 %v9423_v55, %v9494_v52 }
0x1636   : > { %18539 = vrsqrt.f32 %v9557_v5  ;;  %v9527_v53 = vmax.f32 %v9511_v26, 0.0 }
0x1637   : > { %18541 = vrsqrt.f32 %v9556_v9  ;;  %v9526_v13 = vmax.f32 %v9510_v22, 0.0  ;;  %v16243_v12 = vpop.f32.mrb[28].mxu1  ;;  %v9543_v9 = vsub.f32 %v22908_v50, %v23044_v39  ;;  %v9499_v22 = vmul.f32 %v23052_v8, %v23052_v8 }
0x1638   : > { %v9559_v15 = vadd.f32 1e-05, %v9527_v53  ;;  %v9513_v28 = vsub.f32 %v16243_v12, %v9497_v32  ;;  %v9433_v6 = vpop.f32.mrb[29].mxu1  ;;  %v9542_v32 = vsub.f32 %v22897_v61, %v23046_v49  ;;  %v9498_v12 = vmul.f32 %v23054_v23, %v23054_v23 }
0x1639   : > { %v9558_v52 = vadd.f32 1e-05, %v9526_v13  ;;  %v9512_v17 = vsub.f32 %v9433_v6, %v9496_v62  ;;  %v9501_v53 = vmul.f32 %v23056_v30, %v23056_v30  ;;  %v9504_v49 = vmul.f32 %v23075_v4, %v23075_v4 }
0x163a   : > { %18543 = vrsqrt.f32 %v9559_v15  ;;  %v9529_v5 = vmax.f32 %v9513_v28, 0.0  ;;  %v9500_v28 = vmul.f32 %v23058_v40, %v23058_v40 }
0x163b   : > { %18545 = vrsqrt.f32 %v9558_v52  ;;  %v9528_v58 = vmax.f32 %v9512_v17, 0.0  ;;  %v16246_v18 = vpop.f32.mrb[30].mxu1 }
0x163c   : > { %v9561_v50 = vadd.f32 1e-05, %v9529_v5  ;;  %v9515_v59 = vsub.f32 %v16246_v18, %v9499_v22  ;;  %v9443_v39 = vpop.f32.mrb[31].mxu1  ;;  %v9503_v5 = vmul.f32 %v23060_v3, %v23060_v3 }
0x163d   : > { %v9560_v26 = vadd.f32 1e-05, %v9528_v58  ;;  %v9514_v55 = vsub.f32 %v9443_v39, %v9498_v12  ;;  %v9502_v12 = vmul.f32 %v23062_v31, %v23062_v31  ;;  %v23169_v58 = vld [vmem:[%s24499_s4 + $0x33] ss:$0 sm:$0xff] }
0x163e   : > { %18547 = vrsqrt.f32 %v9561_v50  ;;  %v9531_v15 = vmax.f32 %v9515_v59, 0.0 }
0x163f   : > { %18549 = vrsqrt.f32 %v9560_v26  ;;  %v9530_v52 = vmax.f32 %v9514_v55, 0.0  ;;  %v16249_v17 = vpop.f32.mrb[32].mxu1  ;;  %v9505_v26 = vmul.f32 %v23064_v27, %v23064_v27 }
0x1640   : > { %v18540_v22 = vpop.eup %18539  ;;  %v9563_v18 = vadd.f32 1e-05, %v9531_v15  ;;  %v9517_v50 = vsub.f32 %v16249_v17, %v9501_v53  ;;  %v9453_v59 = vpop.f32.mrb[33].mxu1  ;;  %v9507_v53 = vmul.f32 %v23091_v14, %v23091_v14 }
0x1641   : > { %v18542_v39 = vpop.eup %18541  ;;  %v9589_v55 = vmul.f32 %v18540_v22, %v9541_v51  ;;  %v9562_v6 = vadd.f32 1e-05, %v9530_v52  ;;  %v9516_v62 = vsub.f32 %v9453_v59, %v9500_v28  ;;  %v9506_v52 = vmul.f32 %v23094_v45, %v23094_v45 }
0x1642   : > { %v9588_v61 = vmul.f32 %v18542_v39, %v9540_v2  ;;  %18551 = vrsqrt.f32 %v9563_v18  ;;  %v9533_v15 = vmax.f32 %v9517_v50, 0.0 }
0x1643   : > { %18553 = vrsqrt.f32 %v9562_v6  ;;  %v9532_v17 = vmax.f32 %v9516_v62, 0.0  ;;  %v16252_v13 = vpop.f32.mrb[34].mxu1  ;;  %v9610_v51 = vmul.f32 %v23169_v58, %v9589_v55 }
0x1644   : > { %v18544_v28 = vpop.eup %18543  ;;  %v9565_v2 = vadd.f32 1e-05, %v9533_v15  ;;  %v9519_v22 = vsub.f32 %v16252_v13, %v9503_v5  ;;  %v9463_v59 = vpop.f32.mrb[35].mxu1  ;;  %v9609_v39 = vmul.f32 %v23169_v58, %v9588_v61 }
0x1645   : > { %v18546_v34 = vpop.eup %18545  ;;  %v9591_v18 = vmul.f32 %v18544_v28, %v9543_v9  ;;  %v9564_v50 = vadd.f32 1e-05, %v9532_v17  ;;  %v9518_v19 = vsub.f32 %v9463_v59, %v9502_v12  ;;  %v23187_v44 = vadd.f32 %v23178_v11, %v9610_v51 }
0x1646   : > { %v9590_v62 = vmul.f32 %v18546_v34, %v9542_v32  ;;  %18555 = vrsqrt.f32 %v9565_v2  ;;  %v9535_v6 = vmax.f32 %v9519_v22, 0.0  ;;  %v23190_v55 = vadd.f32 %v23178_v11, %v9609_v39 }
0x1647   : > { %v9612_v7 = vmul.f32 %v23169_v58, %v9591_v18  ;;  %18557 = vrsqrt.f32 %v9564_v50  ;;  %v9534_v13 = vmax.f32 %v9518_v19, 0.0  ;;  %v16255_v5 = vpop.f32.mrb[36].mxu1  ;;  %v13971_v61 = vmul.f32 -1.442695, %v23187_v44 }
0x1648   : > { %v18548_v15 = vpop.eup %18547  ;;  %v9611_v9 = vmul.f32 %v23169_v58, %v9590_v62  ;;  %v9567_v12 = vadd.f32 1e-05, %v9535_v6  ;;  %v9521_v17 = vsub.f32 %v16255_v5, %v9505_v26  ;;  %v9473_v51 = vpop.f32.mrb[37].mxu1  ;;  %v13970_v34 = vmul.f32 -1.442695, %v23190_v55 }
0x1649   : > { %v18550_v32 = vpop.eup %18549  ;;  %v23197_v28 = vadd.f32 %v23178_v11, %v9612_v7  ;;  %v24879_v2 = vsub.f32 %v22919_v56, %v23048_v36  ;;  %v9566_v19 = vadd.f32 1e-05, %v9534_v13  ;;  %v9520_v59 = vsub.f32 %v9473_v51, %v9504_v49 }
0x164a   : > { %v23203_v39 = vadd.f32 %v23178_v11, %v9611_v9  ;;  %v24880_v18 = vsub.f32 %v22913_v21, %v23050_v1  ;;  %18559 = vrsqrt.f32 %v9567_v12  ;;  %v9537_v50 = vmax.f32 %v9521_v17, 0.0 }
0x164b   : > { %v9593_v22 = vmul.f32 %v18548_v15, %v24879_v2  ;;  %v13973_v62 = vmul.f32 -1.442695, %v23197_v28  ;;  %18561 = vrsqrt.f32 %v9566_v19  ;;  %v9536_v7 = vmax.f32 %v9520_v59, 0.0  ;;  %v16258_v6 = vpop.f32.mrb[38].mxu1 }
0x164c   : > { %v9592_v26 = vmul.f32 %v18550_v32, %v24880_v18  ;;  %v18552_v56 = vpop.eup %18551  ;;  %v13972_v36 = vmul.f32 -1.442695, %v23203_v39  ;;  %v9569_v49 = vadd.f32 1e-05, %v9537_v50  ;;  %v9523_v13 = vsub.f32 %v16258_v6, %v9507_v53  ;;  %v9483_v15 = vpop.f32.mrb[39].mxu1 }
0x164d   : > { %v9614_v5 = vmul.f32 %v23169_v58, %v9593_v22  ;;  %18563 = vpow2.f32 %v13970_v34  ;;  %v18554_v9 = vpop.eup %18553  ;;  %v24881_v21 = vsub.f32 %v22936_v37, %v23052_v8  ;;  %v9568_v12 = vadd.f32 1e-05, %v9536_v7 }
0x164e   : > { %18565 = vpow2.f32 %v13973_v62  ;;  %v9522_v17 = vsub.f32 %v9483_v15, %v9506_v52  ;;  %v24882_v51 = vsub.f32 %v22927_v57, %v23054_v23  ;;  %v9539_v2 = vmax.f32 %v9523_v13, 0.0 }
0x164f   : > { %v9595_v1 = vmul.f32 %v18552_v56, %v24881_v21  ;;  %18567 = vpow2.f32 %v13972_v36  ;;  %v9613_v22 = vmul.f32 %v23169_v58, %v9592_v26  ;;  %v23219_v34 = vadd.f32 %v23178_v11, %v9614_v5 }
0x1650   : > { %v9594_v32 = vmul.f32 %v18554_v9, %v24882_v51  ;;  %18569 = vrsqrt.f32 %v9569_v49  ;;  %v9538_v53 = vmax.f32 %v9522_v17, 0.0  ;;  %v18556_v59 = vpop.eup %18555  ;;  %v9571_v37 = vadd.f32 1e-05, %v9539_v2 }
0x1651   : > { %v9616_v19 = vmul.f32 %v23169_v58, %v9595_v1  ;;  %18571 = vrsqrt.f32 %v9568_v12  ;;  %v23223_v8 = vadd.f32 %v23178_v11, %v9613_v22  ;;  %v18558_v57 = vpop.eup %18557  ;;  %v24883_v23 = vsub.f32 %v22947_v43, %v23056_v30 }
0x1652   : > { %v9615_v52 = vmul.f32 %v23169_v58, %v9594_v32  ;;  %v9570_v26 = vadd.f32 1e-05, %v9538_v53  ;;  %18573 = vpow2.f32 %v13971_v61  ;;  %v13975_v50 = vmul.f32 -1.442695, %v23219_v34 }
0x1653   : > { %v9597_v18 = vmul.f32 %v18556_v59, %v24883_v23  ;;  %v24884_v62 = vsub.f32 %v22941_v35, %v23058_v40  ;;  %18575 = vrsqrt.f32 %v9571_v37  ;;  %v13974_v6 = vmul.f32 -1.442695, %v23223_v8 }
0x1654   : > { %v23235_v5 = vadd.f32 %v23178_v11, %v9615_v52  ;;  %v9551_v56 = vsub.f32 %v22962_v41, %v23060_v3  ;;  %18577 = vrsqrt.f32 %v9570_v26  ;;  %v23240_v43 = vadd.f32 %v23178_v11, %v9616_v19  ;;  %v18560_v61 = vpop.eup %18559 }
0x1655   : > { %v9596_v7 = vmul.f32 %v18558_v57, %v24884_v62  ;;  %v9618_v30 = vmul.f32 %v23169_v58, %v9597_v18  ;;  %v9550_v35 = vsub.f32 %v22954_v54, %v23062_v31  ;;  %18579 = vpow2.f32 %v13974_v6  ;;  %v18562_v49 = vpop.eup %18561 }
0x1656   : > { %v13976_v40 = vmul.f32 -1.442695, %v23235_v5  ;;  %v9599_v13 = vmul.f32 %v18560_v61, %v9551_v56  ;;  %18581 = vpow2.f32 %v13975_v50  ;;  %v13977_v41 = vmul.f32 -1.442695, %v23240_v43 }
0x1657   : > { %v9617_v36 = vmul.f32 %v23169_v58, %v9596_v7  ;;  %v18564_v3 = vpop.eup %18563  ;;  %v9553_v15 = vsub.f32 %v22972_v29, %v23064_v27  ;;  %v9598_v9 = vmul.f32 %v18562_v49, %v9550_v35  ;;  %v23255_v12 = vadd.f32 %v23178_v11, %v9618_v30 }
0x1658   : > { %18583 = vpow2.f32 %v13976_v40  ;;  %v18566_v54 = vpop.eup %18565  ;;  %v9620_v31 = vmul.f32 %v23169_v58, %v9599_v13  ;;  %v9694_v1 = vadd.f32 1.0, %v18564_v3  ;;  %v9552_v51 = vsub.f32 %v22966_v60, %v23075_v4 }
0x1659   : > { %v23251_v21 = vadd.f32 %v23178_v11, %v9617_v36  ;;  %18585 = vpow2.f32 %v13977_v41  ;;  %v18568_v17 = vpop.eup %18567  ;;  %v9697_v32 = vadd.f32 1.0, %v18566_v54  ;;  %v9619_v29 = vmul.f32 %v23169_v58, %v9598_v9 }
0x165a   : > { %v18570_v2 = vpop.eup %18569  ;;  %v9555_v22 = vsub.f32 %v22985_v20, %v23091_v14  ;;  %v9696_v53 = vadd.f32 1.0, %v18568_v17  ;;  %v23264_v19 = vadd.f32 %v23178_v11, %v9620_v31  ;;  %18587 = vrcp.f32 %v9694_v1 }
0x165b   : > { %v13978_v27 = vmul.f32 -1.442695, %v23251_v21  ;;  %v18572_v59 = vpop.eup %18571  ;;  %v9554_v37 = vsub.f32 %v22978_v16, %v23094_v45  ;;  %18589 = vrcp.f32 %v9697_v32  ;;  %v23269_v60 = vadd.f32 %v23178_v11, %v9619_v29 }
0x165c   : > { %v9601_v4 = vmul.f32 %v18570_v2, %v9553_v15  ;;  %v18574_v52 = vpop.eup %18573  ;;  %18591 = vrcp.f32 %v9696_v53  ;;  %v13981_v57 = vmul.f32 -1.442695, %v23264_v19  ;;  %v9600_v23 = vmul.f32 %v18572_v59, %v9552_v51 }
0x165d   : > { %v13979_v14 = vmul.f32 -1.442695, %v23255_v12  ;;  %v18576_v20 = vpop.eup %18575  ;;  %v13980_v18 = vmul.f32 -1.442695, %v23269_v60  ;;  %v9695_v26 = vadd.f32 1.0, %v18574_v52  ;;  %18593 = vpow2.f32 %v13978_v27 }
0x165e   : > { %v9622_v50 = vmul.f32 %v23169_v58, %v9601_v4  ;;  %v18578_v16 = vpop.eup %18577  ;;  %18595 = vpow2.f32 %v13981_v57  ;;  %v9603_v45 = vmul.f32 %v18576_v20, %v9555_v22  ;;  %v9621_v62 = vmul.f32 %v23169_v58, %v9600_v23 }
0x165f   : > { %v18580_v7 = vpop.eup %18579  ;;  %18597 = vpow2.f32 %v13980_v18  ;;  %v9602_v6 = vmul.f32 %v18578_v16, %v9554_v37 }
0x1660   : > { %v18582_v56 = vpop.eup %18581  ;;  %v9624_v30 = vmul.f32 %v23169_v58, %v9603_v45  ;;  %18599 = vrcp.f32 %v9695_v26  ;;  %v9698_v61 = vadd.f32 1.0, %v18580_v7  ;;  %v23278_v35 = vadd.f32 %v23178_v11, %v9621_v62  ;;  %v17698_v45 = vld [vmem:[#allocation2 + $0x2c8] sm:$0xff]  }
0x1661   : > { %v9623_v36 = vmul.f32 %v23169_v58, %v9602_v6  ;;  %v9699_v49 = vadd.f32 1.0, %v18582_v56  ;;  %18601 = vpow2.f32 %v13979_v14  ;;  %v23282_v13 = vadd.f32 %v23178_v11, %v9622_v50 }
0x1662   : > { %v18584_v40 = vpop.eup %18583  ;;  %v23285_v3 = vadd.f32 %v23178_v11, %v9624_v30  ;;  %18603 = vrcp.f32 %v9698_v61  ;;  %v13982_v58 = vmul.f32 -1.442695, %v23278_v35 }
0x1663   : > { %v18586_v41 = vpop.eup %18585  ;;  %v9700_v15 = vadd.f32 1.0, %v18584_v40  ;;  %v23288_v9 = vadd.f32 %v23178_v11, %v9623_v36  ;;  %18605 = vrcp.f32 %v9699_v49  ;;  %v13983_v32 = vmul.f32 -1.442695, %v23282_v13 }
0x1664   : > { %v9701_v54 = vadd.f32 1.0, %v18586_v41  ;;  %v18588_v31 = vpop.eup %18587  ;;  %v13985_v1 = vmul.f32 -1.442695, %v23285_v3 }
0x1665   : > { %18607 = vrcp.f32 %v9700_v15  ;;  %v18590_v17 = vpop.eup %18589  ;;  %v13984_v51 = vmul.f32 -1.442695, %v23288_v9  ;;  %v9742_v4 = vmul.f32 %v18588_v31, %v23190_v55 }
0x1666   : > { %18609 = vrcp.f32 %v9701_v54  ;;  %v18592_v29 = vpop.eup %18591  ;;  %v9745_v27 = vmul.f32 %v18590_v17, %v23197_v28 }
0x1667   : > { %18611 = vpow2.f32 %v13985_v1  ;;  %v18594_v11 = vpop.eup %18593  ;;  %v9744_v2 = vmul.f32 %v18592_v29, %v23203_v39  ;;  %v17701_v29 = vld [vmem:[#allocation2 + $0x2e0] sm:$0xff]  }
0x1668   : > { %18613 = vpow2.f32 %v13984_v51  ;;  %v18596_v22 = vpop.eup %18595  ;;  %v9702_v53 = vadd.f32 1.0, %v18594_v11 }
0x1669   : > { %18615 = vpow2.f32 %v13982_v58  ;;  %v18598_v59 = vpop.eup %18597  ;;  %v9705_v37 = vadd.f32 1.0, %v18596_v22  ;;  %v9767_v52 = vpack.c.bf16 %v9745_v27, %v9744_v2 }
0x166a   : > { %18617 = vpow2.f32 %v13983_v32  ;;  %v18600_v57 = vpop.eup %18599  ;;  %v9704_v23 = vadd.f32 1.0, %v18598_v59 }
0x166b   : > { %18619 = vrcp.f32 %v9702_v53  ;;  %v18602_v14 = vpop.eup %18601  ;;  %v9743_v28 = vmul.f32 %v18600_v57, %v23187_v44  ;;  %v9943_v57 = vpack.c.bf16 %v22560_v10, %v22545_v63  ;;  %v10204_v63 = vld [vmem:[%s24500_s5 + $0x90] sm:$0xff] }
0x166c   : > { %18621 = vrcp.f32 %v9705_v37  ;;  %v18604_v20 = vpop.eup %18603  ;;  %v9703_v39 = vadd.f32 1.0, %v18602_v14 }
0x166d   : > { %18623 = vrcp.f32 %v9704_v23  ;;  %v18606_v18 = vpop.eup %18605  ;;  %v9766_v26 = vpack.c.bf16 %v9743_v28, %v9742_v4  ;;  %v9746_v50 = vmul.f32 %v18604_v20, %v23223_v8  ;;  %v17703_v4 = vld [vmem:[#allocation2 + $0x2f0] sm:$0xff]   ;;  %v24886_v23 = vld [vmem:[#allocation63_spill] sm:$0xff]  ;;  %v24887_v28 = vld [vmem:[#allocation65_spill] sm:$0xff] }
0x166e   : > { %v9747_v55 = vmul.f32 %v18606_v18, %v23219_v34  ;;  %18625 = vrcp.f32 %v9703_v39  ;;  %v17699_v34 = vld [vmem:[#allocation2 + $0x2d0] sm:$0xff]   ;;  %v10133_v18 = vpop.permute.xlu1 %10132 }
0x166f   : > { %v18608_v16 = vpop.eup %18607  ;;  %16267 = vmatprep.mubr.msk.bf16.mxu0 %vm1928_vm2, %v9766_v26  ;;  %v24888_v20 = vld [vmem:[#allocation40_spill] sm:$0xff] }
0x1670   : > { %v18610_v62 = vpop.eup %18609  ;;  %v9748_v7 = vmul.f32 %v18608_v16, %v23235_v5  ;;  %16268 = vmatmul.mubr.msk.bf16.vlgmr.msra.gmra.mrb[248].mxu0 %vm1928_vm2, %v9767_v52  ;;  %v9768_v44 = vpack.c.bf16 %v9747_v55, %v9746_v50  ;;  %v9946_v39 = vpack.c.bf16 %v24888_v20, %v24887_v28  ;;  %v13986_v50 = vld [vmem:[%s24499_s4 + $0x35] ss:$0 sm:$0xff]  ;;  %v13999_v16 = vld [vmem:[%s24499_s4 + $0x36] ss:$0 sm:$0xff] }
0x1671   : > { %v18612_v6 = vpop.eup %18611  ;;  %v9749_v56 = vmul.f32 %v18610_v62, %v23240_v43  ;;  %16284 = vmatpush3.bf16.msra.mxu0 %v23037_v48  ;;  %v17700_v48 = vld [vmem:[#allocation2 + $0x2d8] sm:$0xff]   ;;  %v23352_v62 = vadd.f32 %v13999_v16, %v13986_v50 }
0x1672   : > { %v18614_v30 = vpop.eup %18613  ;;  %v9709_v61 = vadd.f32 1.0, %v18612_v6  ;;  %16285 = vmatprep.subr.bf16.mxu0 %v17698_v45  ;;  %16271 = vmatprep.mubr.msk.bf16.mxu0 %vm1928_vm2, %v9768_v44 }
0x1673   : > { %v18616_v8 = vpop.eup %18615  ;;  %v9708_v40 = vadd.f32 1.0, %v18614_v30  ;;  %v9769_v36 = vpack.c.bf16 %v9749_v56, %v9748_v7 }
0x1674   : > { %v18618_v49 = vpop.eup %18617  ;;  %18627 = vrcp.f32 %v9709_v61  ;;  %v9706_v5 = vadd.f32 1.0, %v18616_v8 }
0x1675   : > { %v18620_v41 = vpop.eup %18619  ;;  %18629 = vrcp.f32 %v9708_v40  ;;  %v9707_v15 = vadd.f32 1.0, %v18618_v49  ;;  %16286 = vmatpush3.bf16.msra.mxu0 %v17698_v45  ;;  %v10137_v45 = vpop.permute.xlu1 %10136 }
0x1676   : > { %v18622_v54 = vpop.eup %18621  ;;  %18631 = vrcp.f32 %v9706_v5  ;;  %16287 = vmatprep.subr.bf16.mxu0 %v17699_v34  ;;  %v9750_v58 = vmul.f32 %v18620_v41, %v23251_v21 }
0x1677   : > { %v18624_v43 = vpop.eup %18623  ;;  %v9753_v31 = vmul.f32 %v18622_v54, %v23264_v19  ;;  %18633 = vrcp.f32 %v9707_v15 }
0x1678   : > { %v9752_v1 = vmul.f32 %v18624_v43, %v23269_v60  ;;  %v18626_v17 = vpop.eup %18625  ;;  %16272 = vmatmul.mubr.msk.bf16.gmra.mrb[252].mxu0 %vm1928_vm2, %v9769_v36  ;;  %v17702_v60 = vld [vmem:[#allocation2 + $0x2e8] sm:$0xff]  }
0x1679   : > { %16288 = vmatpush3.bf16.msra.mxu0 %v17699_v34  ;;  %v9751_v32 = vmul.f32 %v18626_v17, %v23255_v12  ;;  %v10141_v8 = vpop.permute.xlu1 %10140  ;;  %v24892_v17 = vld [vmem:[#allocation35_spill] sm:$0xff] }
0x167a   : > { %v9771_v51 = vpack.c.bf16 %v9753_v31, %v9752_v1  ;;  %16289 = vmatprep.subr.bf16.mxu0 %v17700_v48 }
0x167b   : > { %v9770_v27 = vpack.c.bf16 %v9751_v32, %v9750_v58 }
0x167d   : > { %16275 = vmatprep.mubr.msk.bf16.mxu0 %vm1928_vm2, %v9770_v27  ;;  %16290 = vmatpush3.bf16.msra.mxu0 %v17700_v48  ;;  %v10145_v48 = vpop.permute.xlu1 %10144 }
0x167e   : > { %v18628_v11 = vpop.eup %18627  ;;  %16291 = vmatprep.subr.bf16.mxu0 %v17701_v29 }
0x167f   : > { %v18630_v19 = vpop.eup %18629  ;;  %v9757_v2 = vmul.f32 %v18628_v11, %v23285_v3  ;;  %v17704_v3 = vld [vmem:[#allocation2 + $0x2f8] sm:$0xff]  }
0x1680   : > { %v18632_v21 = vpop.eup %18631  ;;  %v9756_v22 = vmul.f32 %v18630_v19, %v23288_v9  ;;  %16276 = vmatmul.mubr.msk.bf16.gmra.mrb[0].mxu0 %vm1928_vm2, %v9771_v51  ;;  %v9940_v9 = vpack.c.bf16 %v22514_v42, %v22505_v47  ;;  %v9944_v47 = vpack.c.bf16 %v22584_v33, %v22575_v24  ;;  %v24885_v42 = vld [vmem:[#allocation66_spill] sm:$0xff]  ;;  %v10131_v33 = vpop.permute.xlu0 %10130 }
0x1681   : > { %v18634_v53 = vpop.eup %18633  ;;  %v9754_v12 = vmul.f32 %v18632_v21, %v23278_v35  ;;  %16292 = vmatpush3.bf16.msra.mxu0 %v17701_v29  ;;  %v9941_v35 = vpack.c.bf16 %v22525_v38, %v22511_v46  ;;  %v9945_v14 = vpack.c.bf16 %v24886_v23, %v24885_v42  ;;  %v24889_v46 = vld [vmem:[#allocation61_spill] sm:$0xff]  ;;  %v24890_v38 = vld [vmem:[#allocation36_spill] sm:$0xff]  ;;  %v24891_v24 = vld [vmem:[#allocation38_spill] sm:$0xff] }
0x1682   : > { %v9773_v59 = vpack.c.bf16 %v9757_v2, %v9756_v22  ;;  %v9755_v37 = vmul.f32 %v18634_v53, %v23282_v13  ;;  %16293 = vmatprep.subr.bf16.mxu0 %v17702_v60  ;;  %v9942_v13 = vpack.c.bf16 %v22548_v0, %v22539_v25  ;;  %v9947_v25 = vpack.c.bf16 %v24890_v38, %v24889_v46  ;;  %v10205_v0 = vld [vmem:[%s24500_s5 + $0x98] sm:$0xff]  ;;  %v10149_v22 = vpop.permute.xlu1 %10148 }
0x1683   : > { %v23341_v10 = vpack.c.bf16 %v10205_v0, %v10204_v63 }
0x1684   : > { %v9772_v52 = vpack.c.bf16 %v9755_v37, %v9754_v12  ;;  %v10135_v26 = vpop.permute.xlu0 %10134 }
0x1685   : > { %16294 = vmatpush3.bf16.msra.mxu0 %v17702_v60  ;;  %16980 = vmatprep.subr.bf16.mxu1 %v23341_v10  ;;  %v24893_v60 = vld [vmem:[#allocation48_spill] sm:$0xff] }
0x1686   : > { %16279 = vmatprep.mubr.msk.bf16.mxu0 %vm1928_vm2, %v9772_v52  ;;  %16295 = vmatprep.subr.bf16.mxu0 %v17703_v4  ;;  %v24894_v52 = vld [vmem:[#allocation44_spill] sm:$0xff]  ;;  %v10153_v42 = vpop.permute.xlu1 %10152 }
0x1687   : > { %16982 = vmatpush3.bf16.msra.mxu1 %v23341_v10 }
0x1688   : > { %16280 = vmatmul.mubr.msk.bf16.gmra.mrb[4].mxu0 %vm1928_vm2, %v9773_v59  ;;  %16984 = vmatprep.subr.bf16.mxu1 %v24891_v24  ;;  %v10139_v7 = vpop.permute.xlu0 %10138 }
0x1689   : > { %16296 = vmatpush3.bf16.msra.mxu0 %v17703_v4  ;;  %16299 = vmatprep.mubr.bf16.mxu0 %v9940_v9 }
0x168a   : > { %16297 = vmatprep.subr.bf16.mxu0 %v17704_v3 }
0x168c   : > { %v10143_v41 = vpop.permute.xlu0 %10142 }
0x168d   : > { %16298 = vmatpush3.bf16.msra.mxu0 %v17704_v3 }
0x1690   : > { %16300 = vmatmul.mubr.bf16.vlgmr.msra.gmra.mrb[248].mxu0 %v9941_v35  ;;  %v10147_v19 = vpop.permute.xlu0 %10146 }
0x1691   : > { %16303 = vmatprep.mubr.bf16.mxu0 %v9942_v13 }
0x1694   : > { %v10151_v3 = vpop.permute.xlu0 %10150 }
0x1698   : > { %16304 = vmatmul.mubr.bf16.gmra.mrb[252].mxu0 %v9943_v57  ;;  %v10155_v46 = vpop.permute.xlu0 %10154 }
0x1699   : > { %16307 = vmatprep.mubr.bf16.mxu0 %v9944_v47 }
0x16a0   : > { %16308 = vmatmul.mubr.bf16.gmra.mrb[0].mxu0 %v9945_v14  ;;  %v24895_v14 = vld [vmem:[#allocation46_spill] sm:$0xff] }
0x16a1   : > { %16311 = vmatprep.mubr.bf16.mxu0 %v9946_v39 }
0x16a8   : > { %16312 = vmatmul.mubr.bf16.gmra.mrb[4].mxu0 %v9947_v25 }
0x1763   : > { %v16301_v55 = vpop.f32.mrb[248].mxu0 }
0x1764   : > { %v17217_v6 = vadd.f32 %v16301_v55, %v13986_v50  ;;  %v10035_v44 = vpop.f32.mrb[249].mxu0  ;;  %v10159_v55 = vpop.permute.xlu0 %10158 }
0x1765   : > { %v17219_v56 = vadd.f32 %v13986_v50, %v10035_v44  ;;  %v16302_v30 = vpop.f32.mrb[250].mxu0 }
0x1766   : > { %v10038_v61 = vpop.f32.mrb[251].mxu0  ;;  %v17218_v40 = vadd.f32 %v17217_v6, %v13999_v16  ;;  %v17222_v15 = vadd.f32 %v23352_v62, %v16302_v30 }
0x1767   : > { %v17220_v34 = vadd.f32 %v17219_v56, %v13999_v16  ;;  %v17224_v36 = vadd.f32 %v23352_v62, %v10038_v61 }
0x1768   : > { %v23367_v43 = vsel %vm1928_vm2, %v17218_v40, %v10135_v26  ;;  %v23375_v51 = vsel %vm1928_vm2, %v17222_v15, %v10137_v45  ;;  %v24900_v45 = vld [vmem:[#allocation24_spill] sm:$0xff] }
0x1769   : > { %v23356_v49 = vsel %vm1928_vm2, %v17224_v36, %v10133_v18  ;;  %v23359_v5 = vsel %vm1928_vm2, %v17220_v34, %v10131_v33  ;;  %v10157_v33 = vpop.permute.xlu1 %10156  ;;  %v10402_v30 = vmul.f32 %v23367_v43, %v23367_v43  ;;  %v10403_v61 = vmul.f32 %v23375_v51, %v23375_v51  ;;  %v24904_v36 = vld [vmem:[#allocation29_spill] sm:$0xff] }
0x176a   : > { %16339 = vmatprep.mubr.msk.f32.mxu1 %vm10206_vm3, %v23359_v5  ;;  %v10400_v56 = vmul.f32 %v23359_v5, %v23359_v5 }
0x176b   : > { %v16305_v54 = vpop.f32.mrb[252].mxu0  ;;  %16340 = vmatmul.mubr.msk.f32.vlgmr.msra.gmra.mrb[40].mxu1 %vm10206_vm3, %v23356_v49 }
0x176c   : > { %16986 = vmatpush3.bf16.msra.mxu1 %v24891_v24  ;;  %v10051_v31 = vpop.f32.mrb[253].mxu0  ;;  %16342 = vmatprep.mubr.msk.f32.mxu1 %vm10206_vm3, %v23367_v43  ;;  %v17226_v29 = vadd.f32 %v23352_v62, %v16305_v54  ;;  %v24905_v54 = vld [vmem:[#allocation67_spill] sm:$0xff] }
0x176d   : > { %v17228_v1 = vadd.f32 %v23352_v62, %v10051_v31  ;;  %v16306_v58 = vpop.f32.mrb[254].mxu0  ;;  %16988 = vmatprep.subr.bf16.mxu1 %v24892_v17  ;;  %v10161_v44 = vpop.permute.xlu1 %10160 }
0x176e   : > { %v10054_v32 = vpop.f32.mrb[255].mxu0  ;;  %v17230_v21 = vadd.f32 %v23352_v62, %v16306_v58  ;;  %v23395_v12 = vsel %vm1928_vm2, %v17226_v29, %v10143_v41 }
0x176f   : > { %v17232_v27 = vadd.f32 %v23352_v62, %v10054_v32  ;;  %16343 = vmatmul.mubr.msk.f32.gmra.mrb[42].mxu1 %vm10206_vm3, %v23375_v51  ;;  %v23382_v11 = vsel %vm1928_vm2, %v17228_v1, %v10139_v7  ;;  %v10406_v41 = vmul.f32 %v23395_v12, %v23395_v12 }
0x1770   : > { %16345 = vmatprep.mubr.msk.f32.mxu1 %vm10206_vm3, %v23382_v11  ;;  %16990 = vmatpush3.bf16.msra.mxu1 %v24892_v17  ;;  %v23403_v9 = vsel %vm1928_vm2, %v17230_v21, %v10145_v48  ;;  %v10404_v40 = vmul.f32 %v23382_v11, %v23382_v11  ;;  %v17707_v21 = vld [vmem:[#allocation2 + $0x310] sm:$0xff]  }
0x1771   : > { %v23388_v2 = vsel %vm1928_vm2, %v17232_v27, %v10141_v8  ;;  %16992 = vmatprep.subr.bf16.mxu1 %v24893_v60  ;;  %v24903_v8 = vld [vmem:[#allocation27_spill] sm:$0xff]  ;;  %v10407_v15 = vmul.f32 %v23403_v9, %v23403_v9 }
0x1772   : > { %v10405_v34 = vmul.f32 %v23388_v2, %v23388_v2 }
0x1773   : > { %v16309_v53 = vpop.f32.mrb[0].mxu0  ;;  %16346 = vmatmul.mubr.msk.f32.gmra.mrb[44].mxu1 %vm10206_vm3, %v23388_v2 }
0x1774   : > { %v10067_v59 = vpop.f32.mrb[1].mxu0  ;;  %16348 = vmatprep.mubr.msk.f32.mxu1 %vm10206_vm3, %v23395_v12  ;;  %16994 = vmatpush3.bf16.msra.mxu1 %v24893_v60  ;;  %v17234_v13 = vadd.f32 %v23352_v62, %v16309_v53  ;;  %v17706_v60 = vld [vmem:[#allocation2 + $0x308] sm:$0xff]   ;;  %v17709_v53 = vld [vmem:[#allocation2 + $0x320] sm:$0xff]  }
0x1775   : > { %v17236_v37 = vadd.f32 %v23352_v62, %v10067_v59  ;;  %v16310_v4 = vpop.f32.mrb[2].mxu0  ;;  %16996 = vmatprep.subr.bf16.mxu1 %v24894_v52  ;;  %v17710_v59 = vld [vmem:[#allocation2 + $0x328] sm:$0xff]  }
0x1776   : > { %v10070_v35 = vpop.f32.mrb[3].mxu0  ;;  %v17238_v28 = vadd.f32 %v23352_v62, %v16310_v4  ;;  %v23423_v39 = vsel %vm1928_vm2, %v17234_v13, %v10151_v3 }
0x1777   : > { %v17240_v57 = vadd.f32 %v23352_v62, %v10070_v35  ;;  %16349 = vmatmul.mubr.msk.f32.gmra.mrb[46].mxu1 %vm10206_vm3, %v23403_v9  ;;  %v23410_v47 = vsel %vm1928_vm2, %v17236_v37, %v10147_v19  ;;  %24896 = vst [vmem:[#allocation43_spill] sm:$0xff] %v23423_v39  ;;  %v10410_v1 = vmul.f32 %v23423_v39, %v23423_v39  ;;  %v17705_v19 = vld [vmem:[#allocation2 + $0x300] sm:$0xff]   ;;  %v23516_v37 = vld [vmem:[#allocation2 + $0x330] sm:$0xff]  }
0x1778   : > { %16351 = vmatprep.mubr.msk.f32.mxu1 %vm10206_vm3, %v23410_v47  ;;  %16998 = vmatpush3.bf16.msra.mxu1 %v24894_v52  ;;  %v23431_v0 = vsel %vm1928_vm2, %v17238_v28, %v10153_v42  ;;  %v10408_v31 = vmul.f32 %v23410_v47, %v23410_v47 }
0x1779   : > { %v23416_v23 = vsel %vm1928_vm2, %v17240_v57, %v10149_v22  ;;  %17000 = vmatprep.subr.bf16.mxu1 %v24895_v14  ;;  %24897 = vst [vmem:[#allocation56_spill] sm:$0xff] %v23431_v0  ;;  %v10411_v58 = vmul.f32 %v23431_v0, %v23431_v0  ;;  %16411 = vmatprep.subr.bf16.mxu0 %v17705_v19  ;;  %v17708_v22 = vld [vmem:[#allocation2 + $0x318] sm:$0xff]  }
0x177a   : > { %v10409_v48 = vmul.f32 %v23416_v23, %v23416_v23  ;;  %16412 = vmatpush3.bf16.msra.mxu0 %v17705_v19 }
0x177b   : > { %v16313_v20 = vpop.f32.mrb[4].mxu0  ;;  %16352 = vmatmul.mubr.msk.f32.gmra.mrb[48].mxu1 %vm10206_vm3, %v23416_v23  ;;  %16413 = vmatprep.subr.bf16.mxu0 %v17706_v60 }
0x177c   : > { %v10083_v38 = vpop.f32.mrb[5].mxu0  ;;  %16354 = vmatprep.mubr.msk.f32.mxu1 %vm10206_vm3, %v23423_v39  ;;  %17002 = vmatpush3.bf16.msra.mxu1 %v24895_v14  ;;  %v17242_v18 = vadd.f32 %v23352_v62, %v16313_v20 }
0x177d   : > { %v17244_v25 = vadd.f32 %v23352_v62, %v10083_v38  ;;  %v16314_v63 = vpop.f32.mrb[6].mxu0  ;;  %17004 = vmatprep.subr.bf16.mxu1 %v23341_v10 }
0x177e   : > { %v10086_v24 = vpop.f32.mrb[7].mxu0  ;;  %v17246_v7 = vadd.f32 %v23352_v62, %v16314_v63  ;;  %v23451_v6 = vsel %vm1928_vm2, %v17242_v18, %v10159_v55  ;;  %16414 = vmatpush3.bf16.msra.mxu0 %v17706_v60 }
0x177f   : > { %v17248_v26 = vadd.f32 %v23352_v62, %v10086_v24  ;;  %16355 = vmatmul.mubr.msk.f32.gmra.mrb[50].mxu1 %vm10206_vm3, %v23431_v0  ;;  %v23438_v50 = vsel %vm1928_vm2, %v17244_v25, %v10155_v46  ;;  %24901 = vst [vmem:[#allocation51_spill] sm:$0xff] %v23451_v6  ;;  %v10401_v62 = vmul.f32 %v23356_v49, %v23356_v49 }
0x1780   : > { %24898 = vst [vmem:[#allocation52_spill] sm:$0xff] %v23438_v50  ;;  %16357 = vmatprep.mubr.msk.f32.mxu1 %vm10206_vm3, %v23438_v50  ;;  %17006 = vmatpush3.bf16.msra.mxu1 %v23341_v10  ;;  %v23456_v10 = vsel %vm1928_vm2, %v17246_v7, %v10161_v44  ;;  %v10412_v17 = vmul.f32 %v23438_v50, %v23438_v50 }
0x1781   : > { %v23444_v16 = vsel %vm1928_vm2, %v17248_v26, %v10157_v33  ;;  %17008 = vmatprep.subr.bf16.mxu1 %v24900_v45  ;;  %24902 = vst [vmem:[#allocation64_spill] sm:$0xff] %v23456_v10  ;;  %v10414_v29 = vmul.f32 %v23451_v6, %v23451_v6  ;;  %v10415_v27 = vmul.f32 %v23456_v10, %v23456_v10 }
0x1782   : > { %24899 = vst [vmem:[#allocation54_spill] sm:$0xff] %v23444_v16  ;;  %v10413_v32 = vmul.f32 %v23444_v16, %v23444_v16  ;;  %16415 = vmatprep.subr.bf16.mxu0 %v17707_v21 }
0x1783   : > { %16358 = vmatmul.mubr.msk.f32.gmra.mrb[52].mxu1 %vm10206_vm3, %v23444_v16  ;;  %16416 = vmatpush3.bf16.msra.mxu0 %v17707_v21 }
0x1784   : > { %16360 = vmatprep.mubr.msk.f32.mxu1 %vm10206_vm3, %v23451_v6  ;;  %16417 = vmatprep.subr.bf16.mxu0 %v17708_v22 }
0x1787   : > { %16361 = vmatmul.mubr.msk.f32.gmra.mrb[54].mxu1 %vm10206_vm3, %v23456_v10  ;;  %16418 = vmatpush3.bf16.msra.mxu0 %v17708_v22 }
0x1788   : > { %16387 = vmatprep.mubr.msk.f32.mxu1 %vm10206_vm3, %v10400_v56  ;;  %16419 = vmatprep.subr.bf16.mxu0 %v17709_v53 }
0x178b   : > { %16388 = vmatmul.mubr.msk.f32.vlgmr.msra.gmra.mrb[56].mxu1 %vm10206_vm3, %v10401_v62  ;;  %16420 = vmatpush3.bf16.msra.mxu0 %v17709_v53 }
0x178c   : > { %16390 = vmatprep.mubr.msk.f32.mxu1 %vm10206_vm3, %v10402_v30  ;;  %17010 = vmatpush3.bf16.msra.mxu1 %v24900_v45 }
0x178d   : > { %17012 = vmatprep.subr.bf16.mxu1 %v24903_v8  ;;  %16421 = vmatprep.subr.bf16.mxu0 %v17710_v59 }
0x178f   : > { %16391 = vmatmul.mubr.msk.f32.gmra.mrb[58].mxu1 %vm10206_vm3, %v10403_v61  ;;  %16422 = vmatpush3.bf16.msra.mxu0 %v17710_v59 }
0x1790   : > { %16393 = vmatprep.mubr.msk.f32.mxu1 %vm10206_vm3, %v10404_v40  ;;  %17014 = vmatpush3.bf16.msra.mxu1 %v24903_v8 }
0x1791   : > { %17016 = vmatprep.subr.bf16.mxu1 %v24904_v36  ;;  %16439 = vmatprep.subr.bf16.mxu0 %v23516_v37 }
0x1793   : > { %16394 = vmatmul.mubr.msk.f32.gmra.mrb[60].mxu1 %vm10206_vm3, %v10405_v34 }
0x1794   : > { %16396 = vmatprep.mubr.msk.f32.mxu1 %vm10206_vm3, %v10406_v41  ;;  %17018 = vmatpush3.bf16.msra.mxu1 %v24904_v36 }
0x1795   : > { %17020 = vmatprep.subr.bf16.mxu1 %v24905_v54 }
0x1797   : > { %16397 = vmatmul.mubr.msk.f32.gmra.mrb[62].mxu1 %vm10206_vm3, %v10407_v15 }
0x1798   : > { %16399 = vmatprep.mubr.msk.f32.mxu1 %vm10206_vm3, %v10408_v31  ;;  %17022 = vmatpush3.bf16.msra.mxu1 %v24905_v54 }
0x1799   : > { %17024 = vmatprep.subr.bf16.mxu1 %v24900_v45 }
0x179b   : > { %16400 = vmatmul.mubr.msk.f32.gmra.mrb[64].mxu1 %vm10206_vm3, %v10409_v48 }
0x179c   : > { %16402 = vmatprep.mubr.msk.f32.mxu1 %vm10206_vm3, %v10410_v1 }
0x179f   : > { %16403 = vmatmul.mubr.msk.f32.gmra.mrb[66].mxu1 %vm10206_vm3, %v10411_v58 }
0x17a0   : > { %16405 = vmatprep.mubr.msk.f32.mxu1 %vm10206_vm3, %v10412_v17 }
0x17a3   : > { %16406 = vmatmul.mubr.msk.f32.gmra.mrb[68].mxu1 %vm10206_vm3, %v10413_v32 }
0x17a4   : > { %16408 = vmatprep.mubr.msk.f32.mxu1 %vm10206_vm3, %v10414_v29 }
0x17a7   : > { %16409 = vmatmul.mubr.msk.f32.gmra.mrb[70].mxu1 %vm10206_vm3, %v10415_v27 }
0x183e   : > { %v23519_v4 = vpop.f32.mrb[40].mxu1 }
0x183f   : > { %v23521_v52 = vpop.f32.mrb[41].mxu1  ;;  %v10610_v18 = vmul.f32 %v23519_v4, %v23519_v4  ;;  %v10658_v19 = vsub.f32 %v23356_v49, %v23519_v4 }
0x1840   : > { %v10609_v26 = vmul.f32 %v23521_v52, %v23521_v52  ;;  %v10657_v53 = vsub.f32 %v23359_v5, %v23521_v52 }
0x1842   : > { %v23523_v3 = vpop.f32.mrb[42].mxu1 }
0x1843   : > { %v23525_v35 = vpop.f32.mrb[43].mxu1  ;;  %v10612_v62 = vmul.f32 %v23523_v3, %v23523_v3  ;;  %v10660_v59 = vsub.f32 %v23375_v51, %v23523_v3 }
0x1844   : > { %v10611_v61 = vmul.f32 %v23525_v35, %v23525_v35 }
0x1846   : > { %v23527_v13 = vpop.f32.mrb[44].mxu1 }
0x1847   : > { %v23529_v57 = vpop.f32.mrb[45].mxu1  ;;  %v10614_v58 = vmul.f32 %v23527_v13, %v23527_v13  ;;  %v10662_v4 = vsub.f32 %v23388_v2, %v23527_v13 }
0x1848   : > { %v10613_v32 = vmul.f32 %v23529_v57, %v23529_v57  ;;  %v10661_v3 = vsub.f32 %v23382_v11, %v23529_v57 }
0x184a   : > { %v23531_v42 = vpop.f32.mrb[46].mxu1 }
0x184b   : > { %v23533_v14 = vpop.f32.mrb[47].mxu1  ;;  %v24906_v57 = vsub.f32 %v23403_v9, %v23531_v42 }
0x184e   : > { %v23535_v28 = vpop.f32.mrb[48].mxu1 }
0x184f   : > { %v23537_v20 = vpop.f32.mrb[49].mxu1 }
0x1852   : > { %v23539_v46 = vpop.f32.mrb[50].mxu1 }
0x1853   : > { %v23541_v38 = vpop.f32.mrb[51].mxu1 }
0x1856   : > { %v23543_v25 = vpop.f32.mrb[52].mxu1 }
0x1857   : > { %v23545_v63 = vpop.f32.mrb[53].mxu1 }
0x185a   : > { %v23547_v24 = vpop.f32.mrb[54].mxu1 }
0x185b   : > { %v23549_v33 = vpop.f32.mrb[55].mxu1 }
0x185e   : > { %v16389_v55 = vpop.f32.mrb[56].mxu1 }
0x185f   : > { %v10626_v7 = vsub.f32 %v16389_v55, %v10610_v18  ;;  %v10530_v44 = vpop.f32.mrb[57].mxu1  ;;  %v10659_v55 = vsub.f32 %v23367_v43, %v23525_v35 }
0x1860   : > { %v10625_v56 = vsub.f32 %v10530_v44, %v10609_v26 }
0x1861   : > { %v10642_v30 = vmax.f32 %v10626_v7, 0.0  ;;  %v10616_v7 = vmul.f32 %v23531_v42, %v23531_v42 }
0x1862   : > { %v10641_v40 = vmax.f32 %v10625_v56, 0.0  ;;  %v16392_v34 = vpop.f32.mrb[58].mxu1  ;;  %v10615_v56 = vmul.f32 %v23533_v14, %v23533_v14 }
0x1863   : > { %v10674_v41 = vadd.f32 1e-05, %v10642_v30  ;;  %v10628_v15 = vsub.f32 %v16392_v34, %v10612_v62  ;;  %v10540_v31 = vpop.f32.mrb[59].mxu1 }
0x1864   : > { %v10673_v48 = vadd.f32 1e-05, %v10641_v40  ;;  %v10627_v1 = vsub.f32 %v10540_v31, %v10611_v61 }
0x1865   : > { %18635 = vrsqrt.f32 %v10674_v41  ;;  %v10644_v17 = vmax.f32 %v10628_v15, 0.0  ;;  %v10618_v41 = vmul.f32 %v23535_v28, %v23535_v28 }
0x1866   : > { %18637 = vrsqrt.f32 %v10673_v48  ;;  %v10643_v29 = vmax.f32 %v10627_v1, 0.0  ;;  %v16395_v27 = vpop.f32.mrb[60].mxu1  ;;  %v10617_v1 = vmul.f32 %v23537_v20, %v23537_v20 }
0x1867   : > { %v10676_v60 = vadd.f32 1e-05, %v10644_v17  ;;  %v10630_v21 = vsub.f32 %v16395_v27, %v10614_v58  ;;  %v10550_v22 = vpop.f32.mrb[61].mxu1 }
0x1868   : > { %v10675_v18 = vadd.f32 1e-05, %v10643_v29  ;;  %v10629_v26 = vsub.f32 %v10550_v22, %v10613_v32  ;;  %v10620_v32 = vmul.f32 %v23539_v46, %v23539_v46  ;;  %v10619_v22 = vmul.f32 %v23541_v38, %v23541_v38 }
0x1869   : > { %18639 = vrsqrt.f32 %v10676_v60  ;;  %v10646_v44 = vmax.f32 %v10630_v21, 0.0 }
0x186a   : > { %18641 = vrsqrt.f32 %v10675_v18  ;;  %v10645_v52 = vmax.f32 %v10629_v26, 0.0  ;;  %v16398_v62 = vpop.f32.mrb[62].mxu1  ;;  %v23600_v18 = vld [vmem:[%s24499_s4 + $0x37] ss:$0 sm:$0xff] }
0x186b   : > { %v10678_v30 = vadd.f32 1e-05, %v10646_v44  ;;  %v10632_v61 = vsub.f32 %v16398_v62, %v10616_v7  ;;  %v10560_v40 = vpop.f32.mrb[63].mxu1 }
0x186c   : > { %v10677_v15 = vadd.f32 1e-05, %v10645_v52  ;;  %v10631_v31 = vsub.f32 %v10560_v40, %v10615_v56  ;;  %v10622_v52 = vmul.f32 %v23543_v25, %v23543_v25  ;;  %v10621_v40 = vmul.f32 %v23545_v63, %v23545_v63 }
0x186d   : > { %18643 = vrsqrt.f32 %v10678_v30  ;;  %v10648_v58 = vmax.f32 %v10632_v61, 0.0 }
0x186e   : > { %18645 = vrsqrt.f32 %v10677_v15  ;;  %v10647_v29 = vmax.f32 %v10631_v31, 0.0  ;;  %v16401_v27 = vpop.f32.mrb[64].mxu1  ;;  %v23609_v31 = vld [vmem:[%s24499_s4 + $0x38] ss:$0 sm:$0xff] }
0x186f   : > { %v18636_v60 = vpop.eup %18635  ;;  %v10680_v26 = vadd.f32 1e-05, %v10648_v58  ;;  %v10634_v7 = vsub.f32 %v16401_v27, %v10618_v41  ;;  %v10570_v44 = vpop.f32.mrb[65].mxu1  ;;  %v10624_v41 = vmul.f32 %v23547_v24, %v23547_v24 }
0x1870   : > { %v18638_v56 = vpop.eup %18637  ;;  %v10706_v62 = vmul.f32 %v18636_v60, %v10658_v19  ;;  %v10679_v30 = vadd.f32 1e-05, %v10647_v29  ;;  %v10633_v61 = vsub.f32 %v10570_v44, %v10617_v1  ;;  %v10623_v29 = vmul.f32 %v23549_v33, %v23549_v33 }
0x1871   : > { %v10705_v15 = vmul.f32 %v18638_v56, %v10657_v53  ;;  %18647 = vrsqrt.f32 %v10680_v26  ;;  %v10650_v58 = vmax.f32 %v10634_v7, 0.0 }
0x1872   : > { %18649 = vrsqrt.f32 %v10679_v30  ;;  %v10649_v27 = vmax.f32 %v10633_v61, 0.0  ;;  %v16404_v21 = vpop.f32.mrb[66].mxu1  ;;  %v10727_v19 = vmul.f32 %v23600_v18, %v10706_v62 }
0x1873   : > { %v18640_v1 = vpop.eup %18639  ;;  %v10682_v53 = vadd.f32 1e-05, %v10650_v58  ;;  %v10636_v60 = vsub.f32 %v16404_v21, %v10620_v32  ;;  %v10580_v44 = vpop.f32.mrb[67].mxu1  ;;  %v10726_v56 = vmul.f32 %v23600_v18, %v10705_v15 }
0x1874   : > { %v18642_v17 = vpop.eup %18641  ;;  %v10708_v26 = vmul.f32 %v18640_v1, %v10660_v59  ;;  %v10681_v7 = vadd.f32 1e-05, %v10649_v27  ;;  %v10635_v48 = vsub.f32 %v10580_v44, %v10619_v22  ;;  %v23618_v34 = vadd.f32 %v23609_v31, %v10727_v19 }
0x1875   : > { %v10707_v30 = vmul.f32 %v18642_v17, %v10659_v55  ;;  %18651 = vrsqrt.f32 %v10682_v53  ;;  %v10652_v61 = vmax.f32 %v10636_v60, 0.0  ;;  %v23621_v62 = vadd.f32 %v23609_v31, %v10726_v56 }
0x1876   : > { %v10729_v35 = vmul.f32 %v23600_v18, %v10708_v26  ;;  %18653 = vrsqrt.f32 %v10681_v7  ;;  %v10651_v32 = vmax.f32 %v10635_v48, 0.0  ;;  %v16407_v21 = vpop.f32.mrb[68].mxu1  ;;  %v14043_v15 = vmul.f32 -1.442695, %v23618_v34 }
0x1877   : > { %v18644_v58 = vpop.eup %18643  ;;  %v10728_v59 = vmul.f32 %v23600_v18, %v10707_v30  ;;  %v10684_v22 = vadd.f32 1e-05, %v10652_v61  ;;  %v10638_v27 = vsub.f32 %v16407_v21, %v10622_v52  ;;  %v10590_v19 = vpop.f32.mrb[69].mxu1  ;;  %v14042_v55 = vmul.f32 -1.442695, %v23621_v62 }
0x1878   : > { %v18646_v17 = vpop.eup %18645  ;;  %v23628_v1 = vadd.f32 %v23609_v31, %v10729_v35  ;;  %v10710_v53 = vmul.f32 %v18644_v58, %v10662_v4  ;;  %v10683_v48 = vadd.f32 1e-05, %v10651_v32  ;;  %v10637_v60 = vsub.f32 %v10590_v19, %v10621_v40 }
0x1879   : > { %v23634_v44 = vadd.f32 %v23609_v31, %v10728_v59  ;;  %v10709_v52 = vmul.f32 %v18646_v17, %v10661_v3  ;;  %18655 = vrsqrt.f32 %v10684_v22  ;;  %v10654_v56 = vmax.f32 %v10638_v27, 0.0 }
0x187a   : > { %v14045_v26 = vmul.f32 -1.442695, %v23628_v1  ;;  %18657 = vrsqrt.f32 %v10683_v48  ;;  %v10653_v35 = vmax.f32 %v10637_v60, 0.0  ;;  %v16410_v7 = vpop.f32.mrb[70].mxu1  ;;  %v10731_v30 = vmul.f32 %v23600_v18, %v10710_v53 }
0x187b   : > { %v18648_v13 = vpop.eup %18647  ;;  %v14044_v4 = vmul.f32 -1.442695, %v23634_v44  ;;  %v10686_v40 = vadd.f32 1e-05, %v10654_v56  ;;  %v10640_v61 = vsub.f32 %v16410_v7, %v10624_v41  ;;  %v10600_v32 = vpop.f32.mrb[71].mxu1  ;;  %18659 = vpow2.f32 %v14042_v55 }
0x187c   : > { %v18650_v21 = vpop.eup %18649  ;;  %18661 = vpow2.f32 %v14045_v26  ;;  %v10712_v3 = vmul.f32 %v18648_v13, %v24906_v57  ;;  %v10685_v58 = vadd.f32 1e-05, %v10653_v35  ;;  %v10639_v59 = vsub.f32 %v10600_v32, %v10623_v29 }
0x187d   : > { %18663 = vpow2.f32 %v14044_v4  ;;  %v24907_v22 = vsub.f32 %v23395_v12, %v23533_v14  ;;  %v10656_v19 = vmax.f32 %v10640_v61, 0.0  ;;  %v10730_v17 = vmul.f32 %v23600_v18, %v10709_v52 }
0x187e   : > { %v10733_v41 = vmul.f32 %v23600_v18, %v10712_v3  ;;  %18665 = vrsqrt.f32 %v10686_v40  ;;  %v10655_v55 = vmax.f32 %v10639_v59, 0.0  ;;  %v23651_v53 = vadd.f32 %v23609_v31, %v10731_v30 }
0x187f   : > { %v10711_v27 = vmul.f32 %v18650_v21, %v24907_v22  ;;  %v18652_v48 = vpop.eup %18651  ;;  %18667 = vrsqrt.f32 %v10685_v58  ;;  %v10688_v29 = vadd.f32 1e-05, %v10656_v19  ;;  %v23655_v60 = vadd.f32 %v23609_v31, %v10730_v17 }
0x1880   : > { %v18654_v14 = vpop.eup %18653  ;;  %v23658_v56 = vadd.f32 %v23609_v31, %v10733_v41  ;;  %v24908_v52 = vsub.f32 %v23416_v23, %v23535_v28  ;;  %v10687_v35 = vadd.f32 1e-05, %v10655_v55  ;;  %18669 = vpow2.f32 %v14043_v15 }
0x1881   : > { %v10732_v42 = vmul.f32 %v23600_v18, %v10711_v27  ;;  %v24909_v30 = vsub.f32 %v23410_v47, %v23537_v20  ;;  %18671 = vrsqrt.f32 %v10688_v29  ;;  %v14046_v4 = vmul.f32 -1.442695, %v23655_v60 }
0x1882   : > { %v10714_v26 = vmul.f32 %v18652_v48, %v24908_v52  ;;  %v14049_v40 = vmul.f32 -1.442695, %v23658_v56  ;;  %18673 = vrsqrt.f32 %v10687_v35  ;;  %v14047_v61 = vmul.f32 -1.442695, %v23651_v53 }
0x1883   : > { %v23664_v7 = vadd.f32 %v23609_v31, %v10732_v42  ;;  %v10713_v13 = vmul.f32 %v18654_v14, %v24909_v30  ;;  %v18656_v32 = vpop.eup %18655  ;;  %v10667_v15 = vsub.f32 %v23423_v39, %v23541_v38  ;;  %18675 = vpow2.f32 %v14046_v4 }
0x1884   : > { %v10735_v28 = vmul.f32 %v23600_v18, %v10714_v26  ;;  %v18658_v57 = vpop.eup %18657  ;;  %18677 = vpow2.f32 %v14049_v40  ;;  %v24910_v3 = vsub.f32 %v23431_v0, %v23539_v46  ;;  %v10670_v22 = vsub.f32 %v23444_v16, %v23543_v25 }
0x1885   : > { %v14048_v21 = vmul.f32 -1.442695, %v23664_v7  ;;  %v10734_v20 = vmul.f32 %v23600_v18, %v10713_v13  ;;  %v18660_v59 = vpop.eup %18659  ;;  %v10715_v27 = vmul.f32 %v18658_v57, %v10667_v15  ;;  %v10669_v46 = vsub.f32 %v23438_v50, %v23545_v63 }
0x1886   : > { %v10716_v58 = vmul.f32 %v18656_v32, %v24910_v3  ;;  %v18662_v38 = vpop.eup %18661  ;;  %v10811_v41 = vadd.f32 1.0, %v18660_v59  ;;  %v23687_v55 = vadd.f32 %v23609_v31, %v10735_v28  ;;  %v10672_v52 = vsub.f32 %v23456_v10, %v23547_v24 }
0x1887   : > { %18679 = vpow2.f32 %v14048_v21  ;;  %v23683_v19 = vadd.f32 %v23609_v31, %v10734_v20  ;;  %v18664_v48 = vpop.eup %18663  ;;  %v10814_v42 = vadd.f32 1.0, %v18662_v38  ;;  %v10736_v25 = vmul.f32 %v23600_v18, %v10715_v27 }
0x1888   : > { %v10737_v17 = vmul.f32 %v23600_v18, %v10716_v58  ;;  %18681 = vpow2.f32 %v14047_v61  ;;  %v18666_v14 = vpop.eup %18665  ;;  %v10813_v26 = vadd.f32 1.0, %v18664_v48  ;;  %v10671_v13 = vsub.f32 %v23451_v6, %v23549_v33 }
0x1889   : > { %v14050_v29 = vmul.f32 -1.442695, %v23683_v19  ;;  %18683 = vrcp.f32 %v10811_v41  ;;  %v18668_v30 = vpop.eup %18667  ;;  %v23701_v63 = vadd.f32 %v23609_v31, %v10736_v25  ;;  %v10718_v4 = vmul.f32 %v18666_v14, %v10670_v22 }
0x188a   : > { %v23696_v35 = vadd.f32 %v23609_v31, %v10737_v17  ;;  %18685 = vrcp.f32 %v10814_v42  ;;  %v18670_v40 = vpop.eup %18669  ;;  %v10717_v28 = vmul.f32 %v18668_v30, %v10669_v46  ;;  %v14051_v24 = vmul.f32 -1.442695, %v23687_v55 }
0x188b   : > { %18687 = vrcp.f32 %v10813_v26  ;;  %v18672_v32 = vpop.eup %18671  ;;  %v14052_v15 = vmul.f32 -1.442695, %v23701_v63  ;;  %v10812_v21 = vadd.f32 1.0, %v18670_v40  ;;  %v10739_v20 = vmul.f32 %v23600_v18, %v10718_v4 }
0x188c   : > { %v14053_v61 = vmul.f32 -1.442695, %v23696_v35  ;;  %18689 = vpow2.f32 %v14050_v29  ;;  %v18674_v33 = vpop.eup %18673  ;;  %v10720_v57 = vmul.f32 %v18672_v32, %v10672_v52  ;;  %v10738_v3 = vmul.f32 %v23600_v18, %v10717_v28 }
0x188d   : > { %v18676_v58 = vpop.eup %18675  ;;  %v10719_v59 = vmul.f32 %v18674_v33, %v10671_v13  ;;  %v23714_v42 = vadd.f32 %v23609_v31, %v10739_v20 }
0x188e   : > { %18691 = vpow2.f32 %v14053_v61  ;;  %v18678_v22 = vpop.eup %18677  ;;  %v10741_v27 = vmul.f32 %v23600_v18, %v10720_v57  ;;  %v10815_v38 = vadd.f32 1.0, %v18676_v58  ;;  %v23710_v17 = vadd.f32 %v23609_v31, %v10738_v3 }
0x188f   : > { %18693 = vpow2.f32 %v14052_v15  ;;  %v10818_v48 = vadd.f32 1.0, %v18678_v22  ;;  %v10740_v46 = vmul.f32 %v23600_v18, %v10719_v59  ;;  %v14055_v61 = vmul.f32 -1.442695, %v23714_v42 }
0x1890   : > { %18695 = vrcp.f32 %v10812_v21  ;;  %v23717_v14 = vadd.f32 %v23609_v31, %v10741_v27  ;;  %v14054_v18 = vmul.f32 -1.442695, %v23710_v17 }
0x1891   : > { %v18680_v41 = vpop.eup %18679  ;;  %18697 = vpow2.f32 %v14051_v24  ;;  %v23720_v52 = vadd.f32 %v23609_v31, %v10740_v46 }
0x1892   : > { %v18682_v25 = vpop.eup %18681  ;;  %v10817_v29 = vadd.f32 1.0, %v18680_v41  ;;  %18699 = vrcp.f32 %v10815_v38  ;;  %v14057_v13 = vmul.f32 -1.442695, %v23717_v14 }
0x1893   : > { %18701 = vrcp.f32 %v10818_v48  ;;  %v10816_v26 = vadd.f32 1.0, %v18682_v25  ;;  %v18684_v30 = vpop.eup %18683  ;;  %v14056_v40 = vmul.f32 -1.442695, %v23720_v52 }
0x1894   : > { %18703 = vrcp.f32 %v10817_v29  ;;  %v18686_v4 = vpop.eup %18685  ;;  %v10859_v3 = vmul.f32 %v18684_v30, %v23621_v62  ;;  %v17712_v29 = vld [vmem:[#allocation2 + $0x338] sm:$0xff]  }
0x1895   : > { %18705 = vrcp.f32 %v10816_v26  ;;  %v18688_v28 = vpop.eup %18687  ;;  %v10862_v24 = vmul.f32 %v18686_v4, %v23628_v1 }
0x1896   : > { %18707 = vpow2.f32 %v14057_v13  ;;  %v18690_v32 = vpop.eup %18689  ;;  %v10861_v31 = vmul.f32 %v18688_v28, %v23634_v44 }
0x1897   : > { %18709 = vpow2.f32 %v14056_v40  ;;  %v10819_v21 = vadd.f32 1.0, %v18690_v32 }
0x1898   : > { %v18692_v15 = vpop.eup %18691  ;;  %18711 = vpow2.f32 %v14054_v18  ;;  %v10888_v33 = vpack.c.bf16 %v10862_v24, %v10861_v31 }
0x1899   : > { %v18694_v20 = vpop.eup %18693  ;;  %v10822_v57 = vadd.f32 1.0, %v18692_v15  ;;  %18713 = vpow2.f32 %v14055_v61  ;;  %v17713_v61 = vld [vmem:[#allocation2 + $0x340] sm:$0xff]  }
0x189a   : > { %v18696_v58 = vpop.eup %18695  ;;  %v10821_v59 = vadd.f32 1.0, %v18694_v20  ;;  %18715 = vrcp.f32 %v10819_v21 }
0x189b   : > { %v18698_v22 = vpop.eup %18697  ;;  %18717 = vrcp.f32 %v10822_v57  ;;  %v10860_v1 = vmul.f32 %v18696_v58, %v23618_v34 }
0x189c   : > { %v18700_v27 = vpop.eup %18699  ;;  %18719 = vrcp.f32 %v10821_v59  ;;  %v10820_v44 = vadd.f32 1.0, %v18698_v22 }
0x189d   : > { %v18702_v38 = vpop.eup %18701  ;;  %v10887_v41 = vpack.c.bf16 %v10860_v1, %v10859_v3  ;;  %v10863_v25 = vmul.f32 %v18700_v27, %v23655_v60 }
0x189e   : > { %v18704_v48 = vpop.eup %18703  ;;  %v10866_v46 = vmul.f32 %v18702_v38, %v23658_v56  ;;  %18721 = vrcp.f32 %v10820_v44 }
0x189f   : > { %v18706_v62 = vpop.eup %18705  ;;  %v10865_v26 = vmul.f32 %v18704_v48, %v23664_v7  ;;  %16423 = vmatprep.mubr.msk.bf16.mxu0 %vm10206_vm3, %v10887_v41  ;;  %v24911_v41 = vld [vmem:[#allocation25_spill] sm:$0xff]  ;;  %v24914_v48 = vld [vmem:[#allocation30_spill] sm:$0xff] }
0x18a0   : > { %v18708_v30 = vpop.eup %18707  ;;  %16424 = vmatmul.mubr.msk.bf16.vlgmr.msra.gmra.mrb[8].mxu0 %vm10206_vm3, %v10888_v33  ;;  %v10864_v34 = vmul.f32 %v18706_v62, %v23651_v53  ;;  %v14073_v62 = vld [vmem:[%s24499_s4 + $0x3a] ss:$0 sm:$0xff] }
0x18a1   : > { %v18710_v13 = vpop.eup %18709  ;;  %v10890_v18 = vpack.c.bf16 %v10866_v46, %v10865_v26  ;;  %v10826_v4 = vadd.f32 1.0, %v18708_v30  ;;  %16440 = vmatpush3.bf16.msra.mxu0 %v23516_v37  ;;  %v17714_v37 = vld [vmem:[#allocation2 + $0x348] sm:$0xff]   ;;  %v24917_v46 = vld [vmem:[#allocation34_spill] sm:$0xff] }
0x18a2   : > { %v18712_v56 = vpop.eup %18711  ;;  %v10825_v40 = vadd.f32 1.0, %v18710_v13  ;;  %v10889_v60 = vpack.c.bf16 %v10864_v34, %v10863_v25  ;;  %16441 = vmatprep.subr.bf16.mxu0 %v17712_v29  ;;  %v24918_v25 = vld [vmem:[#allocation33_spill] sm:$0xff] }
0x18a3   : > { %v18714_v28 = vpop.eup %18713  ;;  %18723 = vrcp.f32 %v10826_v4  ;;  %v10823_v7 = vadd.f32 1.0, %v18712_v56  ;;  %v23778_v56 = vld [vmem:[%s24499_s4 + $0x3b] ss:$0 sm:$0xff] }
0x18a4   : > { %v18716_v24 = vpop.eup %18715  ;;  %18725 = vrcp.f32 %v10825_v40  ;;  %16427 = vmatprep.mubr.msk.bf16.mxu0 %vm10206_vm3, %v10889_v60  ;;  %v10824_v32 = vadd.f32 1.0, %v18714_v28 }
0x18a5   : > { %v18718_v31 = vpop.eup %18717  ;;  %16442 = vmatpush3.bf16.msra.mxu0 %v17712_v29  ;;  %18727 = vrcp.f32 %v10823_v7  ;;  %v10867_v20 = vmul.f32 %v18716_v24, %v23683_v19  ;;  %v14058_v29 = vld [vmem:[%s24499_s4 + $0x39] ss:$0 sm:$0xff] }
0x18a6   : > { %v18720_v53 = vpop.eup %18719  ;;  %v10870_v15 = vmul.f32 %v18718_v31, %v23696_v35  ;;  %16443 = vmatprep.subr.bf16.mxu0 %v17713_v61  ;;  %18729 = vrcp.f32 %v10824_v32  ;;  %v23773_v30 = vadd.f32 %v14073_v62, %v14058_v29 }
0x18a7   : > { %v10869_v21 = vmul.f32 %v18720_v53, %v23701_v63 }
0x18a8   : > { %v18722_v33 = vpop.eup %18721  ;;  %16428 = vmatmul.mubr.msk.bf16.gmra.mrb[12].mxu0 %vm10206_vm3, %v10890_v18 }
0x18a9   : > { %v10892_v57 = vpack.c.bf16 %v10870_v15, %v10869_v21  ;;  %v10868_v3 = vmul.f32 %v18722_v33, %v23687_v55  ;;  %16444 = vmatpush3.bf16.msra.mxu0 %v17713_v61 }
0x18aa   : > { %16445 = vmatprep.subr.bf16.mxu0 %v17714_v37 }
0x18ab   : > { %v10891_v58 = vpack.c.bf16 %v10868_v3, %v10867_v20 }
0x18ad   : > { %v18724_v59 = vpop.eup %18723  ;;  %16431 = vmatprep.mubr.msk.bf16.mxu0 %vm10206_vm3, %v10891_v58  ;;  %16446 = vmatpush3.bf16.msra.mxu0 %v17714_v37 }
0x18ae   : > { %v18726_v35 = vpop.eup %18725  ;;  %v10874_v22 = vmul.f32 %v18724_v59, %v23717_v14  ;;  %v24912_v14 = vld [vmem:[#allocation26_spill] sm:$0xff] }
0x18af   : > { %v18728_v1 = vpop.eup %18727  ;;  %v10873_v63 = vmul.f32 %v18726_v35, %v23720_v52  ;;  %v24913_v52 = vld [vmem:[#allocation28_spill] sm:$0xff] }
0x18b0   : > { %v18730_v19 = vpop.eup %18729  ;;  %16432 = vmatmul.mubr.msk.bf16.gmra.mrb[16].mxu0 %vm10206_vm3, %v10892_v57  ;;  %v10871_v27 = vmul.f32 %v18728_v1, %v23710_v17  ;;  %v24915_v17 = vld [vmem:[#allocation32_spill] sm:$0xff] }
0x18b1   : > { %v10894_v44 = vpack.c.bf16 %v10874_v22, %v10873_v63  ;;  %v10872_v55 = vmul.f32 %v18730_v19, %v23714_v42  ;;  %v24916_v42 = vld [vmem:[#allocation31_spill] sm:$0xff] }
0x18b3   : > { %v10893_v38 = vpack.c.bf16 %v10872_v55, %v10871_v27 }
0x18b5   : > { %16435 = vmatprep.mubr.msk.bf16.mxu0 %vm10206_vm3, %v10893_v38 }
0x18b8   : > { %16436 = vmatmul.mubr.msk.bf16.gmra.mrb[20].mxu0 %vm10206_vm3, %v10894_v44 }
0x18b9   : > { %16447 = vmatprep.mubr.msk.bf16.mxu0 %vm1928_vm2, %v24911_v41 }
0x18c0   : > { %16448 = vmatmul.mubr.msk.bf16.vlgmr.msra.gmra.mrb[8].mxu0 %vm1928_vm2, %v24912_v14 }
0x18c1   : > { %16451 = vmatprep.mubr.msk.bf16.mxu0 %vm1928_vm2, %v24913_v52 }
0x18c8   : > { %16452 = vmatmul.mubr.msk.bf16.gmra.mrb[12].mxu0 %vm1928_vm2, %v24914_v48 }
0x18c9   : > { %16455 = vmatprep.mubr.msk.bf16.mxu0 %vm1928_vm2, %v24915_v17 }
0x18d0   : > { %16456 = vmatmul.mubr.msk.bf16.gmra.mrb[16].mxu0 %vm1928_vm2, %v24916_v42 }
0x18d1   : > { %16459 = vmatprep.mubr.msk.bf16.mxu0 %vm1928_vm2, %v24917_v46 }
0x18d8   : > { %16460 = vmatmul.mubr.msk.bf16.gmra.mrb[20].mxu0 %vm1928_vm2, %v24918_v25 }
0x1993   : > { %v16449_v26 = vpop.f32.mrb[8].mxu0 }
0x1994   : > { %v17249_v34 = vadd.f32 %v16449_v26, %v14058_v29  ;;  %v11128_v13 = vpop.f32.mrb[9].mxu0 }
0x1995   : > { %v17252_v18 = vadd.f32 %v14058_v29, %v11128_v13  ;;  %v16450_v4 = vpop.f32.mrb[10].mxu0 }
0x1996   : > { %v11131_v40 = vpop.f32.mrb[11].mxu0  ;;  %v17250_v60 = vadd.f32 %v17249_v34, %v14073_v62  ;;  %v17256_v32 = vadd.f32 %v23773_v30, %v16450_v4 }
0x1997   : > { %v17253_v61 = vadd.f32 %v17252_v18, %v14073_v62  ;;  %v17259_v28 = vadd.f32 %v23773_v30, %v11131_v40 }
0x1998   : > { %v23789_v31 = vadd.f32 %v17250_v60, %v23778_v56  ;;  %v23800_v20 = vadd.f32 %v17256_v32, %v23778_v56 }
0x1999   : > { %v23782_v7 = vadd.f32 %v17253_v61, %v23778_v56  ;;  %v23785_v24 = vadd.f32 %v17259_v28, %v23778_v56 }
0x199a   : > { %v11423_v40 = vmul.f32 %v23789_v31, %v23789_v31 }
0x199b   : > { %v16453_v53 = vpop.f32.mrb[12].mxu0  ;;  %16479 = vmatprep.mubr.msk.f32.mxu1 %vm1928_vm2, %v23782_v7  ;;  %v11421_v4 = vmul.f32 %v23782_v7, %v23782_v7 }
0x199c   : > { %v11144_v15 = vpop.f32.mrb[13].mxu0  ;;  %16480 = vmatmul.mubr.msk.f32.vlgmr.msra.gmra.mrb[72].mxu1 %vm1928_vm2, %v23785_v24  ;;  %v17262_v57 = vadd.f32 %v23773_v30, %v16453_v53 }
0x199d   : > { %v17265_v37 = vadd.f32 %v23773_v30, %v11144_v15  ;;  %17026 = vmatpush3.bf16.msra.mxu1 %v24900_v45  ;;  %v16454_v21 = vpop.f32.mrb[14].mxu0  ;;  %16482 = vmatprep.mubr.msk.f32.mxu1 %vm1928_vm2, %v23789_v31 }
0x199e   : > { %v11147_v33 = vpop.f32.mrb[15].mxu0  ;;  %17028 = vmatprep.subr.bf16.mxu1 %v24903_v8  ;;  %v17268_v59 = vadd.f32 %v23773_v30, %v16454_v21  ;;  %v23819_v35 = vadd.f32 %v17262_v57, %v23778_v56 }
0x199f   : > { %v23805_v3 = vadd.f32 %v17265_v37, %v23778_v56  ;;  %v17271_v58 = vadd.f32 %v23773_v30, %v11147_v33 }
0x19a0   : > { %16483 = vmatmul.mubr.msk.f32.gmra.mrb[74].mxu1 %vm1928_vm2, %v23800_v20  ;;  %v11427_v28 = vmul.f32 %v23819_v35, %v23819_v35 }
0x19a1   : > { %v23811_v45 = vadd.f32 %v17271_v58, %v23778_v56  ;;  %16485 = vmatprep.mubr.msk.f32.mxu1 %vm1928_vm2, %v23805_v3  ;;  %17030 = vmatpush3.bf16.msra.mxu1 %v24903_v8  ;;  %v23828_v8 = vadd.f32 %v17268_v59, %v23778_v56  ;;  %v11425_v60 = vmul.f32 %v23805_v3, %v23805_v3 }
0x19a2   : > { %17032 = vmatprep.subr.bf16.mxu1 %v24904_v36 }
0x19a3   : > { %v16457_v22 = vpop.f32.mrb[16].mxu0  ;;  %v11426_v61 = vmul.f32 %v23811_v45, %v23811_v45  ;;  %v11428_v32 = vmul.f32 %v23828_v8, %v23828_v8 }
0x19a4   : > { %v11160_v1 = vpop.f32.mrb[17].mxu0  ;;  %16486 = vmatmul.mubr.msk.f32.gmra.mrb[76].mxu1 %vm1928_vm2, %v23811_v45  ;;  %v17274_v44 = vadd.f32 %v23773_v30, %v16457_v22  ;;  %v17715_v22 = vld [vmem:[#allocation2 + $0x350] sm:$0xff]  }
0x19a5   : > { %v17277_v63 = vadd.f32 %v23773_v30, %v11160_v1  ;;  %v16458_v19 = vpop.f32.mrb[18].mxu0  ;;  %16488 = vmatprep.mubr.msk.f32.mxu1 %vm1928_vm2, %v23819_v35  ;;  %17034 = vmatpush3.bf16.msra.mxu1 %v24904_v36  ;;  %v17716_v1 = vld [vmem:[#allocation2 + $0x358] sm:$0xff]  }
0x19a6   : > { %v11163_v27 = vpop.f32.mrb[19].mxu0  ;;  %17036 = vmatprep.subr.bf16.mxu1 %v24905_v54  ;;  %v17280_v36 = vadd.f32 %v23773_v30, %v16458_v19  ;;  %v23846_v14 = vadd.f32 %v17274_v44, %v23778_v56  ;;  %16543 = vmatprep.subr.bf16.mxu0 %v17715_v22  ;;  %v17718_v19 = vld [vmem:[#allocation2 + $0x368] sm:$0xff]  }
0x19a7   : > { %v23833_v55 = vadd.f32 %v17277_v63, %v23778_v56  ;;  %v17283_v38 = vadd.f32 %v23773_v30, %v11163_v27  ;;  %16544 = vmatpush3.bf16.msra.mxu0 %v17715_v22  ;;  %v17717_v63 = vld [vmem:[#allocation2 + $0x360] sm:$0xff]   ;;  %v23929_v27 = vld [vmem:[#allocation2 + $0x370] sm:$0xff]  }
0x19a8   : > { %16489 = vmatmul.mubr.msk.f32.gmra.mrb[78].mxu1 %vm1928_vm2, %v23828_v8  ;;  %v23854_v46 = vadd.f32 %v17280_v36, %v23778_v56  ;;  %v11431_v37 = vmul.f32 %v23846_v14, %v23846_v14  ;;  %16545 = vmatprep.subr.bf16.mxu0 %v17716_v1 }
0x19a9   : > { %v23839_v41 = vadd.f32 %v17283_v38, %v23778_v56  ;;  %16491 = vmatprep.mubr.msk.f32.mxu1 %vm1928_vm2, %v23833_v55  ;;  %17038 = vmatpush3.bf16.msra.mxu1 %v24905_v54  ;;  %v11429_v53 = vmul.f32 %v23833_v55, %v23833_v55 }
0x19aa   : > { %v11432_v21 = vmul.f32 %v23854_v46, %v23854_v46 }
0x19ab   : > { %v16461_v52 = vpop.f32.mrb[20].mxu0  ;;  %v11430_v15 = vmul.f32 %v23839_v41, %v23839_v41  ;;  %16546 = vmatpush3.bf16.msra.mxu0 %v17716_v1 }
0x19ac   : > { %v11176_v48 = vpop.f32.mrb[21].mxu0  ;;  %16492 = vmatmul.mubr.msk.f32.gmra.mrb[80].mxu1 %vm1928_vm2, %v23839_v41  ;;  %v17286_v25 = vadd.f32 %v23773_v30, %v16461_v52  ;;  %16547 = vmatprep.subr.bf16.mxu0 %v17717_v63 }
0x19ad   : > { %v17289_v17 = vadd.f32 %v23773_v30, %v11176_v48  ;;  %v16462_v42 = vpop.f32.mrb[22].mxu0  ;;  %16494 = vmatprep.mubr.msk.f32.mxu1 %vm1928_vm2, %v23846_v14 }
0x19ae   : > { %v11179_v54 = vpop.f32.mrb[23].mxu0  ;;  %v17292_v34 = vadd.f32 %v23773_v30, %v16462_v42  ;;  %v23870_v13 = vadd.f32 %v17286_v25, %v23778_v56 }
0x19af   : > { %v23858_v29 = vadd.f32 %v17289_v17, %v23778_v56  ;;  %v17295_v62 = vadd.f32 %v23773_v30, %v11179_v54  ;;  %v11422_v30 = vmul.f32 %v23785_v24, %v23785_v24  ;;  %16548 = vmatpush3.bf16.msra.mxu0 %v17717_v63 }
0x19b0   : > { %16495 = vmatmul.mubr.msk.f32.gmra.mrb[82].mxu1 %vm1928_vm2, %v23854_v46  ;;  %v23877_v18 = vadd.f32 %v17292_v34, %v23778_v56  ;;  %v11435_v58 = vmul.f32 %v23870_v13, %v23870_v13  ;;  %16549 = vmatprep.subr.bf16.mxu0 %v17718_v19 }
0x19b1   : > { %v23864_v26 = vadd.f32 %v17295_v62, %v23778_v56  ;;  %16497 = vmatprep.mubr.msk.f32.mxu1 %vm1928_vm2, %v23858_v29  ;;  %v11424_v56 = vmul.f32 %v23800_v20, %v23800_v20  ;;  %v11433_v33 = vmul.f32 %v23858_v29, %v23858_v29 }
0x19b2   : > { %v11436_v59 = vmul.f32 %v23877_v18, %v23877_v18 }
0x19b3   : > { %v11434_v57 = vmul.f32 %v23864_v26, %v23864_v26  ;;  %16550 = vmatpush3.bf16.msra.mxu0 %v17718_v19 }
0x19b4   : > { %16498 = vmatmul.mubr.msk.f32.gmra.mrb[84].mxu1 %vm1928_vm2, %v23864_v26  ;;  %16567 = vmatprep.subr.bf16.mxu0 %v23929_v27 }
0x19b5   : > { %16500 = vmatprep.mubr.msk.f32.mxu1 %vm1928_vm2, %v23870_v13 }
0x19b8   : > { %16501 = vmatmul.mubr.msk.f32.gmra.mrb[86].mxu1 %vm1928_vm2, %v23877_v18 }
0x19b9   : > { %16519 = vmatprep.mubr.msk.f32.mxu1 %vm1928_vm2, %v11421_v4 }
0x19bc   : > { %16520 = vmatmul.mubr.msk.f32.vlgmr.msra.gmra.mrb[88].mxu1 %vm1928_vm2, %v11422_v30 }
0x19bd   : > { %16522 = vmatprep.mubr.msk.f32.mxu1 %vm1928_vm2, %v11423_v40  ;;  %v17725_v40 = vld [vmem:[#allocation2 + $0x3a0] sm:$0xff]  }
0x19be   : > { %16595 = vmatprep.subr.bf16.mxu1 %v17725_v40 }
0x19bf   : > { %16596 = vmatpush3.bf16.msra.mxu1 %v17725_v40 }
0x19c0   : > { %16523 = vmatmul.mubr.msk.f32.gmra.mrb[90].mxu1 %vm1928_vm2, %v11424_v56  ;;  %v17726_v56 = vld [vmem:[#allocation2 + $0x3a8] sm:$0xff]  }
0x19c1   : > { %16525 = vmatprep.mubr.msk.f32.mxu1 %vm1928_vm2, %v11425_v60  ;;  %16597 = vmatprep.subr.bf16.mxu1 %v17726_v56 }
0x19c3   : > { %16598 = vmatpush3.bf16.msra.mxu1 %v17726_v56 }
0x19c4   : > { %16526 = vmatmul.mubr.msk.f32.gmra.mrb[92].mxu1 %vm1928_vm2, %v11426_v61 }
0x19c5   : > { %16528 = vmatprep.mubr.msk.f32.mxu1 %vm1928_vm2, %v11427_v28  ;;  %v17727_v28 = vld [vmem:[#allocation2 + $0x3b0] sm:$0xff]  }
0x19c6   : > { %16599 = vmatprep.subr.bf16.mxu1 %v17727_v28 }
0x19c7   : > { %16600 = vmatpush3.bf16.msra.mxu1 %v17727_v28 }
0x19c8   : > { %16529 = vmatmul.mubr.msk.f32.gmra.mrb[94].mxu1 %vm1928_vm2, %v11428_v32 }
0x19c9   : > { %16531 = vmatprep.mubr.msk.f32.mxu1 %vm1928_vm2, %v11429_v53 }
0x19cc   : > { %16532 = vmatmul.mubr.msk.f32.gmra.mrb[96].mxu1 %vm1928_vm2, %v11430_v15 }
0x19cd   : > { %16534 = vmatprep.mubr.msk.f32.mxu1 %vm1928_vm2, %v11431_v37 }
0x19d0   : > { %16535 = vmatmul.mubr.msk.f32.gmra.mrb[98].mxu1 %vm1928_vm2, %v11432_v21 }
0x19d1   : > { %16537 = vmatprep.mubr.msk.f32.mxu1 %vm1928_vm2, %v11433_v33 }
0x19d4   : > { %16538 = vmatmul.mubr.msk.f32.gmra.mrb[100].mxu1 %vm1928_vm2, %v11434_v57 }
0x19d5   : > { %16540 = vmatprep.mubr.msk.f32.mxu1 %vm1928_vm2, %v11435_v58 }
0x19d8   : > { %16541 = vmatmul.mubr.msk.f32.gmra.mrb[102].mxu1 %vm1928_vm2, %v11436_v59 }
0x1a6f   : > { %v23932_v44 = vpop.f32.mrb[72].mxu1 }
0x1a70   : > { %v23934_v38 = vpop.f32.mrb[73].mxu1  ;;  %v11631_v53 = vmul.f32 %v23932_v44, %v23932_v44 }
0x1a71   : > { %v11630_v15 = vmul.f32 %v23934_v38, %v23934_v38 }
0x1a73   : > { %v23936_v36 = vpop.f32.mrb[74].mxu1 }
0x1a74   : > { %v23938_v52 = vpop.f32.mrb[75].mxu1  ;;  %v11633_v58 = vmul.f32 %v23936_v36, %v23936_v36 }
0x1a75   : > { %v11632_v22 = vmul.f32 %v23938_v52, %v23938_v52 }
0x1a77   : > { %v23940_v48 = vpop.f32.mrb[76].mxu1 }
0x1a78   : > { %v23942_v17 = vpop.f32.mrb[77].mxu1 }
0x1a7b   : > { %v23944_v42 = vpop.f32.mrb[78].mxu1 }
0x1a7c   : > { %v23946_v54 = vpop.f32.mrb[79].mxu1 }
0x1a7f   : > { %v23948_v25 = vpop.f32.mrb[80].mxu1 }
0x1a80   : > { %v23950_v62 = vpop.f32.mrb[81].mxu1 }
0x1a83   : > { %v23952_v34 = vpop.f32.mrb[82].mxu1 }
0x1a84   : > { %v23954_v4 = vpop.f32.mrb[83].mxu1 }
0x1a87   : > { %v23956_v30 = vpop.f32.mrb[84].mxu1 }
0x1a88   : > { %v23958_v60 = vpop.f32.mrb[85].mxu1 }
0x1a8b   : > { %v23960_v61 = vpop.f32.mrb[86].mxu1 }
0x1a8c   : > { %v23962_v32 = vpop.f32.mrb[87].mxu1 }
0x1a8f   : > { %v16521_v37 = vpop.f32.mrb[88].mxu1 }
0x1a90   : > { %v11647_v21 = vsub.f32 %v16521_v37, %v11631_v53  ;;  %v11551_v33 = vpop.f32.mrb[89].mxu1  ;;  %v11635_v53 = vmul.f32 %v23940_v48, %v23940_v48  ;;  %v11634_v37 = vmul.f32 %v23942_v17, %v23942_v17 }
0x1a91   : > { %v11646_v57 = vsub.f32 %v11551_v33, %v11630_v15  ;;  %v11679_v33 = vsub.f32 %v23785_v24, %v23932_v44  ;;  %v11636_v44 = vmul.f32 %v23946_v54, %v23946_v54 }
0x1a92   : > { %v11663_v59 = vmax.f32 %v11647_v21, 0.0 }
0x1a93   : > { %v11662_v1 = vmax.f32 %v11646_v57, 0.0  ;;  %v16524_v63 = vpop.f32.mrb[90].mxu1 }
0x1a94   : > { %v11695_v19 = vadd.f32 1e-05, %v11663_v59  ;;  %v11649_v40 = vsub.f32 %v16524_v63, %v11633_v58  ;;  %v11561_v56 = vpop.f32.mrb[91].mxu1 }
0x1a95   : > { %v11694_v10 = vadd.f32 1e-05, %v11662_v1  ;;  %v11648_v6 = vsub.f32 %v11561_v56, %v11632_v22  ;;  %v11678_v22 = vsub.f32 %v23782_v7, %v23934_v38  ;;  %v11681_v1 = vsub.f32 %v23800_v20, %v23936_v36  ;;  %v24022_v20 = vld [vmem:[%s24499_s4 + $0x3d] ss:$0 sm:$0xff] }
0x1a96   : > { %18731 = vrsqrt.f32 %v11695_v19  ;;  %v11665_v15 = vmax.f32 %v11649_v40, 0.0  ;;  %v11680_v40 = vsub.f32 %v23789_v31, %v23938_v52 }
0x1a97   : > { %18733 = vrsqrt.f32 %v11694_v10  ;;  %v11664_v28 = vmax.f32 %v11648_v6, 0.0  ;;  %v16527_v21 = vpop.f32.mrb[92].mxu1  ;;  %v11637_v6 = vmul.f32 %v23944_v42, %v23944_v42 }
0x1a98   : > { %v11697_v57 = vadd.f32 1e-05, %v11665_v15  ;;  %v11651_v59 = vsub.f32 %v16527_v21, %v11635_v53  ;;  %v11571_v58 = vpop.f32.mrb[93].mxu1  ;;  %v11639_v15 = vmul.f32 %v23948_v25, %v23948_v25 }
0x1a99   : > { %v11696_v63 = vadd.f32 1e-05, %v11664_v28  ;;  %v11650_v19 = vsub.f32 %v11571_v58, %v11634_v37 }
0x1a9a   : > { %18735 = vrsqrt.f32 %v11697_v57  ;;  %v11667_v10 = vmax.f32 %v11651_v59, 0.0  ;;  %v11638_v57 = vmul.f32 %v23950_v62, %v23950_v62 }
0x1a9b   : > { %18737 = vrsqrt.f32 %v11696_v63  ;;  %v11666_v7 = vmax.f32 %v11650_v19, 0.0  ;;  %v16530_v38 = vpop.f32.mrb[94].mxu1  ;;  %v11641_v63 = vmul.f32 %v23952_v34, %v23952_v34 }
0x1a9c   : > { %v11699_v36 = vadd.f32 1e-05, %v11667_v10  ;;  %v11653_v52 = vsub.f32 %v16530_v38, %v11637_v6  ;;  %v11581_v56 = vpop.f32.mrb[95].mxu1  ;;  %v24013_v38 = vld [vmem:[%s24499_s4 + $0x3c] ss:$0 sm:$0xff] }
0x1a9d   : > { %v11698_v37 = vadd.f32 1e-05, %v11666_v7  ;;  %v11652_v28 = vsub.f32 %v11581_v56, %v11636_v44  ;;  %v11640_v7 = vmul.f32 %v23954_v4, %v23954_v4  ;;  %v11642_v44 = vmul.f32 %v23958_v60, %v23958_v60 }
0x1a9e   : > { %18739 = vrsqrt.f32 %v11699_v36  ;;  %v11669_v59 = vmax.f32 %v11653_v52, 0.0 }
0x1a9f   : > { %18741 = vrsqrt.f32 %v11698_v37  ;;  %v11668_v19 = vmax.f32 %v11652_v28, 0.0  ;;  %v16533_v6 = vpop.f32.mrb[96].mxu1  ;;  %v11643_v37 = vmul.f32 %v23956_v30, %v23956_v30 }
0x1aa0   : > { %v18732_v10 = vpop.eup %18731  ;;  %v11701_v36 = vadd.f32 1e-05, %v11669_v59  ;;  %v11655_v52 = vsub.f32 %v16533_v6, %v11639_v15  ;;  %v11591_v56 = vpop.f32.mrb[97].mxu1  ;;  %v11645_v15 = vmul.f32 %v23960_v61, %v23960_v61 }
0x1aa1   : > { %v18734_v58 = vpop.eup %18733  ;;  %v11727_v28 = vmul.f32 %v18732_v10, %v11679_v33  ;;  %v11700_v21 = vadd.f32 1e-05, %v11668_v19  ;;  %v11654_v53 = vsub.f32 %v11591_v56, %v11638_v57  ;;  %v11644_v19 = vmul.f32 %v23962_v32, %v23962_v32 }
0x1aa2   : > { %v11726_v31 = vmul.f32 %v18734_v58, %v11678_v22  ;;  %18743 = vrsqrt.f32 %v11701_v36  ;;  %v11671_v59 = vmax.f32 %v11655_v52, 0.0 }
0x1aa3   : > { %18745 = vrsqrt.f32 %v11700_v21  ;;  %v11670_v6 = vmax.f32 %v11654_v53, 0.0  ;;  %v16536_v24 = vpop.f32.mrb[98].mxu1  ;;  %v11748_v33 = vmul.f32 %v24013_v38, %v11727_v28 }
0x1aa4   : > { %v18736_v57 = vpop.eup %18735  ;;  %v11703_v22 = vadd.f32 1e-05, %v11671_v59  ;;  %v11657_v58 = vsub.f32 %v16536_v24, %v11641_v63  ;;  %v11601_v10 = vpop.f32.mrb[99].mxu1  ;;  %v11747_v56 = vmul.f32 %v24013_v38, %v11726_v31 }
0x1aa5   : > { %v18738_v16 = vpop.eup %18737  ;;  %v11729_v36 = vmul.f32 %v18736_v57, %v11681_v1  ;;  %v11702_v52 = vadd.f32 1e-05, %v11670_v6  ;;  %v11656_v50 = vsub.f32 %v11601_v10, %v11640_v7  ;;  %v24031_v0 = vadd.f32 %v24022_v20, %v11748_v33 }
0x1aa6   : > { %v11728_v53 = vmul.f32 %v18738_v16, %v11680_v40  ;;  %18747 = vrsqrt.f32 %v11703_v22  ;;  %v11673_v21 = vmax.f32 %v11657_v58, 0.0  ;;  %v24034_v28 = vadd.f32 %v24022_v20, %v11747_v56 }
0x1aa7   : > { %v11750_v39 = vmul.f32 %v24013_v38, %v11729_v36  ;;  %18749 = vrsqrt.f32 %v11702_v52  ;;  %v11672_v24 = vmax.f32 %v11656_v50, 0.0  ;;  %v16539_v63 = vpop.f32.mrb[100].mxu1  ;;  %v14122_v31 = vmul.f32 -1.442695, %v24031_v0 }
0x1aa8   : > { %v18740_v59 = vpop.eup %18739  ;;  %v11749_v1 = vmul.f32 %v24013_v38, %v11728_v53  ;;  %v11705_v7 = vadd.f32 1e-05, %v11673_v21  ;;  %v11659_v6 = vsub.f32 %v16539_v63, %v11643_v37  ;;  %v11611_v33 = vpop.f32.mrb[101].mxu1  ;;  %v14121_v16 = vmul.f32 -1.442695, %v24034_v28 }
0x1aa9   : > { %v18742_v40 = vpop.eup %18741  ;;  %v24041_v57 = vadd.f32 %v24022_v20, %v11750_v39  ;;  %v24919_v22 = vsub.f32 %v23811_v45, %v23940_v48  ;;  %v11704_v50 = vadd.f32 1e-05, %v11672_v24  ;;  %v11658_v10 = vsub.f32 %v11611_v33, %v11642_v44 }
0x1aaa   : > { %v24047_v56 = vadd.f32 %v24022_v20, %v11749_v1  ;;  %v24920_v36 = vsub.f32 %v23805_v3, %v23942_v17  ;;  %18751 = vrsqrt.f32 %v11705_v7  ;;  %v11675_v52 = vmax.f32 %v11659_v6, 0.0 }
0x1aab   : > { %v11731_v58 = vmul.f32 %v18740_v59, %v24919_v22  ;;  %v14124_v53 = vmul.f32 -1.442695, %v24041_v57  ;;  %18753 = vrsqrt.f32 %v11704_v50  ;;  %v11674_v39 = vmax.f32 %v11658_v10, 0.0  ;;  %v16542_v21 = vpop.f32.mrb[102].mxu1 }
0x1aac   : > { %v11730_v37 = vmul.f32 %v18742_v40, %v24920_v36  ;;  %v18744_v45 = vpop.eup %18743  ;;  %v14123_v48 = vmul.f32 -1.442695, %v24047_v56  ;;  %v11707_v44 = vadd.f32 1e-05, %v11675_v52  ;;  %v11661_v24 = vsub.f32 %v16542_v21, %v11645_v15  ;;  %v11621_v59 = vpop.f32.mrb[103].mxu1 }
0x1aad   : > { %v11752_v63 = vmul.f32 %v24013_v38, %v11731_v58  ;;  %18755 = vpow2.f32 %v14121_v16  ;;  %v18746_v1 = vpop.eup %18745  ;;  %v24921_v3 = vsub.f32 %v23828_v8, %v23944_v42  ;;  %v11706_v7 = vadd.f32 1e-05, %v11674_v39 }
0x1aae   : > { %18757 = vpow2.f32 %v14124_v53  ;;  %v11660_v6 = vsub.f32 %v11621_v59, %v11644_v19  ;;  %v24922_v33 = vsub.f32 %v23819_v35, %v23946_v54  ;;  %v11677_v22 = vmax.f32 %v11661_v24, 0.0 }
0x1aaf   : > { %v11733_v17 = vmul.f32 %v18744_v45, %v24921_v3  ;;  %18759 = vpow2.f32 %v14123_v48  ;;  %v11751_v58 = vmul.f32 %v24013_v38, %v11730_v37  ;;  %v24064_v50 = vadd.f32 %v24022_v20, %v11752_v63 }
0x1ab0   : > { %v11732_v40 = vmul.f32 %v18746_v1, %v24922_v33  ;;  %18761 = vrsqrt.f32 %v11707_v44  ;;  %v11676_v16 = vmax.f32 %v11660_v6, 0.0  ;;  %v18748_v10 = vpop.eup %18747  ;;  %v11709_v42 = vadd.f32 1e-05, %v11677_v22 }
0x1ab1   : > { %v11754_v15 = vmul.f32 %v24013_v38, %v11733_v17  ;;  %18763 = vrsqrt.f32 %v11706_v7  ;;  %v24068_v19 = vadd.f32 %v24022_v20, %v11751_v58  ;;  %v18750_v35 = vpop.eup %18749  ;;  %v24923_v36 = vsub.f32 %v23839_v41, %v23948_v25 }
0x1ab2   : > { %v11753_v8 = vmul.f32 %v24013_v38, %v11732_v40  ;;  %v11708_v52 = vadd.f32 1e-05, %v11676_v16  ;;  %18765 = vpow2.f32 %v14122_v31  ;;  %v24924_v39 = vsub.f32 %v23833_v55, %v23950_v62 }
0x1ab3   : > { %v24071_v54 = vadd.f32 %v24022_v20, %v11754_v15  ;;  %v11735_v37 = vmul.f32 %v18748_v10, %v24923_v36  ;;  %18767 = vrsqrt.f32 %v11709_v42  ;;  %v14125_v63 = vmul.f32 -1.442695, %v24068_v19 }
0x1ab4   : > { %v24077_v53 = vadd.f32 %v24022_v20, %v11753_v8  ;;  %v11734_v21 = vmul.f32 %v18750_v35, %v24924_v39  ;;  %18769 = vrsqrt.f32 %v11708_v52  ;;  %v14126_v48 = vmul.f32 -1.442695, %v24064_v50  ;;  %v18752_v25 = vpop.eup %18751 }
0x1ab5   : > { %v14128_v45 = vmul.f32 -1.442695, %v24071_v54  ;;  %v11756_v41 = vmul.f32 %v24013_v38, %v11735_v37  ;;  %v11688_v31 = vsub.f32 %v23846_v14, %v23954_v4  ;;  %18771 = vpow2.f32 %v14125_v63  ;;  %v18754_v62 = vpop.eup %18753 }
0x1ab6   : > { %v14127_v44 = vmul.f32 -1.442695, %v24077_v53  ;;  %v11755_v55 = vmul.f32 %v24013_v38, %v11734_v21  ;;  %v24925_v24 = vsub.f32 %v23854_v46, %v23952_v34  ;;  %v11691_v3 = vsub.f32 %v23864_v26, %v23956_v30 }
0x1ab7   : > { %18773 = vpow2.f32 %v14128_v45  ;;  %v18756_v1 = vpop.eup %18755  ;;  %v11736_v17 = vmul.f32 %v18754_v62, %v11688_v31  ;;  %v24100_v33 = vadd.f32 %v24022_v20, %v11756_v41  ;;  %v11690_v46 = vsub.f32 %v23858_v29, %v23958_v60 }
0x1ab8   : > { %v11737_v59 = vmul.f32 %v18752_v25, %v24925_v24  ;;  %18775 = vpow2.f32 %v14127_v44  ;;  %v24096_v7 = vadd.f32 %v24022_v20, %v11755_v55  ;;  %v18758_v14 = vpop.eup %18757  ;;  %v11832_v6 = vadd.f32 1.0, %v18756_v1 }
0x1ab9   : > { %18777 = vpow2.f32 %v14126_v48  ;;  %v18760_v40 = vpop.eup %18759  ;;  %v11835_v34 = vadd.f32 1.0, %v18758_v14  ;;  %v11757_v26 = vmul.f32 %v24013_v38, %v11736_v17  ;;  %v11693_v58 = vsub.f32 %v23877_v18, %v23960_v61 }
0x1aba   : > { %v11758_v4 = vmul.f32 %v24013_v38, %v11737_v59  ;;  %v14129_v30 = vmul.f32 -1.442695, %v24096_v7  ;;  %v18762_v22 = vpop.eup %18761  ;;  %v11834_v15 = vadd.f32 1.0, %v18760_v40  ;;  %18779 = vrcp.f32 %v11832_v6 }
0x1abb   : > { %v18764_v10 = vpop.eup %18763  ;;  %v11692_v8 = vsub.f32 %v23870_v13, %v23962_v32  ;;  %18781 = vrcp.f32 %v11835_v34  ;;  %v24114_v29 = vadd.f32 %v24022_v20, %v11757_v26  ;;  %v11739_v60 = vmul.f32 %v18762_v22, %v11691_v3 }
0x1abc   : > { %v24109_v16 = vadd.f32 %v24022_v20, %v11758_v4  ;;  %v18766_v42 = vpop.eup %18765  ;;  %18783 = vrcp.f32 %v11834_v15  ;;  %v11738_v36 = vmul.f32 %v18764_v10, %v11690_v46  ;;  %v14130_v18 = vmul.f32 -1.442695, %v24100_v33 }
0x1abd   : > { %v18768_v61 = vpop.eup %18767  ;;  %v14131_v37 = vmul.f32 -1.442695, %v24114_v29  ;;  %v11833_v52 = vadd.f32 1.0, %v18766_v42  ;;  %18785 = vpow2.f32 %v14129_v30  ;;  %v11760_v39 = vmul.f32 %v24013_v38, %v11739_v60 }
0x1abe   : > { %v14132_v35 = vmul.f32 -1.442695, %v24109_v16  ;;  %v18770_v13 = vpop.eup %18769  ;;  %v11741_v32 = vmul.f32 %v18768_v61, %v11693_v58  ;;  %v11759_v21 = vmul.f32 %v24013_v38, %v11738_v36 }
0x1abf   : > { %v18772_v63 = vpop.eup %18771  ;;  %v11740_v45 = vmul.f32 %v18770_v13, %v11692_v8  ;;  %v24127_v24 = vadd.f32 %v24022_v20, %v11760_v39 }
0x1ac0   : > { %18787 = vpow2.f32 %v14132_v35  ;;  %v11762_v41 = vmul.f32 %v24013_v38, %v11741_v32  ;;  %v11836_v25 = vadd.f32 1.0, %v18772_v63  ;;  %v24123_v31 = vadd.f32 %v24022_v20, %v11759_v21  ;;  %v17720_v21 = vld [vmem:[#allocation2 + $0x378] sm:$0xff]  }
0x1ac1   : > { %18789 = vpow2.f32 %v14131_v37  ;;  %v18774_v48 = vpop.eup %18773  ;;  %v11761_v62 = vmul.f32 %v24013_v38, %v11740_v45  ;;  %v14134_v34 = vmul.f32 -1.442695, %v24127_v24 }
0x1ac2   : > { %18791 = vrcp.f32 %v11833_v52  ;;  %v18776_v44 = vpop.eup %18775  ;;  %v11839_v55 = vadd.f32 1.0, %v18774_v48  ;;  %v24130_v3 = vadd.f32 %v24022_v20, %v11762_v41  ;;  %v14133_v38 = vmul.f32 -1.442695, %v24123_v31 }
0x1ac3   : > { %18793 = vpow2.f32 %v14130_v18  ;;  %v18778_v59 = vpop.eup %18777  ;;  %v11838_v1 = vadd.f32 1.0, %v18776_v44  ;;  %v24133_v17 = vadd.f32 %v24022_v20, %v11761_v62 }
0x1ac4   : > { %18795 = vrcp.f32 %v11836_v25  ;;  %v11837_v14 = vadd.f32 1.0, %v18778_v59  ;;  %v18780_v4 = vpop.eup %18779  ;;  %v14136_v6 = vmul.f32 -1.442695, %v24130_v3 }
0x1ac5   : > { %18797 = vrcp.f32 %v11839_v55  ;;  %v18782_v40 = vpop.eup %18781  ;;  %v14135_v46 = vmul.f32 -1.442695, %v24133_v17  ;;  %v11880_v42 = vmul.f32 %v18780_v4, %v24034_v28  ;;  %v17721_v55 = vld [vmem:[#allocation2 + $0x380] sm:$0xff]  }
0x1ac6   : > { %18799 = vrcp.f32 %v11838_v1  ;;  %v18784_v26 = vpop.eup %18783  ;;  %v11883_v30 = vmul.f32 %v18782_v40, %v24041_v57 }
0x1ac7   : > { %18801 = vrcp.f32 %v11837_v14  ;;  %v18786_v22 = vpop.eup %18785  ;;  %v11882_v20 = vmul.f32 %v18784_v26, %v24047_v56  ;;  %v17723_v26 = vld [vmem:[#allocation2 + $0x390] sm:$0xff]  }
0x1ac8   : > { %18803 = vpow2.f32 %v14136_v6  ;;  %v11840_v15 = vadd.f32 1.0, %v18786_v22 }
0x1ac9   : > { %18805 = vpow2.f32 %v14135_v46  ;;  %v11905_v8 = vpack.c.bf16 %v11883_v30, %v11882_v20 }
0x1aca   : > { %v18788_v58 = vpop.eup %18787  ;;  %18807 = vpow2.f32 %v14133_v38 }
0x1acb   : > { %v18790_v10 = vpop.eup %18789  ;;  %v11843_v60 = vadd.f32 1.0, %v18788_v58  ;;  %18809 = vpow2.f32 %v14134_v34 }
0x1acc   : > { %v18792_v35 = vpop.eup %18791  ;;  %v11842_v36 = vadd.f32 1.0, %v18790_v10  ;;  %18811 = vrcp.f32 %v11840_v15 }
0x1acd   : > { %v18794_v18 = vpop.eup %18793  ;;  %18813 = vrcp.f32 %v11843_v60  ;;  %v11881_v57 = vmul.f32 %v18792_v35, %v24031_v0  ;;  %v24929_v35 = vld [vmem:[#allocation54_spill] sm:$0xff] }
0x1ace   : > { %v18796_v61 = vpop.eup %18795  ;;  %18815 = vrcp.f32 %v11842_v36  ;;  %v11841_v56 = vadd.f32 1.0, %v18794_v18  ;;  %v24931_v36 = vld [vmem:[#allocation64_spill] sm:$0xff]  ;;  %v14150_v18 = vld [vmem:[%s24499_s4 + $0x3f] ss:$0 sm:$0xff] }
0x1acf   : > { %v18798_v37 = vpop.eup %18797  ;;  %v11904_v52 = vpack.c.bf16 %v11881_v57, %v11880_v42  ;;  %v11884_v32 = vmul.f32 %v18796_v61, %v24068_v19  ;;  %v24927_v42 = vld [vmem:[#allocation56_spill] sm:$0xff] }
0x1ad0   : > { %v18800_v39 = vpop.eup %18799  ;;  %v11887_v13 = vmul.f32 %v18798_v37, %v24071_v54  ;;  %18817 = vrcp.f32 %v11841_v56 }
0x1ad1   : > { %v18802_v28 = vpop.eup %18801  ;;  %v11886_v63 = vmul.f32 %v18800_v39, %v24077_v53  ;;  %16551 = vmatprep.mubr.msk.bf16.mxu0 %vm1928_vm2, %v11904_v52 }
0x1ad2   : > { %v18804_v45 = vpop.eup %18803  ;;  %16552 = vmatmul.mubr.msk.bf16.vlgmr.msra.gmra.mrb[24].mxu0 %vm1928_vm2, %v11905_v8  ;;  %v11885_v0 = vmul.f32 %v18802_v28, %v24064_v50 }
0x1ad3   : > { %v18806_v48 = vpop.eup %18805  ;;  %v11907_v41 = vpack.c.bf16 %v11887_v13, %v11886_v63  ;;  %v11847_v25 = vadd.f32 1.0, %v18804_v45  ;;  %16568 = vmatpush3.bf16.msra.mxu0 %v23929_v27  ;;  %v17722_v27 = vld [vmem:[#allocation2 + $0x388] sm:$0xff]  }
0x1ad4   : > { %v18808_v54 = vpop.eup %18807  ;;  %v11846_v44 = vadd.f32 1.0, %v18806_v48  ;;  %v11906_v19 = vpack.c.bf16 %v11885_v0, %v11884_v32  ;;  %16569 = vmatprep.subr.bf16.mxu0 %v17720_v21  ;;  %v17730_v48 = vld [vmem:[#allocation2 + $0x428] sm:$0xff]  }
0x1ad5   : > { %v18810_v62 = vpop.eup %18809  ;;  %18819 = vrcp.f32 %v11847_v25  ;;  %v11844_v53 = vadd.f32 1.0, %v18808_v54 }
0x1ad6   : > { %v18812_v59 = vpop.eup %18811  ;;  %18821 = vrcp.f32 %v11846_v44  ;;  %16555 = vmatprep.mubr.msk.bf16.mxu0 %vm1928_vm2, %v11906_v19  ;;  %v11845_v1 = vadd.f32 1.0, %v18810_v62  ;;  %v17731_v62 = vld [vmem:[#allocation2 + $0x430] sm:$0xff]  }
0x1ad7   : > { %v18814_v14 = vpop.eup %18813  ;;  %16570 = vmatpush3.bf16.msra.mxu0 %v17720_v21  ;;  %18823 = vrcp.f32 %v11844_v53  ;;  %v11888_v38 = vmul.f32 %v18812_v59, %v24096_v7 }
0x1ad8   : > { %v18816_v50 = vpop.eup %18815  ;;  %v11891_v4 = vmul.f32 %v18814_v14, %v24109_v16  ;;  %16571 = vmatprep.subr.bf16.mxu0 %v17721_v55  ;;  %18825 = vrcp.f32 %v11845_v1 }
0x1ad9   : > { %v11890_v6 = vmul.f32 %v18816_v50, %v24114_v29  ;;  %v17724_v29 = vld [vmem:[#allocation2 + $0x398] sm:$0xff]  }
0x1ada   : > { %v18818_v40 = vpop.eup %18817  ;;  %16556 = vmatmul.mubr.msk.bf16.gmra.mrb[28].mxu0 %vm1928_vm2, %v11907_v41  ;;  %v17732_v50 = vld [vmem:[#allocation2 + $0x438] sm:$0xff]  }
0x1adb   : > { %v11909_v46 = vpack.c.bf16 %v11891_v4, %v11890_v6  ;;  %16572 = vmatpush3.bf16.msra.mxu0 %v17721_v55  ;;  %v11889_v34 = vmul.f32 %v18818_v40, %v24100_v33 }
0x1adc   : > { %16573 = vmatprep.subr.bf16.mxu0 %v17722_v27 }
0x1add   : > { %v11908_v30 = vpack.c.bf16 %v11889_v34, %v11888_v38 }
0x1adf   : > { %v18820_v22 = vpop.eup %18819  ;;  %16559 = vmatprep.mubr.msk.bf16.mxu0 %vm1928_vm2, %v11908_v30  ;;  %16574 = vmatpush3.bf16.msra.mxu0 %v17722_v27 }
0x1ae0   : > { %v18822_v16 = vpop.eup %18821  ;;  %v11895_v20 = vmul.f32 %v18820_v22, %v24130_v3  ;;  %16575 = vmatprep.subr.bf16.mxu0 %v17723_v26  ;;  %v12074_v3 = vpack.c.bf16 %v23356_v49, %v23359_v5  ;;  %v12078_v49 = vpack.c.bf16 %v23416_v23, %v23410_v47  ;;  %v24926_v5 = vld [vmem:[#allocation43_spill] sm:$0xff]  ;;  %v17729_v47 = vld [vmem:[#allocation2 + $0x420] sm:$0xff]   ;;  %v14137_v23 = vld [vmem:[%s24499_s4 + $0x3e] ss:$0 sm:$0xff] }
0x1ae1   : > { %v18824_v7 = vpop.eup %18823  ;;  %v11894_v58 = vmul.f32 %v18822_v16, %v24133_v17  ;;  %v12075_v17 = vpack.c.bf16 %v23375_v51, %v23367_v43  ;;  %v12079_v43 = vpack.c.bf16 %v24927_v42, %v24926_v5  ;;  %v24928_v51 = vld [vmem:[#allocation52_spill] sm:$0xff]  ;;  %v17303_v57 = vadd.f32 %v14150_v18, %v14137_v23  ;;  %v24205_v5 = vld [vmem:[%s24499_s4 + $0x40] ss:$0 sm:$0xff] }
0x1ae2   : > { %v18826_v15 = vpop.eup %18825  ;;  %16560 = vmatmul.mubr.msk.bf16.gmra.mrb[32].mxu0 %vm1928_vm2, %v11909_v46  ;;  %v11892_v33 = vmul.f32 %v18824_v7, %v24123_v31  ;;  %v12076_v31 = vpack.c.bf16 %v23388_v2, %v23382_v11  ;;  %v12080_v11 = vpack.c.bf16 %v24929_v35, %v24928_v51  ;;  %v24930_v2 = vld [vmem:[#allocation51_spill] sm:$0xff]  ;;  %v17546_v35 = vpop.permute.xlu1 %17545 }
0x1ae3   : > { %v11911_v10 = vpack.c.bf16 %v11895_v20, %v11894_v58  ;;  %v11893_v8 = vmul.f32 %v18826_v15, %v24127_v24  ;;  %16576 = vmatpush3.bf16.msra.mxu0 %v17723_v26  ;;  %v12077_v24 = vpack.c.bf16 %v23403_v9, %v23395_v12  ;;  %v12081_v12 = vpack.c.bf16 %v24931_v36, %v24930_v2  ;;  %v17728_v9 = vld [vmem:[#allocation2 + $0x3b8] sm:$0xff]   ;;  %v17541_v36 = vpop.permute.xlu0 %17540 }
0x1ae4   : > { %16577 = vmatprep.subr.bf16.mxu0 %v17724_v29  ;;  %16601 = vmatprep.subr.bf16.mxu1 %v17728_v9 }
0x1ae5   : > { %v11910_v60 = vpack.c.bf16 %v11893_v8, %v11892_v33  ;;  %16602 = vmatpush3.bf16.msra.mxu1 %v17728_v9 }
0x1ae6   : > { %16619 = vmatprep.subr.bf16.mxu1 %v17729_v47 }
0x1ae7   : > { %16563 = vmatprep.mubr.msk.bf16.mxu0 %vm1928_vm2, %v11910_v60  ;;  %16578 = vmatpush3.bf16.msra.mxu0 %v17724_v29 }
0x1aea   : > { %16564 = vmatmul.mubr.msk.bf16.gmra.mrb[36].mxu0 %vm1928_vm2, %v11911_v10 }
0x1aeb   : > { %16579 = vmatprep.mubr.msk.bf16.mxu0 %vm10206_vm3, %v12074_v3  ;;  %v17733_v3 = vld [vmem:[#allocation2 + $0x440] sm:$0xff]  }
0x1af2   : > { %16580 = vmatmul.mubr.msk.bf16.vlgmr.msra.gmra.mrb[24].mxu0 %vm10206_vm3, %v12075_v17  ;;  %v17734_v17 = vld [vmem:[#allocation2 + $0x448] sm:$0xff]  }
0x1af3   : > { %16583 = vmatprep.mubr.msk.bf16.mxu0 %vm10206_vm3, %v12076_v31  ;;  %v17735_v31 = vld [vmem:[#allocation2 + $0x4a0] sm:$0xff]  }
0x1af4   : > { %16647 = vmatprep.subr.bf16.mxu0 %v17735_v31 }
0x1af5   : > { %16648 = vmatpush3.bf16.msra.mxu0 %v17735_v31 }
0x1afa   : > { %16584 = vmatmul.mubr.msk.bf16.gmra.mrb[28].mxu0 %vm10206_vm3, %v12077_v24  ;;  %v17736_v24 = vld [vmem:[#allocation2 + $0x4a8] sm:$0xff]  }
0x1afb   : > { %16587 = vmatprep.mubr.msk.bf16.mxu0 %vm10206_vm3, %v12078_v49  ;;  %16649 = vmatprep.subr.bf16.mxu0 %v17736_v24  ;;  %v17737_v49 = vld [vmem:[#allocation2 + $0x4b0] sm:$0xff]  }
0x1afc   : > { %16650 = vmatpush3.bf16.msra.mxu0 %v17736_v24 }
0x1afd   : > { %16651 = vmatprep.subr.bf16.mxu0 %v17737_v49 }
0x1b00   : > { %16652 = vmatpush3.bf16.msra.mxu0 %v17737_v49 }
0x1b02   : > { %16588 = vmatmul.mubr.msk.bf16.gmra.mrb[32].mxu0 %vm10206_vm3, %v12079_v43 }
0x1b03   : > { %16591 = vmatprep.mubr.msk.bf16.mxu0 %vm10206_vm3, %v12080_v11 }
0x1b0a   : > { %16592 = vmatmul.mubr.msk.bf16.gmra.mrb[36].mxu0 %vm10206_vm3, %v12081_v12 }
0x1bc5   : > { %v16581_v61 = vpop.f32.mrb[24].mxu0 }
0x1bc6   : > { %v17297_v56 = vadd.f32 %v16581_v61, %v14137_v23  ;;  %v12181_v37 = vpop.f32.mrb[25].mxu0  ;;  %v17547_v61 = vunpack.i.l.bf16 %v17546_v35 }
0x1bc7   : > { %v17299_v52 = vadd.f32 %v14137_v23, %v12181_v37  ;;  %v16582_v39 = vpop.f32.mrb[26].mxu0  ;;  %v17543_v37 = vunpack.i.h.bf16 %v17541_v36 }
0x1bc8   : > { %v17298_v13 = vadd.f32 %v17297_v56, %v14150_v18  ;;  %v17302_v32 = vadd.f32 %v17303_v57, %v16582_v39  ;;  %v12184_v21 = vpop.f32.mrb[27].mxu0 }
0x1bc9   : > { %v17300_v28 = vadd.f32 %v17299_v52, %v14150_v18  ;;  %v17304_v63 = vadd.f32 %v17303_v57, %v12184_v21  ;;  %v17542_v52 = vunpack.i.l.bf16 %v17541_v36 }
0x1bca   : > { %v12269_v45 = vpack.c.bf16 %v17302_v32, %v17298_v13 }
0x1bcb   : > { %v12268_v0 = vpack.c.bf16 %v17304_v63, %v17300_v28 }
0x1bcd   : > { %v16585_v41 = vpop.f32.mrb[28].mxu0  ;;  %16603 = vmatprep.mubr.msk.bf16.mxu1 %vm1928_vm2, %v12268_v0 }
0x1bce   : > { %v12197_v25 = vpop.f32.mrb[29].mxu0  ;;  %16604 = vmatmul.mubr.msk.bf16.vlgmr.msra.gmra.mrb[104].mxu1 %vm1928_vm2, %v12269_v45  ;;  %v17306_v44 = vadd.f32 %v17303_v57, %v16585_v41 }
0x1bcf   : > { %v16586_v54 = vpop.f32.mrb[30].mxu0  ;;  %16620 = vmatpush3.bf16.msra.mxu1 %v17729_v47  ;;  %v17308_v53 = vadd.f32 %v17303_v57, %v12197_v25  ;;  %v17556_v25 = vpop.permute.xlu1 %17555 }
0x1bd0   : > { %v17310_v19 = vadd.f32 %v17303_v57, %v16586_v54  ;;  %v12200_v55 = vpop.f32.mrb[31].mxu0  ;;  %16621 = vmatprep.subr.bf16.mxu1 %v17730_v48 }
0x1bd1   : > { %v17312_v59 = vadd.f32 %v17303_v57, %v12200_v55 }
0x1bd2   : > { %v12271_v1 = vpack.c.bf16 %v17310_v19, %v17306_v44  ;;  %v17551_v19 = vpop.permute.xlu0 %17550 }
0x1bd3   : > { %v12270_v14 = vpack.c.bf16 %v17312_v59, %v17308_v53  ;;  %16622 = vmatpush3.bf16.msra.mxu1 %v17730_v48 }
0x1bd4   : > { %16623 = vmatprep.subr.bf16.mxu1 %v17731_v62 }
0x1bd5   : > { %v16589_v4 = vpop.f32.mrb[32].mxu0  ;;  %16607 = vmatprep.mubr.msk.bf16.mxu1 %vm1928_vm2, %v12270_v14  ;;  %v17558_v14 = vunpack.i.h.bf16 %v17556_v25 }
0x1bd6   : > { %v12213_v27 = vpop.f32.mrb[33].mxu0  ;;  %16608 = vmatmul.mubr.msk.bf16.gmra.mrb[108].mxu1 %vm1928_vm2, %v12271_v1  ;;  %v17314_v38 = vadd.f32 %v17303_v57, %v16589_v4 }
0x1bd7   : > { %v16590_v6 = vpop.f32.mrb[34].mxu0  ;;  %16624 = vmatpush3.bf16.msra.mxu1 %v17731_v62  ;;  %v17316_v34 = vadd.f32 %v17303_v57, %v12213_v27  ;;  %v17553_v27 = vunpack.i.h.bf16 %v17551_v19 }
0x1bd8   : > { %v17318_v40 = vadd.f32 %v17303_v57, %v16590_v6  ;;  %v12216_v46 = vpop.f32.mrb[35].mxu0  ;;  %16625 = vmatprep.subr.bf16.mxu1 %v17732_v50  ;;  %v17552_v6 = vunpack.i.l.bf16 %v17551_v19 }
0x1bd9   : > { %v17320_v26 = vadd.f32 %v17303_v57, %v12216_v46 }
0x1bda   : > { %v12273_v30 = vpack.c.bf16 %v17318_v40, %v17314_v38 }
0x1bdb   : > { %v12272_v22 = vpack.c.bf16 %v17320_v26, %v17316_v34  ;;  %16626 = vmatpush3.bf16.msra.mxu1 %v17732_v50  ;;  %v17557_v50 = vunpack.i.l.bf16 %v17556_v25 }
0x1bdc   : > { %16627 = vmatprep.subr.bf16.mxu1 %v17733_v3 }
0x1bdd   : > { %v16593_v16 = vpop.f32.mrb[36].mxu0  ;;  %16611 = vmatprep.mubr.msk.bf16.mxu1 %vm1928_vm2, %v12272_v22 }
0x1bde   : > { %v12229_v20 = vpop.f32.mrb[37].mxu0  ;;  %16612 = vmatmul.mubr.msk.bf16.gmra.mrb[112].mxu1 %vm1928_vm2, %v12273_v30  ;;  %v17322_v7 = vadd.f32 %v17303_v57, %v16593_v16 }
0x1bdf   : > { %v16594_v29 = vpop.f32.mrb[38].mxu0  ;;  %v17324_v33 = vadd.f32 %v17303_v57, %v12229_v20  ;;  %16628 = vmatpush3.bf16.msra.mxu1 %v17733_v3 }
0x1be0   : > { %v17326_v58 = vadd.f32 %v17303_v57, %v16594_v29  ;;  %v12232_v15 = vpop.f32.mrb[39].mxu0  ;;  %16629 = vmatprep.subr.bf16.mxu1 %v17734_v17 }
0x1be1   : > { %v17328_v10 = vadd.f32 %v17303_v57, %v12232_v15  ;;  %v17548_v57 = vunpack.i.h.bf16 %v17546_v35 }
0x1be2   : > { %v12275_v8 = vpack.c.bf16 %v17326_v58, %v17322_v7  ;;  %v17566_v7 = vpop.permute.xlu1 %17565 }
0x1be3   : > { %v12274_v60 = vpack.c.bf16 %v17328_v10, %v17324_v33  ;;  %16630 = vmatpush3.bf16.msra.mxu1 %v17734_v17  ;;  %v17561_v33 = vpop.permute.xlu0 %17560  ;;  %v17568_v31 = vunpack.i.h.bf16 %v17566_v7  ;;  %v17567_v24 = vunpack.i.l.bf16 %v17566_v7 }
0x1be5   : > { %16615 = vmatprep.mubr.msk.bf16.mxu1 %vm1928_vm2, %v12274_v60 }
0x1be6   : > { %16616 = vmatmul.mubr.msk.bf16.gmra.mrb[116].mxu1 %vm1928_vm2, %v12275_v8 }
0x1ca1   : > { %v16605_v42 = vpop.f32.mrb[104].mxu1 }
0x1ca2   : > { %v12372_v43 = vadd.f32 %v16605_v42, %v24205_v5  ;;  %v12363_v51 = vpop.f32.mrb[105].mxu1  ;;  %v17563_v42 = vunpack.i.h.bf16 %v17561_v33 }
0x1ca3   : > { %v12364_v11 = vadd.f32 %v24205_v5, %v12363_v51  ;;  %v16606_v2 = vpop.f32.mrb[106].mxu1 }
0x1ca4   : > { %v12428_v12 = vmax.f32 %v12372_v43, 0.0  ;;  %v12375_v9 = vadd.f32 %v16606_v2, %v24205_v5  ;;  %v12366_v47 = vpop.f32.mrb[107].mxu1  ;;  %v17562_v43 = vunpack.i.l.bf16 %v17561_v33 }
0x1ca5   : > { %v12426_v23 = vmax.f32 %v12364_v11, 0.0  ;;  %v12367_v18 = vadd.f32 %v24205_v5, %v12366_v47 }
0x1ca6   : > { %v12429_v56 = vmax.f32 %v12375_v9, 0.0  ;;  %v12508_v13 = vsel %vm1928_vm2, %v12428_v12, %v17547_v61 }
0x1ca7   : > { %v12427_v39 = vmax.f32 %v12367_v18, 0.0  ;;  %v12506_v21 = vsel %vm1928_vm2, %v12426_v23, %v17542_v52 }
0x1ca8   : > { %v12509_v32 = vsel %vm1928_vm2, %v12429_v56, %v17548_v57  ;;  %v17576_v57 = vpop.permute.xlu1 %17575 }
0x1ca9   : > { %v12535_v28 = vpack.c.bf16 %v12509_v32, %v12508_v13  ;;  %v12507_v63 = vsel %vm1928_vm2, %v12427_v39, %v17543_v37  ;;  %v16609_v45 = vpop.f32.mrb[108].mxu1  ;;  %v17571_v37 = vpop.permute.xlu0 %17570 }
0x1caa   : > { %v12534_v0 = vpack.c.bf16 %v12507_v63, %v12506_v21  ;;  %v12388_v48 = vadd.f32 %v16609_v45, %v24205_v5  ;;  %v12379_v41 = vpop.f32.mrb[109].mxu1  ;;  %v17577_v63 = vunpack.i.l.bf16 %v17576_v57 }
0x1cab   : > { %v12380_v54 = vadd.f32 %v24205_v5, %v12379_v41  ;;  %v16610_v44 = vpop.f32.mrb[110].mxu1 }
0x1cac   : > { %v12432_v55 = vmax.f32 %v12388_v48, 0.0  ;;  %v12391_v62 = vadd.f32 %v16610_v44, %v24205_v5  ;;  %v12382_v53 = vpop.f32.mrb[111].mxu1  ;;  %16631 = vmatprep.mubr.msk.bf16.mxu1 %vm10206_vm3, %v12534_v0  ;;  %v17573_v0 = vunpack.i.h.bf16 %v17571_v37  ;;  %v17572_v48 = vunpack.i.l.bf16 %v17571_v37 }
0x1cad   : > { %v12430_v59 = vmax.f32 %v12380_v54, 0.0  ;;  %v12383_v1 = vadd.f32 %v24205_v5, %v12382_v53  ;;  %16632 = vmatmul.mubr.msk.bf16.vlgmr.msra.gmra.mrb[120].mxu1 %vm10206_vm3, %v12535_v28  ;;  %v17578_v28 = vunpack.i.h.bf16 %v17576_v57  ;;  %v24250_v53 = vld [vmem:[%s24499_s4 + $0x48] ss:$0 sm:$0xff] }
0x1cae   : > { %v12433_v4 = vmax.f32 %v12391_v62, 0.0  ;;  %v12512_v40 = vsel %vm1928_vm2, %v12432_v55, %v17557_v50 }
0x1caf   : > { %v12431_v38 = vmax.f32 %v12383_v1, 0.0  ;;  %v12510_v34 = vsel %vm1928_vm2, %v12430_v59, %v17552_v6  ;;  %v24255_v1 = vld [vmem:[%s24499_s4 + $0x49] ss:$0 sm:$0xff] }
0x1cb0   : > { %v12513_v46 = vsel %vm1928_vm2, %v12433_v4, %v17558_v14  ;;  %v17586_v4 = vpop.permute.xlu1 %17585 }
0x1cb1   : > { %v12537_v26 = vpack.c.bf16 %v12513_v46, %v12512_v40  ;;  %v12511_v30 = vsel %vm1928_vm2, %v12431_v38, %v17553_v27  ;;  %v16613_v22 = vpop.f32.mrb[112].mxu1  ;;  %v17581_v38 = vpop.permute.xlu0 %17580 }
0x1cb2   : > { %v12536_v16 = vpack.c.bf16 %v12511_v30, %v12510_v34  ;;  %v12404_v20 = vadd.f32 %v16613_v22, %v24205_v5  ;;  %v12395_v29 = vpop.f32.mrb[113].mxu1  ;;  %v17588_v22 = vunpack.i.h.bf16 %v17586_v4  ;;  %v17582_v7 = vunpack.i.l.bf16 %v17581_v38 }
0x1cb3   : > { %v12396_v58 = vadd.f32 %v24205_v5, %v12395_v29  ;;  %v16614_v15 = vpop.f32.mrb[114].mxu1  ;;  %v17583_v29 = vunpack.i.h.bf16 %v17581_v38 }
0x1cb4   : > { %v12436_v10 = vmax.f32 %v12404_v20, 0.0  ;;  %v12407_v8 = vadd.f32 %v16614_v15, %v24205_v5  ;;  %v12398_v60 = vpop.f32.mrb[115].mxu1  ;;  %16635 = vmatprep.mubr.msk.bf16.mxu1 %vm10206_vm3, %v12536_v16  ;;  %v17587_v16 = vunpack.i.l.bf16 %v17586_v4 }
0x1cb5   : > { %v12434_v3 = vmax.f32 %v12396_v58, 0.0  ;;  %v12399_v17 = vadd.f32 %v24205_v5, %v12398_v60  ;;  %16636 = vmatmul.mubr.msk.bf16.gmra.mrb[124].mxu1 %vm10206_vm3, %v12537_v26 }
0x1cb6   : > { %v12437_v49 = vmax.f32 %v12407_v8, 0.0  ;;  %v12516_v35 = vsel %vm1928_vm2, %v12436_v10, %v17567_v24 }
0x1cb7   : > { %v12435_v51 = vmax.f32 %v12399_v17, 0.0  ;;  %v12514_v2 = vsel %vm1928_vm2, %v12434_v3, %v17562_v43 }
0x1cb8   : > { %v12517_v11 = vsel %vm1928_vm2, %v12437_v49, %v17568_v31  ;;  %v17596_v49 = vpop.permute.xlu1 %17595 }
0x1cb9   : > { %v12539_v36 = vpack.c.bf16 %v12517_v11, %v12516_v35  ;;  %v12515_v12 = vsel %vm1928_vm2, %v12435_v51, %v17563_v42  ;;  %v16617_v9 = vpop.f32.mrb[116].mxu1  ;;  %v17591_v51 = vpop.permute.xlu0 %17590 }
0x1cba   : > { %v12538_v47 = vpack.c.bf16 %v12515_v12, %v12514_v2  ;;  %v12420_v23 = vadd.f32 %v16617_v9, %v24205_v5  ;;  %v12411_v18 = vpop.f32.mrb[117].mxu1  ;;  %v17598_v9 = vunpack.i.h.bf16 %v17596_v49  ;;  %v17592_v57 = vunpack.i.l.bf16 %v17591_v51 }
0x1cbb   : > { %v12412_v61 = vadd.f32 %v24205_v5, %v12411_v18  ;;  %v16618_v56 = vpop.f32.mrb[118].mxu1  ;;  %v17593_v18 = vunpack.i.h.bf16 %v17591_v51 }
0x1cbc   : > { %v12440_v52 = vmax.f32 %v12420_v23, 0.0  ;;  %v12423_v39 = vadd.f32 %v16618_v56, %v24205_v5  ;;  %v12414_v13 = vpop.f32.mrb[119].mxu1  ;;  %16639 = vmatprep.mubr.msk.bf16.mxu1 %vm10206_vm3, %v12538_v47  ;;  %v17597_v47 = vunpack.i.l.bf16 %v17596_v49 }
0x1cbd   : > { %v12438_v32 = vmax.f32 %v12412_v61, 0.0  ;;  %v12415_v21 = vadd.f32 %v24205_v5, %v12414_v13  ;;  %16640 = vmatmul.mubr.msk.bf16.gmra.mrb[128].mxu1 %vm10206_vm3, %v12539_v36  ;;  %v17738_v5 = vld [vmem:[#allocation2 + $0x4b8] sm:$0xff]  }
0x1cbe   : > { %v12441_v45 = vmax.f32 %v12423_v39, 0.0  ;;  %v12520_v25 = vsel %vm1928_vm2, %v12440_v52, %v17577_v63  ;;  %16653 = vmatprep.subr.bf16.mxu0 %v17738_v5 }
0x1cbf   : > { %v12439_v41 = vmax.f32 %v12415_v21, 0.0  ;;  %v12518_v44 = vsel %vm1928_vm2, %v12438_v32, %v17572_v48  ;;  %16654 = vmatpush3.bf16.msra.mxu0 %v17738_v5 }
0x1cc0   : > { %v12521_v54 = vsel %vm1928_vm2, %v12441_v45, %v17578_v28  ;;  %v17606_v45 = vpop.permute.xlu1 %17605 }
0x1cc1   : > { %v12541_v19 = vpack.c.bf16 %v12521_v54, %v12520_v25  ;;  %v12519_v55 = vsel %vm1928_vm2, %v12439_v41, %v17573_v0  ;;  %v17601_v41 = vpop.permute.xlu0 %17600  ;;  %v17607_v5 = vunpack.i.l.bf16 %v17606_v45 }
0x1cc2   : > { %v12540_v62 = vpack.c.bf16 %v12519_v55, %v12518_v44 }
0x1cc4   : > { %16643 = vmatprep.mubr.msk.bf16.mxu1 %vm10206_vm3, %v12540_v62  ;;  %v17608_v62 = vunpack.i.h.bf16 %v17606_v45 }
0x1cc5   : > { %16644 = vmatmul.mubr.msk.bf16.gmra.mrb[132].mxu1 %vm10206_vm3, %v12541_v19 }
0x1d80   : > { %v16633_v59 = vpop.f32.mrb[120].mxu1 }
0x1d81   : > { %v12650_v14 = vadd.f32 %v16633_v59, %v24250_v53  ;;  %v12641_v50 = vpop.f32.mrb[121].mxu1 }
0x1d82   : > { %v12642_v27 = vadd.f32 %v24250_v53, %v12641_v50  ;;  %v16634_v6 = vpop.f32.mrb[122].mxu1  ;;  %v17602_v50 = vunpack.i.l.bf16 %v17601_v41 }
0x1d83   : > { %v12711_v40 = vadd.f32 %v24255_v1, %v12650_v14  ;;  %v12653_v46 = vadd.f32 %v16634_v6, %v24250_v53  ;;  %v12644_v34 = vpop.f32.mrb[123].mxu1  ;;  %v17603_v14 = vunpack.i.h.bf16 %v17601_v41 }
0x1d84   : > { %v12709_v26 = vadd.f32 %v24255_v1, %v12642_v27  ;;  %v12645_v30 = vadd.f32 %v24250_v53, %v12644_v34 }
0x1d85   : > { %v12712_v20 = vadd.f32 %v24255_v1, %v12653_v46  ;;  %v12791_v15 = vsel %vm549_vm1, %v12711_v40, %v17587_v16  ;;  %v17616_v16 = vpop.permute.xlu1 %17615 }
0x1d86   : > { %v12710_v58 = vadd.f32 %v24255_v1, %v12645_v30  ;;  %v12789_v10 = vsel %vm549_vm1, %v12709_v26, %v17582_v7  ;;  %v17611_v7 = vpop.permute.xlu0 %17610 }
0x1d87   : > { %v12792_v33 = vsel %vm549_vm1, %v12712_v20, %v17588_v22 }
0x1d88   : > { %v12814_v8 = vpack.c.bf16 %v12792_v33, %v12791_v15  ;;  %v12790_v60 = vsel %vm549_vm1, %v12710_v58, %v17583_v29  ;;  %v16637_v3 = vpop.f32.mrb[124].mxu1 }
0x1d89   : > { %v12666_v17 = vadd.f32 %v16637_v3, %v24250_v53  ;;  %v12657_v31 = vpop.f32.mrb[125].mxu1  ;;  %v12813_v24 = vpack.c.bf16 %v12790_v60, %v12789_v10  ;;  %v17618_v60 = vunpack.i.h.bf16 %v17616_v16  ;;  %v17617_v3 = vunpack.i.l.bf16 %v17616_v16 }
0x1d8a   : > { %v12658_v42 = vadd.f32 %v24250_v53, %v12657_v31  ;;  %v16638_v43 = vpop.f32.mrb[126].mxu1  ;;  %v17613_v31 = vunpack.i.h.bf16 %v17611_v7 }
0x1d8b   : > { %v12715_v35 = vadd.f32 %v24255_v1, %v12666_v17  ;;  %v12669_v11 = vadd.f32 %v16638_v43, %v24250_v53  ;;  %v12660_v2 = vpop.f32.mrb[127].mxu1  ;;  %16655 = vmatprep.mubr.msk.bf16.mxu0 %vm1928_vm2, %v12813_v24  ;;  %v17612_v24 = vunpack.i.l.bf16 %v17611_v7 }
0x1d8c   : > { %v12713_v36 = vadd.f32 %v24255_v1, %v12658_v42  ;;  %v12661_v12 = vadd.f32 %v24250_v53, %v12660_v2  ;;  %16656 = vmatmul.mubr.msk.bf16.vlgmr.msra.gmra.mrb[40].mxu0 %vm1928_vm2, %v12814_v8  ;;  %v14194_v2 = vld [vmem:[%s24499_s4 + $0x51] ss:$0 sm:$0xff] }
0x1d8d   : > { %v12716_v23 = vadd.f32 %v24255_v1, %v12669_v11  ;;  %v12795_v56 = vsel %vm549_vm1, %v12715_v35, %v17597_v47 }
0x1d8e   : > { %v12714_v61 = vadd.f32 %v24255_v1, %v12661_v12  ;;  %v12793_v52 = vsel %vm549_vm1, %v12713_v36, %v17592_v57 }
0x1d8f   : > { %v12796_v37 = vsel %vm549_vm1, %v12716_v23, %v17598_v9 }
0x1d90   : > { %v12816_v39 = vpack.c.bf16 %v12796_v37, %v12795_v56  ;;  %v12794_v13 = vsel %vm549_vm1, %v12714_v61, %v17593_v18  ;;  %v16641_v32 = vpop.f32.mrb[128].mxu1 }
0x1d91   : > { %v12682_v21 = vadd.f32 %v16641_v32, %v24250_v53  ;;  %v12673_v28 = vpop.f32.mrb[129].mxu1  ;;  %v12815_v63 = vpack.c.bf16 %v12794_v13, %v12793_v52 }
0x1d92   : > { %v12674_v0 = vadd.f32 %v24250_v53, %v12673_v28  ;;  %v16642_v48 = vpop.f32.mrb[130].mxu1 }
0x1d93   : > { %v12719_v25 = vadd.f32 %v24255_v1, %v12682_v21  ;;  %v12685_v54 = vadd.f32 %v16642_v48, %v24250_v53  ;;  %v12676_v44 = vpop.f32.mrb[131].mxu1  ;;  %16659 = vmatprep.mubr.msk.bf16.mxu0 %vm1928_vm2, %v12815_v63 }
0x1d94   : > { %v12717_v19 = vadd.f32 %v24255_v1, %v12674_v0  ;;  %v12677_v55 = vadd.f32 %v24250_v53, %v12676_v44  ;;  %16660 = vmatmul.mubr.msk.bf16.gmra.mrb[44].mxu0 %vm1928_vm2, %v12816_v39 }
0x1d95   : > { %v12720_v59 = vadd.f32 %v24255_v1, %v12685_v54  ;;  %v12799_v27 = vsel %vm549_vm1, %v12719_v25, %v17607_v5 }
0x1d96   : > { %v12718_v4 = vadd.f32 %v24255_v1, %v12677_v55  ;;  %v12797_v38 = vsel %vm549_vm1, %v12717_v19, %v17602_v50 }
0x1d97   : > { %v12800_v6 = vsel %vm549_vm1, %v12720_v59, %v17608_v62 }
0x1d98   : > { %v12818_v40 = vpack.c.bf16 %v12800_v6, %v12799_v27  ;;  %v12798_v46 = vsel %vm549_vm1, %v12718_v4, %v17603_v14  ;;  %v16645_v34 = vpop.f32.mrb[132].mxu1 }
0x1d99   : > { %v12698_v26 = vadd.f32 %v16645_v34, %v24250_v53  ;;  %v12689_v30 = vpop.f32.mrb[133].mxu1  ;;  %v12817_v22 = vpack.c.bf16 %v12798_v46, %v12797_v38 }
0x1d9a   : > { %v12690_v20 = vadd.f32 %v24250_v53, %v12689_v30  ;;  %v16646_v29 = vpop.f32.mrb[134].mxu1 }
0x1d9b   : > { %v12723_v58 = vadd.f32 %v24255_v1, %v12698_v26  ;;  %v12701_v15 = vadd.f32 %v16646_v29, %v24250_v53  ;;  %v12692_v33 = vpop.f32.mrb[135].mxu1  ;;  %16663 = vmatprep.mubr.msk.bf16.mxu0 %vm1928_vm2, %v12817_v22 }
0x1d9c   : > { %v12721_v10 = vadd.f32 %v24255_v1, %v12690_v20  ;;  %v12693_v8 = vadd.f32 %v24250_v53, %v12692_v33  ;;  %16664 = vmatmul.mubr.msk.bf16.gmra.mrb[48].mxu0 %vm1928_vm2, %v12818_v40 }
0x1d9d   : > { %v12724_v17 = vadd.f32 %v24255_v1, %v12701_v15  ;;  %v12803_v42 = vsel %vm549_vm1, %v12723_v58, %v17617_v3 }
0x1d9e   : > { %v12722_v49 = vadd.f32 %v24255_v1, %v12693_v8  ;;  %v12801_v51 = vsel %vm549_vm1, %v12721_v10, %v17612_v24  ;;  %v14207_v1 = vld [vmem:[%s24499_s4 + $0x52] ss:$0 sm:$0xff]  ;;  %v13014_v10 = vpop.permute.xlu0 %13013  ;;  %v13016_v8 = vpop.permute.xlu1 %13015 }
0x1d9f   : > { %v12804_v43 = vsel %vm549_vm1, %v12724_v17, %v17618_v60 }
0x1da0   : > { %v12820_v35 = vpack.c.bf16 %v12804_v43, %v12803_v42  ;;  %v12802_v11 = vsel %vm549_vm1, %v12722_v49, %v17613_v31 }
0x1da1   : > { %v12819_v53 = vpack.c.bf16 %v12802_v11, %v12801_v51 }
0x1da2   : > { %v13018_v60 = vpop.permute.xlu0 %13017  ;;  %v13020_v3 = vpop.permute.xlu1 %13019 }
0x1da3   : > { %16667 = vmatprep.mubr.msk.bf16.mxu0 %vm1928_vm2, %v12819_v53 }
0x1da4   : > { %16668 = vmatmul.mubr.msk.bf16.gmra.mrb[52].mxu0 %vm1928_vm2, %v12820_v35 }
0x1da6   : > { %v13022_v17 = vpop.permute.xlu0 %13021  ;;  %v13024_v31 = vpop.permute.xlu1 %13023 }
0x1daa   : > { %v13026_v24 = vpop.permute.xlu0 %13025  ;;  %v13028_v49 = vpop.permute.xlu1 %13027 }
0x1dae   : > { %v24335_v42 = vpop.permute.xlu0 %13029  ;;  %v24337_v43 = vpop.permute.xlu1 %13031 }
0x1db2   : > { %v13034_v51 = vpop.permute.xlu0 %13033  ;;  %v13036_v35 = vpop.permute.xlu1 %13035 }
0x1db6   : > { %v24339_v11 = vpop.permute.xlu0 %13037  ;;  %v24341_v53 = vpop.permute.xlu1 %13039 }
0x1e5f   : > { %v16657_v36 = vpop.f32.mrb[40].mxu0 }
0x1e60   : > { %v12917_v12 = vadd.f32 %v16657_v36, %v14194_v2  ;;  %v12908_v9 = vpop.f32.mrb[41].mxu0  ;;  %v24348_v36 = vpop.permute.xlu1 %13043 }
0x1e61   : > { %v16658_v47 = vpop.f32.mrb[42].mxu0  ;;  %v12909_v18 = vadd.f32 %v14194_v2, %v12908_v9 }
0x1e62   : > { %v12978_v23 = vadd.f32 %v14207_v1, %v12917_v12  ;;  %v12920_v57 = vadd.f32 %v16658_v47, %v14194_v2  ;;  %v12911_v61 = vpop.f32.mrb[43].mxu0 }
0x1e63   : > { %v12912_v37 = vadd.f32 %v14194_v2, %v12911_v61  ;;  %v12976_v52 = vadd.f32 %v14207_v1, %v12909_v18 }
0x1e64   : > { %v12979_v56 = vadd.f32 %v14207_v1, %v12920_v57  ;;  %13081 = vrot.lane.b32.xlu0 %v12978_v23, %s18929_s29 }
0x1e65   : > { %v12977_v13 = vadd.f32 %v14207_v1, %v12912_v37 }
0x1e66   : > { %13083 = vrot.lane.b32.xlu1 %v12979_v56, %s18929_s29 }
0x1e67   : > { %v16661_v39 = vpop.f32.mrb[44].mxu0 }
0x1e68   : > { %v12933_v32 = vadd.f32 %v16661_v39, %v14194_v2  ;;  %v12924_v21 = vpop.f32.mrb[45].mxu0  ;;  %13077 = vrot.lane.b32.xlu0 %v12976_v52, %s18929_s29 }
0x1e69   : > { %v16662_v28 = vpop.f32.mrb[46].mxu0  ;;  %v12925_v45 = vadd.f32 %v14194_v2, %v12924_v21 }
0x1e6a   : > { %v12982_v63 = vadd.f32 %v14207_v1, %v12933_v32  ;;  %v12936_v0 = vadd.f32 %v16662_v28, %v14194_v2  ;;  %v12927_v48 = vpop.f32.mrb[47].mxu0  ;;  %13079 = vrot.lane.b32.xlu1 %v12977_v13, %s18929_s29 }
0x1e6b   : > { %v12928_v25 = vadd.f32 %v14194_v2, %v12927_v48  ;;  %v12980_v54 = vadd.f32 %v14207_v1, %v12925_v45 }
0x1e6c   : > { %v12983_v41 = vadd.f32 %v14207_v1, %v12936_v0  ;;  %13089 = vrot.lane.b32.xlu0 %v12982_v63, %s18929_s29 }
0x1e6d   : > { %v12981_v19 = vadd.f32 %v14207_v1, %v12928_v25 }
0x1e6e   : > { %13091 = vrot.lane.b32.xlu1 %v12983_v41, %s18929_s29 }
0x1e6f   : > { %v16665_v44 = vpop.f32.mrb[48].mxu0 }
0x1e70   : > { %v12949_v55 = vadd.f32 %v16665_v44, %v14194_v2  ;;  %v12940_v62 = vpop.f32.mrb[49].mxu0  ;;  %13085 = vrot.lane.b32.xlu0 %v12980_v54, %s18929_s29 }
0x1e71   : > { %v16666_v5 = vpop.f32.mrb[50].mxu0  ;;  %v12941_v14 = vadd.f32 %v14194_v2, %v12940_v62 }
0x1e72   : > { %v12986_v59 = vadd.f32 %v14207_v1, %v12949_v55  ;;  %v12952_v50 = vadd.f32 %v16666_v5, %v14194_v2  ;;  %v12943_v4 = vpop.f32.mrb[51].mxu0  ;;  %13087 = vrot.lane.b32.xlu1 %v12981_v19, %s18929_s29 }
0x1e73   : > { %v12944_v6 = vadd.f32 %v14194_v2, %v12943_v4  ;;  %v12984_v38 = vadd.f32 %v14207_v1, %v12941_v14 }
0x1e74   : > { %v12987_v27 = vadd.f32 %v14207_v1, %v12952_v50  ;;  %13097 = vrot.lane.b32.xlu0 %v12986_v59, %s18929_s29 }
0x1e75   : > { %v12985_v46 = vadd.f32 %v14207_v1, %v12944_v6 }
0x1e76   : > { %13099 = vrot.lane.b32.xlu1 %v12987_v27, %s18929_s29 }
0x1e77   : > { %v16669_v40 = vpop.f32.mrb[52].mxu0 }
0x1e78   : > { %13093 = vrot.lane.b32.xlu0 %v12984_v38, %s18929_s29  ;;  %v12956_v34 = vpop.f32.mrb[53].mxu0  ;;  %v12965_v16 = vadd.f32 %v16669_v40, %v14194_v2 }
0x1e79   : > { %v12957_v26 = vadd.f32 %v14194_v2, %v12956_v34  ;;  %v16670_v30 = vpop.f32.mrb[54].mxu0 }
0x1e7a   : > { %13095 = vrot.lane.b32.xlu1 %v12985_v46, %s18929_s29  ;;  %v12959_v22 = vpop.f32.mrb[55].mxu0  ;;  %v12968_v7 = vadd.f32 %v16670_v30, %v14194_v2  ;;  %v12990_v15 = vadd.f32 %v14207_v1, %v12965_v16 }
0x1e7b   : > { %v12988_v20 = vadd.f32 %v14207_v1, %v12957_v26  ;;  %v12960_v29 = vadd.f32 %v14194_v2, %v12959_v22  ;;  %v24344_v2 = vpop.permute.xlu0 %13041 }
0x1e7c   : > { %v12991_v33 = vadd.f32 %v14207_v1, %v12968_v7 }
0x1e7d   : > { %v12989_v58 = vadd.f32 %v14207_v1, %v12960_v29  ;;  %13101 = vrot.lane.b32.xlu0 %v12988_v20, %s18929_s29  ;;  %v24353_v1 = vld [vmem:[%s24499_s4 + $0x55] ss:$0 sm:$0xff] }
0x1e7e   : > { %v13127_v12 = vsel %vm382_vm0, %v24353_v1, %v13018_v60  ;;  %v13128_v23 = vsel %vm382_vm0, %v24353_v1, %v13020_v3  ;;  %v13125_v56 = vsel %vm382_vm0, %v24353_v1, %v13014_v10  ;;  %v13126_v13 = vsel %vm382_vm0, %v24353_v1, %v13016_v8 }
0x1e7f   : > { %13103 = vrot.lane.b32.xlu1 %v12989_v58, %s18929_s29  ;;  %v13131_v63 = vsel %vm382_vm0, %v24353_v1, %v13026_v24  ;;  %v13132_v41 = vsel %vm382_vm0, %v24353_v1, %v13028_v49  ;;  %v13129_v19 = vsel %vm382_vm0, %v24353_v1, %v13022_v17  ;;  %v13130_v59 = vsel %vm382_vm0, %v24353_v1, %v13024_v31 }
0x1e80   : > { %v13135_v27 = vsel %vm382_vm0, %v24353_v1, %v13034_v51  ;;  %v13136_v46 = vsel %vm382_vm0, %v24353_v1, %v13036_v35  ;;  %v13133_v22 = vsel %vm382_vm0, %v24353_v1, %v24335_v42  ;;  %v13134_v7 = vsel %vm382_vm0, %v24353_v1, %v24337_v43 }
0x1e81   : > { %13105 = vrot.lane.b32.xlu0 %v12990_v15, %s18929_s29  ;;  %v13137_v8 = vsel %vm382_vm0, %v24353_v1, %v24339_v11  ;;  %v13138_v17 = vsel %vm382_vm0, %v24353_v1, %v24341_v53  ;;  %v13139_v42 = vsel %vm382_vm0, %v24353_v1, %v24344_v2  ;;  %v13140_v11 = vsel %vm382_vm0, %v24353_v1, %v24348_v36 }
0x1e83   : > { %13107 = vrot.lane.b32.xlu1 %v12991_v33, %s18929_s29 }
0x1ed6   : > { %v13082_v9 = vpop.permute.xlu0 %13081 }
0x1ed7   : > { %v13144_v47 = vsel %vm13141_vm4, %v13127_v12, %v13082_v9 }
0x1ed8   : > { %v13161_v18 = vsel %vm13158_vm5, %v13144_v47, 0.0  ;;  %v13084_v57 = vpop.permute.xlu1 %13083 }
0x1ed9   : > { %13177 = vst [vmem:[%s24361_s14 + $0x10] sm:$0xff] %v13161_v18  ;;  %v13145_v61 = vsel %vm13141_vm4, %v13128_v23, %v13084_v57 }
0x1eda   : > { %v13162_v37 = vsel %vm13158_vm5, %v13145_v61, 0.0  ;;  %v13078_v52 = vpop.permute.xlu0 %13077 }
0x1edb   : > { %13178 = vst [vmem:[%s24361_s14 + $0x18] sm:$0xff] %v13162_v37  ;;  %v13142_v39 = vsel %vm13141_vm4, %v13125_v56, %v13078_v52 }
0x1edc   : > { %v13159_v32 = vsel %vm13158_vm5, %v13142_v39, 0.0  ;;  %v13080_v21 = vpop.permute.xlu1 %13079 }
0x1edd   : > { %13175 = vst [vmem:[%s24361_s14] sm:$0xff] %v13159_v32  ;;  %v13143_v28 = vsel %vm13141_vm4, %v13126_v13, %v13080_v21 }
0x1ede   : > { %v13160_v45 = vsel %vm13158_vm5, %v13143_v28, 0.0  ;;  %v13090_v0 = vpop.permute.xlu0 %13089 }
0x1edf   : > { %13176 = vst [vmem:[%s24361_s14 + $0x8] sm:$0xff] %v13160_v45  ;;  %v13148_v48 = vsel %vm13141_vm4, %v13131_v63, %v13090_v0 }
0x1ee0   : > { %v13165_v25 = vsel %vm13158_vm5, %v13148_v48, 0.0  ;;  %v13092_v54 = vpop.permute.xlu1 %13091 }
0x1ee1   : > { %13181 = vst [vmem:[%s24361_s14 + $0x30] sm:$0xff] %v13165_v25  ;;  %v13149_v44 = vsel %vm13141_vm4, %v13132_v41, %v13092_v54 }
0x1ee2   : > { %v13166_v55 = vsel %vm13158_vm5, %v13149_v44, 0.0  ;;  %v13086_v62 = vpop.permute.xlu0 %13085 }
0x1ee3   : > { %13182 = vst [vmem:[%s24361_s14 + $0x38] sm:$0xff] %v13166_v55  ;;  %v13146_v5 = vsel %vm13141_vm4, %v13129_v19, %v13086_v62 }
0x1ee4   : > { %v13163_v14 = vsel %vm13158_vm5, %v13146_v5, 0.0  ;;  %v13088_v50 = vpop.permute.xlu1 %13087 }
0x1ee5   : > { %13179 = vst [vmem:[%s24361_s14 + $0x20] sm:$0xff] %v13163_v14  ;;  %v13147_v4 = vsel %vm13141_vm4, %v13130_v59, %v13088_v50 }
0x1ee6   : > { %v13164_v6 = vsel %vm13158_vm5, %v13147_v4, 0.0  ;;  %v13098_v38 = vpop.permute.xlu0 %13097 }
0x1ee7   : > { %13180 = vst [vmem:[%s24361_s14 + $0x28] sm:$0xff] %v13164_v6  ;;  %v13152_v40 = vsel %vm13141_vm4, %v13135_v27, %v13098_v38 }
0x1ee8   : > { %v13169_v34 = vsel %vm13158_vm5, %v13152_v40, 0.0  ;;  %v13100_v26 = vpop.permute.xlu1 %13099 }
0x1ee9   : > { %13185 = vst [vmem:[%s24361_s14 + $0x50] sm:$0xff] %v13169_v34  ;;  %v13153_v30 = vsel %vm13141_vm4, %v13136_v46, %v13100_v26 }
0x1eea   : > { %v13170_v16 = vsel %vm13158_vm5, %v13153_v30, 0.0  ;;  %v13094_v20 = vpop.permute.xlu0 %13093 }
0x1eeb   : > { %13186 = vst [vmem:[%s24361_s14 + $0x58] sm:$0xff] %v13170_v16  ;;  %v13150_v29 = vsel %vm13141_vm4, %v13133_v22, %v13094_v20 }
0x1eec   : > { %v13167_v58 = vsel %vm13158_vm5, %v13150_v29, 0.0  ;;  %v13096_v15 = vpop.permute.xlu1 %13095 }
0x1eed   : > { %13183 = vst [vmem:[%s24361_s14 + $0x40] sm:$0xff] %v13167_v58  ;;  %v13151_v33 = vsel %vm13141_vm4, %v13134_v7, %v13096_v15 }
0x1eee   : > { %v13168_v10 = vsel %vm13158_vm5, %v13151_v33, 0.0 }
0x1eef   : > { %13184 = vst [vmem:[%s24361_s14 + $0x48] sm:$0xff] %v13168_v10  ;;  %v13102_v60 = vpop.permute.xlu0 %13101 }
0x1ef0   : > { %v13154_v3 = vsel %vm13141_vm4, %v13137_v8, %v13102_v60 }
0x1ef1   : > { %v13171_v31 = vsel %vm13158_vm5, %v13154_v3, 0.0  ;;  %v13104_v24 = vpop.permute.xlu1 %13103 }
0x1ef2   : > { %13187 = vst [vmem:[%s24361_s14 + $0x60] sm:$0xff] %v13171_v31  ;;  %v13155_v49 = vsel %vm13141_vm4, %v13138_v17, %v13104_v24 }
0x1ef3   : > { %v13172_v43 = vsel %vm13158_vm5, %v13155_v49, 0.0  ;;  %v13106_v51 = vpop.permute.xlu0 %13105 }
0x1ef4   : > { %13188 = vst [vmem:[%s24361_s14 + $0x68] sm:$0xff] %v13172_v43  ;;  %v13156_v35 = vsel %vm13141_vm4, %v13139_v42, %v13106_v51 }
0x1ef5   : > { %v13173_v53 = vsel %vm13158_vm5, %v13156_v35, 0.0  ;;  %v13108_v12 = vpop.permute.xlu1 %13107 }
0x1ef6   : > { %13189 = vst [vmem:[%s24361_s14 + $0x70] sm:$0xff] %v13173_v53  ;;  %v13157_v2 = vsel %vm13141_vm4, %v13140_v11, %v13108_v12 }
0x1ef7   : > { %v13174_v9 = vsel %vm13158_vm5, %v13157_v2, 0.0 }
0x1ef8   : > { %13190 = vst [vmem:[%s24361_s14 + $0x78] sm:$0xff] %v13174_v9 }
0x1ef9   : > { %18868 = shalt.err (!%p18865_p7)
}
0x1efa   : > { %s18869_s29 = scalar_lea.hbm %s24444_s17, 2048  ;;  %s18873_s12 = scalar_lea.hbm %s24501_s6, 4096 }
0x1efb   : > { %p18870_p8 = scmp.ne.s32.totalorder %s24444_s17, %s18869_s29  ;;  %p18874_p1 = scmp.lt.u32.totalorder %s24444_s17, %s24501_s6 }
0x1efc   : > { %p18875_p0 = scmp.lt.u32.totalorder %s18873_s12, %s18869_s29  ;;  %p18877_p6 = scmp.lt.u32.totalorder %s18869_s29, %s24444_s17 }
0x1efd   : > { %p18871_p11 = pnand %p18870_p8, %p24932_p9 }
0x1efe   : > { %p18876_p5 = por %p18875_p0, %p18874_p1 }
0x1eff   : > { %p18872_p13 = pneg %p18871_p11 }
0x1f00   : > { %p18878_p10 = por %p18877_p6, %p18876_p5 }
0x1f02   : > { %p18879_p12 = pnand %p18878_p10, %p18872_p13 }
0x1f04   : > { %18882 = shalt.err (!%p18879_p12)
}
0x1f05   : > { %s18931_s15 = smov 128   ;;  %s18932_s25 = smov 8  }
0x1f06   : > { %17445 = dma.vmem_to_hbm [thread:$0]  (%p24932_p9), %s24446_s9, 2048, %s24444_s17, %s24454_s18, %s18931_s15, %s18931_s15, %s18932_s25  }
0x1f07 PF: > { %p17457_p2 = scmp.ge.s32.totalorder %s18921_s24, 2  ;;  %s13220_s16 = sand.u32 1, %s18909_s21  }
0x1f08   : > { %p24933_p3 = scmp.ne.s32.totalorder %s24628_s8, 0  ;;  %s13221_s19 = scalar_lea.sflag [#allocation4], %s13220_s16 }
0x1f0a   : > { %p17452_p4 = pnand %p17457_p2, %p24933_p3 }
0x1f0c   : > { %18904 = dma.done.wait (!%p17452_p4), %s13221_s19, 2048  }
0x1f0d   : > { %18906 = vsyncadd (!%p17452_p4), %s13221_s19, 4294965248  ;;  %p17_p7 = scmp.ge.s32.totalorder %s18993_s27, 4   ;;  %s24934_s21 = smov %s18913_s22 }
0x1f0e   : > { %s24935_s22 = smov %s18917_s23  ;;  %s24936_s23 = smov %s19004_s30 }
0x1f0f   : > { %s24937_s24 = smov %s18993_s27  ;;  %19 = sbr.rel (!%p17_p7) target bundleno = 4 (0x4), region = 90 }
0x1f16   :  { %13226 = vsyncpa [#allocation3], 1 }
0x1f17   :  { %13228 = vsyncpa [#allocation3 + $0x1], 1 }
0x1f18   :  { %13229 = vsyncpa [#allocation4], 1 }
0x1f19   :  { %13231 = vsyncpa [#allocation4 + $0x1], 1 }

</bundles_post_ra>
